<compile_context>
chip_gen: v7x
topology: tpu7x:2x2x1
jax: 0.10.0
libtpu: 0.0.40
codegen_flags: <defaults>
</compile_context>

<pallas_src>
import functools

import jax
import jax.numpy as jnp
from jax import lax
from jax.experimental import pallas as pl
from jax.experimental.pallas import tpu as pltpu


# ----------------------------------------------------------------------------
# Pallas kernel: one image per grid step (grid axis is "parallel"), fused
#   1x1 expand conv (BN scale folded) + bias + ReLU
#   3x3 depthwise conv (pad=1, stride, BN scale folded) + bias + ReLU
#   1x1 project conv (BN scale folded) + bias
#   optional residual add
# ----------------------------------------------------------------------------
def _inverted_residual_kernel(x_ref, w1_ref, b1_ref, wdw_ref, b2_ref,
                              w3_ref, b3_ref, o_ref, hp_ref,
                              *, H, W, stride, use_res):
    Chid = w1_ref.shape[0]
    Ho = (H + 2 - 3) // stride + 1
    Wo = (W + 2 - 3) // stride + 1

    x = x_ref[0]                                           # [Cin, H*W] lane-dense

    # ---- 1) pointwise expand (1x1 conv, scale folded) + bias + ReLU ---------
    h = jnp.dot(w1_ref[...], x, preferred_element_type=jnp.float32)  # [Chid, H*W]
    h = jnp.maximum(h + b1_ref[...], 0.0)

    # ---- 2) depthwise 3x3 conv, pad=1, stride, + bias + ReLU ----------------
    # VMEM scratch holds the spatially padded activation. Zero it every step
    # (cheap; keeps correctness when the grid is sharded across TensorCores),
    # then write the interior.
    hp_ref[...] = jnp.zeros_like(hp_ref)
    hp_ref[:, 1:H + 1, 1:W + 1] = h.reshape(Chid, H, W)

    wdw = wdw_ref[...]                                     # [Chid, 9], hoisted
    acc = jnp.zeros((Chid, Ho, Wo), jnp.float32)
    for kh in range(3):
        for kw in range(3):
            if stride == 1:
                win = hp_ref[:, kh:kh + Ho, kw:kw + Wo]
            else:
                win = hp_ref[:, kh:kh + (Ho - 1) * stride + 1,
                                kw:kw + (Wo - 1) * stride + 1]
                win = win[:, ::stride, ::stride]
            tap = wdw[:, kh * 3 + kw:kh * 3 + kw + 1][:, :, None]   # [Chid,1,1]
            acc = acc + win * tap

    d = acc.reshape(Chid, Ho * Wo)
    d = jnp.maximum(d + b2_ref[...], 0.0)

    # ---- 3) pointwise project (1x1 conv, scale folded) + bias (no ReLU) -----
    y = jnp.dot(w3_ref[...], d, preferred_element_type=jnp.float32)  # [Cout, Ho*Wo]
    y = y + b3_ref[...]

    # ---- 4) residual ---------------------------------------------------------
    if use_res:
        y = y + x

    o_ref[0] = y                                           # lane-dense store


# ----------------------------------------------------------------------------
# Wrapper: NCHW in / NCHW out (PyTorch convention), no transposes.
# ----------------------------------------------------------------------------
def inverted_residual_pallas(x_nchw, params, *, stride, use_res):
    w1, s1, b1, wdw, s2, b2, w3, s3, b3 = params
    N, Cin, H, W = x_nchw.shape
    Chid = w1.shape[1]
    Cout = w3.shape[1]
    Ho = (H + 2 - 3) // stride + 1
    Wo = (W + 2 - 3) // stride + 1

    # Fold BN scales into the (tiny) weights here; biases stay as adds.
    w1f = (w1.T * s1.reshape(Chid, 1)).astype(jnp.float32)             # [Chid, Cin]
    b1f = b1.reshape(Chid, 1).astype(jnp.float32)
    wdwf = (jnp.transpose(wdw, (2, 0, 1)).reshape(Chid, 9)
            * s2.reshape(Chid, 1)).astype(jnp.float32)                 # [Chid, 9]
    b2f = b2.reshape(Chid, 1).astype(jnp.float32)
    w3f = (w3.T * s3.reshape(Cout, 1)).astype(jnp.float32)             # [Cout, Chid]
    b3f = b3.reshape(Cout, 1).astype(jnp.float32)

    # Free reshape (contiguous view) instead of an HBM transpose pass.
    x_flat = x_nchw.astype(jnp.float32).reshape(N, Cin, H * W)

    kernel = functools.partial(_inverted_residual_kernel, H=H, W=W,
                               stride=stride, use_res=use_res)

    out = pl.pallas_call(
        kernel,
        out_shape=jax.ShapeDtypeStruct((N, Cout, Ho * Wo), jnp.float32),
        grid_spec=pltpu.PrefetchScalarGridSpec(
            num_scalar_prefetch=0,
            grid=(N,),
            in_specs=[
                pl.BlockSpec((1, Cin, H * W), lambda n: (n, 0, 0)),   # x
                pl.BlockSpec((Chid, Cin),     lambda n: (0, 0)),      # w1 (folded)
                pl.BlockSpec((Chid, 1),       lambda n: (0, 0)),      # b1
                pl.BlockSpec((Chid, 9),       lambda n: (0, 0)),      # wdw (folded)
                pl.BlockSpec((Chid, 1),       lambda n: (0, 0)),      # b2
                pl.BlockSpec((Cout, Chid),    lambda n: (0, 0)),      # w3 (folded)
                pl.BlockSpec((Cout, 1),       lambda n: (0, 0)),      # b3
            ],
            out_specs=pl.BlockSpec((1, Cout, Ho * Wo), lambda n: (n, 0, 0)),
            scratch_shapes=[pltpu.VMEM((Chid, H + 2, W + 2), jnp.float32)],
        ),
        compiler_params=pltpu.CompilerParams(
            dimension_semantics=("parallel",)),
    )(x_flat, w1f, b1f, wdwf, b2f, w3f, b3f)

    return out.reshape(N, Cout, Ho, Wo)                    # free reshape to NCHW


# ----------------------------------------------------------------------------
# Deterministic parameter construction (folded BN, eval mode)
# ----------------------------------------------------------------------------
def make_params(key, inp, oup, expand_ratio):
    hidden = round(inp * expand_ratio)
    eps = 1e-5
    keys = jax.random.split(key, 15)

    def folded_bn(k0, k1, k2, k3, c):
        gamma = 1.0 + 0.1 * jax.random.normal(k0, (c,), jnp.float32)
        beta = 0.1 * jax.random.normal(k1, (c,), jnp.float32)
        mean = 0.1 * jax.random.normal(k2, (c,), jnp.float32)
        var = jnp.abs(jax.random.normal(k3, (c,), jnp.float32)) + 0.5
        scale = gamma / jnp.sqrt(var + eps)
        bias = beta - mean * scale
        return scale.reshape(1, c), bias.reshape(1, c)

    # expand 1x1 conv:  torch weight [hidden, inp, 1, 1]  -> [inp, hidden]
    w1 = 0.1 * jax.random.normal(keys[0], (inp, hidden), jnp.float32)
    s1, b1 = folded_bn(keys[1], keys[2], keys[3], keys[4], hidden)
    # depthwise 3x3 conv: torch weight [hidden, 1, 3, 3]  -> [3, 3, hidden]
    wdw = 0.1 * jax.random.normal(keys[5], (3, 3, hidden), jnp.float32)
    s2, b2 = folded_bn(keys[6], keys[7], keys[8], keys[9], hidden)
    # project 1x1 conv: torch weight [oup, hidden, 1, 1]  -> [hidden, oup]
    w3 = 0.1 * jax.random.normal(keys[10], (hidden, oup), jnp.float32)
    s3, b3 = folded_bn(keys[11], keys[12], keys[13], keys[14], oup)

    return (w1, s1, b1, wdw, s2, b2, w3, s3, b3)


# ----------------------------------------------------------------------------
# Pure-JAX reference (lax convs) for correctness check
# ----------------------------------------------------------------------------
def inverted_residual_ref(x_nchw, params, *, stride, use_res):
    w1, s1, b1, wdw, s2, b2, w3, s3, b3 = params
    hidden = w1.shape[1]

    def bn(x, s, b):
        return x * s.reshape(1, -1, 1, 1) + b.reshape(1, -1, 1, 1)

    w1_oihw = jnp.transpose(w1, (1, 0))[:, :, None, None]
    h = lax.conv_general_dilated(x_nchw, w1_oihw, (1, 1), 'VALID')
    h = jnp.maximum(bn(h, s1, b1), 0.0)

    wdw_oihw = jnp.transpose(wdw, (2, 0, 1))[:, None, :, :]
    d = lax.conv_general_dilated(h, wdw_oihw, (stride, stride),
                                 ((1, 1), (1, 1)),
                                 feature_group_count=hidden)
    d = jnp.maximum(bn(d, s2, b2), 0.0)

    w3_oihw = jnp.transpose(w3, (1, 0))[:, :, None, None]
    y = lax.conv_general_dilated(d, w3_oihw, (1, 1), 'VALID')
    y = bn(y, s3, b3)
    if use_res:
        y = y + x_nchw
    return y


if __name__ == "__main__":
    # Module config: InvertedResidual(inp=4, oup=4, stride=1, expand_ratio=6)
    inp, oup, stride, expand_ratio = 4, 4, 1, 6
    use_res = (stride == 1) and (inp == oup)

    key = jax.random.PRNGKey(0)
    kx, kp = jax.random.split(key)
    x = jax.random.normal(kx, (2, inp, 16, 16), jnp.float32)   # NCHW like torch
    params = make_params(kp, inp, oup, expand_ratio)

    out = inverted_residual_pallas(x, params, stride=stride, use_res=use_res)
    out = jax.block_until_ready(out)

    ref = inverted_residual_ref(x, params, stride=stride, use_res=use_res)
    assert out.shape == ref.shape
    assert jnp.allclose(out, ref, atol=1e-3, rtol=1e-3), "mismatch vs reference"

    print("KERNEL_OK")
</pallas_src>

<mosaic_0001>
module attributes {stable_mosaic.version = 11 : i64} {
  func.func @_inverted_residual_kernel(%arg0: i32, %arg1: memref<1x4x256xf32, #tpu.memory_space<vmem>>, %arg2: memref<24x4xf32, #tpu.memory_space<vmem>>, %arg3: memref<24x1xf32, #tpu.memory_space<vmem>>, %arg4: memref<24x9xf32, #tpu.memory_space<vmem>>, %arg5: memref<24x1xf32, #tpu.memory_space<vmem>>, %arg6: memref<4x24xf32, #tpu.memory_space<vmem>>, %arg7: memref<4x1xf32, #tpu.memory_space<vmem>>, %arg8: memref<1x4x256xf32, #tpu.memory_space<vmem>>, %arg9: memref<24x18x18xf32, #tpu.memory_space<vmem>>) attributes {dimension_semantics = [#tpu.dimension_semantics<parallel>], iteration_bounds = array<i64: 2>, scalar_prefetch = 0 : i64, scratch_operands = 1 : i64, tpu.core_type = #tpu.core_type<tc>, window_params = [{transform_indices = @transform_0, window_bounds = array<i64: 1, 4, 256>}, {pipeline_mode = #tpu.pipeline_mode<synchronous>, transform_indices = @transform_1, window_bounds = array<i64: 24, 4>}, {pipeline_mode = #tpu.pipeline_mode<synchronous>, transform_indices = @transform_2, window_bounds = array<i64: 24, 1>}, {pipeline_mode = #tpu.pipeline_mode<synchronous>, transform_indices = @transform_3, window_bounds = array<i64: 24, 9>}, {pipeline_mode = #tpu.pipeline_mode<synchronous>, transform_indices = @transform_4, window_bounds = array<i64: 24, 1>}, {pipeline_mode = #tpu.pipeline_mode<synchronous>, transform_indices = @transform_5, window_bounds = array<i64: 4, 24>}, {pipeline_mode = #tpu.pipeline_mode<synchronous>, transform_indices = @transform_6, window_bounds = array<i64: 4, 1>}, {transform_indices = @transform_7, window_bounds = array<i64: 1, 4, 256>}]} {
    %c0 = arith.constant 0 : index
    %c0_0 = arith.constant 0 : index
    %c0_1 = arith.constant 0 : index
    %0 = vector.load %arg1[%c0, %c0_0, %c0_1] : memref<1x4x256xf32, #tpu.memory_space<vmem>>, vector<1x4x256xf32>
    %1 = vector.shape_cast %0 : vector<1x4x256xf32> to vector<4x256xf32>
    %c0_2 = arith.constant 0 : index
    %c0_3 = arith.constant 0 : index
    %2 = vector.load %arg2[%c0_2, %c0_3] : memref<24x4xf32, #tpu.memory_space<vmem>>, vector<24x4xf32>
    %cst = arith.constant dense<0.000000e+00> : vector<24x256xf32>
    %3 = tpu.matmul %2, %1, %cst {dimension_numbers = #tpu.dot_dimension_numbers<[1], [0], [0], [1], [0, 0, 1, 1], [], []>} : vector<24x4xf32>, vector<4x256xf32>, vector<24x256xf32> -> vector<24x256xf32>
    %c0_4 = arith.constant 0 : index
    %c0_5 = arith.constant 0 : index
    %4 = vector.load %arg3[%c0_4, %c0_5] : memref<24x1xf32, #tpu.memory_space<vmem>>, vector<24x1xf32>
    %5 = vector.broadcast %4 : vector<24x1xf32> to vector<24x256xf32>
    %6 = arith.addf %3, %5 : vector<24x256xf32>
    %cst_6 = arith.constant 0.000000e+00 : f32
    %7 = vector.broadcast %cst_6 : f32 to vector<24x256xf32>
    %8 = arith.maximumf %6, %7 : vector<24x256xf32>
    %cst_7 = arith.constant 0.000000e+00 : f32
    %9 = vector.broadcast %cst_7 : f32 to vector<24x18x18xf32>
    %c0_8 = arith.constant 0 : index
    %c0_9 = arith.constant 0 : index
    %c0_10 = arith.constant 0 : index
    %10 = vector.load %arg9[%c0_8, %c0_9, %c0_10] : memref<24x18x18xf32, #tpu.memory_space<vmem>>, vector<24x18x18xf32>
    tpu.vector_store %arg9[%c0_8, %c0_9, %c0_10], %9 {strides = array<i32>} : memref<24x18x18xf32, #tpu.memory_space<vmem>>, vector<24x18x18xf32>,
    %11 = vector.shape_cast %8 : vector<24x256xf32> to vector<24x16x16xf32>
    %c0_11 = arith.constant 0 : index
    %c1 = arith.constant 1 : index
    %c1_12 = arith.constant 1 : index
    %12 = vector.load %arg9[%c0_11, %c1, %c1_12] : memref<24x18x18xf32, #tpu.memory_space<vmem>>, vector<24x16x16xf32>
    tpu.vector_store %arg9[%c0_11, %c1, %c1_12], %11 {strides = array<i32>} : memref<24x18x18xf32, #tpu.memory_space<vmem>>, vector<24x16x16xf32>,
    %c0_13 = arith.constant 0 : index
    %c0_14 = arith.constant 0 : index
    %13 = vector.load %arg4[%c0_13, %c0_14] : memref<24x9xf32, #tpu.memory_space<vmem>>, vector<24x9xf32>
    %cst_15 = arith.constant 0.000000e+00 : f32
    %14 = vector.broadcast %cst_15 : f32 to vector<24x16x16xf32>
    %c0_16 = arith.constant 0 : index
    %c0_17 = arith.constant 0 : index
    %c0_18 = arith.constant 0 : index
    %15 = vector.load %arg9[%c0_16, %c0_17, %c0_18] : memref<24x18x18xf32, #tpu.memory_space<vmem>>, vector<24x16x16xf32>
    %16 = vector.extract_strided_slice %13 {offsets = [0, 0], sizes = [24, 1], strides = [1, 1]} : vector<24x9xf32> to vector<24x1xf32>
    %17 = vector.shape_cast %16 : vector<24x1xf32> to vector<24x1x1xf32>
    %18 = vector.broadcast %17 : vector<24x1x1xf32> to vector<24x16x16xf32>
    %19 = arith.mulf %15, %18 : vector<24x16x16xf32>
    %20 = arith.addf %14, %19 : vector<24x16x16xf32>
    %c0_19 = arith.constant 0 : index
    %c0_20 = arith.constant 0 : index
    %c1_21 = arith.constant 1 : index
    %21 = vector.load %arg9[%c0_19, %c0_20, %c1_21] : memref<24x18x18xf32, #tpu.memory_space<vmem>>, vector<24x16x16xf32>
    %22 = vector.extract_strided_slice %13 {offsets = [0, 1], sizes = [24, 1], strides = [1, 1]} : vector<24x9xf32> to vector<24x1xf32>
    %23 = vector.shape_cast %22 : vector<24x1xf32> to vector<24x1x1xf32>
    %24 = vector.broadcast %23 : vector<24x1x1xf32> to vector<24x16x16xf32>
    %25 = arith.mulf %21, %24 : vector<24x16x16xf32>
    %26 = arith.addf %20, %25 : vector<24x16x16xf32>
    %c0_22 = arith.constant 0 : index
    %c0_23 = arith.constant 0 : index
    %c2 = arith.constant 2 : index
    %27 = vector.load %arg9[%c0_22, %c0_23, %c2] : memref<24x18x18xf32, #tpu.memory_space<vmem>>, vector<24x16x16xf32>
    %28 = vector.extract_strided_slice %13 {offsets = [0, 2], sizes = [24, 1], strides = [1, 1]} : vector<24x9xf32> to vector<24x1xf32>
    %29 = vector.shape_cast %28 : vector<24x1xf32> to vector<24x1x1xf32>
    %30 = vector.broadcast %29 : vector<24x1x1xf32> to vector<24x16x16xf32>
    %31 = arith.mulf %27, %30 : vector<24x16x16xf32>
    %32 = arith.addf %26, %31 : vector<24x16x16xf32>
    %c0_24 = arith.constant 0 : index
    %c1_25 = arith.constant 1 : index
    %c0_26 = arith.constant 0 : index
    %33 = vector.load %arg9[%c0_24, %c1_25, %c0_26] : memref<24x18x18xf32, #tpu.memory_space<vmem>>, vector<24x16x16xf32>
    %34 = vector.extract_strided_slice %13 {offsets = [0, 3], sizes = [24, 1], strides = [1, 1]} : vector<24x9xf32> to vector<24x1xf32>
    %35 = vector.shape_cast %34 : vector<24x1xf32> to vector<24x1x1xf32>
    %36 = vector.broadcast %35 : vector<24x1x1xf32> to vector<24x16x16xf32>
    %37 = arith.mulf %33, %36 : vector<24x16x16xf32>
    %38 = arith.addf %32, %37 : vector<24x16x16xf32>
    %c0_27 = arith.constant 0 : index
    %c1_28 = arith.constant 1 : index
    %c1_29 = arith.constant 1 : index
    %39 = vector.load %arg9[%c0_27, %c1_28, %c1_29] : memref<24x18x18xf32, #tpu.memory_space<vmem>>, vector<24x16x16xf32>
    %40 = vector.extract_strided_slice %13 {offsets = [0, 4], sizes = [24, 1], strides = [1, 1]} : vector<24x9xf32> to vector<24x1xf32>
    %41 = vector.shape_cast %40 : vector<24x1xf32> to vector<24x1x1xf32>
    %42 = vector.broadcast %41 : vector<24x1x1xf32> to vector<24x16x16xf32>
    %43 = arith.mulf %39, %42 : vector<24x16x16xf32>
    %44 = arith.addf %38, %43 : vector<24x16x16xf32>
    %c0_30 = arith.constant 0 : index
    %c1_31 = arith.constant 1 : index
    %c2_32 = arith.constant 2 : index
    %45 = vector.load %arg9[%c0_30, %c1_31, %c2_32] : memref<24x18x18xf32, #tpu.memory_space<vmem>>, vector<24x16x16xf32>
    %46 = vector.extract_strided_slice %13 {offsets = [0, 5], sizes = [24, 1], strides = [1, 1]} : vector<24x9xf32> to vector<24x1xf32>
    %47 = vector.shape_cast %46 : vector<24x1xf32> to vector<24x1x1xf32>
    %48 = vector.broadcast %47 : vector<24x1x1xf32> to vector<24x16x16xf32>
    %49 = arith.mulf %45, %48 : vector<24x16x16xf32>
    %50 = arith.addf %44, %49 : vector<24x16x16xf32>
    %c0_33 = arith.constant 0 : index
    %c2_34 = arith.constant 2 : index
    %c0_35 = arith.constant 0 : index
    %51 = vector.load %arg9[%c0_33, %c2_34, %c0_35] : memref<24x18x18xf32, #tpu.memory_space<vmem>>, vector<24x16x16xf32>
    %52 = vector.extract_strided_slice %13 {offsets = [0, 6], sizes = [24, 1], strides = [1, 1]} : vector<24x9xf32> to vector<24x1xf32>
    %53 = vector.shape_cast %52 : vector<24x1xf32> to vector<24x1x1xf32>
    %54 = vector.broadcast %53 : vector<24x1x1xf32> to vector<24x16x16xf32>
    %55 = arith.mulf %51, %54 : vector<24x16x16xf32>
    %56 = arith.addf %50, %55 : vector<24x16x16xf32>
    %c0_36 = arith.constant 0 : index
    %c2_37 = arith.constant 2 : index
    %c1_38 = arith.constant 1 : index
    %57 = vector.load %arg9[%c0_36, %c2_37, %c1_38] : memref<24x18x18xf32, #tpu.memory_space<vmem>>, vector<24x16x16xf32>
    %58 = vector.extract_strided_slice %13 {offsets = [0, 7], sizes = [24, 1], strides = [1, 1]} : vector<24x9xf32> to vector<24x1xf32>
    %59 = vector.shape_cast %58 : vector<24x1xf32> to vector<24x1x1xf32>
    %60 = vector.broadcast %59 : vector<24x1x1xf32> to vector<24x16x16xf32>
    %61 = arith.mulf %57, %60 : vector<24x16x16xf32>
    %62 = arith.addf %56, %61 : vector<24x16x16xf32>
    %c0_39 = arith.constant 0 : index
    %c2_40 = arith.constant 2 : index
    %c2_41 = arith.constant 2 : index
    %63 = vector.load %arg9[%c0_39, %c2_40, %c2_41] : memref<24x18x18xf32, #tpu.memory_space<vmem>>, vector<24x16x16xf32>
    %64 = vector.extract_strided_slice %13 {offsets = [0, 8], sizes = [24, 1], strides = [1, 1]} : vector<24x9xf32> to vector<24x1xf32>
    %65 = vector.shape_cast %64 : vector<24x1xf32> to vector<24x1x1xf32>
    %66 = vector.broadcast %65 : vector<24x1x1xf32> to vector<24x16x16xf32>
    %67 = arith.mulf %63, %66 : vector<24x16x16xf32>
    %68 = arith.addf %62, %67 : vector<24x16x16xf32>
    %69 = vector.shape_cast %68 : vector<24x16x16xf32> to vector<24x256xf32>
    %c0_42 = arith.constant 0 : index
    %c0_43 = arith.constant 0 : index
    %70 = vector.load %arg5[%c0_42, %c0_43] : memref<24x1xf32, #tpu.memory_space<vmem>>, vector<24x1xf32>
    %71 = vector.broadcast %70 : vector<24x1xf32> to vector<24x256xf32>
    %72 = arith.addf %69, %71 : vector<24x256xf32>
    %cst_44 = arith.constant 0.000000e+00 : f32
    %73 = vector.broadcast %cst_44 : f32 to vector<24x256xf32>
    %74 = arith.maximumf %72, %73 : vector<24x256xf32>
    %c0_45 = arith.constant 0 : index
    %c0_46 = arith.constant 0 : index
    %75 = vector.load %arg6[%c0_45, %c0_46] : memref<4x24xf32, #tpu.memory_space<vmem>>, vector<4x24xf32>
    %cst_47 = arith.constant dense<0.000000e+00> : vector<4x256xf32>
    %76 = tpu.matmul %75, %74, %cst_47 {dimension_numbers = #tpu.dot_dimension_numbers<[1], [0], [0], [1], [0, 0, 1, 1], [], []>} : vector<4x24xf32>, vector<24x256xf32>, vector<4x256xf32> -> vector<4x256xf32>
    %c0_48 = arith.constant 0 : index
    %c0_49 = arith.constant 0 : index
    %77 = vector.load %arg7[%c0_48, %c0_49] : memref<4x1xf32, #tpu.memory_space<vmem>>, vector<4x1xf32>
    %78 = vector.broadcast %77 : vector<4x1xf32> to vector<4x256xf32>
    %79 = arith.addf %76, %78 : vector<4x256xf32>
    %80 = arith.addf %79, %1 : vector<4x256xf32>
    %c0_50 = arith.constant 0 : index
    %c0_51 = arith.constant 0 : index
    %c0_52 = arith.constant 0 : index
    %81 = vector.load %arg8[%c0_50, %c0_51, %c0_52] : memref<1x4x256xf32, #tpu.memory_space<vmem>>, vector<1x4x256xf32>
    %82 = vector.shape_cast %81 : vector<1x4x256xf32> to vector<4x256xf32>
    %83 = vector.shape_cast %80 : vector<4x256xf32> to vector<1x4x256xf32>
    tpu.vector_store %arg8[%c0_50, %c0_51, %c0_52], %83 {strides = array<i32>} : memref<1x4x256xf32, #tpu.memory_space<vmem>>, vector<1x4x256xf32>,
    return
  }
  func.func @transform_0(%arg0: i32) -> (i32, i32, i32) {
    %c0_i32 = arith.constant 0 : i32
    %c0_i32_0 = arith.constant 0 : i32
    %c0_i32_1 = arith.constant 0 : i32
    return %arg0, %c0_i32, %c0_i32_0 : i32, i32, i32
  }
  func.func @transform_1(%arg0: i32) -> (i32, i32) {
    %c0_i32 = arith.constant 0 : i32
    %c0_i32_0 = arith.constant 0 : i32
    %c0_i32_1 = arith.constant 0 : i32
    return %c0_i32, %c0_i32_0 : i32, i32
  }
  func.func @transform_2(%arg0: i32) -> (i32, i32) {
    %c0_i32 = arith.constant 0 : i32
    %c0_i32_0 = arith.constant 0 : i32
    %c0_i32_1 = arith.constant 0 : i32
    return %c0_i32, %c0_i32_0 : i32, i32
  }
  func.func @transform_3(%arg0: i32) -> (i32, i32) {
    %c0_i32 = arith.constant 0 : i32
    %c0_i32_0 = arith.constant 0 : i32
    %c0_i32_1 = arith.constant 0 : i32
    return %c0_i32, %c0_i32_0 : i32, i32
  }
  func.func @transform_4(%arg0: i32) -> (i32, i32) {
    %c0_i32 = arith.constant 0 : i32
    %c0_i32_0 = arith.constant 0 : i32
    %c0_i32_1 = arith.constant 0 : i32
    return %c0_i32, %c0_i32_0 : i32, i32
  }
  func.func @transform_5(%arg0: i32) -> (i32, i32) {
    %c0_i32 = arith.constant 0 : i32
    %c0_i32_0 = arith.constant 0 : i32
    %c0_i32_1 = arith.constant 0 : i32
    return %c0_i32, %c0_i32_0 : i32, i32
  }
  func.func @transform_6(%arg0: i32) -> (i32, i32) {
    %c0_i32 = arith.constant 0 : i32
    %c0_i32_0 = arith.constant 0 : i32
    %c0_i32_1 = arith.constant 0 : i32
    return %c0_i32, %c0_i32_0 : i32, i32
  }
  func.func @transform_7(%arg0: i32) -> (i32, i32, i32) {
    %c0_i32 = arith.constant 0 : i32
    %c0_i32_0 = arith.constant 0 : i32
    %c0_i32_1 = arith.constant 0 : i32
    return %arg0, %c0_i32, %c0_i32_0 : i32, i32, i32
  }
}

</mosaic_0001>

<bundles_post_ra>
// kernel: tpu_custom_call.1
= control target key start
LH: loop header
LB: loop body
LE: loop exit
PB: predicated region body
PF: predicated region fallthrough
CT: control target
= control target key end

     0   :  { %12 = vsyncpa [#allocation4], 0  ;;  %s10968_s0 = inlined_call_operand.vmem [shape: f32[2,4,256], index: 0, kind: input, shape index: {}]   ;;  %s10969_s1 = inlined_call_operand.vmem [shape: f32[24,4], index: 1, kind: input, shape index: {}]   ;;  %s10970_s2 = inlined_call_operand.vmem [shape: f32[24,1], index: 2, kind: input, shape index: {}]   ;;  %s10971_s3 = inlined_call_operand.vmem [shape: f32[24,9], index: 3, kind: input, shape index: {}]   ;;  %s10972_s4 = inlined_call_operand.vmem [shape: f32[24,1], index: 4, kind: input, shape index: {}]   ;;  %s10973_s5 = inlined_call_operand.vmem [shape: f32[4,24], index: 5, kind: input, shape index: {}]   ;;  %s10974_s6 = inlined_call_operand.vmem [shape: f32[4,1], index: 6, kind: input, shape index: {}]   ;;  %s10975_s7 = inlined_call_operand.hbm [shape: f32[2,4,256], index: 7, kind: output, shape index: {}]  }
   0x1   :  { %14 = vsyncpa [#allocation4 + $0x1], 0  ;;  %s6789_s24 = smov 0   ;;  %s6791_s25 = smov 0  }
   0x2   :  { %s6793_s26 = smov 0   ;;  %s6795_s27 = smov 0  }
   0x3 LB: > { %s6810_s28 = sadd.s32 4294967295, %s6723_s27   ;;  %s6456_s29 = sadd.s32 4294967294, %s6723_s27   ;;  %s6723_s27 = sphi %s6795_s27, %s12110_s27   ;;  %s6719_s26 = sphi %s6793_s26, %s12109_s26   ;;  %s6715_s25 = sphi %s6791_s25, %s12108_s25   ;;  %s6711_s24 = sphi %s6789_s24, %s12107_s24  }
   0x4   : > { %s6814_s30 = sadd.s32 1, %s6723_s27   ;;  %s179_s8 = sadd.s32 1, %s6719_s26 }
   0x5   : > { %s176_s9 = ssub.s32 %s6723_s27, %s6814_s30  ;;  %p189_p0 = scmp.ne.s32.totalorder %s6719_s26, %s6715_s25 }
   0x6   : > { %p177_p1 = scmp.eq.s32.totalorder %s176_s9, 0  ;;  %p190_p2 = scmp.eq.s32.totalorder %s6810_s28, 1 }
   0x7   : > { %p195_p3 = scmp.ne.s32.totalorder %s6715_s25, %s6711_s24  ;;  %p196_p4 = scmp.eq.s32.totalorder %s6456_s29, 1 }
   0x8   : > { %s6825_s10 = scalar_select %p177_p1, %s6719_s26, %s179_s8  }
   0x9   : > { %p6827_p5 = por %p190_p2, %p189_p0  ;;  %p6831_p6 = por %p196_p4, %p195_p3 }
   0xa   : > { %p6459_p7 = scmp.ge.s32.totalorder %s6723_s27, 1  ;;  %p240_p8 = scmp.lt.s32.totalorder %s6723_s27, 3 }
   0xc   : > { %p241_p9 = pnand %p6459_p7, %p240_p8 }
   0xe   : > { %244 = sbr.rel (%p241_p9) target bundleno = 2120 (0x848), region = 48 }
  0x15   : > { %p272_p10 = scmp.lt.s32.totalorder %s6810_s28, 1  ;;  %v10978_v0 = vmov 0.0   ;;  %v10976_v1 = vmov 0   ;;  %v283_v2 = vld [vmem:[%s10970_s2 + $0x10] sm:$0xff]  ;;  %v616_v3 = vlaneseq  ;;  %v6727_v5 = vmov 1966171168  }
  0x16   : > { %380 = vmatprep.mubr.f32.mxu0 %v10978_v0  ;;  %6543 = vset.pattern.permute.xlu1 %v10976_v1  ;;  %v1724_v6 = vunpack.c.l.s4 %v6727_v5  ;;  %v281_v7 = vld [vmem:[%s10970_s2] sm:$0xff]  ;;  %v282_v11 = vld [vmem:[%s10970_s2 + $0x8] sm:$0xff]  ;;  %vm311_vm0 = vcmask 1043456   ;;  %vm301_vm1 = vcmask 31744   ;;  %v1670_v22 = vld [vmem:[%s10971_s3 + $0x10] sm:$0xff]  ;;  %v6728_v27 = vmov 1  }
  0x17   : > { %s273_s15 = scalar_select %p272_p10, %s6810_s28, 1  ;;  %296 = vperm.xlu1 %6543, %v283_v2   ;;  %6542 = vset.pattern.permute.xlu0 %v10976_v1  ;;  %v6845_v4 = vshrl.u32 %v616_v3, 7  ;;  %v1668_v8 = vld [vmem:[%s10971_s3] sm:$0xff]  ;;  %v1669_v21 = vld [vmem:[%s10971_s3 + $0x8] sm:$0xff]  ;;  %v1820_v25 = vcombine.high %v1670_v22, %v1670_v22  ;;  %v280_v32 = vld [vmem:[%s10969_s1 + $0x10] sm:$0xff]  ;;  %vm405_vm2 = vcmask 146432  }
  0x18   : > { %6367 = vmatprep.mubr.f32.mxu1 %v10978_v0  ;;  %286 = vperm.xlu0 %6542, %v281_v7   ;;  %v1725_v9 = vunpack.c.0.s8 %v1724_v6  ;;  %v1722_v10 = vcombine.high %v1668_v8, %v1668_v8  ;;  %v278_v15 = vld [vmem:[%s10969_s1] sm:$0xff]  ;;  %v279_v23 = vld [vmem:[%s10969_s1 + $0x8] sm:$0xff]  ;;  %v1771_v24 = vcombine.high %v1669_v21, %v1669_v21  ;;  %s6730_s22 = smov 96   ;;  %s6731_s29 = smov 112   ;;  %vm408_vm3 = vcmask 140288  }
  0x19   : > { %s6474_s18 = sshll.u32 %s273_s15, 3  ;;  %v6874_v17 = vsub.s32 0, %v6845_v4  ;;  %s6732_s8 = smov 64   ;;  %vm1619_vm4 = vcmask 138248   ;;  %vm6213_vm5 = vcmask 130048   ;;  %vm6217_vm6 = vcmask 261120  }
  0x1a   : > { %s6857_s23 = scalar_lea.vmem %s10968_s0, %s6474_s18  ;;  %v6866_v14 = vsub.s32 %v1725_v9, %v6845_v4  ;;  %s6733_s9 = smov 80   ;;  %vm6221_vm7 = vcmask 392192   ;;  %vm6225_vm8 = vcmask 523264   ;;  %vm6229_vm9 = vcmask 654336  }
  0x1b   : > { %v277_v12 = vld [vmem:[%s6857_s23] sm:$0xff]  ;;  %s6734_s13 = smov 32   ;;  %s6735_s14 = smov 48   ;;  %vm6233_vm10 = vcmask 785408   ;;  %vm6237_vm11 = vcmask 916480   ;;  %vm6299_vm12 = vcmask 195584  }
  0x1c   : > { %v6863_v13 = vcombine.high %v277_v12, %v277_v12  ;;  %291 = vperm.xlu0 %6542, %v282_v11   ;;  %v1729_v16 = vrot.slane %v1668_v8, %v6866_v14  ;;  %v6877_v18 = vrot.slane %v1722_v10, %v6866_v14  ;;  %v1778_v31 = vrot.slane %v1669_v21, %v6866_v14  ;;  %s6736_s15 = smov 16   ;;  %s6739_s16 = smov 1  }
  0x1d   : > { %v1785_v33 = vrot.slane %v1771_v24, %v6866_v14  ;;  %v1827_v34 = vrot.slane %v1670_v22, %v6866_v14  ;;  %v1834_v35 = vrot.slane %v1820_v25, %v6866_v14  ;;  %v6729_v22 = vmov 2   ;;  %s6740_s17 = smov 126   ;;  %s6741_s18 = smov 127  }
  0x1e   : > { %11202 = vst [vmem:[#allocation6_spill] sm:$0xff] %v6863_v13  ;;  %6463 = vmatprep.subr.msk.mxu0 %vm311_vm0, %v6863_v13  ;;  %v1745_v19 = vrot.slane %v1729_v16, %v6866_v14  ;;  %v1752_v20 = vrot.slane %v6877_v18, %v6866_v14  ;;  %v1737_v28 = vcombine.high %v1729_v16, %v1729_v16 }
  0x1f   : > { %6464 = vmatpush1.msk.msra.mxu0 %vm311_vm0, %v277_v12  ;;  %v1786_v37 = vcombine.high %v1778_v31, %v1778_v31  ;;  %v1787_v39 = vcombine.high %v1785_v33, %v1785_v33  ;;  %v1835_v40 = vcombine.high %v1827_v34, %v1827_v34  ;;  %v1836_v41 = vcombine.high %v1834_v35, %v1834_v35 }
  0x20   : > { %6465 = vmatmul.mubr.msk.f32.vlgmr.msra.gmra.mrb[0].mxu0 %vm301_vm1, %v278_v15  ;;  %v6894_v26 = vrot.slane %v1745_v19, %v6874_v17  ;;  %6545 = vset.pattern.permute.xlu0 %v6728_v27  ;;  %v6900_v29 = vrot.slane %v1752_v20, %v6874_v17  ;;  %v1767_v30 = vcombine.high %v1745_v19, %v1745_v19 }
  0x21   : > { %386 = vmatprep.mubr.f32.mxu0 %v10978_v0  ;;  %v1768_v36 = vcombine.high %v1752_v20, %v1752_v20  ;;  %v6911_v38 = vrot.slane %v1737_v28, %v6866_v14  ;;  %v1808_v44 = vrot.slane %v1786_v37, %v6866_v14  ;;  %v1815_v45 = vrot.slane %v1787_v39, %v6866_v14 }
  0x22   : > { %11203 = vst [vmem:[#allocation7_spill] sm:$0xff] %v6894_v26  ;;  %1966 = vperm.xlu1 %6543, %v6894_v26   ;;  %11204 = vst [vmem:[#allocation8_spill] sm:$0xff] %v6900_v29  ;;  %v6916_v42 = vrot.slane %v1767_v30, %v6874_v17  ;;  %v1794_v46 = vrot.slane %v1778_v31, %v6866_v14  ;;  %v1857_v47 = vrot.slane %v1835_v40, %v6866_v14 }
  0x23   : > { %v6920_v43 = vrot.slane %v6911_v38, %v6874_v17  ;;  %v1864_v48 = vrot.slane %v1836_v41, %v6866_v14  ;;  %v6928_v49 = vrot.slane %v1768_v36, %v6874_v17  ;;  %v6932_v50 = vrot.slane %v1808_v44, %v6874_v17 }
  0x24   : > { %6466 = vmatmul.mubr.msk.f32.gmra.mrb[2].mxu0 %vm301_vm1, %v279_v23  ;;  %11205 = vst [vmem:[#allocation9_spill] sm:$0xff] %v6916_v42  ;;  %v1818_v51 = vcombine.high %v1808_v44, %v1808_v44  ;;  %v6935_v52 = vrot.slane %v1815_v45, %v6874_v17  ;;  %v1819_v53 = vcombine.high %v1815_v45, %v1815_v45 }
  0x25   : > { %392 = vmatprep.mubr.f32.mxu0 %v10978_v0  ;;  %11206 = vst [vmem:[#allocation10_spill] sm:$0xff] %v6920_v43  ;;  %11207 = vst [vmem:[#allocation11_spill] sm:$0xff] %v6928_v49  ;;  %2210 = vperm.xlu0 %6545, %v6920_v43   ;;  %v6939_v54 = vrot.slane %v1857_v47, %v6874_v17  ;;  %v1867_v55 = vcombine.high %v1857_v47, %v1857_v47 }
  0x26   : > { %1982 = vperm.xlu1 %6543, %v6900_v29   ;;  %11208 = vst [vmem:[#allocation12_spill] sm:$0xff] %v6932_v50  ;;  %11209 = vst [vmem:[#allocation13_spill] sm:$0xff] %v6935_v52  ;;  %v6942_v56 = vrot.slane %v1864_v48, %v6874_v17  ;;  %v6945_v57 = vrot.slane %v1818_v51, %v6874_v17  ;;  %v1868_v58 = vcombine.high %v1864_v48, %v1864_v48 }
  0x27   : > { %11210 = vst [vmem:[#allocation14_spill] sm:$0xff] %v6939_v54  ;;  %v6948_v59 = vrot.slane %v1819_v53, %v6874_v17  ;;  %v6951_v60 = vrot.slane %v1867_v55, %v6874_v17  ;;  %v6959_v62 = vrot.slane %v1794_v46, %v6874_v17  ;;  %v1816_v63 = vcombine.high %v1794_v46, %v1794_v46 }
  0x28   : > { %6467 = vmatmul.mubr.msk.f32.gmra.mrb[4].mxu0 %vm301_vm1, %v280_v32  ;;  %11211 = vst [vmem:[#allocation15_spill] sm:$0xff] %v6942_v56  ;;  %11212 = vst [vmem:[#allocation16_spill] sm:$0xff] %v6945_v57  ;;  %v6955_v61 = vrot.slane %v1868_v58, %v6874_v17  ;;  %v1801_v3 = vrot.slane %v1785_v33, %v6866_v14  ;;  %v1843_v8 = vrot.slane %v1827_v34, %v6866_v14 }
  0x29   : > { %11213 = vst [vmem:[#allocation17_spill] sm:$0xff] %v6948_v59  ;;  %11214 = vst [vmem:[#allocation18_spill] sm:$0xff] %v6951_v60  ;;  %2222 = vperm.xlu0 %6545, %v6900_v29   ;;  %v6964_v2 = vrot.slane %v1816_v63, %v6874_v17  ;;  %v1850_v12 = vrot.slane %v1834_v35, %v6866_v14  ;;  %v1769_v20 = vcombine.high %v6911_v38, %v6911_v38 }
  0x2a   : > { %1974 = vperm.xlu1 %6543, %v6916_v42   ;;  %11215 = vst [vmem:[#allocation19_spill] sm:$0xff] %v6955_v61  ;;  %11216 = vst [vmem:[#allocation20_spill] sm:$0xff] %v6959_v62  ;;  %v6970_v5 = vrot.slane %v1801_v3, %v6874_v17  ;;  %v1817_v6 = vcombine.high %v1801_v3, %v1801_v3  ;;  %v6981_v9 = vrot.slane %v1843_v8, %v6874_v17 }
  0x2b   : > { %11217 = vst [vmem:[#allocation21_spill] sm:$0xff] %v6964_v2  ;;  %v1865_v10 = vcombine.high %v1843_v8, %v1843_v8  ;;  %v6992_v15 = vrot.slane %v1850_v12, %v6874_v17  ;;  %v1866_v16 = vcombine.high %v1850_v12, %v1850_v12  ;;  %v1738_v21 = vcombine.high %v6877_v18, %v6877_v18 }
  0x2c   : > { %11218 = vst [vmem:[#allocation22_spill] sm:$0xff] %v6970_v5  ;;  %v6975_v7 = vrot.slane %v1817_v6, %v6874_v17  ;;  %11220 = vst [vmem:[#allocation24_spill] sm:$0xff] %v6981_v9  ;;  %v7011_v23 = vrot.slane %v1769_v20, %v6874_v17 }
  0x2d   : > { %2230 = vperm.xlu0 %6545, %v6928_v49   ;;  %v6986_v11 = vrot.slane %v1865_v10, %v6874_v17  ;;  %11222 = vst [vmem:[#allocation26_spill] sm:$0xff] %v6992_v15  ;;  %v6997_v19 = vrot.slane %v1866_v16, %v6874_v17  ;;  %v1766_v24 = vrot.slane %v1738_v21, %v6866_v14 }
  0x2e   : > { %1990 = vperm.xlu1 %6543, %v6928_v49   ;;  %11219 = vst [vmem:[#allocation23_spill] sm:$0xff] %v6975_v7  ;;  %11224 = vst [vmem:[#allocation28_spill] sm:$0xff] %v7011_v23 }
  0x2f   : > { %11221 = vst [vmem:[#allocation25_spill] sm:$0xff] %v6986_v11  ;;  %11223 = vst [vmem:[#allocation27_spill] sm:$0xff] %v6997_v19  ;;  %v7017_v25 = vrot.slane %v1766_v24, %v6874_v17 }
  0x31   : > { %2238 = vperm.xlu0 %6545, %v6959_v62   ;;  %11225 = vst [vmem:[#allocation29_spill] sm:$0xff] %v7017_v25 }
  0x32   : > { %1998 = vperm.xlu1 %6543, %v6959_v62  }
  0x35   : > { %2246 = vperm.xlu0 %6545, %v6964_v2  }
  0x36   : > { %2006 = vperm.xlu1 %6543, %v6964_v2  }
  0x39   : > { %2254 = vperm.xlu0 %6545, %v6970_v5  }
  0x3a   : > { %2014 = vperm.xlu1 %6543, %v6970_v5  }
  0x3d   : > { %2262 = vperm.xlu0 %6545, %v6975_v7  }
  0x3e   : > { %2022 = vperm.xlu1 %6543, %v6975_v7  }
  0x41   : > { %2270 = vperm.xlu0 %6545, %v6981_v9  }
  0x42   : > { %2030 = vperm.xlu1 %6543, %v6981_v9  }
  0x45   : > { %2278 = vperm.xlu0 %6545, %v6986_v11  }
  0x46   : > { %2038 = vperm.xlu1 %6543, %v6986_v11  }
  0x49   : > { %2286 = vperm.xlu0 %6545, %v6992_v15  }
  0x4a   : > { %2046 = vperm.xlu1 %6543, %v6992_v15  }
  0x4d   : > { %2294 = vperm.xlu0 %6545, %v6997_v19  }
  0x4e   : > { %2054 = vperm.xlu1 %6543, %v6997_v19  }
  0x51   : > { %6546 = vset.pattern.permute.xlu0 %v6729_v22 }
  0x52   : > { %6544 = vset.pattern.permute.xlu1 %v6728_v27  ;;  %2638 = vperm.xlu0 %6546, %v6894_v26   ;;  %v1770_v27 = vcombine.high %v1766_v24, %v1766_v24 }
  0x53   : > { %2206 = vperm.xlu1 %6544, %v6894_v26  }
  0x54   : > { %v7022_v18 = vrot.slane %v1770_v27, %v6874_v17 }
  0x56   : > { %2650 = vperm.xlu0 %6546, %v7011_v23   ;;  %11226 = vst [vmem:[#allocation30_spill] sm:$0xff] %v7022_v18 }
  0x57   : > { %2214 = vperm.xlu1 %6544, %v6916_v42  }
  0x5a   : > { %2658 = vperm.xlu0 %6546, %v7017_v25  }
  0x5b   : > { %2218 = vperm.xlu1 %6544, %v7011_v23   ;;  %v6737_v23 = vmov 1983009808  }
  0x5e   : > { %2666 = vperm.xlu0 %6546, %v7022_v18  }
  0x5f   : > { %2226 = vperm.xlu1 %6544, %v7017_v25  }
  0x62   : > { %2674 = vperm.xlu0 %6546, %v6932_v50  }
  0x63   : > { %2234 = vperm.xlu1 %6544, %v7022_v18  }
  0x66   : > { %2682 = vperm.xlu0 %6546, %v6945_v57  }
  0x67   : > { %2242 = vperm.xlu1 %6544, %v6932_v50  }
  0x6a   : > { %2690 = vperm.xlu0 %6546, %v6935_v52  }
  0x6b   : > { %2250 = vperm.xlu1 %6544, %v6945_v57  }
  0x6e   : > { %2698 = vperm.xlu0 %6546, %v6948_v59  }
  0x6f   : > { %2258 = vperm.xlu1 %6544, %v6935_v52  }
  0x72   : > { %2706 = vperm.xlu0 %6546, %v6939_v54  }
  0x73   : > { %2266 = vperm.xlu1 %6544, %v6948_v59  }
  0x76   : > { %2714 = vperm.xlu0 %6546, %v6951_v60  }
  0x77   : > { %2274 = vperm.xlu1 %6544, %v6939_v54  }
  0x7a   : > { %2722 = vperm.xlu0 %6546, %v6942_v56  }
  0x7b   : > { %2282 = vperm.xlu1 %6544, %v6951_v60  }
  0x7e   : > { %2730 = vperm.xlu0 %6546, %v6955_v61  }
  0x7f   : > { %2290 = vperm.xlu1 %6544, %v6942_v56  }
  0x83   : > { %2298 = vperm.xlu1 %6544, %v6955_v61  }
  0x87   : > { %6547 = vset.pattern.permute.xlu1 %v6729_v22 }
  0x88   : > { %2642 = vperm.xlu1 %6547, %v6920_v43  }
  0x8c   : > { %2646 = vperm.xlu1 %6547, %v6916_v42  }
  0x90   : > { %2654 = vperm.xlu1 %6547, %v6900_v29  }
  0x94   : > { %2662 = vperm.xlu1 %6547, %v6928_v49   ;;  %v614_v49 = vunpack.c.l.s4 %v6737_v23 }
  0x96   : > { %v7047_v14 = vpop.permute.xlu1 %296  ;;  %v615_v26 = vunpack.c.0.s8 %v614_v49 }
  0x97   : > { %v287_v40 = vpop.permute.xlu0 %286 }
  0x98   : > { %2670 = vperm.xlu1 %6547, %v6959_v62   ;;  %v11267_v62 = vmov 0.0  }
  0x99   : > { %406 = vst.msk [vmem:[#allocation2] sm:$0xff] %vm405_vm2, %v11267_v62  ;;  %407 = vst.msk [vmem:[#allocation2 + $0x8] sm:$0xff] %vm405_vm2, %v11267_v62 }
  0x9a   : > { %410 = vst.msk [vmem:[#allocation2 + $0x18] sm:$0xff] %vm405_vm2, %v11267_v62  ;;  %411 = vst.msk [vmem:[#allocation2 + $0x20] sm:$0xff] %vm405_vm2, %v11267_v62 }
  0x9b   : > { %v292_v44 = vpop.permute.xlu0 %291  ;;  %413 = vst.msk [vmem:[#allocation2 + $0x30] sm:$0xff] %vm405_vm2, %v11267_v62  ;;  %414 = vst.msk [vmem:[#allocation2 + $0x38] sm:$0xff] %vm405_vm2, %v11267_v62 }
  0x9c   : > { %2678 = vperm.xlu1 %6547, %v6964_v2   ;;  %416 = vst.msk [vmem:[#allocation2 + $0x48] sm:$0xff] %vm405_vm2, %v11267_v62  ;;  %417 = vst.msk [vmem:[#allocation2 + $0x50] sm:$0xff] %vm405_vm2, %v11267_v62 }
  0x9d   : > { %419 = vst.msk [vmem:[#allocation2 + $0x60] sm:$0xff] %vm405_vm2, %v11267_v62  ;;  %420 = vst.msk [vmem:[#allocation2 + $0x68] sm:$0xff] %vm405_vm2, %v11267_v62 }
  0x9e   : > { %422 = vst.msk [vmem:[#allocation2 + $0x78] sm:$0xff] %vm405_vm2, %v11267_v62  ;;  %423 = vst.msk [vmem:[#allocation2 + $0x80] sm:$0xff] %vm405_vm2, %v11267_v62 }
  0x9f   : > { %425 = vst.msk [vmem:[#allocation2 + $0x90] sm:$0xff] %vm405_vm2, %v11267_v62  ;;  %426 = vst.msk [vmem:[#allocation2 + $0x98] sm:$0xff] %vm405_vm2, %v11267_v62 }
  0xa0   : > { %2686 = vperm.xlu1 %6547, %v6970_v5   ;;  %428 = vst.msk [vmem:[#allocation2 + $0xa8] sm:$0xff] %vm405_vm2, %v11267_v62  ;;  %429 = vst.msk [vmem:[#allocation2 + $0xb0] sm:$0xff] %vm405_vm2, %v11267_v62 }
  0xa1   : > { %v7051_v17 = vpop.permute.xlu1 %1966  ;;  %431 = vst.msk [vmem:[#allocation2 + $0xc0] sm:$0xff] %vm405_vm2, %v11267_v62  ;;  %432 = vst.msk [vmem:[#allocation2 + $0xc8] sm:$0xff] %vm405_vm2, %v11267_v62 }
  0xa2   : > { %11227 = vst [vmem:[#allocation31_spill] sm:$0xff] %v7051_v17  ;;  %434 = vst.msk [vmem:[#allocation2 + $0xd8] sm:$0xff] %vm405_vm2, %v11267_v62 }
  0xa3   : > { %435 = vst.msk [vmem:[#allocation2 + $0xe0] sm:$0xff] %vm405_vm2, %v11267_v62  ;;  %437 = vst.msk [vmem:[#allocation2 + $0xf0] sm:$0xff] %vm405_vm2, %v11267_v62 }
  0xa4   : > { %2694 = vperm.xlu1 %6547, %v6975_v7   ;;  %v7084_v46 = vpop.permute.xlu0 %2210  ;;  %438 = vst.msk [vmem:[#allocation2 + $0xf8] sm:$0xff] %vm405_vm2, %v11267_v62  ;;  %440 = vst.msk [vmem:[#allocation2 + $0x108] sm:$0xff] %vm405_vm2, %v11267_v62 }
  0xa5   : > { %v7054_v28 = vpop.permute.xlu1 %1982  ;;  %441 = vst.msk [vmem:[#allocation2 + $0x110] sm:$0xff] %vm405_vm2, %v11267_v62  ;;  %443 = vst.msk [vmem:[#allocation2 + $0x120] sm:$0xff] %vm405_vm2, %v11267_v62 }
  0xa6   : > { %11228 = vst [vmem:[#allocation32_spill] sm:$0xff] %v7054_v28  ;;  %444 = vst.msk [vmem:[#allocation2 + $0x128] sm:$0xff] %vm405_vm2, %v11267_v62 }
  0xa7   : > { %446 = vst.msk [vmem:[#allocation2 + $0x138] sm:$0xff] %vm405_vm2, %v11267_v62  ;;  %447 = vst.msk [vmem:[#allocation2 + $0x140] sm:$0xff] %vm405_vm2, %v11267_v62 }
  0xa8   : > { %2702 = vperm.xlu1 %6547, %v6981_v9   ;;  %v7088_v48 = vpop.permute.xlu0 %2222  ;;  %449 = vst.msk [vmem:[#allocation2 + $0x150] sm:$0xff] %vm405_vm2, %v11267_v62  ;;  %450 = vst.msk [vmem:[#allocation2 + $0x158] sm:$0xff] %vm405_vm2, %v11267_v62 }
  0xa9   : > { %v7057_v30 = vpop.permute.xlu1 %1974  ;;  %452 = vst.msk [vmem:[#allocation2 + $0x168] sm:$0xff] %vm405_vm2, %v11267_v62  ;;  %453 = vst.msk [vmem:[#allocation2 + $0x170] sm:$0xff] %vm405_vm2, %v11267_v62 }
  0xaa   : > { %11229 = vst [vmem:[#allocation33_spill] sm:$0xff] %v7057_v30  ;;  %455 = vst.msk [vmem:[#allocation2 + $0x180] sm:$0xff] %vm405_vm2, %v11267_v62 }
  0xab   : > { %456 = vst.msk [vmem:[#allocation2 + $0x188] sm:$0xff] %vm405_vm2, %v11267_v62  ;;  %458 = vst.msk [vmem:[#allocation2 + $0x198] sm:$0xff] %vm405_vm2, %v11267_v62 }
  0xac   : > { %2710 = vperm.xlu1 %6547, %v6986_v11   ;;  %v7092_v53 = vpop.permute.xlu0 %2230  ;;  %459 = vst.msk [vmem:[#allocation2 + $0x1a0] sm:$0xff] %vm405_vm2, %v11267_v62  ;;  %461 = vst.msk [vmem:[#allocation2 + $0x1b0] sm:$0xff] %vm405_vm2, %v11267_v62 }
  0xad   : > { %v7060_v31 = vpop.permute.xlu1 %1990  ;;  %462 = vst.msk [vmem:[#allocation2 + $0x1b8] sm:$0xff] %vm405_vm2, %v11267_v62  ;;  %464 = vst.msk [vmem:[#allocation2 + $0x1c8] sm:$0xff] %vm405_vm2, %v11267_v62 }
  0xae   : > { %11230 = vst [vmem:[#allocation34_spill] sm:$0xff] %v7060_v31  ;;  %465 = vst.msk [vmem:[#allocation2 + $0x1d0] sm:$0xff] %vm405_vm2, %v11267_v62 }
  0xaf   : > { %467 = vst.msk [vmem:[#allocation2 + $0x1e0] sm:$0xff] %vm405_vm2, %v11267_v62  ;;  %468 = vst.msk [vmem:[#allocation2 + $0x1e8] sm:$0xff] %vm405_vm2, %v11267_v62 }
  0xb0   : > { %2718 = vperm.xlu1 %6547, %v6992_v15   ;;  %v7096_v63 = vpop.permute.xlu0 %2238  ;;  %470 = vst.msk [vmem:[#allocation2 + $0x1f8] sm:$0xff] %vm405_vm2, %v11267_v62  ;;  %471 = vst.msk [vmem:[#allocation2 + $0x200] sm:$0xff] %vm405_vm2, %v11267_v62 }
  0xb1   : > { %v7063_v32 = vpop.permute.xlu1 %1998  ;;  %473 = vst.msk [vmem:[#allocation2 + $0x210] sm:$0xff] %vm405_vm2, %v11267_v62  ;;  %474 = vst.msk [vmem:[#allocation2 + $0x218] sm:$0xff] %vm405_vm2, %v11267_v62 }
  0xb2   : > { %11231 = vst [vmem:[#allocation35_spill] sm:$0xff] %v7063_v32  ;;  %476 = vst.msk [vmem:[#allocation2 + $0x228] sm:$0xff] %vm405_vm2, %v11267_v62 }
  0xb3   : > { %477 = vst.msk [vmem:[#allocation2 + $0x230] sm:$0xff] %vm405_vm2, %v11267_v62 }
  0xb4   : > { %2726 = vperm.xlu1 %6547, %v6997_v19   ;;  %v7106_v20 = vpop.permute.xlu0 %2246  ;;  %409 = vst.msk [vmem:[#allocation2 + $0x10] sm:$0x3] %vm408_vm3, %v11267_v62  ;;  %412 = vst.msk [vmem:[#allocation2 + $0x28] sm:$0x3] %vm408_vm3, %v11267_v62 }
  0xb5   : > { %v7066_v33 = vpop.permute.xlu1 %2006  ;;  %11239 = vst [vmem:[#allocation43_spill] sm:$0xff] %v7106_v20  ;;  %415 = vst.msk [vmem:[#allocation2 + $0x40] sm:$0x3] %vm408_vm3, %v11267_v62 }
  0xb6   : > { %11232 = vst [vmem:[#allocation36_spill] sm:$0xff] %v7066_v33  ;;  %418 = vst.msk [vmem:[#allocation2 + $0x58] sm:$0x3] %vm408_vm3, %v11267_v62 }
  0xb7   : > { %421 = vst.msk [vmem:[#allocation2 + $0x70] sm:$0x3] %vm408_vm3, %v11267_v62  ;;  %424 = vst.msk [vmem:[#allocation2 + $0x88] sm:$0x3] %vm408_vm3, %v11267_v62 }
  0xb8   : > { %427 = vst.msk [vmem:[#allocation2 + $0xa0] sm:$0x3] %vm408_vm3, %v11267_v62  ;;  %430 = vst.msk [vmem:[#allocation2 + $0xb8] sm:$0x3] %vm408_vm3, %v11267_v62 }
  0xb9   : > { %v7068_v34 = vpop.permute.xlu1 %2014  ;;  %433 = vst.msk [vmem:[#allocation2 + $0xd0] sm:$0x3] %vm408_vm3, %v11267_v62  ;;  %436 = vst.msk [vmem:[#allocation2 + $0xe8] sm:$0x3] %vm408_vm3, %v11267_v62 }
  0xba   : > { %11233 = vst [vmem:[#allocation37_spill] sm:$0xff] %v7068_v34  ;;  %439 = vst.msk [vmem:[#allocation2 + $0x100] sm:$0x3] %vm408_vm3, %v11267_v62 }
  0xbb   : > { %442 = vst.msk [vmem:[#allocation2 + $0x118] sm:$0x3] %vm408_vm3, %v11267_v62  ;;  %445 = vst.msk [vmem:[#allocation2 + $0x130] sm:$0x3] %vm408_vm3, %v11267_v62 }
  0xbc   : > { %448 = vst.msk [vmem:[#allocation2 + $0x148] sm:$0x3] %vm408_vm3, %v11267_v62  ;;  %451 = vst.msk [vmem:[#allocation2 + $0x160] sm:$0x3] %vm408_vm3, %v11267_v62 }
  0xbd   : > { %v7070_v35 = vpop.permute.xlu1 %2022  ;;  %454 = vst.msk [vmem:[#allocation2 + $0x178] sm:$0x3] %vm408_vm3, %v11267_v62  ;;  %457 = vst.msk [vmem:[#allocation2 + $0x190] sm:$0x3] %vm408_vm3, %v11267_v62 }
  0xbe   : > { %11234 = vst [vmem:[#allocation38_spill] sm:$0xff] %v7070_v35  ;;  %460 = vst.msk [vmem:[#allocation2 + $0x1a8] sm:$0x3] %vm408_vm3, %v11267_v62 }
  0xbf   : > { %463 = vst.msk [vmem:[#allocation2 + $0x1c0] sm:$0x3] %vm408_vm3, %v11267_v62  ;;  %466 = vst.msk [vmem:[#allocation2 + $0x1d8] sm:$0x3] %vm408_vm3, %v11267_v62 }
  0xc0   : > { %469 = vst.msk [vmem:[#allocation2 + $0x1f0] sm:$0x3] %vm408_vm3, %v11267_v62  ;;  %472 = vst.msk [vmem:[#allocation2 + $0x208] sm:$0x3] %vm408_vm3, %v11267_v62 }
  0xc1   : > { %v7072_v36 = vpop.permute.xlu1 %2030  ;;  %475 = vst.msk [vmem:[#allocation2 + $0x220] sm:$0x3] %vm408_vm3, %v11267_v62  ;;  %478 = vst.msk [vmem:[#allocation2 + $0x238] sm:$0x3] %vm408_vm3, %v11267_v62 }
  0xc2   : > { %11235 = vst [vmem:[#allocation39_spill] sm:$0xff] %v7072_v36 }
  0xc5   : > { %v7074_v37 = vpop.permute.xlu1 %2038 }
  0xc6   : > { %11236 = vst [vmem:[#allocation40_spill] sm:$0xff] %v7074_v37 }
  0xc9   : > { %v7076_v38 = vpop.permute.xlu1 %2046 }
  0xca   : > { %11237 = vst [vmem:[#allocation41_spill] sm:$0xff] %v7076_v38 }
  0xcd   : > { %v7078_v39 = vpop.permute.xlu1 %2054 }
  0xce   : > { %11238 = vst [vmem:[#allocation42_spill] sm:$0xff] %v7078_v39 }
  0xd2   : > { %v7080_v41 = vpop.permute.xlu1 %2206 }
  0xd6   : > { %v7082_v45 = vpop.permute.xlu1 %2214 }
  0xda   : > { %v7086_v47 = vpop.permute.xlu1 %2218 }
  0xde   : > { %v7090_v51 = vpop.permute.xlu1 %2226 }
  0xe2   : > { %v7094_v55 = vpop.permute.xlu1 %2234 }
  0xe6   : > { %v7098_v8 = vpop.permute.xlu1 %2242 }
  0xea   : > { %v7108_v22 = vpop.permute.xlu1 %2250 }
  0xeb   : > { %11240 = vst [vmem:[#allocation44_spill] sm:$0xff] %v7108_v22 }
  0xf3   : > { %v382_v58 = vpop.f32.mrb[0].mxu0 }
  0xf4   : > { %v383_v3 = vadd.f32 %v382_v58, %v287_v40  ;;  %v384_v6 = vpop.f32.mrb[1].mxu0  ;;  %v7114_v58 = vpop.permute.xlu0 %2254 }
  0xf5   : > { %v385_v27 = vadd.f32 %v384_v6, %v287_v40  ;;  %11241 = vst [vmem:[#allocation45_spill] sm:$0xff] %v7114_v58 }
  0xf6   : > { %v7100_v10 = vmax.f32 %v383_v3, 0.0  ;;  %v7120_v3 = vpop.permute.xlu1 %2258 }
  0xf7   : > { %v388_v12 = vpop.f32.mrb[2].mxu0  ;;  %11242 = vst [vmem:[#allocation46_spill] sm:$0xff] %v7120_v3  ;;  %v7122_v1 = vmax.f32 %v385_v27, 0.0 }
  0xf8   : > { %v390_v16 = vpop.f32.mrb[3].mxu0  ;;  %491 = vrot.lane.b32.xlu0 %v7100_v10, %s6730_s22  ;;  %482 = vrot.lane.b32.xlu1 %v7100_v10, %s6731_s29  ;;  %v7128_v40 = vpop.permute.xlu0 %2262  ;;  %v389_v27 = vadd.f32 %v388_v12, %v292_v44 }
  0xf9   : > { %11243 = vst [vmem:[#allocation47_spill] sm:$0xff] %v7128_v40 }
  0xfa   : > { %v7130_v6 = vpop.permute.xlu1 %2266  ;;  %v7148_v39 = vmax.f32 %v389_v27, 0.0  ;;  %v391_v27 = vadd.f32 %v390_v16, %v292_v44 }
  0xfb   : > { %v394_v21 = vpop.f32.mrb[4].mxu0  ;;  %11244 = vst [vmem:[#allocation48_spill] sm:$0xff] %v7130_v6 }
  0xfc   : > { %v396_v24 = vpop.f32.mrb[5].mxu0  ;;  %509 = vrot.lane.b32.xlu0 %v7100_v10, %s6732_s8  ;;  %500 = vrot.lane.b32.xlu1 %v7100_v10, %s6733_s9  ;;  %v7136_v0 = vpop.permute.xlu0 %2270  ;;  %v7170_v35 = vmax.f32 %v391_v27, 0.0  ;;  %v395_v27 = vadd.f32 %v394_v21, %v7047_v14 }
  0xfd   : > { %11245 = vst [vmem:[#allocation49_spill] sm:$0xff] %v7136_v0  ;;  %v397_v21 = vadd.f32 %v396_v24, %v7047_v14 }
  0xfe   : > { %v7142_v13 = vpop.permute.xlu1 %2274  ;;  %v7201_v28 = vmax.f32 %v395_v27, 0.0 }
  0xff   : > { %11246 = vst [vmem:[#allocation50_spill] sm:$0xff] %v7142_v13  ;;  %v7224_v56 = vmax.f32 %v397_v21, 0.0 }
 0x100   : > { %527 = vrot.lane.b32.xlu0 %v7100_v10, %s6734_s13  ;;  %518 = vrot.lane.b32.xlu1 %v7100_v10, %s6735_s14  ;;  %v7150_v38 = vpop.permute.xlu0 %2278 }
 0x101   : > { %11247 = vst [vmem:[#allocation51_spill] sm:$0xff] %v7150_v38 }
 0x102   : > { %v7152_v37 = vpop.permute.xlu1 %2282 }
 0x103   : > { %11248 = vst [vmem:[#allocation52_spill] sm:$0xff] %v7152_v37 }
 0x104   : > { %548 = vrot.lane.b32.xlu0 %v7122_v1, %s6731_s29  ;;  %536 = vrot.lane.b32.xlu1 %v7100_v10, %s6736_s15  ;;  %v7158_v12 = vpop.permute.xlu0 %2286 }
 0x105   : > { %11249 = vst [vmem:[#allocation53_spill] sm:$0xff] %v7158_v12 }
 0x106   : > { %v7164_v36 = vpop.permute.xlu1 %2290 }
 0x107   : > { %11250 = vst [vmem:[#allocation54_spill] sm:$0xff] %v7164_v36 }
 0x108   : > { %566 = vrot.lane.b32.xlu0 %v7122_v1, %s6733_s9  ;;  %557 = vrot.lane.b32.xlu1 %v7122_v1, %s6730_s22  ;;  %v7172_v34 = vpop.permute.xlu0 %2294 }
 0x109   : > { %11251 = vst [vmem:[#allocation55_spill] sm:$0xff] %v7172_v34 }
 0x10a   : > { %v7174_v33 = vpop.permute.xlu1 %2298 }
 0x10b   : > { %11252 = vst [vmem:[#allocation56_spill] sm:$0xff] %v7174_v33 }
 0x10c   : > { %584 = vrot.lane.b32.xlu0 %v7122_v1, %s6735_s14  ;;  %575 = vrot.lane.b32.xlu1 %v7122_v1, %s6732_s8  ;;  %v7182_v16 = vpop.permute.xlu0 %2638 }
 0x10e   : > { %v7180_v44 = vpop.permute.xlu1 %2642 }
 0x110   : > { %602 = vrot.lane.b32.xlu0 %v7122_v1, %s6736_s15  ;;  %593 = vrot.lane.b32.xlu1 %v7122_v1, %s6734_s13  ;;  %v7195_v31 = vpop.permute.xlu0 %2650 }
 0x112   : > { %v7193_v32 = vpop.permute.xlu1 %2646 }
 0x114   : > { %484 = vrot.lane.b32.xlu0 %v7148_v39, %s6731_s29  ;;  %493 = vrot.lane.b32.xlu1 %v7148_v39, %s6730_s22  ;;  %v7205_v17 = vpop.permute.xlu0 %2658 }
 0x116   : > { %v7203_v30 = vpop.permute.xlu1 %2654 }
 0x118   : > { %502 = vrot.lane.b32.xlu0 %v7148_v39, %s6733_s9  ;;  %511 = vrot.lane.b32.xlu1 %v7148_v39, %s6732_s8  ;;  %v7218_v61 = vpop.permute.xlu0 %2666 }
 0x11a   : > { %v7216_v27 = vpop.permute.xlu1 %2662 }
 0x11c   : > { %520 = vrot.lane.b32.xlu0 %v7148_v39, %s6735_s14  ;;  %529 = vrot.lane.b32.xlu1 %v7148_v39, %s6734_s13  ;;  %v7228_v19 = vpop.permute.xlu0 %2674 }
 0x11e   : > { %v7226_v60 = vpop.permute.xlu1 %2670 }
 0x120   : > { %538 = vrot.lane.b32.xlu0 %v7148_v39, %s6736_s15  ;;  %550 = vrot.lane.b32.xlu1 %v7170_v35, %s6731_s29  ;;  %v7240_v24 = vpop.permute.xlu0 %2682 }
 0x121   : > { %11254 = vst [vmem:[#allocation58_spill] sm:$0xff] %v7240_v24 }
 0x122   : > { %v7238_v14 = vpop.permute.xlu1 %2678 }
 0x123   : > { %11253 = vst [vmem:[#allocation57_spill] sm:$0xff] %v7238_v14 }
 0x124   : > { %559 = vrot.lane.b32.xlu0 %v7170_v35, %s6730_s22  ;;  %568 = vrot.lane.b32.xlu1 %v7170_v35, %s6733_s9  ;;  %v7248_v54 = vpop.permute.xlu0 %2690 }
 0x125   : > { %11256 = vst [vmem:[#allocation60_spill] sm:$0xff] %v7248_v54 }
 0x126   : > { %v7246_v21 = vpop.permute.xlu1 %2686 }
 0x127   : > { %11255 = vst [vmem:[#allocation59_spill] sm:$0xff] %v7246_v21 }
 0x128   : > { %577 = vrot.lane.b32.xlu0 %v7170_v35, %s6732_s8  ;;  %586 = vrot.lane.b32.xlu1 %v7170_v35, %s6735_s14  ;;  %v7256_v59 = vpop.permute.xlu0 %2698 }
 0x129   : > { %11258 = vst [vmem:[#allocation62_spill] sm:$0xff] %v7256_v59 }
 0x12a   : > { %v7254_v15 = vpop.permute.xlu1 %2694 }
 0x12b   : > { %11257 = vst [vmem:[#allocation61_spill] sm:$0xff] %v7254_v15 }
 0x12c   : > { %595 = vrot.lane.b32.xlu0 %v7170_v35, %s6734_s13  ;;  %604 = vrot.lane.b32.xlu1 %v7170_v35, %s6736_s15  ;;  %v7260_v52 = vpop.permute.xlu0 %2706 }
 0x12d   : > { %11260 = vst [vmem:[#allocation64_spill] sm:$0xff] %v7260_v52 }
 0x12e   : > { %v7258_v11 = vpop.permute.xlu1 %2702 }
 0x12f   : > { %11259 = vst [vmem:[#allocation63_spill] sm:$0xff] %v7258_v11 }
 0x130   : > { %495 = vrot.lane.b32.xlu0 %v7201_v28, %s6730_s22  ;;  %486 = vrot.lane.b32.xlu1 %v7201_v28, %s6731_s29  ;;  %v7264_v57 = vpop.permute.xlu0 %2714 }
 0x131   : > { %11262 = vst [vmem:[#allocation66_spill] sm:$0xff] %v7264_v57 }
 0x132   : > { %v7262_v9 = vpop.permute.xlu1 %2710 }
 0x133   : > { %11261 = vst [vmem:[#allocation65_spill] sm:$0xff] %v7262_v9  ;;  %v7376_v9 = vsub.s32 %v615_v26, %v6845_v4 }
 0x134   : > { %513 = vrot.lane.b32.xlu0 %v7201_v28, %s6732_s8  ;;  %504 = vrot.lane.b32.xlu1 %v7201_v28, %s6733_s9  ;;  %v7268_v50 = vpop.permute.xlu0 %2722 }
 0x135   : > { %11264 = vst [vmem:[#allocation68_spill] sm:$0xff] %v7268_v50  ;;  %11268 = vst [vmem:[#allocation71_spill] sm:$0xff] %v7376_v9 }
 0x136   : > { %v7266_v7 = vpop.permute.xlu1 %2718 }
 0x137   : > { %11263 = vst [vmem:[#allocation67_spill] sm:$0xff] %v7266_v7 }
 0x138   : > { %531 = vrot.lane.b32.xlu0 %v7201_v28, %s6734_s13  ;;  %522 = vrot.lane.b32.xlu1 %v7201_v28, %s6735_s14  ;;  %v7272_v18 = vpop.permute.xlu0 %2730 }
 0x139   : > { %11266 = vst [vmem:[#allocation70_spill] sm:$0xff] %v7272_v18  ;;  %v6738_v18 = vmov 1934713408  }
 0x13a   : > { %v7270_v5 = vpop.permute.xlu1 %2726 }
 0x13b   : > { %11265 = vst [vmem:[#allocation69_spill] sm:$0xff] %v7270_v5  ;;  %v678_v5 = vunpack.c.l.s4 %v6738_v18 }
 0x13c   : > { %552 = vrot.lane.b32.xlu0 %v7224_v56, %s6731_s29  ;;  %540 = vrot.lane.b32.xlu1 %v7201_v28, %s6736_s15 }
 0x13d   : > { %v679_v43 = vunpack.c.0.s8 %v678_v5 }
 0x13f   : > { %v7385_v34 = vsub.s32 %v679_v43, %v6845_v4 }
 0x140   : > { %570 = vrot.lane.b32.xlu0 %v7224_v56, %s6733_s9  ;;  %561 = vrot.lane.b32.xlu1 %v7224_v56, %s6730_s22 }
 0x141   : > { %11269 = vst [vmem:[#allocation72_spill] sm:$0xff] %v7385_v34 }
 0x144   : > { %588 = vrot.lane.b32.xlu0 %v7224_v56, %s6735_s14  ;;  %579 = vrot.lane.b32.xlu1 %v7224_v56, %s6732_s8 }
 0x148   : > { %606 = vrot.lane.b32.xlu0 %v7224_v56, %s6736_s15  ;;  %597 = vrot.lane.b32.xlu1 %v7224_v56, %s6734_s13 }
 0x16a   : > { %v7274_v2 = vpop.permute.xlu0 %491  ;;  %v7276_v25 = vpop.permute.xlu1 %482 }
 0x16b   : > { %v611_v52 = vcombine.low %v7100_v10, %v7274_v2 }
 0x16d   : > { %v619_v49 = vrot.slane %v611_v52, %v7376_v9 }
 0x16e   : > { %v510_v42 = vpop.permute.xlu0 %509  ;;  %v501_v29 = vpop.permute.xlu1 %500 }
 0x16f   : > { %v627_v50 = vcombine.low %v7276_v25, %v501_v29  ;;  %v628_v40 = vcombine.high %v7276_v25, %v501_v29 }
 0x171   : > { %v635_v11 = vrot.slane %v627_v50, %v7376_v9 }
 0x172   : > { %v528_v7 = vpop.permute.xlu0 %527  ;;  %v519_v57 = vpop.permute.xlu1 %518 }
 0x173   : > { %v643_v59 = vcombine.low %v510_v42, %v528_v7  ;;  %v675_v36 = vcombine.low %v619_v49, %v635_v11  ;;  %v644_v15 = vcombine.high %v510_v42, %v528_v7  ;;  %v676_v3 = vcombine.high %v619_v49, %v635_v11 }
 0x175   : > { %v651_v26 = vrot.slane %v643_v59, %v7376_v9  ;;  %v683_v13 = vrot.slane %v675_v36, %v7385_v34 }
 0x176   : > { %v7381_v23 = vpop.permute.xlu0 %548  ;;  %v537_v33 = vpop.permute.xlu1 %536 }
 0x177   : > { %v659_v18 = vcombine.low %v519_v57, %v537_v33  ;;  %v660_v43 = vcombine.high %v519_v57, %v537_v33  ;;  %v612_v57 = vcombine.high %v7100_v10, %v7274_v2  ;;  %v7429_v2 = vrot.slane %v644_v15, %v7376_v9 }
 0x179   : > { %v667_v12 = vrot.slane %v659_v18, %v7376_v9  ;;  %v7414_v33 = vrot.slane %v660_v43, %v7376_v9  ;;  %v626_v15 = vrot.slane %v612_v57, %v7376_v9 }
 0x17a   : > { %v7389_v37 = vpop.permute.xlu0 %566  ;;  %v7391_v5 = vpop.permute.xlu1 %557 }
 0x17b   : > { %v707_v50 = vcombine.low %v651_v26, %v667_v12  ;;  %v763_v38 = vcombine.low %v7381_v23, %v7389_v37  ;;  %v747_v52 = vcombine.low %v7122_v1, %v7391_v5  ;;  %v708_v18 = vcombine.high %v651_v26, %v667_v12 }
 0x17d   : > { %v715_v4 = vrot.slane %v707_v50, %v7385_v34  ;;  %v7405_v54 = vrot.slane %v763_v38, %v7376_v9  ;;  %v7408_v58 = vrot.slane %v747_v52, %v7376_v9  ;;  %v722_v25 = vrot.slane %v708_v18, %v7385_v34 }
 0x17e   : > { %v7399_v0 = vpop.permute.xlu0 %584  ;;  %v7401_v59 = vpop.permute.xlu1 %575  ;;  %v7426_v38 = vrot.slane %v628_v40, %v7376_v9 }
 0x17f   : > { %v739_v6 = vcombine.low %v683_v13, %v715_v4  ;;  %v740_v11 = vcombine.high %v683_v13, %v715_v4  ;;  %v811_v10 = vcombine.low %v7408_v58, %v7405_v54  ;;  %v690_v13 = vrot.slane %v676_v3, %v7385_v34 }
 0x180   : > { %v723_v3 = vcombine.low %v7429_v2, %v7414_v33  ;;  %v691_v52 = vcombine.low %v626_v15, %v7426_v38 }
 0x181   : > { %1475 = vrot.lane.b32.xlu1 %v739_v6, %s6739_s16  ;;  %v741_v50 = vcombine.low %v690_v13, %v722_v25  ;;  %v819_v4 = vrot.slane %v811_v10, %v7385_v34  ;;  %v742_v57 = vcombine.high %v690_v13, %v722_v25  ;;  %v764_v10 = vcombine.high %v7381_v23, %v7389_v37 }
 0x182   : > { %v7416_v36 = vpop.permute.xlu0 %602  ;;  %v7418_v29 = vpop.permute.xlu1 %593  ;;  %v812_v25 = vcombine.high %v7408_v58, %v7405_v54  ;;  %v692_v54 = vcombine.high %v626_v15, %v7426_v38 }
 0x183   : > { %v795_v42 = vcombine.low %v7399_v0, %v7416_v36  ;;  %v779_v7 = vcombine.low %v7401_v59, %v7418_v29  ;;  %v778_v58 = vrot.slane %v764_v10, %v7376_v9 }
 0x185   : > { %v803_v6 = vrot.slane %v795_v42, %v7376_v9  ;;  %v787_v12 = vrot.slane %v779_v7, %v7376_v9  ;;  %1479 = vrot.lane.b32.xlu1 %v740_v11, %s6739_s16  ;;  %v731_v42 = vrot.slane %v723_v3, %v7385_v34  ;;  %v796_v7 = vcombine.high %v7399_v0, %v7416_v36 }
 0x186   : > { %v7488_v40 = vpop.permute.xlu0 %484  ;;  %v7490_v49 = vpop.permute.xlu1 %493  ;;  %v780_v11 = vcombine.high %v7401_v59, %v7418_v29  ;;  %v724_v0 = vcombine.high %v7429_v2, %v7414_v33  ;;  %v826_v33 = vrot.slane %v812_v25, %v7385_v34 }
 0x187   : > { %v843_v26 = vcombine.low %v787_v12, %v803_v6  ;;  %v844_v21 = vcombine.high %v787_v12, %v803_v6  ;;  %v810_v37 = vrot.slane %v796_v7, %v7376_v9  ;;  %v706_v7 = vrot.slane %v692_v54, %v7385_v34 }
 0x188   : > { %v794_v23 = vrot.slane %v780_v11, %v7376_v9  ;;  %v738_v38 = vrot.slane %v724_v0, %v7385_v34 }
 0x189   : > { %1483 = vrot.lane.b32.xlu1 %v741_v50, %s6739_s16  ;;  %v851_v43 = vrot.slane %v843_v26, %v7385_v34  ;;  %v699_v50 = vrot.slane %v691_v52, %v7385_v34  ;;  %v748_v26 = vcombine.high %v7122_v1, %v7391_v5  ;;  %v858_v5 = vrot.slane %v844_v21, %v7385_v34 }
 0x18a   : > { %v7496_v62 = vpop.permute.xlu0 %502  ;;  %v7498_v18 = vpop.permute.xlu1 %511  ;;  %v859_v13 = vcombine.low %v794_v23, %v810_v37 }
 0x18b   : > { %v875_v22 = vcombine.low %v819_v4, %v851_v43  ;;  %v743_v29 = vcombine.low %v699_v50, %v731_v42  ;;  %v876_v1 = vcombine.high %v819_v4, %v851_v43  ;;  %v899_v2 = vcombine.low %v7488_v40, %v7496_v62 }
 0x18c   : > { %v744_v3 = vcombine.high %v699_v50, %v731_v42  ;;  %v877_v52 = vcombine.low %v826_v33, %v858_v5  ;;  %v883_v4 = vcombine.low %v7148_v39, %v7490_v49  ;;  %v745_v50 = vcombine.low %v706_v7, %v738_v38 }
 0x18d   : > { %1487 = vrot.lane.b32.xlu1 %v742_v57, %s6739_s16  ;;  %1477 = vrot.lane.b32.xlu0 %v875_v22, %s6739_s16  ;;  %v762_v22 = vrot.slane %v748_v26, %v7376_v9  ;;  %v907_v11 = vrot.slane %v899_v2, %v7376_v9  ;;  %v878_v25 = vcombine.high %v826_v33, %v858_v5 }
 0x18e   : > { %v7516_v59 = vpop.permute.xlu0 %520  ;;  %v7518_v36 = vpop.permute.xlu1 %529  ;;  %v867_v0 = vrot.slane %v859_v13, %v7385_v34 }
 0x18f   : > { %v915_v6 = vcombine.low %v7498_v18, %v7518_v36  ;;  %v827_v43 = vcombine.low %v762_v22, %v778_v58  ;;  %v828_v5 = vcombine.high %v762_v22, %v778_v58 }
 0x191   : > { %1491 = vrot.lane.b32.xlu1 %v743_v29, %s6739_s16  ;;  %1481 = vrot.lane.b32.xlu0 %v876_v1, %s6739_s16  ;;  %v923_v10 = vrot.slane %v915_v6, %v7376_v9  ;;  %v891_v29 = vrot.slane %v883_v4, %v7376_v9  ;;  %v835_v54 = vrot.slane %v827_v43, %v7385_v34 }
 0x192   : > { %v7533_v12 = vpop.permute.xlu0 %538  ;;  %v7535_v21 = vpop.permute.xlu1 %550 }
 0x193   : > { %v931_v15 = vcombine.low %v7516_v59, %v7533_v12  ;;  %v947_v2 = vcombine.low %v891_v29, %v907_v11  ;;  %v879_v24 = vcombine.low %v835_v54, %v867_v0  ;;  %v880_v58 = vcombine.high %v835_v54, %v867_v0 }
 0x194   : > { %v900_v0 = vcombine.high %v7488_v40, %v7496_v62  ;;  %v948_v54 = vcombine.high %v891_v29, %v907_v11 }
 0x195   : > { %v939_v57 = vrot.slane %v931_v15, %v7376_v9  ;;  %1495 = vrot.lane.b32.xlu1 %v744_v3, %s6739_s16  ;;  %1485 = vrot.lane.b32.xlu0 %v877_v52, %s6739_s16  ;;  %v860_v3 = vcombine.high %v794_v23, %v810_v37  ;;  %v746_v52 = vcombine.high %v706_v7, %v738_v38 }
 0x196   : > { %v7548_v26 = vpop.permute.xlu0 %559  ;;  %v7550_v42 = vpop.permute.xlu1 %568  ;;  %v932_v38 = vcombine.high %v7516_v59, %v7533_v12  ;;  %v916_v59 = vcombine.high %v7498_v18, %v7518_v36  ;;  %v914_v18 = vrot.slane %v900_v0, %v7376_v9 }
 0x197   : > { %v979_v1 = vcombine.low %v923_v10, %v939_v57  ;;  %v1019_v13 = vcombine.low %v7170_v35, %v7548_v26  ;;  %v1035_v4 = vcombine.low %v7535_v21, %v7550_v42  ;;  %v874_v22 = vrot.slane %v860_v3, %v7385_v34 }
 0x198   : > { %v980_v7 = vcombine.high %v923_v10, %v939_v57  ;;  %v930_v36 = vrot.slane %v916_v59, %v7376_v9 }
 0x199   : > { %1499 = vrot.lane.b32.xlu1 %v745_v50, %s6739_s16  ;;  %1489 = vrot.lane.b32.xlu0 %v878_v25, %s6739_s16  ;;  %v987_v33 = vrot.slane %v979_v1, %v7385_v34  ;;  %v955_v25 = vrot.slane %v947_v2, %v7385_v34  ;;  %v1043_v20 = vrot.slane %v1035_v4, %v7376_v9 }
 0x19a   : > { %v7557_v15 = vpop.permute.xlu0 %577  ;;  %v7559_v6 = vpop.permute.xlu1 %586  ;;  %v994_v40 = vrot.slane %v980_v7, %v7385_v34 }
 0x19b   : > { %v1011_v1 = vcombine.low %v955_v25, %v987_v33  ;;  %v1012_v4 = vcombine.high %v955_v25, %v987_v33 }
 0x19d   : > { %1503 = vrot.lane.b32.xlu1 %v746_v52, %s6739_s16  ;;  %1493 = vrot.lane.b32.xlu0 %v879_v24, %s6739_s16  ;;  %v842_v52 = vrot.slane %v828_v5, %v7385_v34  ;;  %v1027_v24 = vrot.slane %v1019_v13, %v7376_v9  ;;  %v884_v5 = vcombine.high %v7148_v39, %v7490_v49 }
 0x19e   : > { %v596_v43 = vpop.permute.xlu0 %595  ;;  %v605_v50 = vpop.permute.xlu1 %604  ;;  %v946_v13 = vrot.slane %v932_v38, %v7376_v9  ;;  %v962_v39 = vrot.slane %v948_v54, %v7385_v34 }
 0x19f   : > { %v1051_v37 = vcombine.low %v7557_v15, %v596_v43  ;;  %v1067_v23 = vcombine.low %v7559_v6, %v605_v50  ;;  %v881_v3 = vcombine.low %v842_v52, %v874_v22  ;;  %v1083_v62 = vcombine.low %v1027_v24, %v1043_v20 }
 0x1a0   : > { %v882_v49 = vcombine.high %v842_v52, %v874_v22  ;;  %v898_v25 = vrot.slane %v884_v5, %v7376_v9  ;;  %v1052_v0 = vcombine.high %v7557_v15, %v596_v43  ;;  %v1068_v22 = vcombine.high %v7559_v6, %v605_v50 }
 0x1a1   : > { %v1059_v2 = vrot.slane %v1051_v37, %v7376_v9  ;;  %v1075_v14 = vrot.slane %v1067_v23, %v7376_v9  ;;  %1497 = vrot.lane.b32.xlu0 %v880_v58, %s6739_s16  ;;  %1507 = vrot.lane.b32.xlu1 %v1011_v1, %s6739_s16  ;;  %v995_v37 = vcombine.low %v930_v36, %v946_v13 }
 0x1a2   : > { %v7585_v12 = vpop.permute.xlu0 %495  ;;  %v7587_v57 = vpop.permute.xlu1 %486  ;;  %v1013_v23 = vcombine.low %v962_v39, %v994_v40  ;;  %v1091_v58 = vrot.slane %v1083_v62, %v7385_v34  ;;  %v963_v38 = vcombine.low %v898_v25, %v914_v18  ;;  %v1014_v59 = vcombine.high %v962_v39, %v994_v40 }
 0x1a3   : > { %v1115_v10 = vcombine.low %v1059_v2, %v1075_v14  ;;  %v1116_v52 = vcombine.high %v1059_v2, %v1075_v14  ;;  %v1036_v5 = vcombine.high %v7535_v21, %v7550_v42  ;;  %v1066_v6 = vrot.slane %v1052_v0, %v7376_v9 }
 0x1a4   : > { %v971_v14 = vrot.slane %v963_v38, %v7385_v34  ;;  %v1082_v43 = vrot.slane %v1068_v22, %v7376_v9  ;;  %v964_v40 = vcombine.high %v898_v25, %v914_v18 }
 0x1a5   : > { %1501 = vrot.lane.b32.xlu0 %v881_v3, %s6739_s16  ;;  %1511 = vrot.lane.b32.xlu1 %v1012_v4, %s6739_s16  ;;  %v1123_v33 = vrot.slane %v1115_v10, %v7385_v34  ;;  %v1003_v10 = vrot.slane %v995_v37, %v7385_v34  ;;  %v1020_v3 = vcombine.high %v7170_v35, %v7548_v26 }
 0x1a6   : > { %v7597_v11 = vpop.permute.xlu0 %513  ;;  %v7599_v29 = vpop.permute.xlu1 %504  ;;  %v1084_v4 = vcombine.high %v1027_v24, %v1043_v20  ;;  %v1130_v35 = vrot.slane %v1116_v52, %v7385_v34  ;;  %v996_v26 = vcombine.high %v930_v36, %v946_v13  ;;  %v1050_v24 = vrot.slane %v1036_v5, %v7376_v9 }
 0x1a7   : > { %v1147_v54 = vcombine.low %v1091_v58, %v1123_v33  ;;  %v1148_v50 = vcombine.high %v1091_v58, %v1123_v33  ;;  %v1015_v21 = vcombine.low %v971_v14, %v1003_v10  ;;  %v1034_v42 = vrot.slane %v1020_v3, %v7376_v9 }
 0x1a8   : > { %v1098_v2 = vrot.slane %v1084_v4, %v7385_v34  ;;  %v1171_v39 = vcombine.low %v7587_v57, %v7599_v29  ;;  %v1131_v33 = vcombine.low %v1066_v6, %v1082_v43  ;;  %v1016_v18 = vcombine.high %v971_v14, %v1003_v10 }
 0x1a9   : > { %1505 = vrot.lane.b32.xlu0 %v882_v49, %s6739_s16  ;;  %1515 = vrot.lane.b32.xlu1 %v1013_v23, %s6739_s16  ;;  %v1155_v23 = vcombine.low %v7201_v28, %v7585_v12  ;;  %v1010_v25 = vrot.slane %v996_v26, %v7385_v34  ;;  %v1099_v38 = vcombine.low %v1034_v42, %v1050_v24 }
 0x1aa   : > { %v7607_v7 = vpop.permute.xlu0 %531  ;;  %v7609_v1 = vpop.permute.xlu1 %522  ;;  %v1149_v37 = vcombine.low %v1098_v2, %v1130_v35  ;;  %v1179_v0 = vrot.slane %v1171_v39, %v7376_v9  ;;  %v1150_v3 = vcombine.high %v1098_v2, %v1130_v35  ;;  %v1139_v10 = vrot.slane %v1131_v33, %v7385_v34 }
 0x1ab   : > { %v1187_v49 = vcombine.low %v7597_v11, %v7607_v7  ;;  %v1163_v5 = vrot.slane %v1155_v23, %v7376_v9  ;;  %v1132_v39 = vcombine.high %v1066_v6, %v1082_v43 }
 0x1ad   : > { %1509 = vrot.lane.b32.xlu0 %v1147_v54, %s6739_s16  ;;  %1519 = vrot.lane.b32.xlu1 %v1014_v59, %s6739_s16  ;;  %v1195_v22 = vrot.slane %v1187_v49, %v7376_v9  ;;  %v978_v59 = vrot.slane %v964_v40, %v7385_v34  ;;  %v1219_v26 = vcombine.low %v1163_v5, %v1179_v0 }
 0x1ae   : > { %v7620_v62 = vpop.permute.xlu0 %552  ;;  %v7622_v15 = vpop.permute.xlu1 %540 }
 0x1af   : > { %v1203_v20 = vcombine.low %v7609_v1, %v7622_v15  ;;  %v1017_v14 = vcombine.low %v978_v59, %v1010_v25  ;;  %v1018_v49 = vcombine.high %v978_v59, %v1010_v25  ;;  %v1227_v6 = vrot.slane %v1219_v26, %v7385_v34 }
 0x1b0   : > { %v1146_v59 = vrot.slane %v1132_v39, %v7385_v34 }
 0x1b1   : > { %1513 = vrot.lane.b32.xlu0 %v1148_v50, %s6739_s16  ;;  %1523 = vrot.lane.b32.xlu1 %v1015_v21, %s6739_s16  ;;  %v1211_v58 = vrot.slane %v1203_v20, %v7376_v9  ;;  %v1107_v50 = vrot.slane %v1099_v38, %v7385_v34 }
 0x1b2   : > { %v7639_v13 = vpop.permute.xlu0 %570  ;;  %v7641_v36 = vpop.permute.xlu1 %561 }
 0x1b3   : > { %v1251_v4 = vcombine.low %v1195_v22, %v1211_v58  ;;  %v1151_v40 = vcombine.low %v1107_v50, %v1139_v10  ;;  %v1307_v23 = vcombine.low %v7620_v62, %v7639_v13  ;;  %v1152_v25 = vcombine.high %v1107_v50, %v1139_v10 }
 0x1b4   : > { %v1188_v10 = vcombine.high %v7597_v11, %v7607_v7 }
 0x1b5   : > { %1517 = vrot.lane.b32.xlu0 %v1149_v37, %s6739_s16  ;;  %1527 = vrot.lane.b32.xlu1 %v1016_v18, %s6739_s16  ;;  %v1259_v33 = vrot.slane %v1251_v4, %v7385_v34  ;;  %v1100_v37 = vcombine.high %v1034_v42, %v1050_v24  ;;  %v1291_v18 = vcombine.low %v7224_v56, %v7641_v36 }
 0x1b6   : > { %v7651_v52 = vpop.permute.xlu0 %588  ;;  %v7653_v54 = vpop.permute.xlu1 %579  ;;  %v1204_v42 = vcombine.high %v7609_v1, %v7622_v15  ;;  %v1252_v24 = vcombine.high %v1195_v22, %v1211_v58  ;;  %v1315_v4 = vrot.slane %v1307_v23, %v7376_v9  ;;  %v1156_v58 = vcombine.high %v7201_v28, %v7585_v12 }
 0x1b7   : > { %v1114_v26 = vrot.slane %v1100_v37, %v7385_v34  ;;  %v1284_v50 = vcombine.high %v1227_v6, %v1259_v33 }
 0x1b8   : > { %v1218_v22 = vrot.slane %v1204_v42, %v7376_v9  ;;  %v1266_v39 = vrot.slane %v1252_v24, %v7385_v34  ;;  %v1170_v28 = vrot.slane %v1156_v58, %v7376_v9  ;;  %v1308_v42 = vcombine.high %v7620_v62, %v7639_v13 }
 0x1b9   : > { %1521 = vrot.lane.b32.xlu0 %v1150_v3, %s6739_s16  ;;  %1531 = vrot.lane.b32.xlu1 %v1017_v14, %s6739_s16  ;;  %v1283_v3 = vcombine.low %v1227_v6, %v1259_v33  ;;  %v1299_v14 = vrot.slane %v1291_v18, %v7376_v9  ;;  %v1153_v15 = vcombine.low %v1114_v26, %v1146_v59 }
 0x1ba   : > { %v7661_v20 = vpop.permute.xlu0 %606  ;;  %v7663_v21 = vpop.permute.xlu1 %597  ;;  %v1154_v7 = vcombine.high %v1114_v26, %v1146_v59  ;;  %v1292_v24 = vcombine.high %v7224_v56, %v7641_v36  ;;  %v1322_v62 = vrot.slane %v1308_v42, %v7376_v9 }
 0x1bb   : > { %v1339_v35 = vcombine.low %v7651_v52, %v7661_v20  ;;  %v1323_v2 = vcombine.low %v7653_v54, %v7663_v21  ;;  %v1340_v37 = vcombine.high %v7651_v52, %v7661_v20  ;;  %v1324_v23 = vcombine.high %v7653_v54, %v7663_v21 }
 0x1bc   : > { %v1306_v56 = vrot.slane %v1292_v24, %v7376_v9 }
 0x1bd   : > { %1525 = vrot.lane.b32.xlu0 %v1151_v40, %s6739_s16  ;;  %1535 = vrot.lane.b32.xlu1 %v1018_v49, %s6739_s16  ;;  %v1347_v43 = vrot.slane %v1339_v35, %v7376_v9  ;;  %v1331_v38 = vrot.slane %v1323_v2, %v7376_v9  ;;  %v1172_v35 = vcombine.high %v7587_v57, %v7599_v29 }
 0x1be   : > { %v1220_v2 = vcombine.high %v1163_v5, %v1179_v0  ;;  %v1355_v40 = vcombine.low %v1299_v14, %v1315_v4  ;;  %v1202_v29 = vrot.slane %v1188_v10, %v7376_v9  ;;  %v1354_v54 = vrot.slane %v1340_v37, %v7376_v9 }
 0x1bf   : > { %v1387_v1 = vcombine.low %v1331_v38, %v1347_v43  ;;  %v1186_v57 = vrot.slane %v1172_v35, %v7376_v9  ;;  %v1388_v18 = vcombine.high %v1331_v38, %v1347_v43  ;;  %v1338_v20 = vrot.slane %v1324_v23, %v7376_v9  ;;  %v11362_v9 = vld [vmem:[#allocation23_spill] sm:$0xff] }
 0x1c0   : > { %v1234_v11 = vrot.slane %v1220_v2, %v7385_v34  ;;  %v1267_v12 = vcombine.low %v1202_v29, %v1218_v22  ;;  %v1363_v49 = vrot.slane %v1355_v40, %v7385_v34  ;;  %v1268_v38 = vcombine.high %v1202_v29, %v1218_v22 }
 0x1c1   : > { %1529 = vrot.lane.b32.xlu0 %v1152_v25, %s6739_s16  ;;  %1539 = vrot.lane.b32.xlu1 %v1283_v3, %s6739_s16  ;;  %v1395_v0 = vrot.slane %v1387_v1, %v7385_v34  ;;  %v1235_v33 = vcombine.low %v1170_v28, %v1186_v57  ;;  %v1356_v3 = vcombine.high %v1299_v14, %v1315_v4 }
 0x1c2   : > { %v1285_v5 = vcombine.low %v1234_v11, %v1266_v39  ;;  %v1286_v25 = vcombine.high %v1234_v11, %v1266_v39  ;;  %v1275_v59 = vrot.slane %v1267_v12, %v7385_v34  ;;  %v1402_v43 = vrot.slane %v1388_v18, %v7385_v34 }
 0x1c3   : > { %v1419_v6 = vcombine.low %v1363_v49, %v1395_v0  ;;  %v1243_v52 = vrot.slane %v1235_v33, %v7385_v34  ;;  %v1420_v21 = vcombine.high %v1363_v49, %v1395_v0  ;;  %v1370_v13 = vrot.slane %v1356_v3, %v7385_v34 }
 0x1c4   : > { %v1236_v36 = vcombine.high %v1170_v28, %v1186_v57  ;;  %v1403_v4 = vcombine.low %v1338_v20, %v1354_v54  ;;  %v1282_v2 = vrot.slane %v1268_v38, %v7385_v34  ;;  %v1371_v10 = vcombine.low %v1306_v56, %v1322_v62 }
 0x1c5   : > { %1533 = vrot.lane.b32.xlu0 %v1153_v15, %s6739_s16  ;;  %1543 = vrot.lane.b32.xlu1 %v1284_v50, %s6739_s16  ;;  %v1287_v26 = vcombine.low %v1243_v52, %v1275_v59  ;;  %v1421_v14 = vcombine.low %v1370_v13, %v1402_v43  ;;  %v1288_v35 = vcombine.high %v1243_v52, %v1275_v59 }
 0x1c6   : > { %v1250_v1 = vrot.slane %v1236_v36, %v7385_v34  ;;  %v1422_v15 = vcombine.high %v1370_v13, %v1402_v43  ;;  %v1411_v58 = vrot.slane %v1403_v4, %v7385_v34  ;;  %v1379_v50 = vrot.slane %v1371_v10, %v7385_v34 }
 0x1c7   : > { %v1404_v39 = vcombine.high %v1338_v20, %v1354_v54  ;;  %v1372_v29 = vcombine.high %v1306_v56, %v1322_v62 }
 0x1c8   : > { %v1289_v22 = vcombine.low %v1250_v1, %v1282_v2  ;;  %v1423_v40 = vcombine.low %v1379_v50, %v1411_v58  ;;  %v1290_v57 = vcombine.high %v1250_v1, %v1282_v2  ;;  %v1424_v11 = vcombine.high %v1379_v50, %v1411_v58 }
 0x1c9   : > { %1537 = vrot.lane.b32.xlu0 %v1154_v7, %s6739_s16  ;;  %1547 = vrot.lane.b32.xlu1 %v1285_v5, %s6739_s16  ;;  %v1418_v7 = vrot.slane %v1404_v39, %v7385_v34  ;;  %v1386_v0 = vrot.slane %v1372_v29, %v7385_v34 }
 0x1cb   : > { %v1425_v28 = vcombine.low %v1386_v0, %v1418_v7  ;;  %v1426_v12 = vcombine.high %v1386_v0, %v1418_v7 }
 0x1cd   : > { %1541 = vrot.lane.b32.xlu0 %v1419_v6, %s6739_s16  ;;  %1551 = vrot.lane.b32.xlu1 %v1286_v25, %s6739_s16 }
 0x1d1   : > { %1545 = vrot.lane.b32.xlu0 %v1420_v21, %s6739_s16  ;;  %1555 = vrot.lane.b32.xlu1 %v1287_v26, %s6739_s16 }
 0x1d5   : > { %1549 = vrot.lane.b32.xlu0 %v1421_v14, %s6739_s16  ;;  %1559 = vrot.lane.b32.xlu1 %v1288_v35, %s6739_s16 }
 0x1d9   : > { %1553 = vrot.lane.b32.xlu0 %v1422_v15, %s6739_s16  ;;  %1563 = vrot.lane.b32.xlu1 %v1289_v22, %s6739_s16 }
 0x1dd   : > { %1557 = vrot.lane.b32.xlu0 %v1423_v40, %s6739_s16  ;;  %1567 = vrot.lane.b32.xlu1 %v1290_v57, %s6739_s16 }
 0x1e1   : > { %1561 = vrot.lane.b32.xlu0 %v1424_v11, %s6739_s16 }
 0x1e5   : > { %1565 = vrot.lane.b32.xlu0 %v1425_v28, %s6739_s16 }
 0x1e9   : > { %1569 = vrot.lane.b32.xlu0 %v1426_v12, %s6739_s16 }
 0x1f3   : > { %v1476_v5 = vpop.permute.xlu1 %1475 }
 0x1f4   : > { %1620 = vst.msk [vmem:[#allocation2 + $0x1] sm:$0xff] %vm1619_vm4, %v1476_v5 }
 0x1f7   : > { %v1480_v49 = vpop.permute.xlu1 %1479 }
 0x1f8   : > { %1622 = vst.msk [vmem:[#allocation2 + $0x19] sm:$0xff] %vm1619_vm4, %v1480_v49 }
 0x1fb   : > { %v1484_v33 = vpop.permute.xlu1 %1483  ;;  %v2589_v37 = vld [vmem:[#allocation2] sm:$0xff] }
 0x1fc   : > { %1624 = vst.msk [vmem:[#allocation2 + $0x31] sm:$0xff] %vm1619_vm4, %v1484_v33  ;;  %v2733_v23 = vmul.f32 %v7182_v16, %v2589_v37  ;;  %v2301_v18 = vmul.f32 %v2589_v37, %v7080_v41 }
 0x1fe   : > { %2829 = vrot.lane.b32.xlu1 %v2733_v23, %s6740_s17  ;;  %2397 = vrot.lane.b32.xlu0 %v2301_v18, %s6741_s18  ;;  %v6742_v18 = vmov 3  }
 0x1ff   : > { %v1478_v6 = vpop.permute.xlu0 %1477  ;;  %v1488_v25 = vpop.permute.xlu1 %1487  ;;  %v2591_v59 = vld [vmem:[#allocation2 + $0x18] sm:$0xff]  ;;  %6549 = vset.pattern.permute.xlu0 %v6742_v18  ;;  %6548 = vset.pattern.permute.xlu1 %v6742_v18 }
 0x200   : > { %1621 = vst.msk [vmem:[#allocation2 + $0x9] sm:$0xff] %vm1619_vm4, %v1478_v6  ;;  %1626 = vst.msk [vmem:[#allocation2 + $0x49] sm:$0xff] %vm1619_vm4, %v1488_v25  ;;  %v2735_v42 = vmul.f32 %v7180_v44, %v2591_v59  ;;  %v2303_v24 = vmul.f32 %v2591_v59, %v7084_v46 }
 0x202   : > { %2833 = vrot.lane.b32.xlu1 %v2735_v42, %s6740_s17  ;;  %2401 = vrot.lane.b32.xlu0 %v2303_v24, %s6741_s18 }
 0x203   : > { %v1482_v3 = vpop.permute.xlu0 %1481  ;;  %v1492_v52 = vpop.permute.xlu1 %1491  ;;  %v2593_v54 = vld [vmem:[#allocation2 + $0x30] sm:$0xff] }
 0x204   : > { %1623 = vst.msk [vmem:[#allocation2 + $0x21] sm:$0xff] %vm1619_vm4, %v1482_v3  ;;  %1628 = vst.msk [vmem:[#allocation2 + $0x61] sm:$0xff] %vm1619_vm4, %v1492_v52  ;;  %v2737_v20 = vmul.f32 %v7193_v32, %v2593_v54  ;;  %v2305_v21 = vmul.f32 %v2593_v54, %v7082_v45 }
 0x206   : > { %2837 = vrot.lane.b32.xlu1 %v2737_v20, %s6740_s17  ;;  %2405 = vrot.lane.b32.xlu0 %v2305_v21, %s6741_s18 }
 0x207   : > { %v1486_v43 = vpop.permute.xlu0 %1485  ;;  %v1496_v38 = vpop.permute.xlu1 %1495  ;;  %v2595_v26 = vld [vmem:[#allocation2 + $0x48] sm:$0xff] }
 0x208   : > { %1625 = vst.msk [vmem:[#allocation2 + $0x39] sm:$0xff] %vm1619_vm4, %v1486_v43  ;;  %1630 = vst.msk [vmem:[#allocation2 + $0x79] sm:$0xff] %vm1619_vm4, %v1496_v38  ;;  %v2739_v62 = vmul.f32 %v7195_v31, %v2595_v26  ;;  %v2307_v56 = vmul.f32 %v2595_v26, %v7086_v47  ;;  %v2158_v12 = vld [vmem:[#allocation2 + $0x8] sm:$0xff] }
 0x209   : > { %v2302_v33 = vmul.f32 %v7080_v41, %v2158_v12  ;;  %v2734_v37 = vmul.f32 %v7182_v16, %v2158_v12 }
 0x20a   : > { %2841 = vrot.lane.b32.xlu1 %v2739_v62, %s6740_s17  ;;  %2409 = vrot.lane.b32.xlu0 %v2307_v56, %s6741_s18 }
 0x20b   : > { %v1490_v13 = vpop.permute.xlu0 %1489  ;;  %v1500_v36 = vpop.permute.xlu1 %1499  ;;  %v2597_v4 = vld [vmem:[#allocation2 + $0x60] sm:$0xff] }
 0x20c   : > { %1627 = vst.msk [vmem:[#allocation2 + $0x51] sm:$0xff] %vm1619_vm4, %v1490_v13  ;;  %1632 = vst.msk [vmem:[#allocation2 + $0x91] sm:$0xff] %vm1619_vm4, %v1500_v36  ;;  %v2741_v14 = vmul.f32 %v7203_v30, %v2597_v4  ;;  %v2309_v35 = vmul.f32 %v2597_v4, %v7088_v48  ;;  %v2160_v23 = vld [vmem:[#allocation2 + $0x20] sm:$0xff] }
 0x20d   : > { %v2304_v59 = vmul.f32 %v7084_v46, %v2160_v23  ;;  %v2736_v41 = vmul.f32 %v7180_v44, %v2160_v23  ;;  %v11273_v23 = vld [vmem:[#allocation44_spill] sm:$0xff] }
 0x20e   : > { %2845 = vrot.lane.b32.xlu1 %v2741_v14, %s6740_s17  ;;  %2413 = vrot.lane.b32.xlu0 %v2309_v35, %s6741_s18 }
 0x20f   : > { %v1494_v2 = vpop.permute.xlu0 %1493  ;;  %v1504_v10 = vpop.permute.xlu1 %1503  ;;  %v2599_v1 = vld [vmem:[#allocation2 + $0x78] sm:$0xff] }
 0x210   : > { %1629 = vst.msk [vmem:[#allocation2 + $0x69] sm:$0xff] %vm1619_vm4, %v1494_v2  ;;  %1634 = vst.msk [vmem:[#allocation2 + $0xa9] sm:$0xff] %vm1619_vm4, %v1504_v10  ;;  %v2743_v15 = vmul.f32 %v7205_v17, %v2599_v1  ;;  %v2311_v58 = vmul.f32 %v2599_v1, %v7090_v51  ;;  %v2162_v16 = vld [vmem:[#allocation2 + $0x38] sm:$0xff] }
 0x211   : > { %v2306_v3 = vmul.f32 %v7082_v45, %v2162_v16  ;;  %v2738_v52 = vmul.f32 %v7193_v32, %v2162_v16 }
 0x212   : > { %2849 = vrot.lane.b32.xlu1 %v2743_v15, %s6740_s17  ;;  %2417 = vrot.lane.b32.xlu0 %v2311_v58, %s6741_s18 }
 0x213   : > { %v1498_v22 = vpop.permute.xlu0 %1497  ;;  %v2601_v50 = vld [vmem:[#allocation2 + $0x90] sm:$0xff]  ;;  %v1508_v39 = vpop.permute.xlu1 %1507 }
 0x214   : > { %1631 = vst.msk [vmem:[#allocation2 + $0x81] sm:$0xff] %vm1619_vm4, %v1498_v22  ;;  %v2745_v40 = vmul.f32 %v7216_v27, %v2601_v50  ;;  %v2313_v57 = vmul.f32 %v2601_v50, %v7092_v53  ;;  %1636 = vst.msk [vmem:[#allocation2 + $0xc1] sm:$0xff] %vm1619_vm4, %v1508_v39  ;;  %v2164_v46 = vld [vmem:[#allocation2 + $0x50] sm:$0xff] }
 0x215   : > { %v2308_v20 = vmul.f32 %v7086_v47, %v2164_v46  ;;  %v2740_v21 = vmul.f32 %v7195_v31, %v2164_v46 }
 0x216   : > { %2853 = vrot.lane.b32.xlu1 %v2745_v40, %s6740_s17  ;;  %2421 = vrot.lane.b32.xlu0 %v2313_v57, %s6741_s18 }
 0x217   : > { %v1502_v29 = vpop.permute.xlu0 %1501  ;;  %v2603_v11 = vld [vmem:[#allocation2 + $0xa8] sm:$0xff]  ;;  %v1512_v7 = vpop.permute.xlu1 %1511 }
 0x218   : > { %1633 = vst.msk [vmem:[#allocation2 + $0x99] sm:$0xff] %vm1619_vm4, %v1502_v29  ;;  %v2747_v0 = vmul.f32 %v7218_v61, %v2603_v11  ;;  %v2315_v28 = vmul.f32 %v2603_v11, %v7094_v55  ;;  %1638 = vst.msk [vmem:[#allocation2 + $0xd9] sm:$0xff] %vm1619_vm4, %v1512_v7  ;;  %v2166_v45 = vld [vmem:[#allocation2 + $0x68] sm:$0xff] }
 0x219   : > { %v2310_v38 = vmul.f32 %v7088_v48, %v2166_v45  ;;  %v2742_v26 = vmul.f32 %v7203_v30, %v2166_v45  ;;  %v11270_v11 = vld [vmem:[#allocation57_spill] sm:$0xff] }
 0x21a   : > { %2857 = vrot.lane.b32.xlu1 %v2747_v0, %s6740_s17  ;;  %2425 = vrot.lane.b32.xlu0 %v2315_v28, %s6741_s18  ;;  %v11271_v0 = vld [vmem:[#allocation43_spill] sm:$0xff] }
 0x21b   : > { %v1506_v5 = vpop.permute.xlu0 %1505  ;;  %v1516_v49 = vpop.permute.xlu1 %1515  ;;  %v2168_v47 = vld [vmem:[#allocation2 + $0x80] sm:$0xff] }
 0x21c   : > { %1635 = vst.msk [vmem:[#allocation2 + $0xb1] sm:$0xff] %vm1619_vm4, %v1506_v5  ;;  %1640 = vst.msk [vmem:[#allocation2 + $0xf1] sm:$0xff] %vm1619_vm4, %v1516_v49  ;;  %v2312_v56 = vmul.f32 %v7090_v51, %v2168_v47  ;;  %v2744_v13 = vmul.f32 %v7205_v17, %v2168_v47 }
 0x21e   : > { %2399 = vrot.lane.b32.xlu1 %v2302_v33, %s6741_s18  ;;  %2831 = vrot.lane.b32.xlu0 %v2734_v37, %s6740_s17  ;;  %v11272_v33 = vld [vmem:[#allocation58_spill] sm:$0xff] }
 0x21f   : > { %v1510_v6 = vpop.permute.xlu0 %1509  ;;  %v1520_v25 = vpop.permute.xlu1 %1519  ;;  %v2170_v48 = vld [vmem:[#allocation2 + $0x98] sm:$0xff] }
 0x220   : > { %1637 = vst.msk [vmem:[#allocation2 + $0xc9] sm:$0xff] %vm1619_vm4, %v1510_v6  ;;  %1642 = vst.msk [vmem:[#allocation2 + $0x109] sm:$0xff] %vm1619_vm4, %v1520_v25  ;;  %v2314_v4 = vmul.f32 %v7092_v53, %v2170_v48  ;;  %v2746_v14 = vmul.f32 %v7216_v27, %v2170_v48  ;;  %v2605_v53 = vld [vmem:[#allocation2 + $0xc0] sm:$0xff] }
 0x221   : > { %v2749_v15 = vmul.f32 %v7226_v60, %v2605_v53  ;;  %v2317_v58 = vmul.f32 %v2605_v53, %v7096_v63  ;;  %v11280_v48 = vld [vmem:[#allocation48_spill] sm:$0xff] }
 0x222   : > { %2403 = vrot.lane.b32.xlu1 %v2304_v59, %s6741_s18  ;;  %2835 = vrot.lane.b32.xlu0 %v2736_v41, %s6740_s17  ;;  %v11274_v41 = vld [vmem:[#allocation59_spill] sm:$0xff] }
 0x223   : > { %v1514_v42 = vpop.permute.xlu0 %1513  ;;  %v1524_v24 = vpop.permute.xlu1 %1523  ;;  %v2172_v51 = vld [vmem:[#allocation2 + $0xb0] sm:$0xff] }
 0x224   : > { %1639 = vst.msk [vmem:[#allocation2 + $0xe1] sm:$0xff] %vm1619_vm4, %v1514_v42  ;;  %1644 = vst.msk [vmem:[#allocation2 + $0x121] sm:$0xff] %vm1619_vm4, %v1524_v24  ;;  %v2316_v2 = vmul.f32 %v7094_v55, %v2172_v51  ;;  %v2748_v10 = vmul.f32 %v7218_v61, %v2172_v51  ;;  %v2607_v55 = vld [vmem:[#allocation2 + $0xd8] sm:$0xff]  ;;  %v2609_v40 = vld [vmem:[#allocation2 + $0xf0] sm:$0xff] }
 0x225   : > { %v2751_v50 = vmul.f32 %v7228_v19, %v2607_v55  ;;  %v2319_v39 = vmul.f32 %v2607_v55, %v7098_v8  ;;  %v2753_v7 = vmul.f32 %v11270_v11, %v2609_v40  ;;  %v2321_v28 = vmul.f32 %v2609_v40, %v11271_v0  ;;  %v11275_v42 = vld [vmem:[#allocation45_spill] sm:$0xff] }
 0x226   : > { %2407 = vrot.lane.b32.xlu1 %v2306_v3, %s6741_s18  ;;  %2839 = vrot.lane.b32.xlu0 %v2738_v52, %s6740_s17 }
 0x227   : > { %v1518_v44 = vpop.permute.xlu0 %1517  ;;  %v1528_v54 = vpop.permute.xlu1 %1527  ;;  %v2611_v12 = vld [vmem:[#allocation2 + $0x108] sm:$0xff] }
 0x228   : > { %1641 = vst.msk [vmem:[#allocation2 + $0xf9] sm:$0xff] %vm1619_vm4, %v1518_v44  ;;  %1646 = vst.msk [vmem:[#allocation2 + $0x139] sm:$0xff] %vm1619_vm4, %v1528_v54  ;;  %v2755_v37 = vmul.f32 %v11272_v33, %v2611_v12  ;;  %v2323_v18 = vmul.f32 %v2611_v12, %v11273_v23  ;;  %v11276_v44 = vld [vmem:[#allocation60_spill] sm:$0xff] }
 0x22a   : > { %2411 = vrot.lane.b32.xlu1 %v2308_v20, %s6741_s18  ;;  %2843 = vrot.lane.b32.xlu0 %v2740_v21, %s6740_s17  ;;  %v11277_v20 = vld [vmem:[#allocation46_spill] sm:$0xff] }
 0x22b   : > { %v1522_v32 = vpop.permute.xlu0 %1521  ;;  %v1532_v43 = vpop.permute.xlu1 %1531  ;;  %v2613_v6 = vld [vmem:[#allocation2 + $0x120] sm:$0xff] }
 0x22c   : > { %1643 = vst.msk [vmem:[#allocation2 + $0x111] sm:$0xff] %vm1619_vm4, %v1522_v32  ;;  %1648 = vst.msk [vmem:[#allocation2 + $0x151] sm:$0xff] %vm1619_vm4, %v1532_v43  ;;  %v2757_v16 = vmul.f32 %v11274_v41, %v2613_v6  ;;  %v2325_v24 = vmul.f32 %v2613_v6, %v11275_v42  ;;  %v11278_v43 = vld [vmem:[#allocation61_spill] sm:$0xff] }
 0x22e   : > { %2415 = vrot.lane.b32.xlu1 %v2310_v38, %s6741_s18  ;;  %2847 = vrot.lane.b32.xlu0 %v2742_v26, %s6740_s17  ;;  %v11279_v26 = vld [vmem:[#allocation47_spill] sm:$0xff] }
 0x22f   : > { %v1526_v31 = vpop.permute.xlu0 %1525  ;;  %v1536_v62 = vpop.permute.xlu1 %1535  ;;  %v2615_v3 = vld [vmem:[#allocation2 + $0x138] sm:$0xff] }
 0x230   : > { %1645 = vst.msk [vmem:[#allocation2 + $0x129] sm:$0xff] %vm1619_vm4, %v1526_v31  ;;  %1650 = vst.msk [vmem:[#allocation2 + $0x169] sm:$0xff] %vm1619_vm4, %v1536_v62  ;;  %v2759_v54 = vmul.f32 %v11276_v44, %v2615_v3  ;;  %v2327_v21 = vmul.f32 %v2615_v3, %v11277_v20  ;;  %v2174_v31 = vld [vmem:[#allocation2 + $0xc8] sm:$0xff] }
 0x231   : > { %v2750_v51 = vmul.f32 %v7226_v60, %v2174_v31 }
 0x232   : > { %2419 = vrot.lane.b32.xlu1 %v2312_v56, %s6741_s18  ;;  %2851 = vrot.lane.b32.xlu0 %v2744_v13, %s6740_s17  ;;  %v2318_v13 = vmul.f32 %v7096_v63, %v2174_v31 }
 0x233   : > { %v1530_v30 = vpop.permute.xlu0 %1529  ;;  %v1540_v36 = vpop.permute.xlu1 %1539  ;;  %v2617_v45 = vld [vmem:[#allocation2 + $0x150] sm:$0xff] }
 0x234   : > { %1647 = vst.msk [vmem:[#allocation2 + $0x141] sm:$0xff] %vm1619_vm4, %v1530_v30  ;;  %1652 = vst.msk [vmem:[#allocation2 + $0x181] sm:$0xff] %vm1619_vm4, %v1540_v36  ;;  %v2761_v38 = vmul.f32 %v11278_v43, %v2617_v45  ;;  %v2329_v47 = vmul.f32 %v2617_v45, %v11279_v26  ;;  %v2176_v36 = vld [vmem:[#allocation2 + $0xe0] sm:$0xff] }
 0x236   : > { %2423 = vrot.lane.b32.xlu1 %v2314_v4, %s6741_s18  ;;  %2855 = vrot.lane.b32.xlu0 %v2746_v14, %s6740_s17  ;;  %v2320_v14 = vmul.f32 %v7098_v8, %v2176_v36 }
 0x237   : > { %v1534_v17 = vpop.permute.xlu0 %1533  ;;  %v1544_v35 = vpop.permute.xlu1 %1543  ;;  %v7876_v62 = vld [vmem:[#allocation2 + $0x168] sm:$0xff] }
 0x238   : > { %1649 = vst.msk [vmem:[#allocation2 + $0x159] sm:$0xff] %vm1619_vm4, %v1534_v17  ;;  %1654 = vst.msk [vmem:[#allocation2 + $0x199] sm:$0xff] %vm1619_vm4, %v1544_v35  ;;  %v2331_v30 = vmul.f32 %v11280_v48, %v7876_v62  ;;  %v2178_v17 = vld [vmem:[#allocation2 + $0xf8] sm:$0xff]  ;;  %v2752_v35 = vmul.f32 %v7228_v19, %v2176_v36  ;;  %v2182_v53 = vld [vmem:[#allocation2 + $0x128] sm:$0xff] }
 0x239   : > { %v2322_v63 = vmul.f32 %v11271_v0, %v2178_v17  ;;  %v2754_v8 = vmul.f32 %v11270_v11, %v2178_v17  ;;  %v2326_v60 = vmul.f32 %v11275_v42, %v2182_v53  ;;  %v11302_v17 = vld [vmem:[#allocation54_spill] sm:$0xff] }
 0x23a   : > { %2427 = vrot.lane.b32.xlu1 %v2316_v2, %s6741_s18  ;;  %2859 = vrot.lane.b32.xlu0 %v2748_v10, %s6740_s17  ;;  %v2180_v2 = vld [vmem:[#allocation2 + $0x110] sm:$0xff] }
 0x23b   : > { %v1538_v27 = vpop.permute.xlu0 %1537  ;;  %v1548_v1 = vpop.permute.xlu1 %1547  ;;  %v2324_v10 = vmul.f32 %v11273_v23, %v2180_v2  ;;  %v7926_v0 = vld [vmem:[#allocation2 + $0x180] sm:$0xff] }
 0x23c   : > { %1651 = vst.msk [vmem:[#allocation2 + $0x171] sm:$0xff] %vm1619_vm4, %v1538_v27  ;;  %1656 = vst.msk [vmem:[#allocation2 + $0x1b1] sm:$0xff] %vm1619_vm4, %v1548_v1  ;;  %v2756_v27 = vmul.f32 %v11272_v33, %v2180_v2  ;;  %v2184_v1 = vld [vmem:[#allocation2 + $0x140] sm:$0xff] }
 0x23d   : > { %v2328_v19 = vmul.f32 %v11277_v20, %v2184_v1 }
 0x23e   : > { %2861 = vrot.lane.b32.xlu1 %v2749_v15, %s6740_s17  ;;  %2429 = vrot.lane.b32.xlu0 %v2317_v58, %s6741_s18  ;;  %v2758_v15 = vmul.f32 %v11274_v41, %v2182_v53 }
 0x23f   : > { %v1542_v61 = vpop.permute.xlu0 %1541  ;;  %v1552_v22 = vpop.permute.xlu1 %1551  ;;  %v2186_v58 = vld [vmem:[#allocation2 + $0x158] sm:$0xff] }
 0x240   : > { %1653 = vst.msk [vmem:[#allocation2 + $0x189] sm:$0xff] %vm1619_vm4, %v1542_v61  ;;  %1658 = vst.msk [vmem:[#allocation2 + $0x1c9] sm:$0xff] %vm1619_vm4, %v1552_v22  ;;  %v2330_v22 = vmul.f32 %v11279_v26, %v2186_v58  ;;  %v2762_v11 = vmul.f32 %v11278_v43, %v2186_v58  ;;  %v7940_v23 = vld [vmem:[#allocation2 + $0x198] sm:$0xff] }
 0x242   : > { %2865 = vrot.lane.b32.xlu1 %v2751_v50, %s6740_s17  ;;  %2433 = vrot.lane.b32.xlu0 %v2319_v39, %s6741_s18  ;;  %v2760_v50 = vmul.f32 %v11276_v44, %v2184_v1 }
 0x243   : > { %v1546_v57 = vpop.permute.xlu0 %1545  ;;  %v1556_v29 = vpop.permute.xlu1 %1555  ;;  %v7913_v39 = vld [vmem:[#allocation2 + $0x170] sm:$0xff] }
 0x244   : > { %1655 = vst.msk [vmem:[#allocation2 + $0x1a1] sm:$0xff] %vm1619_vm4, %v1546_v57  ;;  %1660 = vst.msk [vmem:[#allocation2 + $0x1e1] sm:$0xff] %vm1619_vm4, %v1556_v29  ;;  %v2332_v29 = vmul.f32 %v11280_v48, %v7913_v39  ;;  %v7954_v42 = vld [vmem:[#allocation2 + $0x1b0] sm:$0xff] }
 0x246   : > { %2869 = vrot.lane.b32.xlu1 %v2753_v7, %s6740_s17  ;;  %2437 = vrot.lane.b32.xlu0 %v2321_v28, %s6741_s18 }
 0x247   : > { %v1550_v5 = vpop.permute.xlu0 %1549  ;;  %v1560_v49 = vpop.permute.xlu1 %1559  ;;  %v7924_v7 = vld [vmem:[#allocation2 + $0x188] sm:$0xff] }
 0x248   : > { %1657 = vst.msk [vmem:[#allocation2 + $0x1b9] sm:$0xff] %vm1619_vm4, %v1550_v5  ;;  %1662 = vst.msk [vmem:[#allocation2 + $0x1f9] sm:$0xff] %vm1619_vm4, %v1560_v49  ;;  %v11287_v5 = vld [vmem:[#allocation49_spill] sm:$0xff] }
 0x249   : > { %v2334_v49 = vmul.f32 %v11287_v5, %v7924_v7  ;;  %v2333_v33 = vmul.f32 %v11287_v5, %v7926_v0  ;;  %v7968_v20 = vld [vmem:[#allocation2 + $0x1c8] sm:$0xff] }
 0x24a   : > { %2873 = vrot.lane.b32.xlu1 %v2755_v37, %s6740_s17  ;;  %2441 = vrot.lane.b32.xlu0 %v2323_v18, %s6741_s18 }
 0x24b   : > { %v1554_v25 = vpop.permute.xlu0 %1553  ;;  %v1564_v59 = vpop.permute.xlu1 %1563  ;;  %v7938_v37 = vld [vmem:[#allocation2 + $0x1a0] sm:$0xff] }
 0x24c   : > { %1659 = vst.msk [vmem:[#allocation2 + $0x1d1] sm:$0xff] %vm1619_vm4, %v1554_v25  ;;  %1664 = vst.msk [vmem:[#allocation2 + $0x211] sm:$0xff] %vm1619_vm4, %v1564_v59  ;;  %v11290_v25 = vld [vmem:[#allocation50_spill] sm:$0xff] }
 0x24d   : > { %v2336_v59 = vmul.f32 %v11290_v25, %v7938_v37  ;;  %v2335_v41 = vmul.f32 %v11290_v25, %v7940_v23 }
 0x24e   : > { %2877 = vrot.lane.b32.xlu1 %v2757_v16, %s6740_s17  ;;  %2445 = vrot.lane.b32.xlu0 %v2325_v24, %s6741_s18 }
 0x24f   : > { %v1558_v52 = vpop.permute.xlu0 %1557  ;;  %v1568_v46 = vpop.permute.xlu1 %1567  ;;  %v7952_v16 = vld [vmem:[#allocation2 + $0x1b8] sm:$0xff] }
 0x250   : > { %1661 = vst.msk [vmem:[#allocation2 + $0x1e9] sm:$0xff] %vm1619_vm4, %v1558_v52  ;;  %1666 = vst.msk [vmem:[#allocation2 + $0x229] sm:$0xff] %vm1619_vm4, %v1568_v46  ;;  %v11293_v52 = vld [vmem:[#allocation51_spill] sm:$0xff] }
 0x251   : > { %v2338_v46 = vmul.f32 %v11293_v52, %v7952_v16  ;;  %v2337_v44 = vmul.f32 %v11293_v52, %v7954_v42 }
 0x252   : > { %2881 = vrot.lane.b32.xlu1 %v2759_v54, %s6740_s17  ;;  %2449 = vrot.lane.b32.xlu0 %v2327_v21, %s6741_s18 }
 0x253   : > { %v1562_v32 = vpop.permute.xlu0 %1561  ;;  %v7966_v54 = vld [vmem:[#allocation2 + $0x1d0] sm:$0xff] }
 0x254   : > { %1663 = vst.msk [vmem:[#allocation2 + $0x201] sm:$0xff] %vm1619_vm4, %v1562_v32  ;;  %v11296_v32 = vld [vmem:[#allocation52_spill] sm:$0xff] }
 0x255   : > { %v2340_v43 = vmul.f32 %v11296_v32, %v7966_v54 }
 0x256   : > { %2885 = vrot.lane.b32.xlu1 %v2761_v38, %s6740_s17  ;;  %2453 = vrot.lane.b32.xlu0 %v2329_v47, %s6741_s18  ;;  %v2339_v38 = vmul.f32 %v11296_v32, %v7968_v20  ;;  %v7982_v47 = vld [vmem:[#allocation2 + $0x1e0] sm:$0xff]  ;;  %v11315_v32 = vld [vmem:[#allocation10_spill] sm:$0xff] }
 0x257   : > { %v1566_v56 = vpop.permute.xlu0 %1565  ;;  %v7980_v26 = vld [vmem:[#allocation2 + $0x1e8] sm:$0xff] }
 0x258   : > { %1665 = vst.msk [vmem:[#allocation2 + $0x219] sm:$0xff] %vm1619_vm4, %v1566_v56 }
 0x25a   : > { %2431 = vrot.lane.b32.xlu1 %v2318_v13, %s6741_s18  ;;  %2457 = vrot.lane.b32.xlu0 %v2331_v30, %s6741_s18  ;;  %v11299_v13 = vld [vmem:[#allocation53_spill] sm:$0xff] }
 0x25b   : > { %v1570_v4 = vpop.permute.xlu0 %1569  ;;  %v2342_v48 = vmul.f32 %v11299_v13, %v7980_v26  ;;  %v2341_v30 = vmul.f32 %v11299_v13, %v7982_v47  ;;  %v7994_v36 = vld [vmem:[#allocation2 + $0x200] sm:$0xff] }
 0x25c   : > { %1667 = vst.msk [vmem:[#allocation2 + $0x231] sm:$0xff] %vm1619_vm4, %v1570_v4  ;;  %v2199_v4 = vld [vmem:[#allocation2 + $0x1f8] sm:$0xff] }
 0x25e   : > { %2435 = vrot.lane.b32.xlu1 %v2320_v14, %s6741_s18  ;;  %2863 = vrot.lane.b32.xlu0 %v2750_v51, %s6740_s17 }
 0x25f   : > { %v8005_v2 = vld [vmem:[#allocation2 + $0x218] sm:$0xff] }
 0x262   : > { %2439 = vrot.lane.b32.xlu1 %v2322_v63, %s6741_s18  ;;  %2867 = vrot.lane.b32.xlu0 %v2752_v35, %s6740_s17  ;;  %v2344_v63 = vmul.f32 %v11302_v17, %v7994_v36  ;;  %v2343_v35 = vmul.f32 %v11302_v17, %v2199_v4 }
 0x266   : > { %2443 = vrot.lane.b32.xlu1 %v2324_v10, %s6741_s18  ;;  %2871 = vrot.lane.b32.xlu0 %v2754_v8, %s6740_s17  ;;  %v2201_v10 = vld [vmem:[#allocation2 + $0x210] sm:$0xff] }
 0x26a   : > { %2447 = vrot.lane.b32.xlu1 %v2326_v60, %s6741_s18  ;;  %2875 = vrot.lane.b32.xlu0 %v2756_v27, %s6740_s17  ;;  %v11305_v60 = vld [vmem:[#allocation55_spill] sm:$0xff] }
 0x26b   : > { %v2346_v27 = vmul.f32 %v11305_v60, %v8005_v2  ;;  %v2345_v1 = vmul.f32 %v11305_v60, %v2201_v10 }
 0x26e   : > { %2451 = vrot.lane.b32.xlu1 %v2328_v19, %s6741_s18  ;;  %2879 = vrot.lane.b32.xlu0 %v2758_v15, %s6740_s17  ;;  %v8016_v19 = vld [vmem:[#allocation2 + $0x230] sm:$0xff]  ;;  %v2203_v15 = vld [vmem:[#allocation2 + $0x228] sm:$0xff] }
 0x270   : > { %v7907_v55 = vpop.permute.xlu0 %2397  ;;  %v7909_v61 = vpop.permute.xlu1 %2829 }
 0x271   : > { %11281 = vst [vmem:[#allocation57_spill] sm:$0xff] %v7907_v55  ;;  %11282 = vst [vmem:[#allocation43_spill] sm:$0xff] %v7909_v61  ;;  %v8456_v55 = vld [vmem:[#allocation2 + $0x181] sm:$0xff] }
 0x272   : > { %2455 = vrot.lane.b32.xlu1 %v2330_v22, %s6741_s18  ;;  %2883 = vrot.lane.b32.xlu0 %v2760_v50, %s6740_s17  ;;  %v11308_v50 = vld [vmem:[#allocation56_spill] sm:$0xff]  ;;  %11445 = vst [vmem:[#allocation149_spill] sm:$0xff] %v8456_v55 }
 0x274   : > { %v7917_v40 = vpop.permute.xlu0 %2401  ;;  %v7919_v57 = vpop.permute.xlu1 %2833 }
 0x275   : > { %11283 = vst [vmem:[#allocation58_spill] sm:$0xff] %v7917_v40  ;;  %11284 = vst [vmem:[#allocation44_spill] sm:$0xff] %v7919_v57 }
 0x276   : > { %2459 = vrot.lane.b32.xlu1 %v2332_v29, %s6741_s18  ;;  %2887 = vrot.lane.b32.xlu0 %v2762_v11, %s6740_s17  ;;  %v2348_v29 = vmul.f32 %v11308_v50, %v8016_v19  ;;  %v2347_v11 = vmul.f32 %v11308_v50, %v2203_v15 }
 0x278   : > { %v7930_v28 = vpop.permute.xlu0 %2405  ;;  %v7932_v12 = vpop.permute.xlu1 %2837 }
 0x279   : > { %11285 = vst [vmem:[#allocation59_spill] sm:$0xff] %v7930_v28  ;;  %11286 = vst [vmem:[#allocation45_spill] sm:$0xff] %v7932_v12 }
 0x27a   : > { %2463 = vrot.lane.b32.xlu1 %v2334_v49, %s6741_s18  ;;  %2461 = vrot.lane.b32.xlu0 %v2333_v33, %s6741_s18  ;;  %v11311_v33 = vld [vmem:[#allocation62_spill] sm:$0xff] }
 0x27b   : > { %v2763_v25 = vmul.f32 %v11311_v33, %v7876_v62 }
 0x27c   : > { %v7944_v18 = vpop.permute.xlu0 %2409  ;;  %v7946_v6 = vpop.permute.xlu1 %2841 }
 0x27d   : > { %11288 = vst [vmem:[#allocation60_spill] sm:$0xff] %v7944_v18  ;;  %11289 = vst [vmem:[#allocation46_spill] sm:$0xff] %v7946_v6  ;;  %v6743_v18 = vmov 4  }
 0x27e   : > { %2467 = vrot.lane.b32.xlu1 %v2336_v59, %s6741_s18  ;;  %2465 = vrot.lane.b32.xlu0 %v2335_v41, %s6741_s18  ;;  %v2764_v59 = vmul.f32 %v11311_v33, %v7913_v39  ;;  %v11318_v39 = vld [vmem:[#allocation64_spill] sm:$0xff] }
 0x280   : > { %v7958_v24 = vpop.permute.xlu0 %2413  ;;  %v7960_v3 = vpop.permute.xlu1 %2845 }
 0x281   : > { %11291 = vst [vmem:[#allocation61_spill] sm:$0xff] %v7958_v24  ;;  %11292 = vst [vmem:[#allocation47_spill] sm:$0xff] %v7960_v3  ;;  %v8400_v3 = vld [vmem:[#allocation2 + $0xd9] sm:$0xff]  ;;  %v8448_v24 = vld [vmem:[#allocation2 + $0x169] sm:$0xff] }
 0x282   : > { %2471 = vrot.lane.b32.xlu1 %v2338_v46, %s6741_s18  ;;  %2469 = vrot.lane.b32.xlu0 %v2337_v44, %s6741_s18  ;;  %v11314_v46 = vld [vmem:[#allocation63_spill] sm:$0xff]  ;;  %11443 = vst [vmem:[#allocation147_spill] sm:$0xff] %v8448_v24 }
 0x283   : > { %v2765_v44 = vmul.f32 %v11314_v46, %v7926_v0  ;;  %v2766_v13 = vmul.f32 %v11314_v46, %v7924_v7 }
 0x284   : > { %v7972_v21 = vpop.permute.xlu0 %2417  ;;  %v7974_v45 = vpop.permute.xlu1 %2849 }
 0x285   : > { %11294 = vst [vmem:[#allocation48_spill] sm:$0xff] %v7972_v21  ;;  %11295 = vst [vmem:[#allocation49_spill] sm:$0xff] %v7974_v45  ;;  %v11375_v45 = vld [vmem:[#allocation14_spill] sm:$0xff] }
 0x286   : > { %2475 = vrot.lane.b32.xlu1 %v2340_v43, %s6741_s18  ;;  %2473 = vrot.lane.b32.xlu0 %v2339_v38, %s6741_s18  ;;  %v2767_v38 = vmul.f32 %v11318_v39, %v7940_v23 }
 0x288   : > { %v7986_v31 = vpop.permute.xlu0 %2421  ;;  %v7988_v56 = vpop.permute.xlu1 %2853 }
 0x289   : > { %11297 = vst [vmem:[#allocation50_spill] sm:$0xff] %v7986_v31  ;;  %11298 = vst [vmem:[#allocation51_spill] sm:$0xff] %v7988_v56 }
 0x28a   : > { %2479 = vrot.lane.b32.xlu1 %v2342_v48, %s6741_s18  ;;  %2477 = vrot.lane.b32.xlu0 %v2341_v30, %s6741_s18  ;;  %v11321_v30 = vld [vmem:[#allocation65_spill] sm:$0xff] }
 0x28b   : > { %v2769_v17 = vmul.f32 %v11321_v30, %v7954_v42 }
 0x28c   : > { %v7998_v14 = vpop.permute.xlu0 %2425  ;;  %v8000_v51 = vpop.permute.xlu1 %2857 }
 0x28d   : > { %11300 = vst [vmem:[#allocation52_spill] sm:$0xff] %v7998_v14  ;;  %11301 = vst [vmem:[#allocation53_spill] sm:$0xff] %v8000_v51 }
 0x28e   : > { %2483 = vrot.lane.b32.xlu1 %v2344_v63, %s6741_s18  ;;  %2481 = vrot.lane.b32.xlu0 %v2343_v35, %s6741_s18  ;;  %v2768_v63 = vmul.f32 %v11318_v39, %v7938_v37  ;;  %v11324_v35 = vld [vmem:[#allocation66_spill] sm:$0xff] }
 0x28f   : > { %v2771_v60 = vmul.f32 %v11324_v35, %v7968_v20  ;;  %v11336_v39 = vld [vmem:[#allocation70_spill] sm:$0xff] }
 0x290   : > { %v8009_v8 = vpop.permute.xlu0 %2831  ;;  %v8011_v53 = vpop.permute.xlu1 %2399 }
 0x291   : > { %11303 = vst [vmem:[#allocation54_spill] sm:$0xff] %v8009_v8  ;;  %11304 = vst [vmem:[#allocation73_spill] sm:$0xff] %v8011_v53  ;;  %v8392_v8 = vld [vmem:[#allocation2 + $0xc1] sm:$0xff]  ;;  %v8440_v53 = vld [vmem:[#allocation2 + $0x151] sm:$0xff] }
 0x292   : > { %2487 = vrot.lane.b32.xlu1 %v2346_v27, %s6741_s18  ;;  %2485 = vrot.lane.b32.xlu0 %v2345_v1, %s6741_s18  ;;  %v2770_v27 = vmul.f32 %v11321_v30, %v7952_v16  ;;  %v11327_v1 = vld [vmem:[#allocation67_spill] sm:$0xff]  ;;  %v2780_v30 = vmul.f32 %v11336_v39, %v8016_v19 }
 0x293   : > { %v2773_v50 = vmul.f32 %v11327_v1, %v7982_v47 }
 0x294   : > { %v8020_v58 = vpop.permute.xlu0 %2835  ;;  %v8022_v22 = vpop.permute.xlu1 %2403 }
 0x295   : > { %11306 = vst [vmem:[#allocation55_spill] sm:$0xff] %v8020_v58  ;;  %11307 = vst [vmem:[#allocation74_spill] sm:$0xff] %v8022_v22 }
 0x296   : > { %2491 = vrot.lane.b32.xlu1 %v2348_v29, %s6741_s18  ;;  %2489 = vrot.lane.b32.xlu0 %v2347_v11, %s6741_s18  ;;  %v2772_v29 = vmul.f32 %v11324_v35, %v7966_v54  ;;  %v11330_v11 = vld [vmem:[#allocation68_spill] sm:$0xff]  ;;  %v11343_v35 = vld [vmem:[#allocation9_spill] sm:$0xff] }
 0x297   : > { %v2775_v33 = vmul.f32 %v11330_v11, %v2199_v4 }
 0x298   : > { %v8029_v5 = vpop.permute.xlu0 %2839  ;;  %v8031_v49 = vpop.permute.xlu1 %2407 }
 0x299   : > { %11309 = vst [vmem:[#allocation56_spill] sm:$0xff] %v8029_v5  ;;  %11310 = vst [vmem:[#allocation75_spill] sm:$0xff] %v8031_v49 }
 0x29a   : > { %2889 = vrot.lane.b32.xlu1 %v2763_v25, %s6740_s17  ;;  %2891 = vrot.lane.b32.xlu0 %v2764_v59, %s6740_s17  ;;  %v2774_v25 = vmul.f32 %v11327_v1, %v7980_v26  ;;  %v11333_v59 = vld [vmem:[#allocation69_spill] sm:$0xff]  ;;  %v11346_v1 = vld [vmem:[#allocation11_spill] sm:$0xff] }
 0x29b   : > { %v2777_v46 = vmul.f32 %v11333_v59, %v2201_v10 }
 0x29c   : > { %v8039_v41 = vpop.permute.xlu0 %2843  ;;  %v8041_v52 = vpop.permute.xlu1 %2411 }
 0x29d   : > { %11312 = vst [vmem:[#allocation62_spill] sm:$0xff] %v8039_v41  ;;  %11313 = vst [vmem:[#allocation76_spill] sm:$0xff] %v8041_v52  ;;  %v11382_v41 = vld [vmem:[#allocation15_spill] sm:$0xff] }
 0x29e   : > { %2893 = vrot.lane.b32.xlu1 %v2765_v44, %s6740_s17  ;;  %3074 = vperm.xlu0 %6549, %v11315_v32   ;;  %v2776_v44 = vmul.f32 %v11330_v11, %v7994_v36  ;;  %v11350_v11 = vld [vmem:[#allocation20_spill] sm:$0xff] }
 0x2a0   : > { %v8047_v43 = vpop.permute.xlu0 %2847  ;;  %v8049_v62 = vpop.permute.xlu1 %2415 }
 0x2a1   : > { %11316 = vst [vmem:[#allocation63_spill] sm:$0xff] %v8047_v43  ;;  %11317 = vst [vmem:[#allocation10_spill] sm:$0xff] %v8049_v62  ;;  %v8384_v43 = vld [vmem:[#allocation2 + $0xa9] sm:$0xff]  ;;  %v8432_v62 = vld [vmem:[#allocation2 + $0x139] sm:$0xff] }
 0x2a2   : > { %2897 = vrot.lane.b32.xlu1 %v2767_v38, %s6740_s17  ;;  %2895 = vrot.lane.b32.xlu0 %v2766_v13, %s6740_s17  ;;  %v2779_v38 = vmul.f32 %v11336_v39, %v2203_v15  ;;  %v2778_v13 = vmul.f32 %v11333_v59, %v8005_v2  ;;  %v11342_v2 = vld [vmem:[#allocation8_spill] sm:$0xff] }
 0x2a4   : > { %v8057_v48 = vpop.permute.xlu0 %2851  ;;  %v8059_v0 = vpop.permute.xlu1 %2419 }
 0x2a5   : > { %11319 = vst [vmem:[#allocation64_spill] sm:$0xff] %v8057_v48  ;;  %11320 = vst [vmem:[#allocation77_spill] sm:$0xff] %v8059_v0  ;;  %v11374_v48 = vld [vmem:[#allocation26_spill] sm:$0xff] }
 0x2a6   : > { %2901 = vrot.lane.b32.xlu1 %v2769_v17, %s6740_s17  ;;  %2899 = vrot.lane.b32.xlu0 %v2768_v63, %s6740_s17  ;;  %v11339_v17 = vld [vmem:[#allocation7_spill] sm:$0xff] }
 0x2a8   : > { %v8067_v23 = vpop.permute.xlu0 %2855  ;;  %v8069_v7 = vpop.permute.xlu1 %2423 }
 0x2a9   : > { %11322 = vst [vmem:[#allocation65_spill] sm:$0xff] %v8067_v23  ;;  %11323 = vst [vmem:[#allocation78_spill] sm:$0xff] %v8069_v7  ;;  %v8376_v23 = vld [vmem:[#allocation2 + $0x91] sm:$0xff] }
 0x2aa   : > { %2905 = vrot.lane.b32.xlu1 %v2771_v60, %s6740_s17  ;;  %2903 = vrot.lane.b32.xlu0 %v2770_v27, %s6740_s17 }
 0x2ac   : > { %v8077_v42 = vpop.permute.xlu0 %2859  ;;  %v8079_v37 = vpop.permute.xlu1 %2427 }
 0x2ad   : > { %11325 = vst [vmem:[#allocation66_spill] sm:$0xff] %v8077_v42  ;;  %11326 = vst [vmem:[#allocation79_spill] sm:$0xff] %v8079_v37  ;;  %v11370_v42 = vld [vmem:[#allocation25_spill] sm:$0xff]  ;;  %v11378_v37 = vld [vmem:[#allocation27_spill] sm:$0xff] }
 0x2ae   : > { %2909 = vrot.lane.b32.xlu1 %v2773_v50, %s6740_s17  ;;  %2907 = vrot.lane.b32.xlu0 %v2772_v29, %s6740_s17  ;;  %v11347_v50 = vld [vmem:[#allocation28_spill] sm:$0xff] }
 0x2b0   : > { %v8087_v20 = vpop.permute.xlu0 %2429  ;;  %v8089_v16 = vpop.permute.xlu1 %2861 }
 0x2b1   : > { %11328 = vst [vmem:[#allocation67_spill] sm:$0xff] %v8087_v20  ;;  %11329 = vst [vmem:[#allocation80_spill] sm:$0xff] %v8089_v16  ;;  %v8424_v20 = vld [vmem:[#allocation2 + $0x121] sm:$0xff] }
 0x2b2   : > { %2913 = vrot.lane.b32.xlu1 %v2775_v33, %s6740_s17  ;;  %2911 = vrot.lane.b32.xlu0 %v2774_v25, %s6740_s17  ;;  %v11351_v33 = vld [vmem:[#allocation29_spill] sm:$0xff] }
 0x2b4   : > { %v8096_v47 = vpop.permute.xlu0 %2433  ;;  %v8098_v54 = vpop.permute.xlu1 %2865 }
 0x2b5   : > { %11331 = vst [vmem:[#allocation68_spill] sm:$0xff] %v8096_v47  ;;  %11332 = vst [vmem:[#allocation81_spill] sm:$0xff] %v8098_v54  ;;  %v11366_v54 = vld [vmem:[#allocation24_spill] sm:$0xff] }
 0x2b6   : > { %2917 = vrot.lane.b32.xlu1 %v2777_v46, %s6740_s17  ;;  %2915 = vrot.lane.b32.xlu0 %v2776_v44, %s6740_s17  ;;  %v11354_v46 = vld [vmem:[#allocation21_spill] sm:$0xff]  ;;  %v11355_v44 = vld [vmem:[#allocation30_spill] sm:$0xff] }
 0x2b8   : > { %v8105_v4 = vpop.permute.xlu0 %2437  ;;  %v8107_v26 = vpop.permute.xlu1 %2869 }
 0x2b9   : > { %11334 = vst [vmem:[#allocation69_spill] sm:$0xff] %v8105_v4  ;;  %11335 = vst [vmem:[#allocation82_spill] sm:$0xff] %v8107_v26  ;;  %v8368_v26 = vld [vmem:[#allocation2 + $0x79] sm:$0xff] }
 0x2ba   : > { %2921 = vrot.lane.b32.xlu1 %v2779_v38, %s6740_s17  ;;  %2919 = vrot.lane.b32.xlu0 %v2778_v13, %s6740_s17  ;;  %v11358_v13 = vld [vmem:[#allocation22_spill] sm:$0xff] }
 0x2bc   : > { %v8114_v10 = vpop.permute.xlu0 %2441  ;;  %v8116_v36 = vpop.permute.xlu1 %2873 }
 0x2bd   : > { %11337 = vst [vmem:[#allocation70_spill] sm:$0xff] %v8114_v10  ;;  %11338 = vst [vmem:[#allocation83_spill] sm:$0xff] %v8116_v36  ;;  %v11367_v10 = vld [vmem:[#allocation13_spill] sm:$0xff] }
 0x2be   : > { %3070 = vperm.xlu1 %6548, %v11339_v17   ;;  %2923 = vrot.lane.b32.xlu0 %v2780_v30, %s6740_s17  ;;  %v11359_v30 = vld [vmem:[#allocation12_spill] sm:$0xff] }
 0x2c0   : > { %v8122_v63 = vpop.permute.xlu0 %2445  ;;  %v8124_v15 = vpop.permute.xlu1 %2877 }
 0x2c1   : > { %11340 = vst [vmem:[#allocation7_spill] sm:$0xff] %v8122_v63  ;;  %11341 = vst [vmem:[#allocation84_spill] sm:$0xff] %v8124_v15  ;;  %v8416_v63 = vld [vmem:[#allocation2 + $0x109] sm:$0xff] }
 0x2c2   : > { %3086 = vperm.xlu0 %6549, %v11342_v2   ;;  %3078 = vperm.xlu1 %6548, %v11343_v35  }
 0x2c4   : > { %v8128_v60 = vpop.permute.xlu0 %2449  ;;  %v8130_v27 = vpop.permute.xlu1 %2881 }
 0x2c5   : > { %11344 = vst [vmem:[#allocation8_spill] sm:$0xff] %v8128_v60  ;;  %11345 = vst [vmem:[#allocation9_spill] sm:$0xff] %v8130_v27 }
 0x2c6   : > { %3094 = vperm.xlu0 %6549, %v11346_v1   ;;  %3082 = vperm.xlu1 %6548, %v11347_v50  }
 0x2c8   : > { %v8134_v19 = vpop.permute.xlu0 %2453  ;;  %v8136_v29 = vpop.permute.xlu1 %2885 }
 0x2c9   : > { %11348 = vst [vmem:[#allocation11_spill] sm:$0xff] %v8134_v19  ;;  %11349 = vst [vmem:[#allocation28_spill] sm:$0xff] %v8136_v29  ;;  %v8360_v29 = vld [vmem:[#allocation2 + $0x61] sm:$0xff]  ;;  %v8408_v19 = vld [vmem:[#allocation2 + $0xf1] sm:$0xff] }
 0x2ca   : > { %3102 = vperm.xlu0 %6549, %v11350_v11   ;;  %3090 = vperm.xlu1 %6548, %v11351_v33  }
 0x2cc   : > { %v8140_v25 = vpop.permute.xlu0 %2457  ;;  %v8142_v59 = vpop.permute.xlu1 %2431 }
 0x2cd   : > { %11352 = vst [vmem:[#allocation20_spill] sm:$0xff] %v8140_v25  ;;  %11353 = vst [vmem:[#allocation29_spill] sm:$0xff] %v8142_v59  ;;  %v11363_v25 = vld [vmem:[#allocation16_spill] sm:$0xff] }
 0x2ce   : > { %3110 = vperm.xlu0 %6549, %v11354_v46   ;;  %3098 = vperm.xlu1 %6548, %v11355_v44  }
 0x2d0   : > { %v8146_v39 = vpop.permute.xlu0 %2863  ;;  %v8148_v38 = vpop.permute.xlu1 %2435 }
 0x2d1   : > { %11356 = vst [vmem:[#allocation21_spill] sm:$0xff] %v8146_v39  ;;  %11357 = vst [vmem:[#allocation30_spill] sm:$0xff] %v8148_v38 }
 0x2d2   : > { %3118 = vperm.xlu0 %6549, %v11358_v13   ;;  %3106 = vperm.xlu1 %6548, %v11359_v30  }
 0x2d4   : > { %v8152_v27 = vpop.permute.xlu0 %2867  ;;  %v8154_v34 = vpop.permute.xlu1 %2439 }
 0x2d5   : > { %11360 = vst [vmem:[#allocation22_spill] sm:$0xff] %v8152_v27  ;;  %11361 = vst [vmem:[#allocation12_spill] sm:$0xff] %v8154_v34  ;;  %v11371_v27 = vld [vmem:[#allocation17_spill] sm:$0xff] }
 0x2d6   : > { %3126 = vperm.xlu0 %6549, %v11362_v9   ;;  %3114 = vperm.xlu1 %6548, %v11363_v25   ;;  %v8352_v34 = vld [vmem:[#allocation2 + $0x49] sm:$0xff] }
 0x2d8   : > { %v8158_v60 = vpop.permute.xlu0 %2871  ;;  %v8160_v36 = vpop.permute.xlu1 %2443 }
 0x2d9   : > { %11364 = vst [vmem:[#allocation23_spill] sm:$0xff] %v8158_v60  ;;  %11365 = vst [vmem:[#allocation16_spill] sm:$0xff] %v8160_v36 }
 0x2da   : > { %3134 = vperm.xlu0 %6549, %v11366_v54   ;;  %3122 = vperm.xlu1 %6548, %v11367_v10  }
 0x2dc   : > { %v8164_v47 = vpop.permute.xlu0 %2875  ;;  %v8166_v51 = vpop.permute.xlu1 %2447 }
 0x2dd   : > { %11368 = vst [vmem:[#allocation24_spill] sm:$0xff] %v8164_v47  ;;  %11369 = vst [vmem:[#allocation13_spill] sm:$0xff] %v8166_v51  ;;  %v11379_v47 = vld [vmem:[#allocation18_spill] sm:$0xff] }
 0x2de   : > { %3142 = vperm.xlu0 %6549, %v11370_v42   ;;  %3130 = vperm.xlu1 %6548, %v11371_v27  }
 0x2e0   : > { %v8170_v14 = vpop.permute.xlu0 %2879  ;;  %v8172_v38 = vpop.permute.xlu1 %2451 }
 0x2e1   : > { %11372 = vst [vmem:[#allocation25_spill] sm:$0xff] %v8170_v14  ;;  %11373 = vst [vmem:[#allocation17_spill] sm:$0xff] %v8172_v38 }
 0x2e2   : > { %3150 = vperm.xlu0 %6549, %v11374_v48   ;;  %3138 = vperm.xlu1 %6548, %v11375_v45  }
 0x2e4   : > { %v8176_v36 = vpop.permute.xlu0 %2883  ;;  %v8178_v6 = vpop.permute.xlu1 %2455 }
 0x2e5   : > { %11376 = vst [vmem:[#allocation14_spill] sm:$0xff] %v8176_v36  ;;  %11377 = vst [vmem:[#allocation85_spill] sm:$0xff] %v8178_v6  ;;  %v11385_v36 = vld [vmem:[#allocation19_spill] sm:$0xff] }
 0x2e6   : > { %3158 = vperm.xlu0 %6549, %v11378_v37   ;;  %3146 = vperm.xlu1 %6548, %v11379_v47  }
 0x2e8   : > { %v8182_v0 = vpop.permute.xlu0 %2887  ;;  %v8184_v21 = vpop.permute.xlu1 %2459 }
 0x2e9   : > { %11380 = vst [vmem:[#allocation86_spill] sm:$0xff] %v8182_v0  ;;  %11381 = vst [vmem:[#allocation87_spill] sm:$0xff] %v8184_v21 }
 0x2ea   : > { %6550 = vset.pattern.permute.xlu0 %v6743_v18  ;;  %3154 = vperm.xlu1 %6548, %v11382_v41  }
 0x2eb   : > { %3310 = vperm.xlu0 %6550, %v11339_v17  }
 0x2ec   : > { %v8188_v38 = vpop.permute.xlu0 %2461  ;;  %v8190_v57 = vpop.permute.xlu1 %2463 }
 0x2ed   : > { %11383 = vst [vmem:[#allocation88_spill] sm:$0xff] %v8188_v38  ;;  %11384 = vst [vmem:[#allocation89_spill] sm:$0xff] %v8190_v57 }
 0x2ee   : > { %3162 = vperm.xlu1 %6548, %v11385_v36  }
 0x2ef   : > { %3322 = vperm.xlu0 %6550, %v11347_v50  }
 0x2f0   : > { %v8194_v52 = vpop.permute.xlu0 %2465  ;;  %v8196_v58 = vpop.permute.xlu1 %2467 }
 0x2f1   : > { %11386 = vst [vmem:[#allocation90_spill] sm:$0xff] %v8194_v52  ;;  %11387 = vst [vmem:[#allocation91_spill] sm:$0xff] %v8196_v58 }
 0x2f2   : > { %6551 = vset.pattern.permute.xlu1 %v6743_v18 }
 0x2f3   : > { %3330 = vperm.xlu0 %6550, %v11351_v33   ;;  %3314 = vperm.xlu1 %6551, %v11315_v32  }
 0x2f4   : > { %v8200_v21 = vpop.permute.xlu1 %2471  ;;  %v8202_v40 = vpop.permute.xlu0 %2469 }
 0x2f5   : > { %11388 = vst [vmem:[#allocation92_spill] sm:$0xff] %v8200_v21  ;;  %11389 = vst [vmem:[#allocation93_spill] sm:$0xff] %v8202_v40 }
 0x2f7   : > { %3338 = vperm.xlu0 %6550, %v11355_v44   ;;  %3318 = vperm.xlu1 %6551, %v11343_v35  }
 0x2f8   : > { %v8206_v57 = vpop.permute.xlu1 %2475  ;;  %v8208_v22 = vpop.permute.xlu0 %2473 }
 0x2f9   : > { %11390 = vst [vmem:[#allocation94_spill] sm:$0xff] %v8206_v57  ;;  %11391 = vst [vmem:[#allocation95_spill] sm:$0xff] %v8208_v22 }
 0x2fb   : > { %3346 = vperm.xlu0 %6550, %v11359_v30   ;;  %3326 = vperm.xlu1 %6551, %v11342_v2  }
 0x2fc   : > { %v8212_v18 = vpop.permute.xlu1 %2479  ;;  %v8218_v58 = vpop.permute.xlu0 %2477 }
 0x2fd   : > { %11392 = vst [vmem:[#allocation96_spill] sm:$0xff] %v8212_v18  ;;  %11394 = vst [vmem:[#allocation98_spill] sm:$0xff] %v8218_v58 }
 0x2ff   : > { %3354 = vperm.xlu0 %6550, %v11363_v25   ;;  %3334 = vperm.xlu1 %6551, %v11346_v1  }
 0x300   : > { %v8216_v52 = vpop.permute.xlu1 %2483  ;;  %v8224_v22 = vpop.permute.xlu0 %2481 }
 0x301   : > { %11393 = vst [vmem:[#allocation97_spill] sm:$0xff] %v8216_v52  ;;  %11396 = vst [vmem:[#allocation100_spill] sm:$0xff] %v8224_v22 }
 0x303   : > { %3362 = vperm.xlu0 %6550, %v11367_v10   ;;  %3342 = vperm.xlu1 %6551, %v11350_v11  }
 0x304   : > { %v8222_v57 = vpop.permute.xlu1 %2487  ;;  %v8234_v58 = vpop.permute.xlu0 %2485 }
 0x305   : > { %11395 = vst [vmem:[#allocation99_spill] sm:$0xff] %v8222_v57  ;;  %11399 = vst [vmem:[#allocation103_spill] sm:$0xff] %v8234_v58 }
 0x307   : > { %3370 = vperm.xlu0 %6550, %v11371_v27   ;;  %3350 = vperm.xlu1 %6551, %v11354_v46  }
 0x308   : > { %v8228_v18 = vpop.permute.xlu1 %2491  ;;  %v8240_v22 = vpop.permute.xlu0 %2489 }
 0x309   : > { %11397 = vst [vmem:[#allocation101_spill] sm:$0xff] %v8228_v18  ;;  %11401 = vst [vmem:[#allocation105_spill] sm:$0xff] %v8240_v22 }
 0x30b   : > { %3378 = vperm.xlu0 %6550, %v11375_v45   ;;  %3358 = vperm.xlu1 %6551, %v11358_v13  }
 0x30c   : > { %v8232_v52 = vpop.permute.xlu1 %2889  ;;  %v8248_v21 = vpop.permute.xlu0 %2891 }
 0x30d   : > { %11398 = vst [vmem:[#allocation102_spill] sm:$0xff] %v8232_v52  ;;  %11403 = vst [vmem:[#allocation107_spill] sm:$0xff] %v8248_v21 }
 0x30f   : > { %3386 = vperm.xlu0 %6550, %v11379_v47   ;;  %3366 = vperm.xlu1 %6551, %v11362_v9  }
 0x310   : > { %v8238_v57 = vpop.permute.xlu1 %2893 }
 0x311   : > { %11400 = vst [vmem:[#allocation104_spill] sm:$0xff] %v8238_v57 }
 0x313   : > { %3394 = vperm.xlu0 %6550, %v11382_v41   ;;  %3374 = vperm.xlu1 %6551, %v11366_v54  }
 0x314   : > { %v8244_v18 = vpop.permute.xlu1 %2897 }
 0x315   : > { %11402 = vst [vmem:[#allocation106_spill] sm:$0xff] %v8244_v18 }
 0x317   : > { %3402 = vperm.xlu0 %6550, %v11385_v36   ;;  %3382 = vperm.xlu1 %6551, %v11370_v42  }
 0x318   : > { %v8250_v58 = vpop.permute.xlu1 %2901 }
 0x319   : > { %11404 = vst [vmem:[#allocation108_spill] sm:$0xff] %v8250_v58 }
 0x31b   : > { %3390 = vperm.xlu1 %6551, %v11374_v48  }
 0x31c   : > { %v8256_v22 = vpop.permute.xlu1 %2905 }
 0x31d   : > { %v8253_v40 = vpop.permute.xlu0 %3074  ;;  %11406 = vst [vmem:[#allocation110_spill] sm:$0xff] %v8256_v22 }
 0x31e   : > { %11405 = vst [vmem:[#allocation109_spill] sm:$0xff] %v8253_v40 }
 0x31f   : > { %3398 = vperm.xlu1 %6551, %v11378_v37  }
 0x320   : > { %v8262_v18 = vpop.permute.xlu1 %2909 }
 0x321   : > { %v8258_v57 = vpop.permute.xlu0 %2895  ;;  %11409 = vst [vmem:[#allocation113_spill] sm:$0xff] %v8262_v18 }
 0x322   : > { %11407 = vst [vmem:[#allocation111_spill] sm:$0xff] %v8258_v57 }
 0x324   : > { %v8266_v0 = vpop.permute.xlu1 %2913 }
 0x325   : > { %v8260_v52 = vpop.permute.xlu0 %2899  ;;  %11411 = vst [vmem:[#allocation115_spill] sm:$0xff] %v8266_v0 }
 0x326   : > { %11408 = vst [vmem:[#allocation112_spill] sm:$0xff] %v8260_v52 }
 0x328   : > { %v8272_v14 = vpop.permute.xlu1 %2917 }
 0x329   : > { %v8264_v38 = vpop.permute.xlu0 %2903  ;;  %11414 = vst [vmem:[#allocation118_spill] sm:$0xff] %v8272_v14 }
 0x32a   : > { %11410 = vst [vmem:[#allocation114_spill] sm:$0xff] %v8264_v38 }
 0x32c   : > { %v8276_v60 = vpop.permute.xlu1 %2921 }
 0x32d   : > { %v8268_v21 = vpop.permute.xlu0 %2907  ;;  %11416 = vst [vmem:[#allocation120_spill] sm:$0xff] %v8276_v60 }
 0x32e   : > { %11412 = vst [vmem:[#allocation116_spill] sm:$0xff] %v8268_v21 }
 0x331   : > { %v8270_v58 = vpop.permute.xlu0 %2911 }
 0x332   : > { %11413 = vst [vmem:[#allocation117_spill] sm:$0xff] %v8270_v58 }
 0x335   : > { %v8274_v40 = vpop.permute.xlu0 %2915 }
 0x336   : > { %11415 = vst [vmem:[#allocation119_spill] sm:$0xff] %v8274_v40 }
 0x339   : > { %v8278_v22 = vpop.permute.xlu0 %2919 }
 0x33a   : > { %11417 = vst [vmem:[#allocation121_spill] sm:$0xff] %v8278_v22  ;;  %v6744_v22 = vmov 5  }
 0x33b   : > { %6553 = vset.pattern.permute.xlu0 %v6744_v22  ;;  %6552 = vset.pattern.permute.xlu1 %v6744_v22 }
 0x33d   : > { %v8280_v57 = vpop.permute.xlu0 %2923  ;;  %v8282_v52 = vpop.permute.xlu1 %3070 }
 0x33e   : > { %11418 = vst [vmem:[#allocation122_spill] sm:$0xff] %v8280_v57  ;;  %11419 = vst [vmem:[#allocation123_spill] sm:$0xff] %v8282_v52 }
 0x341   : > { %v8284_v18 = vpop.permute.xlu0 %3086  ;;  %v8286_v38 = vpop.permute.xlu1 %3078 }
 0x342   : > { %11420 = vst [vmem:[#allocation124_spill] sm:$0xff] %v8284_v18  ;;  %11421 = vst [vmem:[#allocation125_spill] sm:$0xff] %v8286_v38 }
 0x345   : > { %v8288_v0 = vpop.permute.xlu0 %3094  ;;  %v8290_v21 = vpop.permute.xlu1 %3082 }
 0x346   : > { %11422 = vst [vmem:[#allocation126_spill] sm:$0xff] %v8288_v0  ;;  %11423 = vst [vmem:[#allocation127_spill] sm:$0xff] %v8290_v21 }
 0x349   : > { %v8292_v58 = vpop.permute.xlu0 %3102  ;;  %v8294_v14 = vpop.permute.xlu1 %3090 }
 0x34a   : > { %11424 = vst [vmem:[#allocation128_spill] sm:$0xff] %v8292_v58  ;;  %11425 = vst [vmem:[#allocation129_spill] sm:$0xff] %v8294_v14 }
 0x34d   : > { %v8296_v40 = vpop.permute.xlu0 %3110  ;;  %v8298_v60 = vpop.permute.xlu1 %3098 }
 0x34e   : > { %11426 = vst [vmem:[#allocation130_spill] sm:$0xff] %v8296_v40  ;;  %11427 = vst [vmem:[#allocation131_spill] sm:$0xff] %v8298_v60 }
 0x351   : > { %v8300_v57 = vpop.permute.xlu0 %3118  ;;  %v8302_v18 = vpop.permute.xlu1 %3106 }
 0x352   : > { %11428 = vst [vmem:[#allocation132_spill] sm:$0xff] %v8300_v57  ;;  %11429 = vst [vmem:[#allocation133_spill] sm:$0xff] %v8302_v18 }
 0x355   : > { %v8304_v38 = vpop.permute.xlu0 %3126  ;;  %v8306_v0 = vpop.permute.xlu1 %3114 }
 0x356   : > { %11430 = vst [vmem:[#allocation134_spill] sm:$0xff] %v8304_v38  ;;  %11431 = vst [vmem:[#allocation135_spill] sm:$0xff] %v8306_v0  ;;  %v8326_v38 = vld [vmem:[#allocation2 + $0x1] sm:$0xff]  ;;  %v8328_v0 = vld [vmem:[#allocation2 + $0x9] sm:$0xff] }
 0x359   : > { %v8308_v21 = vpop.permute.xlu0 %3134  ;;  %v8310_v58 = vpop.permute.xlu1 %3122 }
 0x35a   : > { %11432 = vst [vmem:[#allocation136_spill] sm:$0xff] %v8308_v21  ;;  %11433 = vst [vmem:[#allocation137_spill] sm:$0xff] %v8310_v58 }
 0x35d   : > { %v8312_v14 = vpop.permute.xlu0 %3142  ;;  %v8314_v40 = vpop.permute.xlu1 %3130 }
 0x35e   : > { %11434 = vst [vmem:[#allocation138_spill] sm:$0xff] %v8312_v14  ;;  %11435 = vst [vmem:[#allocation139_spill] sm:$0xff] %v8314_v40 }
 0x361   : > { %v8316_v60 = vpop.permute.xlu0 %3150  ;;  %v8318_v52 = vpop.permute.xlu1 %3138 }
 0x362   : > { %11436 = vst [vmem:[#allocation140_spill] sm:$0xff] %v8316_v60  ;;  %11437 = vst [vmem:[#allocation141_spill] sm:$0xff] %v8318_v52 }
 0x365   : > { %v8320_v22 = vpop.permute.xlu0 %3158  ;;  %v8322_v57 = vpop.permute.xlu1 %3146 }
 0x366   : > { %11438 = vst [vmem:[#allocation142_spill] sm:$0xff] %v8320_v22  ;;  %11439 = vst [vmem:[#allocation143_spill] sm:$0xff] %v8322_v57  ;;  %v8336_v22 = vld [vmem:[#allocation2 + $0x19] sm:$0xff]  ;;  %v8338_v57 = vld [vmem:[#allocation2 + $0x21] sm:$0xff] }
 0x369   : > { %v8324_v18 = vpop.permute.xlu1 %3154 }
 0x36a   : > { %11440 = vst [vmem:[#allocation144_spill] sm:$0xff] %v8324_v18  ;;  %v3311_v21 = vpop.permute.xlu0 %3310 }
 0x36b   : > { %v3405_v58 = vmul.f32 %v3311_v21, %v8326_v38  ;;  %v3406_v14 = vmul.f32 %v3311_v21, %v8328_v0  ;;  %v8344_v21 = vld [vmem:[#allocation2 + $0x31] sm:$0xff] }
 0x36d   : > { %3503 = vrot.lane.b32.xlu0 %v3406_v14, %s6741_s18  ;;  %3501 = vrot.lane.b32.xlu1 %v3405_v58, %s6741_s18  ;;  %v8334_v52 = vpop.permute.xlu1 %3162  ;;  %v8346_v14 = vld [vmem:[#allocation2 + $0x39] sm:$0xff] }
 0x36e   : > { %11441 = vst [vmem:[#allocation145_spill] sm:$0xff] %v8334_v52  ;;  %v3323_v51 = vpop.permute.xlu0 %3322 }
 0x372   : > { %v3315_v18 = vpop.permute.xlu1 %3314  ;;  %v3331_v15 = vpop.permute.xlu0 %3330 }
 0x373   : > { %v3407_v60 = vmul.f32 %v3315_v18, %v8336_v22  ;;  %v3408_v40 = vmul.f32 %v3315_v18, %v8338_v57  ;;  %v8354_v18 = vld [vmem:[#allocation2 + $0x51] sm:$0xff] }
 0x375   : > { %3507 = vrot.lane.b32.xlu0 %v3408_v40, %s6741_s18  ;;  %3505 = vrot.lane.b32.xlu1 %v3407_v60, %s6741_s18  ;;  %v3411_v40 = vmul.f32 %v3323_v51, %v8352_v34  ;;  %v3412_v60 = vmul.f32 %v3323_v51, %v8354_v18  ;;  %v8370_v51 = vld [vmem:[#allocation2 + $0x81] sm:$0xff] }
 0x376   : > { %v3319_v58 = vpop.permute.xlu1 %3318  ;;  %v3339_v59 = vpop.permute.xlu0 %3338 }
 0x377   : > { %v3409_v52 = vmul.f32 %v3319_v58, %v8344_v21  ;;  %v3410_v6 = vmul.f32 %v3319_v58, %v8346_v14  ;;  %v8362_v58 = vld [vmem:[#allocation2 + $0x69] sm:$0xff] }
 0x379   : > { %3511 = vrot.lane.b32.xlu0 %v3410_v6, %s6741_s18  ;;  %3509 = vrot.lane.b32.xlu1 %v3409_v52, %s6741_s18 }
 0x37a   : > { %v3327_v39 = vpop.permute.xlu1 %3326  ;;  %v3347_v56 = vpop.permute.xlu0 %3346 }
 0x37b   : > { %v3413_v6 = vmul.f32 %v3327_v39, %v8360_v29  ;;  %v3414_v52 = vmul.f32 %v3327_v39, %v8362_v58  ;;  %v8378_v39 = vld [vmem:[#allocation2 + $0x99] sm:$0xff] }
 0x37d   : > { %3515 = vrot.lane.b32.xlu0 %v3412_v60, %s6741_s18  ;;  %3513 = vrot.lane.b32.xlu1 %v3411_v40, %s6741_s18  ;;  %v3415_v60 = vmul.f32 %v3331_v15, %v8368_v26  ;;  %v3416_v40 = vmul.f32 %v3331_v15, %v8370_v51  ;;  %v8386_v15 = vld [vmem:[#allocation2 + $0xb1] sm:$0xff] }
 0x37e   : > { %v3335_v16 = vpop.permute.xlu1 %3334  ;;  %v3355_v61 = vpop.permute.xlu0 %3354 }
 0x381   : > { %3519 = vrot.lane.b32.xlu0 %v3414_v52, %s6741_s18  ;;  %3517 = vrot.lane.b32.xlu1 %v3413_v6, %s6741_s18  ;;  %v3417_v52 = vmul.f32 %v3335_v16, %v8376_v23  ;;  %v3418_v6 = vmul.f32 %v3335_v16, %v8378_v39  ;;  %v8394_v16 = vld [vmem:[#allocation2 + $0xc9] sm:$0xff] }
 0x382   : > { %v3343_v5 = vpop.permute.xlu1 %3342  ;;  %v3363_v7 = vpop.permute.xlu0 %3362 }
 0x385   : > { %3523 = vrot.lane.b32.xlu0 %v3416_v40, %s6741_s18  ;;  %3521 = vrot.lane.b32.xlu1 %v3415_v60, %s6741_s18  ;;  %v3419_v40 = vmul.f32 %v3339_v59, %v8384_v43  ;;  %v3420_v60 = vmul.f32 %v3339_v59, %v8386_v15  ;;  %v8402_v59 = vld [vmem:[#allocation2 + $0xe1] sm:$0xff] }
 0x386   : > { %v3351_v12 = vpop.permute.xlu1 %3350  ;;  %v3371_v31 = vpop.permute.xlu0 %3370 }
 0x389   : > { %3527 = vrot.lane.b32.xlu0 %v3418_v6, %s6741_s18  ;;  %3525 = vrot.lane.b32.xlu1 %v3417_v52, %s6741_s18  ;;  %v3421_v6 = vmul.f32 %v3343_v5, %v8392_v8  ;;  %v3422_v52 = vmul.f32 %v3343_v5, %v8394_v16  ;;  %v8410_v5 = vld [vmem:[#allocation2 + $0xf9] sm:$0xff] }
 0x38a   : > { %v3359_v4 = vpop.permute.xlu1 %3358 }
 0x38d   : > { %3531 = vrot.lane.b32.xlu0 %v3420_v60, %s6741_s18  ;;  %3529 = vrot.lane.b32.xlu1 %v3419_v40, %s6741_s18  ;;  %v3423_v60 = vmul.f32 %v3347_v56, %v8400_v3  ;;  %v3424_v40 = vmul.f32 %v3347_v56, %v8402_v59  ;;  %v8418_v56 = vld [vmem:[#allocation2 + $0x111] sm:$0xff] }
 0x38e   : > { %v3367_v49 = vpop.permute.xlu1 %3366 }
 0x391   : > { %3535 = vrot.lane.b32.xlu0 %v3422_v52, %s6741_s18  ;;  %3533 = vrot.lane.b32.xlu1 %v3421_v6, %s6741_s18  ;;  %v3425_v52 = vmul.f32 %v3351_v12, %v8408_v19  ;;  %v3426_v6 = vmul.f32 %v3351_v12, %v8410_v5  ;;  %v8426_v12 = vld [vmem:[#allocation2 + $0x129] sm:$0xff] }
 0x392   : > { %v3375_v28 = vpop.permute.xlu1 %3374 }
 0x395   : > { %3539 = vrot.lane.b32.xlu0 %v3424_v40, %s6741_s18  ;;  %3537 = vrot.lane.b32.xlu1 %v3423_v60, %s6741_s18  ;;  %v3427_v40 = vmul.f32 %v3355_v61, %v8416_v63  ;;  %v3428_v60 = vmul.f32 %v3355_v61, %v8418_v56  ;;  %v8434_v61 = vld [vmem:[#allocation2 + $0x141] sm:$0xff] }
 0x399   : > { %3543 = vrot.lane.b32.xlu0 %v3426_v6, %s6741_s18  ;;  %3541 = vrot.lane.b32.xlu1 %v3425_v52, %s6741_s18  ;;  %v3429_v6 = vmul.f32 %v3359_v4, %v8424_v20  ;;  %v3430_v52 = vmul.f32 %v3359_v4, %v8426_v12  ;;  %v8442_v4 = vld [vmem:[#allocation2 + $0x159] sm:$0xff] }
 0x39a   : > { %11442 = vst [vmem:[#allocation146_spill] sm:$0xff] %v8442_v4 }
 0x39d   : > { %3547 = vrot.lane.b32.xlu0 %v3428_v60, %s6741_s18  ;;  %3545 = vrot.lane.b32.xlu1 %v3427_v40, %s6741_s18  ;;  %v3431_v60 = vmul.f32 %v3363_v7, %v8432_v62  ;;  %v3432_v40 = vmul.f32 %v3363_v7, %v8434_v61  ;;  %v8450_v7 = vld [vmem:[#allocation2 + $0x171] sm:$0xff] }
 0x39e   : > { %11444 = vst [vmem:[#allocation148_spill] sm:$0xff] %v8450_v7 }
 0x3a1   : > { %3551 = vrot.lane.b32.xlu0 %v3430_v52, %s6741_s18  ;;  %3549 = vrot.lane.b32.xlu1 %v3429_v6, %s6741_s18  ;;  %v3433_v52 = vmul.f32 %v3367_v49, %v8440_v53  ;;  %v3434_v6 = vmul.f32 %v3367_v49, %v8442_v4  ;;  %v8458_v49 = vld [vmem:[#allocation2 + $0x189] sm:$0xff]  ;;  %v3379_v4 = vpop.permute.xlu0 %3378 }
 0x3a2   : > { %11446 = vst [vmem:[#allocation150_spill] sm:$0xff] %v8458_v49 }
 0x3a5   : > { %3555 = vrot.lane.b32.xlu0 %v3432_v40, %s6741_s18  ;;  %3553 = vrot.lane.b32.xlu1 %v3431_v60, %s6741_s18  ;;  %v3435_v40 = vmul.f32 %v3371_v31, %v8448_v24  ;;  %v3436_v60 = vmul.f32 %v3371_v31, %v8450_v7  ;;  %v8464_v24 = vld [vmem:[#allocation2 + $0x199] sm:$0xff]  ;;  %v8466_v31 = vld [vmem:[#allocation2 + $0x1a1] sm:$0xff]  ;;  %v3383_v7 = vpop.permute.xlu1 %3382 }
 0x3a6   : > { %11447 = vst [vmem:[#allocation151_spill] sm:$0xff] %v8464_v24  ;;  %11448 = vst [vmem:[#allocation152_spill] sm:$0xff] %v8466_v31 }
 0x3a9   : > { %3559 = vrot.lane.b32.xlu0 %v3434_v6, %s6741_s18  ;;  %3557 = vrot.lane.b32.xlu1 %v3433_v52, %s6741_s18  ;;  %v3437_v6 = vmul.f32 %v3375_v28, %v8456_v55  ;;  %v3438_v52 = vmul.f32 %v3375_v28, %v8458_v49  ;;  %v8472_v55 = vld [vmem:[#allocation2 + $0x1b1] sm:$0xff]  ;;  %v8474_v28 = vld [vmem:[#allocation2 + $0x1b9] sm:$0xff]  ;;  %v3387_v49 = vpop.permute.xlu0 %3386 }
 0x3aa   : > { %11449 = vst [vmem:[#allocation153_spill] sm:$0xff] %v8472_v55  ;;  %11450 = vst [vmem:[#allocation154_spill] sm:$0xff] %v8474_v28 }
 0x3ad   : > { %3563 = vrot.lane.b32.xlu0 %v3436_v60, %s6741_s18  ;;  %3561 = vrot.lane.b32.xlu1 %v3435_v40, %s6741_s18  ;;  %v3439_v60 = vmul.f32 %v3379_v4, %v8464_v24  ;;  %v3440_v40 = vmul.f32 %v3379_v4, %v8466_v31  ;;  %v8480_v24 = vld [vmem:[#allocation2 + $0x1c9] sm:$0xff]  ;;  %v8482_v4 = vld [vmem:[#allocation2 + $0x1d1] sm:$0xff]  ;;  %v3391_v31 = vpop.permute.xlu1 %3390 }
 0x3ae   : > { %11451 = vst [vmem:[#allocation155_spill] sm:$0xff] %v8480_v24  ;;  %11452 = vst [vmem:[#allocation156_spill] sm:$0xff] %v8482_v4 }
 0x3b1   : > { %3567 = vrot.lane.b32.xlu0 %v3438_v52, %s6741_s18  ;;  %3565 = vrot.lane.b32.xlu1 %v3437_v6, %s6741_s18  ;;  %v3441_v52 = vmul.f32 %v3383_v7, %v8472_v55  ;;  %v3442_v6 = vmul.f32 %v3383_v7, %v8474_v28  ;;  %v8488_v55 = vld [vmem:[#allocation2 + $0x1e1] sm:$0xff]  ;;  %v8490_v7 = vld [vmem:[#allocation2 + $0x1e9] sm:$0xff]  ;;  %v3395_v28 = vpop.permute.xlu0 %3394 }
 0x3b2   : > { %11453 = vst [vmem:[#allocation157_spill] sm:$0xff] %v8488_v55  ;;  %11454 = vst [vmem:[#allocation158_spill] sm:$0xff] %v8490_v7 }
 0x3b5   : > { %3571 = vrot.lane.b32.xlu0 %v3440_v40, %s6741_s18  ;;  %3569 = vrot.lane.b32.xlu1 %v3439_v60, %s6741_s18  ;;  %v3443_v40 = vmul.f32 %v3387_v49, %v8480_v24  ;;  %v3444_v60 = vmul.f32 %v3387_v49, %v8482_v4  ;;  %v8496_v24 = vld [vmem:[#allocation2 + $0x1f9] sm:$0xff]  ;;  %v8498_v49 = vld [vmem:[#allocation2 + $0x201] sm:$0xff]  ;;  %v3399_v4 = vpop.permute.xlu1 %3398 }
 0x3b6   : > { %11455 = vst [vmem:[#allocation159_spill] sm:$0xff] %v8496_v24 }
 0x3b9   : > { %3575 = vrot.lane.b32.xlu0 %v3442_v6, %s6741_s18  ;;  %3573 = vrot.lane.b32.xlu1 %v3441_v52, %s6741_s18  ;;  %v3445_v6 = vmul.f32 %v3391_v31, %v8488_v55  ;;  %v3446_v52 = vmul.f32 %v3391_v31, %v8490_v7  ;;  %v8504_v55 = vld [vmem:[#allocation2 + $0x211] sm:$0xff]  ;;  %v8506_v31 = vld [vmem:[#allocation2 + $0x219] sm:$0xff]  ;;  %v3403_v7 = vpop.permute.xlu0 %3402 }
 0x3bd   : > { %3579 = vrot.lane.b32.xlu0 %v3444_v60, %s6741_s18  ;;  %3577 = vrot.lane.b32.xlu1 %v3443_v40, %s6741_s18  ;;  %v3447_v60 = vmul.f32 %v3395_v28, %v8496_v24  ;;  %v3448_v40 = vmul.f32 %v3395_v28, %v8498_v49  ;;  %v8512_v24 = vld [vmem:[#allocation2 + $0x229] sm:$0xff]  ;;  %v8514_v28 = vld [vmem:[#allocation2 + $0x231] sm:$0xff] }
 0x3c1   : > { %3583 = vrot.lane.b32.xlu0 %v3446_v52, %s6741_s18  ;;  %3581 = vrot.lane.b32.xlu1 %v3445_v6, %s6741_s18  ;;  %v3449_v52 = vmul.f32 %v3399_v4, %v8504_v55  ;;  %v3450_v6 = vmul.f32 %v3399_v4, %v8506_v31 }
 0x3c5   : > { %3587 = vrot.lane.b32.xlu0 %v3448_v40, %s6741_s18  ;;  %3585 = vrot.lane.b32.xlu1 %v3447_v60, %s6741_s18  ;;  %v3451_v40 = vmul.f32 %v3403_v7, %v8512_v24  ;;  %v3452_v60 = vmul.f32 %v3403_v7, %v8514_v28 }
 0x3c9   : > { %3591 = vrot.lane.b32.xlu0 %v3450_v6, %s6741_s18  ;;  %3589 = vrot.lane.b32.xlu1 %v3449_v52, %s6741_s18 }
 0x3cd   : > { %3595 = vrot.lane.b32.xlu0 %v3452_v60, %s6741_s18  ;;  %3593 = vrot.lane.b32.xlu1 %v3451_v40, %s6741_s18 }
 0x3d1   : > { %3746 = vperm.xlu0 %6553, %v11315_v32   ;;  %3742 = vperm.xlu1 %6552, %v11339_v17  }
 0x3d5   : > { %3758 = vperm.xlu0 %6553, %v11342_v2   ;;  %3750 = vperm.xlu1 %6552, %v11343_v35  }
 0x3d9   : > { %3766 = vperm.xlu0 %6553, %v11346_v1   ;;  %3754 = vperm.xlu1 %6552, %v11347_v50  }
 0x3dd   : > { %3774 = vperm.xlu0 %6553, %v11350_v11   ;;  %3762 = vperm.xlu1 %6552, %v11351_v33  }
 0x3df   : > { %v8530_v4 = vpop.permute.xlu0 %3503  ;;  %v8532_v7 = vpop.permute.xlu1 %3501 }
 0x3e0   : > { %11456 = vst [vmem:[#allocation160_spill] sm:$0xff] %v8530_v4  ;;  %11457 = vst [vmem:[#allocation161_spill] sm:$0xff] %v8532_v7 }
 0x3e1   : > { %3782 = vperm.xlu0 %6553, %v11354_v46   ;;  %3770 = vperm.xlu1 %6552, %v11355_v44  }
 0x3e5   : > { %3790 = vperm.xlu0 %6553, %v11358_v13   ;;  %3778 = vperm.xlu1 %6552, %v11359_v30  }
 0x3e7   : > { %v8536_v52 = vpop.permute.xlu0 %3507  ;;  %v8538_v6 = vpop.permute.xlu1 %3505 }
 0x3e8   : > { %11458 = vst [vmem:[#allocation162_spill] sm:$0xff] %v8536_v52  ;;  %11459 = vst [vmem:[#allocation163_spill] sm:$0xff] %v8538_v6 }
 0x3e9   : > { %3798 = vperm.xlu0 %6553, %v11362_v9   ;;  %3786 = vperm.xlu1 %6552, %v11363_v25  }
 0x3eb   : > { %v8542_v40 = vpop.permute.xlu0 %3511  ;;  %v8544_v60 = vpop.permute.xlu1 %3509 }
 0x3ec   : > { %11460 = vst [vmem:[#allocation164_spill] sm:$0xff] %v8542_v40  ;;  %11461 = vst [vmem:[#allocation165_spill] sm:$0xff] %v8544_v60 }
 0x3ed   : > { %3806 = vperm.xlu0 %6553, %v11366_v54   ;;  %3794 = vperm.xlu1 %6552, %v11367_v10  }
 0x3ef   : > { %v8548_v7 = vpop.permute.xlu0 %3515  ;;  %v8550_v4 = vpop.permute.xlu1 %3513 }
 0x3f0   : > { %11462 = vst [vmem:[#allocation166_spill] sm:$0xff] %v8548_v7  ;;  %11463 = vst [vmem:[#allocation167_spill] sm:$0xff] %v8550_v4 }
 0x3f1   : > { %3814 = vperm.xlu0 %6553, %v11370_v42   ;;  %3802 = vperm.xlu1 %6552, %v11371_v27  }
 0x3f3   : > { %v8554_v6 = vpop.permute.xlu0 %3519  ;;  %v8556_v52 = vpop.permute.xlu1 %3517 }
 0x3f4   : > { %11464 = vst [vmem:[#allocation168_spill] sm:$0xff] %v8554_v6  ;;  %11465 = vst [vmem:[#allocation169_spill] sm:$0xff] %v8556_v52 }
 0x3f5   : > { %3822 = vperm.xlu0 %6553, %v11374_v48   ;;  %3810 = vperm.xlu1 %6552, %v11375_v45  }
 0x3f7   : > { %v8560_v60 = vpop.permute.xlu0 %3523  ;;  %v8562_v40 = vpop.permute.xlu1 %3521 }
 0x3f8   : > { %11466 = vst [vmem:[#allocation170_spill] sm:$0xff] %v8560_v60  ;;  %11467 = vst [vmem:[#allocation171_spill] sm:$0xff] %v8562_v40 }
 0x3f9   : > { %3830 = vperm.xlu0 %6553, %v11378_v37   ;;  %3818 = vperm.xlu1 %6552, %v11379_v47  }
 0x3fb   : > { %v8566_v4 = vpop.permute.xlu0 %3527  ;;  %v8568_v7 = vpop.permute.xlu1 %3525 }
 0x3fc   : > { %11468 = vst [vmem:[#allocation172_spill] sm:$0xff] %v8566_v4  ;;  %11469 = vst [vmem:[#allocation173_spill] sm:$0xff] %v8568_v7 }
 0x3fd   : > { %3826 = vperm.xlu1 %6552, %v11382_v41  }
 0x3ff   : > { %v8571_v6 = vpop.permute.xlu0 %3531  ;;  %v8573_v52 = vpop.permute.xlu1 %3529 }
 0x400   : > { %11470 = vst [vmem:[#allocation174_spill] sm:$0xff] %v8571_v6  ;;  %11471 = vst [vmem:[#allocation175_spill] sm:$0xff] %v8573_v52 }
 0x401   : > { %3834 = vperm.xlu1 %6552, %v11385_v36  }
 0x403   : > { %v8576_v48 = vpop.permute.xlu0 %3535  ;;  %v8578_v60 = vpop.permute.xlu1 %3533 }
 0x404   : > { %11472 = vst [vmem:[#allocation176_spill] sm:$0xff] %v8576_v48  ;;  %11473 = vst [vmem:[#allocation177_spill] sm:$0xff] %v8578_v60 }
 0x407   : > { %v8580_v40 = vpop.permute.xlu0 %3539  ;;  %v8582_v37 = vpop.permute.xlu1 %3537 }
 0x408   : > { %11474 = vst [vmem:[#allocation178_spill] sm:$0xff] %v8580_v40  ;;  %11475 = vst [vmem:[#allocation179_spill] sm:$0xff] %v8582_v37 }
 0x40b   : > { %v8584_v47 = vpop.permute.xlu0 %3543  ;;  %v8586_v4 = vpop.permute.xlu1 %3541 }
 0x40c   : > { %11476 = vst [vmem:[#allocation180_spill] sm:$0xff] %v8584_v47  ;;  %11477 = vst [vmem:[#allocation181_spill] sm:$0xff] %v8586_v4 }
 0x40f   : > { %v8588_v7 = vpop.permute.xlu0 %3547  ;;  %v8590_v41 = vpop.permute.xlu1 %3545 }
 0x410   : > { %11478 = vst [vmem:[#allocation182_spill] sm:$0xff] %v8588_v7  ;;  %11479 = vst [vmem:[#allocation183_spill] sm:$0xff] %v8590_v41 }
 0x413   : > { %v8592_v6 = vpop.permute.xlu0 %3551  ;;  %v8594_v52 = vpop.permute.xlu1 %3549 }
 0x414   : > { %11480 = vst [vmem:[#allocation184_spill] sm:$0xff] %v8592_v6  ;;  %11481 = vst [vmem:[#allocation185_spill] sm:$0xff] %v8594_v52 }
 0x417   : > { %v8596_v36 = vpop.permute.xlu0 %3555  ;;  %v8598_v48 = vpop.permute.xlu1 %3553 }
 0x418   : > { %11482 = vst [vmem:[#allocation186_spill] sm:$0xff] %v8596_v36  ;;  %11483 = vst [vmem:[#allocation187_spill] sm:$0xff] %v8598_v48  ;;  %v6745_v48 = vmov 6  }
 0x419   : > { %6554 = vset.pattern.permute.xlu0 %v6745_v48  ;;  %6555 = vset.pattern.permute.xlu1 %v6745_v48 }
 0x41b   : > { %v8600_v60 = vpop.permute.xlu0 %3559  ;;  %v8602_v40 = vpop.permute.xlu1 %3557 }
 0x41c   : > { %11484 = vst [vmem:[#allocation188_spill] sm:$0xff] %v8600_v60  ;;  %11485 = vst [vmem:[#allocation189_spill] sm:$0xff] %v8602_v40 }
 0x41f   : > { %v8604_v37 = vpop.permute.xlu0 %3563  ;;  %v8606_v47 = vpop.permute.xlu1 %3561 }
 0x420   : > { %11486 = vst [vmem:[#allocation190_spill] sm:$0xff] %v8604_v37  ;;  %11487 = vst [vmem:[#allocation191_spill] sm:$0xff] %v8606_v47 }
 0x423   : > { %v8608_v4 = vpop.permute.xlu1 %3565  ;;  %v8610_v7 = vpop.permute.xlu0 %3567 }
 0x424   : > { %11488 = vst [vmem:[#allocation192_spill] sm:$0xff] %v8608_v4  ;;  %11489 = vst [vmem:[#allocation193_spill] sm:$0xff] %v8610_v7 }
 0x427   : > { %v8612_v41 = vpop.permute.xlu1 %3569  ;;  %v8614_v6 = vpop.permute.xlu0 %3571 }
 0x428   : > { %11490 = vst [vmem:[#allocation194_spill] sm:$0xff] %v8612_v41  ;;  %11491 = vst [vmem:[#allocation195_spill] sm:$0xff] %v8614_v6 }
 0x42b   : > { %v8616_v52 = vpop.permute.xlu1 %3573  ;;  %v8618_v36 = vpop.permute.xlu0 %3575 }
 0x42c   : > { %11492 = vst [vmem:[#allocation196_spill] sm:$0xff] %v8616_v52  ;;  %11493 = vst [vmem:[#allocation197_spill] sm:$0xff] %v8618_v36 }
 0x42f   : > { %v8620_v40 = vpop.permute.xlu1 %3577  ;;  %v8622_v37 = vpop.permute.xlu0 %3579 }
 0x430   : > { %11494 = vst [vmem:[#allocation198_spill] sm:$0xff] %v8620_v40  ;;  %11495 = vst [vmem:[#allocation199_spill] sm:$0xff] %v8622_v37 }
 0x433   : > { %v8624_v47 = vpop.permute.xlu1 %3581  ;;  %v8626_v4 = vpop.permute.xlu0 %3583 }
 0x434   : > { %11496 = vst [vmem:[#allocation200_spill] sm:$0xff] %v8624_v47  ;;  %11497 = vst [vmem:[#allocation201_spill] sm:$0xff] %v8626_v4 }
 0x437   : > { %v8628_v7 = vpop.permute.xlu1 %3585  ;;  %v8630_v41 = vpop.permute.xlu0 %3587 }
 0x438   : > { %11498 = vst [vmem:[#allocation202_spill] sm:$0xff] %v8628_v7  ;;  %11499 = vst [vmem:[#allocation203_spill] sm:$0xff] %v8630_v41 }
 0x43b   : > { %v8632_v6 = vpop.permute.xlu1 %3589  ;;  %v8634_v52 = vpop.permute.xlu0 %3591 }
 0x43c   : > { %11500 = vst [vmem:[#allocation204_spill] sm:$0xff] %v8632_v6  ;;  %11501 = vst [vmem:[#allocation205_spill] sm:$0xff] %v8634_v52 }
 0x43f   : > { %v8636_v36 = vpop.permute.xlu1 %3593  ;;  %v8638_v60 = vpop.permute.xlu0 %3595 }
 0x440   : > { %11502 = vst [vmem:[#allocation206_spill] sm:$0xff] %v8636_v36  ;;  %11503 = vst [vmem:[#allocation207_spill] sm:$0xff] %v8638_v60 }
 0x450   : > { %v3743_v48 = vpop.permute.xlu1 %3742  ;;  %v3747_v47 = vpop.permute.xlu0 %3746 }
 0x451   : > { %v3837_v40 = vmul.f32 %v3743_v48, %v8326_v38  ;;  %v3838_v37 = vmul.f32 %v3743_v48, %v8328_v0  ;;  %v3839_v41 = vmul.f32 %v3747_v47, %v8336_v22  ;;  %v3840_v6 = vmul.f32 %v3747_v47, %v8338_v57 }
 0x453   : > { %3935 = vrot.lane.b32.xlu1 %v3838_v37, %s6740_s17  ;;  %3933 = vrot.lane.b32.xlu0 %v3837_v40, %s6740_s17 }
 0x454   : > { %v3751_v7 = vpop.permute.xlu1 %3750  ;;  %v3759_v22 = vpop.permute.xlu0 %3758 }
 0x455   : > { %v3841_v36 = vmul.f32 %v3751_v7, %v8344_v21  ;;  %v3842_v38 = vmul.f32 %v3751_v7, %v8346_v14  ;;  %v3845_v57 = vmul.f32 %v3759_v22, %v8360_v29 }
 0x457   : > { %3939 = vrot.lane.b32.xlu1 %v3840_v6, %s6740_s17  ;;  %3937 = vrot.lane.b32.xlu0 %v3839_v41, %s6740_s17  ;;  %v3846_v41 = vmul.f32 %v3759_v22, %v8362_v58 }
 0x458   : > { %v3755_v60 = vpop.permute.xlu1 %3754  ;;  %v3767_v21 = vpop.permute.xlu0 %3766 }
 0x459   : > { %v3843_v0 = vmul.f32 %v3755_v60, %v8352_v34  ;;  %v3844_v37 = vmul.f32 %v3755_v60, %v8354_v18  ;;  %v3849_v14 = vmul.f32 %v3767_v21, %v8376_v23  ;;  %v3850_v29 = vmul.f32 %v3767_v21, %v8378_v39 }
 0x45b   : > { %3943 = vrot.lane.b32.xlu1 %v3842_v38, %s6740_s17  ;;  %3941 = vrot.lane.b32.xlu0 %v3841_v36, %s6740_s17 }
 0x45c   : > { %v3763_v47 = vpop.permute.xlu1 %3762  ;;  %v3775_v7 = vpop.permute.xlu0 %3774 }
 0x45d   : > { %v3847_v36 = vmul.f32 %v3763_v47, %v8368_v26  ;;  %v3848_v34 = vmul.f32 %v3763_v47, %v8370_v51  ;;  %v3853_v51 = vmul.f32 %v3775_v7, %v8392_v8  ;;  %v3854_v23 = vmul.f32 %v3775_v7, %v8394_v16  ;;  %v11511_v7 = vld [vmem:[#allocation153_spill] sm:$0xff] }
 0x45f   : > { %3947 = vrot.lane.b32.xlu1 %v3844_v37, %s6740_s17  ;;  %3945 = vrot.lane.b32.xlu0 %v3843_v0, %s6740_s17  ;;  %v11504_v37 = vld [vmem:[#allocation146_spill] sm:$0xff] }
 0x460   : > { %v3771_v18 = vpop.permute.xlu1 %3770  ;;  %v3783_v40 = vpop.permute.xlu0 %3782 }
 0x461   : > { %v3851_v58 = vmul.f32 %v3771_v18, %v8384_v43  ;;  %v3852_v26 = vmul.f32 %v3771_v18, %v8386_v15  ;;  %v3857_v15 = vmul.f32 %v3783_v40, %v8408_v19  ;;  %v3858_v8 = vmul.f32 %v3783_v40, %v8410_v5  ;;  %v11510_v18 = vld [vmem:[#allocation152_spill] sm:$0xff] }
 0x463   : > { %3951 = vrot.lane.b32.xlu1 %v3846_v41, %s6740_s17  ;;  %3949 = vrot.lane.b32.xlu0 %v3845_v57, %s6740_s17  ;;  %v11506_v41 = vld [vmem:[#allocation148_spill] sm:$0xff] }
 0x464   : > { %v3779_v6 = vpop.permute.xlu1 %3778  ;;  %v3791_v48 = vpop.permute.xlu0 %3790 }
 0x465   : > { %v3855_v39 = vmul.f32 %v3779_v6, %v8400_v3  ;;  %v3856_v43 = vmul.f32 %v3779_v6, %v8402_v59  ;;  %v3861_v59 = vmul.f32 %v3791_v48, %v8424_v20  ;;  %v3862_v19 = vmul.f32 %v3791_v48, %v8426_v12  ;;  %v11505_v12 = vld [vmem:[#allocation147_spill] sm:$0xff]  ;;  %v11516_v48 = vld [vmem:[#allocation158_spill] sm:$0xff] }
 0x467   : > { %3955 = vrot.lane.b32.xlu1 %v3848_v34, %s6740_s17  ;;  %3953 = vrot.lane.b32.xlu0 %v3847_v36, %s6740_s17  ;;  %v11508_v34 = vld [vmem:[#allocation150_spill] sm:$0xff] }
 0x468   : > { %v3787_v60 = vpop.permute.xlu1 %3786  ;;  %v3799_v0 = vpop.permute.xlu0 %3798 }
 0x469   : > { %v3859_v16 = vmul.f32 %v3787_v60, %v8416_v63  ;;  %v3860_v3 = vmul.f32 %v3787_v60, %v8418_v56  ;;  %v3865_v56 = vmul.f32 %v3799_v0, %v8440_v53  ;;  %v3866_v20 = vmul.f32 %v3799_v0, %v11504_v37 }
 0x46b   : > { %3959 = vrot.lane.b32.xlu1 %v3850_v29, %s6740_s17  ;;  %3957 = vrot.lane.b32.xlu0 %v3849_v14, %s6740_s17  ;;  %v11509_v14 = vld [vmem:[#allocation151_spill] sm:$0xff] }
 0x46c   : > { %v3795_v38 = vpop.permute.xlu1 %3794  ;;  %v3807_v47 = vpop.permute.xlu0 %3806 }
 0x46d   : > { %v3863_v5 = vmul.f32 %v3795_v38, %v8432_v62  ;;  %v3864_v63 = vmul.f32 %v3795_v38, %v8434_v61  ;;  %v11507_v61 = vld [vmem:[#allocation149_spill] sm:$0xff]  ;;  %v3870_v53 = vmul.f32 %v3807_v47, %v11508_v34  ;;  %v11517_v38 = vld [vmem:[#allocation159_spill] sm:$0xff] }
 0x46e   : > { %v3869_v36 = vmul.f32 %v3807_v47, %v11507_v61 }
 0x46f   : > { %3963 = vrot.lane.b32.xlu1 %v3852_v26, %s6740_s17  ;;  %3961 = vrot.lane.b32.xlu0 %v3851_v58, %s6740_s17 }
 0x470   : > { %v3803_v22 = vpop.permute.xlu1 %3802  ;;  %v3815_v26 = vpop.permute.xlu0 %3814 }
 0x471   : > { %v3867_v57 = vmul.f32 %v3803_v22, %v11505_v12  ;;  %v3868_v62 = vmul.f32 %v3803_v22, %v11506_v41 }
 0x473   : > { %3967 = vrot.lane.b32.xlu1 %v3854_v23, %s6740_s17  ;;  %3965 = vrot.lane.b32.xlu0 %v3853_v51, %s6740_s17  ;;  %v3873_v51 = vmul.f32 %v3815_v26, %v11511_v7  ;;  %v11512_v23 = vld [vmem:[#allocation154_spill] sm:$0xff] }
 0x474   : > { %v3811_v21 = vpop.permute.xlu1 %3810  ;;  %v3874_v6 = vmul.f32 %v3815_v26, %v11512_v23  ;;  %v3823_v60 = vpop.permute.xlu0 %3822  ;;  %v11529_v26 = vld [vmem:[#allocation19_spill] sm:$0xff]  ;;  %v11116_v23 = vmov 7  }
 0x475   : > { %v3871_v29 = vmul.f32 %v3811_v21, %v11509_v14  ;;  %v3872_v58 = vmul.f32 %v3811_v21, %v11510_v18  ;;  %v11525_v21 = vld [vmem:[#allocation26_spill] sm:$0xff]  ;;  %v11526_v14 = vld [vmem:[#allocation15_spill] sm:$0xff] }
 0x477   : > { %3971 = vrot.lane.b32.xlu1 %v3856_v43, %s6740_s17  ;;  %3969 = vrot.lane.b32.xlu0 %v3855_v39, %s6740_s17  ;;  %v11513_v43 = vld [vmem:[#allocation155_spill] sm:$0xff] }
 0x478   : > { %v3819_v39 = vpop.permute.xlu1 %3818  ;;  %v3831_v0 = vpop.permute.xlu0 %3830 }
 0x479   : > { %v3875_v40 = vmul.f32 %v3819_v39, %v11513_v43  ;;  %v3882_v37 = vmul.f32 %v3831_v0, %v8506_v31 }
 0x47b   : > { %3975 = vrot.lane.b32.xlu1 %v3858_v8, %s6740_s17  ;;  %3973 = vrot.lane.b32.xlu0 %v3857_v15, %s6740_s17  ;;  %v11514_v15 = vld [vmem:[#allocation156_spill] sm:$0xff] }
 0x47c   : > { %v3876_v8 = vmul.f32 %v3819_v39, %v11514_v15 }
 0x47f   : > { %3979 = vrot.lane.b32.xlu1 %v3860_v3, %s6740_s17  ;;  %3977 = vrot.lane.b32.xlu0 %v3859_v16, %s6740_s17  ;;  %v11515_v16 = vld [vmem:[#allocation157_spill] sm:$0xff] }
 0x480   : > { %v3877_v3 = vmul.f32 %v3823_v60, %v11515_v16 }
 0x483   : > { %3983 = vrot.lane.b32.xlu1 %v3862_v19, %s6740_s17  ;;  %3981 = vrot.lane.b32.xlu0 %v3861_v59, %s6740_s17  ;;  %v3878_v59 = vmul.f32 %v3823_v60, %v11516_v48  ;;  %v3827_v19 = vpop.permute.xlu1 %3826 }
 0x487   : > { %3987 = vrot.lane.b32.xlu1 %v3864_v63, %s6740_s17  ;;  %3985 = vrot.lane.b32.xlu0 %v3863_v5, %s6740_s17  ;;  %v3879_v5 = vmul.f32 %v3827_v19, %v11517_v38  ;;  %v3880_v63 = vmul.f32 %v3827_v19, %v8498_v49 }
 0x48b   : > { %3991 = vrot.lane.b32.xlu1 %v3866_v20, %s6740_s17  ;;  %3989 = vrot.lane.b32.xlu0 %v3865_v56, %s6740_s17  ;;  %v3881_v56 = vmul.f32 %v3831_v0, %v8504_v55  ;;  %v3835_v20 = vpop.permute.xlu1 %3834 }
 0x48c   : > { %v3883_v22 = vmul.f32 %v3835_v20, %v8512_v24  ;;  %v3884_v12 = vmul.f32 %v3835_v20, %v8514_v28  ;;  %v6747_v20 = vmov 8  }
 0x48f   : > { %3995 = vrot.lane.b32.xlu1 %v3868_v62, %s6740_s17  ;;  %3993 = vrot.lane.b32.xlu0 %v3867_v57, %s6740_s17 }
 0x493   : > { %3999 = vrot.lane.b32.xlu1 %v3870_v53, %s6740_s17  ;;  %3997 = vrot.lane.b32.xlu0 %v3869_v36, %s6740_s17  ;;  %v11522_v36 = vld [vmem:[#allocation18_spill] sm:$0xff] }
 0x497   : > { %4003 = vrot.lane.b32.xlu1 %v3872_v58, %s6740_s17  ;;  %4001 = vrot.lane.b32.xlu0 %v3871_v29, %s6740_s17  ;;  %v11528_v58 = vld [vmem:[#allocation27_spill] sm:$0xff] }
 0x49b   : > { %4007 = vrot.lane.b32.xlu1 %v3874_v6, %s6740_s17  ;;  %4005 = vrot.lane.b32.xlu0 %v3873_v51, %s6740_s17 }
 0x49f   : > { %4011 = vrot.lane.b32.xlu1 %v3876_v8, %s6740_s17  ;;  %4009 = vrot.lane.b32.xlu0 %v3875_v40, %s6740_s17 }
 0x4a3   : > { %4015 = vrot.lane.b32.xlu1 %v3878_v59, %s6740_s17  ;;  %4013 = vrot.lane.b32.xlu0 %v3877_v3, %s6740_s17 }
 0x4a7   : > { %4019 = vrot.lane.b32.xlu1 %v3880_v63, %s6740_s17  ;;  %4017 = vrot.lane.b32.xlu0 %v3879_v5, %s6740_s17 }
 0x4ab   : > { %4023 = vrot.lane.b32.xlu1 %v3882_v37, %s6740_s17  ;;  %4021 = vrot.lane.b32.xlu0 %v3881_v56, %s6740_s17 }
 0x4af   : > { %4027 = vrot.lane.b32.xlu1 %v3884_v12, %s6740_s17  ;;  %4025 = vrot.lane.b32.xlu0 %v3883_v22, %s6740_s17 }
 0x4b3   : > { %4178 = vperm.xlu1 %6555, %v11315_v32   ;;  %4174 = vperm.xlu0 %6554, %v11339_v17  }
 0x4b7   : > { %4182 = vperm.xlu1 %6555, %v11343_v35   ;;  %4186 = vperm.xlu0 %6554, %v11347_v50  }
 0x4bb   : > { %4190 = vperm.xlu1 %6555, %v11342_v2   ;;  %4194 = vperm.xlu0 %6554, %v11351_v33  }
 0x4bf   : > { %4198 = vperm.xlu1 %6555, %v11346_v1   ;;  %4202 = vperm.xlu0 %6554, %v11355_v44  }
 0x4c3   : > { %4206 = vperm.xlu1 %6555, %v11350_v11   ;;  %4210 = vperm.xlu0 %6554, %v11359_v30  }
 0x4c5   : > { %v8746_v55 = vpop.permute.xlu0 %3933  ;;  %v8748_v24 = vpop.permute.xlu1 %3935 }
 0x4c7   : > { %4214 = vperm.xlu1 %6555, %v11354_v46   ;;  %4218 = vperm.xlu0 %6554, %v11363_v25  }
 0x4c9   : > { %v8752_v49 = vpop.permute.xlu0 %3937  ;;  %v8754_v31 = vpop.permute.xlu1 %3939 }
 0x4ca   : > { %11518 = vst [vmem:[#allocation146_spill] sm:$0xff] %v8752_v49  ;;  %11519 = vst [vmem:[#allocation147_spill] sm:$0xff] %v8754_v31 }
 0x4cb   : > { %4222 = vperm.xlu1 %6555, %v11358_v13   ;;  %4226 = vperm.xlu0 %6554, %v11367_v10  }
 0x4cd   : > { %v8758_v28 = vpop.permute.xlu0 %3941  ;;  %v8760_v57 = vpop.permute.xlu1 %3943 }
 0x4cf   : > { %4230 = vperm.xlu1 %6555, %v11362_v9   ;;  %4234 = vperm.xlu0 %6554, %v11371_v27  }
 0x4d1   : > { %v8764_v41 = vpop.permute.xlu0 %3945  ;;  %v8766_v62 = vpop.permute.xlu1 %3947 }
 0x4d2   : > { %11520 = vst [vmem:[#allocation148_spill] sm:$0xff] %v8764_v41  ;;  %11521 = vst [vmem:[#allocation149_spill] sm:$0xff] %v8766_v62 }
 0x4d3   : > { %4238 = vperm.xlu1 %6555, %v11366_v54   ;;  %4242 = vperm.xlu0 %6554, %v11375_v45  }
 0x4d5   : > { %v8770_v47 = vpop.permute.xlu0 %3949  ;;  %v8772_v61 = vpop.permute.xlu1 %3951 }
 0x4d7   : > { %4246 = vperm.xlu1 %6555, %v11370_v42   ;;  %4250 = vperm.xlu0 %6554, %v11522_v36  }
 0x4d9   : > { %v8776_v34 = vpop.permute.xlu0 %3953  ;;  %v8778_v53 = vpop.permute.xlu1 %3955 }
 0x4da   : > { %11523 = vst [vmem:[#allocation150_spill] sm:$0xff] %v8776_v34  ;;  %11524 = vst [vmem:[#allocation151_spill] sm:$0xff] %v8778_v53 }
 0x4db   : > { %4254 = vperm.xlu1 %6555, %v11525_v21   ;;  %4258 = vperm.xlu0 %6554, %v11526_v14  }
 0x4dd   : > { %v8782_v29 = vpop.permute.xlu0 %3957  ;;  %v8784_v18 = vpop.permute.xlu1 %3959 }
 0x4de   : > { %11527 = vst [vmem:[#allocation152_spill] sm:$0xff] %v8784_v18 }
 0x4df   : > { %4262 = vperm.xlu1 %6555, %v11528_v58   ;;  %4266 = vperm.xlu0 %6554, %v11529_v26  }
 0x4e1   : > { %v8788_v7 = vpop.permute.xlu0 %3961  ;;  %v8790_v51 = vpop.permute.xlu1 %3963 }
 0x4e2   : > { %11530 = vst [vmem:[#allocation153_spill] sm:$0xff] %v8788_v7  ;;  %11531 = vst [vmem:[#allocation154_spill] sm:$0xff] %v8790_v51 }
 0x4e3   : > { %6556 = vset.pattern.permute.xlu1 %v11116_v23  ;;  %6557 = vset.pattern.permute.xlu0 %v11116_v23 }
 0x4e4   : > { %4414 = vperm.xlu1 %6556, %v11339_v17   ;;  %4418 = vperm.xlu0 %6557, %v11315_v32  }
 0x4e5   : > { %v8796_v6 = vpop.permute.xlu0 %3965  ;;  %v8798_v39 = vpop.permute.xlu1 %3967 }
 0x4e6   : > { %11532 = vst [vmem:[#allocation155_spill] sm:$0xff] %v8796_v6  ;;  %11533 = vst [vmem:[#allocation156_spill] sm:$0xff] %v8798_v39 }
 0x4e8   : > { %4422 = vperm.xlu1 %6556, %v11343_v35   ;;  %4430 = vperm.xlu0 %6557, %v11342_v2  }
 0x4e9   : > { %v8802_v43 = vpop.permute.xlu0 %3969  ;;  %v8804_v40 = vpop.permute.xlu1 %3971 }
 0x4ea   : > { %11534 = vst [vmem:[#allocation157_spill] sm:$0xff] %v8802_v43  ;;  %11535 = vst [vmem:[#allocation158_spill] sm:$0xff] %v8804_v40 }
 0x4ec   : > { %4426 = vperm.xlu1 %6556, %v11347_v50   ;;  %4438 = vperm.xlu0 %6557, %v11346_v1  }
 0x4ed   : > { %v8808_v15 = vpop.permute.xlu0 %3973  ;;  %v8810_v8 = vpop.permute.xlu1 %3975 }
 0x4ee   : > { %11536 = vst [vmem:[#allocation159_spill] sm:$0xff] %v8808_v15  ;;  %11537 = vst [vmem:[#allocation18_spill] sm:$0xff] %v8810_v8 }
 0x4f0   : > { %4434 = vperm.xlu1 %6556, %v11351_v33   ;;  %4446 = vperm.xlu0 %6557, %v11350_v11  }
 0x4f1   : > { %v8814_v60 = vpop.permute.xlu0 %3977  ;;  %v8816_v16 = vpop.permute.xlu1 %3979 }
 0x4f2   : > { %11538 = vst [vmem:[#allocation26_spill] sm:$0xff] %v8814_v60  ;;  %11539 = vst [vmem:[#allocation15_spill] sm:$0xff] %v8816_v16 }
 0x4f4   : > { %4442 = vperm.xlu1 %6556, %v11355_v44   ;;  %4454 = vperm.xlu0 %6557, %v11354_v46  }
 0x4f5   : > { %v8820_v3 = vpop.permute.xlu0 %3981  ;;  %v8822_v48 = vpop.permute.xlu1 %3983 }
 0x4f6   : > { %11540 = vst [vmem:[#allocation27_spill] sm:$0xff] %v8820_v3  ;;  %11541 = vst [vmem:[#allocation19_spill] sm:$0xff] %v8822_v48 }
 0x4f8   : > { %4450 = vperm.xlu1 %6556, %v11359_v30   ;;  %4462 = vperm.xlu0 %6557, %v11358_v13  }
 0x4f9   : > { %v8826_v59 = vpop.permute.xlu0 %3985  ;;  %v8828_v19 = vpop.permute.xlu1 %3987 }
 0x4fa   : > { %11542 = vst [vmem:[#allocation208_spill] sm:$0xff] %v8826_v59  ;;  %11543 = vst [vmem:[#allocation209_spill] sm:$0xff] %v8828_v19 }
 0x4fc   : > { %4458 = vperm.xlu1 %6556, %v11363_v25   ;;  %4470 = vperm.xlu0 %6557, %v11362_v9  }
 0x4fd   : > { %v8832_v38 = vpop.permute.xlu0 %3989  ;;  %v8834_v5 = vpop.permute.xlu1 %3991 }
 0x4fe   : > { %11544 = vst [vmem:[#allocation210_spill] sm:$0xff] %v8832_v38  ;;  %11545 = vst [vmem:[#allocation211_spill] sm:$0xff] %v8834_v5 }
 0x500   : > { %4466 = vperm.xlu1 %6556, %v11367_v10   ;;  %4482 = vperm.xlu0 %6557, %v11375_v45  }
 0x501   : > { %v8838_v63 = vpop.permute.xlu0 %3993  ;;  %v8840_v0 = vpop.permute.xlu1 %3995 }
 0x502   : > { %11546 = vst [vmem:[#allocation212_spill] sm:$0xff] %v8838_v63  ;;  %11547 = vst [vmem:[#allocation213_spill] sm:$0xff] %v8840_v0 }
 0x504   : > { %4474 = vperm.xlu1 %6556, %v11371_v27   ;;  %4494 = vperm.xlu0 %6557, %v11525_v21  }
 0x505   : > { %v8844_v56 = vpop.permute.xlu0 %3997  ;;  %v8846_v37 = vpop.permute.xlu1 %3999 }
 0x506   : > { %11548 = vst [vmem:[#allocation214_spill] sm:$0xff] %v8844_v56  ;;  %11549 = vst [vmem:[#allocation215_spill] sm:$0xff] %v8846_v37 }
 0x508   : > { %6558 = vset.pattern.permute.xlu1 %v6747_v20  ;;  %4502 = vperm.xlu0 %6557, %v11528_v58  }
 0x509   : > { %4850 = vperm.xlu1 %6558, %v11315_v32   ;;  %v8850_v22 = vpop.permute.xlu0 %4001  ;;  %v8852_v12 = vpop.permute.xlu1 %4003 }
 0x50a   : > { %11550 = vst [vmem:[#allocation216_spill] sm:$0xff] %v8850_v22  ;;  %11551 = vst [vmem:[#allocation217_spill] sm:$0xff] %v8852_v12 }
 0x50c   : > { %6560 = vset.pattern.permute.xlu0 %v6747_v20 }
 0x50d   : > { %4854 = vperm.xlu1 %6558, %v11343_v35   ;;  %4846 = vperm.xlu0 %6560, %v11339_v17   ;;  %v8856_v23 = vpop.permute.xlu0 %4005  ;;  %v8858_v56 = vpop.permute.xlu1 %4007 }
 0x50e   : > { %11552 = vst [vmem:[#allocation218_spill] sm:$0xff] %v8856_v23  ;;  %11553 = vst [vmem:[#allocation219_spill] sm:$0xff] %v8858_v56 }
 0x511   : > { %4862 = vperm.xlu1 %6558, %v11342_v2   ;;  %4858 = vperm.xlu0 %6560, %v11347_v50   ;;  %v8864_v22 = vpop.permute.xlu0 %4009  ;;  %v8866_v12 = vpop.permute.xlu1 %4011 }
 0x512   : > { %11554 = vst [vmem:[#allocation220_spill] sm:$0xff] %v8864_v22  ;;  %11555 = vst [vmem:[#allocation221_spill] sm:$0xff] %v8866_v12 }
 0x515   : > { %4870 = vperm.xlu1 %6558, %v11346_v1   ;;  %4866 = vperm.xlu0 %6560, %v11351_v33   ;;  %v8870_v17 = vpop.permute.xlu0 %4013  ;;  %v8872_v35 = vpop.permute.xlu1 %4015 }
 0x516   : > { %11556 = vst [vmem:[#allocation222_spill] sm:$0xff] %v8870_v17  ;;  %11557 = vst [vmem:[#allocation223_spill] sm:$0xff] %v8872_v35  ;;  %v11562_v17 = vmov 7  }
 0x519   : > { %4874 = vperm.xlu0 %6560, %v11355_v44   ;;  %4878 = vperm.xlu1 %6558, %v11350_v11   ;;  %v8878_v2 = vpop.permute.xlu0 %4017  ;;  %v8880_v1 = vpop.permute.xlu1 %4019 }
 0x51a   : > { %11558 = vst [vmem:[#allocation224_spill] sm:$0xff] %v8878_v2  ;;  %11559 = vst [vmem:[#allocation225_spill] sm:$0xff] %v8880_v1  ;;  %v11571_v1 = vmov 0  }
 0x51d   : > { %4882 = vperm.xlu0 %6560, %v11359_v30   ;;  %4886 = vperm.xlu1 %6558, %v11354_v46   ;;  %v8884_v11 = vpop.permute.xlu0 %4021  ;;  %v8886_v22 = vpop.permute.xlu1 %4023 }
 0x51e   : > { %11560 = vst [vmem:[#allocation226_spill] sm:$0xff] %v8884_v11  ;;  %11561 = vst [vmem:[#allocation227_spill] sm:$0xff] %v8886_v22 }
 0x521   : > { %4890 = vperm.xlu0 %6560, %v11363_v25   ;;  %4894 = vperm.xlu1 %6558, %v11358_v13   ;;  %v8892_v46 = vpop.permute.xlu0 %4025  ;;  %v8894_v13 = vpop.permute.xlu1 %4027 }
 0x522   : > { %11563 = vst [vmem:[#allocation228_spill] sm:$0xff] %v8892_v46  ;;  %11564 = vst [vmem:[#allocation229_spill] sm:$0xff] %v8894_v13 }
 0x525   : > { %4898 = vperm.xlu0 %6560, %v11367_v10   ;;  %4902 = vperm.xlu1 %6558, %v11362_v9  }
 0x529   : > { %4906 = vperm.xlu0 %6560, %v11371_v27   ;;  %6559 = vset.pattern.permute.xlu1 %v11562_v17 }
 0x52a   : > { %4478 = vperm.xlu1 %6559, %v11366_v54  }
 0x52d   : > { %4910 = vperm.xlu0 %6560, %v11366_v54  }
 0x52e   : > { %4486 = vperm.xlu1 %6559, %v11370_v42  }
 0x531   : > { %4922 = vperm.xlu0 %6560, %v11522_v36  }
 0x532   : > { %v8898_v9 = vpop.permute.xlu0 %4174  ;;  %4490 = vperm.xlu1 %6559, %v11522_v36   ;;  %v8901_v2 = vpop.permute.xlu1 %4178 }
 0x533   : > { %11565 = vst [vmem:[#allocation230_spill] sm:$0xff] %v8898_v9  ;;  %11566 = vst [vmem:[#allocation231_spill] sm:$0xff] %v8901_v2 }
 0x535   : > { %4930 = vperm.xlu0 %6560, %v11526_v14  }
 0x536   : > { %v8904_v17 = vpop.permute.xlu0 %4186  ;;  %4498 = vperm.xlu1 %6559, %v11526_v14   ;;  %v8907_v54 = vpop.permute.xlu1 %4182 }
 0x537   : > { %11567 = vst [vmem:[#allocation232_spill] sm:$0xff] %v8904_v17  ;;  %11568 = vst [vmem:[#allocation233_spill] sm:$0xff] %v8907_v54 }
 0x539   : > { %4938 = vperm.xlu0 %6560, %v11529_v26  }
 0x53a   : > { %v8910_v46 = vpop.permute.xlu0 %4194  ;;  %4506 = vperm.xlu1 %6559, %v11529_v26   ;;  %v8913_v13 = vpop.permute.xlu1 %4190 }
 0x53b   : > { %11569 = vst [vmem:[#allocation234_spill] sm:$0xff] %v8910_v46  ;;  %11570 = vst [vmem:[#allocation235_spill] sm:$0xff] %v8913_v13 }
 0x53d   : > { %6562 = vset.pattern.permute.xlu0 %v11571_v1 }
 0x53e   : > { %1970 = vperm.xlu0 %6562, %v11315_v32   ;;  %v8917_v12 = vpop.permute.xlu0 %4202  ;;  %6561 = vset.pattern.permute.xlu1 %v6747_v20  ;;  %v8919_v11 = vpop.permute.xlu1 %4198 }
 0x53f   : > { %11572 = vst [vmem:[#allocation236_spill] sm:$0xff] %v8917_v12  ;;  %11573 = vst [vmem:[#allocation237_spill] sm:$0xff] %v8919_v11  ;;  %4914 = vperm.xlu1 %6561, %v11375_v45  }
 0x542   : > { %1978 = vperm.xlu0 %6562, %v11347_v50   ;;  %v8923_v23 = vpop.permute.xlu0 %4210  ;;  %v8925_v22 = vpop.permute.xlu1 %4206 }
 0x543   : > { %11574 = vst [vmem:[#allocation238_spill] sm:$0xff] %v8923_v23  ;;  %11575 = vst [vmem:[#allocation239_spill] sm:$0xff] %v8925_v22  ;;  %4918 = vperm.xlu1 %6561, %v11370_v42  }
 0x546   : > { %1986 = vperm.xlu0 %6562, %v11351_v33   ;;  %v8929_v35 = vpop.permute.xlu0 %4218  ;;  %v8931_v32 = vpop.permute.xlu1 %4214 }
 0x547   : > { %11576 = vst [vmem:[#allocation240_spill] sm:$0xff] %v8929_v35  ;;  %11577 = vst [vmem:[#allocation241_spill] sm:$0xff] %v8931_v32  ;;  %4926 = vperm.xlu1 %6561, %v11525_v21  }
 0x54a   : > { %1994 = vperm.xlu0 %6562, %v11355_v44   ;;  %v8935_v20 = vpop.permute.xlu0 %4226  ;;  %v8937_v52 = vpop.permute.xlu1 %4222 }
 0x54b   : > { %11578 = vst [vmem:[#allocation242_spill] sm:$0xff] %v8935_v20  ;;  %11579 = vst [vmem:[#allocation243_spill] sm:$0xff] %v8937_v52  ;;  %4934 = vperm.xlu1 %6561, %v11528_v58  }
 0x54e   : > { %2002 = vperm.xlu0 %6562, %v11359_v30   ;;  %v8941_v50 = vpop.permute.xlu0 %4234  ;;  %v8943_v42 = vpop.permute.xlu1 %4230 }
 0x54f   : > { %11580 = vst [vmem:[#allocation244_spill] sm:$0xff] %v8941_v50  ;;  %11581 = vst [vmem:[#allocation245_spill] sm:$0xff] %v8943_v42  ;;  %6563 = vset.pattern.permute.xlu1 %v11571_v1 }
 0x552   : > { %2010 = vperm.xlu0 %6562, %v11363_v25   ;;  %v8947_v33 = vpop.permute.xlu0 %4242  ;;  %v8949_v21 = vpop.permute.xlu1 %4238 }
 0x553   : > { %11582 = vst [vmem:[#allocation246_spill] sm:$0xff] %v8947_v33  ;;  %11583 = vst [vmem:[#allocation247_spill] sm:$0xff] %v8949_v21  ;;  %v8967_v33 = vld [vmem:[#allocation2 + $0xa] sm:$0xff] }
 0x554   : > { %11590 = vst [vmem:[#allocation254_spill] sm:$0xff] %v8967_v33 }
 0x556   : > { %2018 = vperm.xlu0 %6562, %v11367_v10   ;;  %v8952_v44 = vpop.permute.xlu0 %4250  ;;  %v8954_v4 = vpop.permute.xlu1 %4246 }
 0x557   : > { %11584 = vst [vmem:[#allocation248_spill] sm:$0xff] %v8952_v44  ;;  %11585 = vst [vmem:[#allocation249_spill] sm:$0xff] %v8954_v4 }
 0x55a   : > { %2026 = vperm.xlu0 %6562, %v11371_v27   ;;  %v8957_v30 = vpop.permute.xlu0 %4258  ;;  %v8959_v58 = vpop.permute.xlu1 %4254  ;;  %v8974_v27 = vld [vmem:[#allocation2 + $0x3a] sm:$0xff] }
 0x55b   : > { %11586 = vst [vmem:[#allocation250_spill] sm:$0xff] %v8957_v30  ;;  %11587 = vst [vmem:[#allocation251_spill] sm:$0xff] %v8959_v58  ;;  %v8984_v30 = vld [vmem:[#allocation2 + $0x22] sm:$0xff] }
 0x55c   : > { %11591 = vst [vmem:[#allocation255_spill] sm:$0xff] %v8974_v27  ;;  %11592 = vst [vmem:[#allocation256_spill] sm:$0xff] %v8984_v30 }
 0x55e   : > { %2034 = vperm.xlu0 %6562, %v11375_v45   ;;  %v8962_v1 = vpop.permute.xlu0 %4266  ;;  %v8964_v25 = vpop.permute.xlu1 %4262 }
 0x55f   : > { %11588 = vst [vmem:[#allocation252_spill] sm:$0xff] %v8962_v1  ;;  %11589 = vst [vmem:[#allocation253_spill] sm:$0xff] %v8964_v25  ;;  %v8986_v25 = vld [vmem:[#allocation2 + $0x6a] sm:$0xff] }
 0x560   : > { %11593 = vst [vmem:[#allocation257_spill] sm:$0xff] %v8986_v25 }
 0x562   : > { %2042 = vperm.xlu0 %6562, %v11522_v36  }
 0x563   : > { %v8969_v10 = vpop.permute.xlu0 %4418  ;;  %v4415_v44 = vpop.permute.xlu1 %4414 }
 0x564   : > { %v4510_v56 = vmul.f32 %v4415_v44, %v8967_v33  ;;  %v4512_v58 = vmul.f32 %v8969_v10, %v8984_v30 }
 0x566   : > { %2050 = vperm.xlu0 %6562, %v11526_v14   ;;  %4607 = vrot.lane.b32.xlu1 %v4510_v56, %s6741_s18 }
 0x567   : > { %v8976_v45 = vpop.permute.xlu0 %4430  ;;  %v8978_v1 = vpop.permute.xlu1 %4422 }
 0x568   : > { %v4514_v36 = vmul.f32 %v8978_v1, %v8974_v27  ;;  %v4518_v37 = vmul.f32 %v8976_v45, %v8986_v25 }
 0x56a   : > { %2058 = vperm.xlu0 %6562, %v11529_v26   ;;  %4615 = vrot.lane.b32.xlu1 %v4514_v36, %s6741_s18  ;;  %v8998_v26 = vld [vmem:[#allocation2 + $0x52] sm:$0xff]  ;;  %v9000_v36 = vld [vmem:[#allocation2 + $0x9a] sm:$0xff] }
 0x56b   : > { %v8988_v14 = vpop.permute.xlu0 %4438  ;;  %v8990_v56 = vpop.permute.xlu1 %4426  ;;  %11594 = vst [vmem:[#allocation258_spill] sm:$0xff] %v8998_v26  ;;  %11595 = vst [vmem:[#allocation259_spill] sm:$0xff] %v9000_v36 }
 0x56c   : > { %v4522_v63 = vmul.f32 %v8988_v14, %v9000_v36  ;;  %v4516_v59 = vmul.f32 %v8990_v56, %v8998_v26 }
 0x56e   : > { %4611 = vrot.lane.b32.xlu0 %v4512_v58, %s6741_s18  ;;  %4623 = vrot.lane.b32.xlu1 %v4518_v37, %s6741_s18  ;;  %v9012_v58 = vld [vmem:[#allocation2 + $0x82] sm:$0xff]  ;;  %v9014_v37 = vld [vmem:[#allocation2 + $0xca] sm:$0xff] }
 0x56f   : > { %v9002_v4 = vpop.permute.xlu0 %4446  ;;  %v9004_v21 = vpop.permute.xlu1 %4434  ;;  %11596 = vst [vmem:[#allocation260_spill] sm:$0xff] %v9012_v58  ;;  %11597 = vst [vmem:[#allocation261_spill] sm:$0xff] %v9014_v37 }
 0x570   : > { %v4526_v0 = vmul.f32 %v9002_v4, %v9014_v37  ;;  %v4520_v19 = vmul.f32 %v9004_v21, %v9012_v58 }
 0x572   : > { %4631 = vrot.lane.b32.xlu1 %v4522_v63, %s6741_s18  ;;  %4619 = vrot.lane.b32.xlu0 %v4516_v59, %s6741_s18  ;;  %v9026_v63 = vld [vmem:[#allocation2 + $0xb2] sm:$0xff]  ;;  %v9028_v59 = vld [vmem:[#allocation2 + $0xfa] sm:$0xff] }
 0x573   : > { %v9016_v60 = vpop.permute.xlu0 %4454  ;;  %v9018_v43 = vpop.permute.xlu1 %4442  ;;  %11598 = vst [vmem:[#allocation262_spill] sm:$0xff] %v9026_v63  ;;  %11599 = vst [vmem:[#allocation263_spill] sm:$0xff] %v9028_v59 }
 0x574   : > { %v4530_v40 = vmul.f32 %v9016_v60, %v9028_v59  ;;  %v4524_v34 = vmul.f32 %v9018_v43, %v9026_v63 }
 0x576   : > { %4639 = vrot.lane.b32.xlu1 %v4526_v0, %s6741_s18  ;;  %4627 = vrot.lane.b32.xlu0 %v4520_v19, %s6741_s18  ;;  %v9040_v0 = vld [vmem:[#allocation2 + $0xe2] sm:$0xff]  ;;  %v9042_v19 = vld [vmem:[#allocation2 + $0x12a] sm:$0xff] }
 0x577   : > { %v9030_v7 = vpop.permute.xlu0 %4462  ;;  %v9032_v16 = vpop.permute.xlu1 %4450  ;;  %11600 = vst [vmem:[#allocation264_spill] sm:$0xff] %v9040_v0  ;;  %11601 = vst [vmem:[#allocation265_spill] sm:$0xff] %v9042_v19 }
 0x578   : > { %v4534_v53 = vmul.f32 %v9030_v7, %v9042_v19  ;;  %v4528_v62 = vmul.f32 %v9032_v16, %v9040_v0 }
 0x57a   : > { %4647 = vrot.lane.b32.xlu1 %v4530_v40, %s6741_s18  ;;  %4635 = vrot.lane.b32.xlu0 %v4524_v34, %s6741_s18  ;;  %v9054_v40 = vld [vmem:[#allocation2 + $0x112] sm:$0xff]  ;;  %v9056_v34 = vld [vmem:[#allocation2 + $0x15a] sm:$0xff] }
 0x57b   : > { %v9044_v51 = vpop.permute.xlu0 %4470  ;;  %v9046_v41 = vpop.permute.xlu1 %4458  ;;  %11602 = vst [vmem:[#allocation266_spill] sm:$0xff] %v9054_v40  ;;  %11603 = vst [vmem:[#allocation267_spill] sm:$0xff] %v9056_v34 }
 0x57c   : > { %v4538_v42 = vmul.f32 %v9044_v51, %v9056_v34  ;;  %v4532_v50 = vmul.f32 %v9046_v41, %v9054_v40 }
 0x57e   : > { %4655 = vrot.lane.b32.xlu1 %v4534_v53, %s6741_s18  ;;  %4643 = vrot.lane.b32.xlu0 %v4528_v62, %s6741_s18  ;;  %v9068_v53 = vld [vmem:[#allocation2 + $0x2] sm:$0xff] }
 0x57f   : > { %v9058_v49 = vpop.permute.xlu0 %4482  ;;  %v9060_v31 = vpop.permute.xlu1 %4466  ;;  %v9070_v62 = vld [vmem:[#allocation2 + $0x142] sm:$0xff]  ;;  %v4509_v23 = vmul.f32 %v4415_v44, %v9068_v53 }
 0x580   : > { %11604 = vst [vmem:[#allocation268_spill] sm:$0xff] %v9070_v62  ;;  %v4536_v52 = vmul.f32 %v9060_v31, %v9070_v62 }
 0x582   : > { %4663 = vrot.lane.b32.xlu1 %v4538_v42, %s6741_s18  ;;  %4651 = vrot.lane.b32.xlu0 %v4532_v50, %s6741_s18  ;;  %v9081_v42 = vld [vmem:[#allocation2 + $0x32] sm:$0xff] }
 0x583   : > { %v9072_v20 = vpop.permute.xlu0 %4494  ;;  %v9074_v35 = vpop.permute.xlu1 %4474  ;;  %v9083_v50 = vld [vmem:[#allocation2 + $0x172] sm:$0xff]  ;;  %v4513_v12 = vmul.f32 %v8978_v1, %v9081_v42 }
 0x584   : > { %11605 = vst [vmem:[#allocation269_spill] sm:$0xff] %v9083_v50  ;;  %v4540_v22 = vmul.f32 %v9074_v35, %v9083_v50 }
 0x586   : > { %4605 = vrot.lane.b32.xlu1 %v4509_v23, %s6741_s18  ;;  %4659 = vrot.lane.b32.xlu0 %v4536_v52, %s6741_s18  ;;  %v9095_v23 = vld [vmem:[#allocation2 + $0x1a] sm:$0xff]  ;;  %v9097_v52 = vld [vmem:[#allocation2 + $0x62] sm:$0xff] }
 0x587   : > { %v9085_v32 = vpop.permute.xlu0 %4502  ;;  %11606 = vst [vmem:[#allocation270_spill] sm:$0xff] %v9097_v52  ;;  %v4511_v11 = vmul.f32 %v8969_v10, %v9095_v23  ;;  %v4517_v46 = vmul.f32 %v8976_v45, %v9097_v52 }
 0x588   : > { %v9091_v44 = vpop.permute.xlu1 %4850 }
 0x58a   : > { %4613 = vrot.lane.b32.xlu1 %v4513_v12, %s6741_s18  ;;  %4667 = vrot.lane.b32.xlu0 %v4540_v22, %s6741_s18  ;;  %v9109_v12 = vld [vmem:[#allocation2 + $0x4a] sm:$0xff]  ;;  %v9111_v22 = vld [vmem:[#allocation2 + $0x92] sm:$0xff] }
 0x58b   : > { %11607 = vst [vmem:[#allocation271_spill] sm:$0xff] %v9109_v12  ;;  %11608 = vst [vmem:[#allocation272_spill] sm:$0xff] %v9111_v22  ;;  %v4521_v2 = vmul.f32 %v8988_v14, %v9111_v22  ;;  %v4515_v10 = vmul.f32 %v8990_v56, %v9109_v12 }
 0x58c   : > { %v9103_v1 = vpop.permute.xlu0 %4846  ;;  %v9105_v17 = vpop.permute.xlu1 %4854 }
 0x58d   : > { %v4942_v39 = vmul.f32 %v9103_v1, %v8967_v33 }
 0x58e   : > { %4621 = vrot.lane.b32.xlu1 %v4517_v46, %s6741_s18  ;;  %4609 = vrot.lane.b32.xlu0 %v4511_v11, %s6741_s18  ;;  %v9123_v46 = vld [vmem:[#allocation2 + $0x7a] sm:$0xff]  ;;  %v9125_v11 = vld [vmem:[#allocation2 + $0xc2] sm:$0xff] }
 0x58f   : > { %11609 = vst [vmem:[#allocation273_spill] sm:$0xff] %v9123_v46  ;;  %11610 = vst [vmem:[#allocation274_spill] sm:$0xff] %v9125_v11  ;;  %v4525_v5 = vmul.f32 %v9002_v4, %v9125_v11  ;;  %v4519_v14 = vmul.f32 %v9004_v21, %v9123_v46 }
 0x590   : > { %v9117_v13 = vpop.permute.xlu0 %4858  ;;  %v9119_v45 = vpop.permute.xlu1 %4862 }
 0x592   : > { %4629 = vrot.lane.b32.xlu1 %v4521_v2, %s6741_s18  ;;  %4617 = vrot.lane.b32.xlu0 %v4515_v10, %s6741_s18  ;;  %v9137_v2 = vld [vmem:[#allocation2 + $0xaa] sm:$0xff]  ;;  %v9139_v10 = vld [vmem:[#allocation2 + $0xf2] sm:$0xff] }
 0x593   : > { %11611 = vst [vmem:[#allocation275_spill] sm:$0xff] %v9137_v2  ;;  %11612 = vst [vmem:[#allocation276_spill] sm:$0xff] %v9139_v10  ;;  %v4529_v48 = vmul.f32 %v9016_v60, %v9139_v10  ;;  %v4523_v4 = vmul.f32 %v9018_v43, %v9137_v2 }
 0x594   : > { %v9131_v38 = vpop.permute.xlu0 %4866  ;;  %v9133_v56 = vpop.permute.xlu1 %4870 }
 0x596   : > { %4637 = vrot.lane.b32.xlu1 %v4525_v5, %s6741_s18  ;;  %4625 = vrot.lane.b32.xlu0 %v4519_v14, %s6741_s18  ;;  %v9151_v5 = vld [vmem:[#allocation2 + $0xda] sm:$0xff]  ;;  %v9153_v14 = vld [vmem:[#allocation2 + $0x122] sm:$0xff] }
 0x597   : > { %11613 = vst [vmem:[#allocation277_spill] sm:$0xff] %v9153_v14  ;;  %v4533_v3 = vmul.f32 %v9030_v7, %v9153_v14  ;;  %v4527_v60 = vmul.f32 %v9032_v16, %v9151_v5 }
 0x598   : > { %v9145_v54 = vpop.permute.xlu0 %4874  ;;  %v9147_v21 = vpop.permute.xlu1 %4878 }
 0x59a   : > { %4645 = vrot.lane.b32.xlu1 %v4529_v48, %s6741_s18  ;;  %4633 = vrot.lane.b32.xlu0 %v4523_v4, %s6741_s18  ;;  %v9165_v48 = vld [vmem:[#allocation2 + $0x10a] sm:$0xff]  ;;  %v9167_v4 = vld [vmem:[#allocation2 + $0x152] sm:$0xff] }
 0x59b   : > { %11614 = vst [vmem:[#allocation278_spill] sm:$0xff] %v9167_v4  ;;  %v4537_v15 = vmul.f32 %v9044_v51, %v9167_v4  ;;  %v4531_v7 = vmul.f32 %v9046_v41, %v9165_v48  ;;  %v9191_v41 = vld [vmem:[#allocation2 + $0x16a] sm:$0xff] }
 0x59c   : > { %v9159_v8 = vpop.permute.xlu0 %4882  ;;  %v9161_v43 = vpop.permute.xlu1 %4886 }
 0x59e   : > { %4653 = vrot.lane.b32.xlu1 %v4533_v3, %s6741_s18  ;;  %4641 = vrot.lane.b32.xlu0 %v4527_v60, %s6741_s18  ;;  %v9179_v3 = vld [vmem:[#allocation2 + $0x13a] sm:$0xff] }
 0x59f   : > { %v4535_v60 = vmul.f32 %v9060_v31, %v9179_v3 }
 0x5a0   : > { %v9173_v9 = vpop.permute.xlu0 %4890  ;;  %v9175_v16 = vpop.permute.xlu1 %4894 }
 0x5a2   : > { %4661 = vrot.lane.b32.xlu1 %v4537_v15, %s6741_s18  ;;  %4649 = vrot.lane.b32.xlu0 %v4531_v7, %s6741_s18  ;;  %v4539_v15 = vmul.f32 %v9074_v35, %v9191_v41  ;;  %v4946_v7 = vmul.f32 %v9105_v17, %v8974_v27  ;;  %v4948_v27 = vmul.f32 %v9117_v13, %v8998_v26 }
 0x5a4   : > { %v9185_v51 = vpop.permute.xlu0 %4898  ;;  %v9187_v6 = vpop.permute.xlu1 %4902 }
 0x5a6   : > { %5039 = vrot.lane.b32.xlu1 %v4942_v39, %s6740_s17  ;;  %4657 = vrot.lane.b32.xlu0 %v4535_v60, %s6741_s18  ;;  %v4944_v39 = vmul.f32 %v9091_v44, %v8984_v30  ;;  %v4950_v60 = vmul.f32 %v9119_v45, %v8986_v25  ;;  %v4952_v25 = vmul.f32 %v9131_v38, %v9012_v58 }
 0x5a8   : > { %v9197_v31 = vpop.permute.xlu0 %4906 }
 0x5a9   : > { %v9199_v18 = vpop.permute.xlu1 %4478 }
 0x5aa   : > { %4665 = vrot.lane.b32.xlu0 %v4539_v15, %s6741_s18  ;;  %5047 = vrot.lane.b32.xlu1 %v4946_v7, %s6740_s17  ;;  %v4954_v15 = vmul.f32 %v9133_v56, %v9000_v36  ;;  %v4956_v36 = vmul.f32 %v9145_v54, %v9026_v63 }
 0x5ac   : > { %v9207_v33 = vpop.permute.xlu0 %4910 }
 0x5ad   : > { %v9209_v35 = vpop.permute.xlu1 %4486 }
 0x5ae   : > { %5043 = vrot.lane.b32.xlu0 %v4944_v39, %s6740_s17  ;;  %5055 = vrot.lane.b32.xlu1 %v4950_v60, %s6740_s17  ;;  %v4958_v39 = vmul.f32 %v9147_v21, %v9014_v37 }
 0x5b0   : > { %v9217_v7 = vpop.permute.xlu0 %4922 }
 0x5b1   : > { %11615 = vst [vmem:[#allocation279_spill] sm:$0xff] %v9217_v7  ;;  %v9219_v30 = vpop.permute.xlu1 %4490  ;;  %v6590_v7 = vld [vmem:[#allocation2 + $0x1e8] sm:$0xff] }
 0x5b2   : > { %5051 = vrot.lane.b32.xlu0 %v4948_v27, %s6740_s17  ;;  %5063 = vrot.lane.b32.xlu1 %v4954_v15, %s6740_s17  ;;  %v4962_v27 = vmul.f32 %v9161_v43, %v9028_v59  ;;  %v11644_v59 = vld [vmem:[#allocation39_spill] sm:$0xff] }
 0x5b4   : > { %v9227_v60 = vpop.permute.xlu0 %4930 }
 0x5b5   : > { %11616 = vst [vmem:[#allocation280_spill] sm:$0xff] %v9227_v60  ;;  %v9229_v26 = vpop.permute.xlu1 %4498  ;;  %v4960_v60 = vmul.f32 %v9159_v8, %v9040_v0 }
 0x5b6   : > { %5059 = vrot.lane.b32.xlu0 %v4952_v25, %s6740_s17  ;;  %5071 = vrot.lane.b32.xlu1 %v4958_v39, %s6740_s17  ;;  %v4966_v25 = vmul.f32 %v9175_v16, %v9042_v19  ;;  %v4968_v19 = vmul.f32 %v9185_v51, %v9070_v62 }
 0x5b8   : > { %v9237_v15 = vpop.permute.xlu0 %4938 }
 0x5b9   : > { %11617 = vst [vmem:[#allocation281_spill] sm:$0xff] %v9237_v15  ;;  %v9245_v37 = vpop.permute.xlu1 %4506  ;;  %v4964_v15 = vmul.f32 %v9173_v9, %v9054_v40 }
 0x5ba   : > { %5067 = vrot.lane.b32.xlu0 %v4956_v36, %s6740_s17  ;;  %5079 = vrot.lane.b32.xlu1 %v4962_v27, %s6740_s17  ;;  %v4970_v36 = vmul.f32 %v9187_v6, %v9056_v34  ;;  %v4972_v34 = vmul.f32 %v9197_v31, %v9083_v50  ;;  %v11641_v50 = vld [vmem:[#allocation37_spill] sm:$0xff] }
 0x5bd   : > { %v9247_v39 = vpop.permute.xlu0 %1970 }
 0x5be   : > { %11618 = vst [vmem:[#allocation282_spill] sm:$0xff] %v9247_v39  ;;  %5075 = vrot.lane.b32.xlu0 %v4960_v60, %s6740_s17  ;;  %5087 = vrot.lane.b32.xlu1 %v4966_v25, %s6740_s17  ;;  %v9257_v0 = vpop.permute.xlu1 %4914  ;;  %v4941_v60 = vmul.f32 %v9103_v1, %v9068_v53  ;;  %v4943_v1 = vmul.f32 %v9091_v44, %v9095_v23 }
 0x5bf   : > { %v4951_v44 = vmul.f32 %v9131_v38, %v9123_v46 }
 0x5c1   : > { %v9255_v27 = vpop.permute.xlu0 %1978 }
 0x5c2   : > { %11619 = vst [vmem:[#allocation283_spill] sm:$0xff] %v9255_v27  ;;  %5083 = vrot.lane.b32.xlu0 %v4964_v15, %s6740_s17  ;;  %5095 = vrot.lane.b32.xlu1 %v4970_v36, %s6740_s17  ;;  %v9271_v40 = vpop.permute.xlu1 %4918  ;;  %v4945_v15 = vmul.f32 %v9105_v17, %v9081_v42  ;;  %v4947_v17 = vmul.f32 %v9117_v13, %v9109_v12  ;;  %v11643_v27 = vld [vmem:[#allocation38_spill] sm:$0xff]  ;;  %v11666_v12 = vld [vmem:[#allocation7_spill] sm:$0xff] }
 0x5c3   : > { %v4955_v13 = vmul.f32 %v9145_v54, %v9137_v2 }
 0x5c5   : > { %v9265_v25 = vpop.permute.xlu0 %1986 }
 0x5c6   : > { %11620 = vst [vmem:[#allocation284_spill] sm:$0xff] %v9265_v25  ;;  %5091 = vrot.lane.b32.xlu0 %v4968_v19, %s6740_s17  ;;  %5037 = vrot.lane.b32.xlu1 %v4941_v60, %s6740_s17  ;;  %v4949_v19 = vmul.f32 %v9119_v45, %v9097_v52  ;;  %v9285_v25 = vpop.permute.xlu1 %4926  ;;  %v9428_v52 = vld [vmem:[#allocation2 + $0x1d2] sm:$0xff] }
 0x5c9   : > { %v9275_v36 = vpop.permute.xlu0 %1994 }
 0x5ca   : > { %11621 = vst [vmem:[#allocation285_spill] sm:$0xff] %v9275_v36  ;;  %5099 = vrot.lane.b32.xlu0 %v4972_v34, %s6740_s17  ;;  %5045 = vrot.lane.b32.xlu1 %v4945_v15, %s6740_s17  ;;  %v4953_v34 = vmul.f32 %v9133_v56, %v9111_v22  ;;  %v9299_v45 = vpop.permute.xlu1 %4934 }
 0x5cb   : > { %11624 = vst [vmem:[#allocation288_spill] sm:$0xff] %v9299_v45  ;;  %v11661_v45 = vld [vmem:[#allocation10_spill] sm:$0xff] }
 0x5cd   : > { %v9283_v60 = vpop.permute.xlu0 %2002 }
 0x5ce   : > { %11622 = vst [vmem:[#allocation286_spill] sm:$0xff] %v9283_v60  ;;  %5041 = vrot.lane.b32.xlu0 %v4943_v1, %s6740_s17  ;;  %5053 = vrot.lane.b32.xlu1 %v4949_v19, %s6740_s17  ;;  %v4957_v1 = vmul.f32 %v9147_v21, %v9125_v11  ;;  %v4959_v21 = vmul.f32 %v9159_v8, %v9151_v5  ;;  %v9337_v5 = vld [vmem:[#allocation2 + $0x18a] sm:$0xff]  ;;  %v6573_v60 = vld [vmem:[#allocation2 + $0x38] sm:$0xff] }
 0x5d1   : > { %v9293_v15 = vpop.permute.xlu0 %2010 }
 0x5d2   : > { %11623 = vst [vmem:[#allocation287_spill] sm:$0xff] %v9293_v15  ;;  %5049 = vrot.lane.b32.xlu0 %v4947_v17, %s6740_s17  ;;  %5061 = vrot.lane.b32.xlu1 %v4953_v34, %s6740_s17  ;;  %v4961_v17 = vmul.f32 %v9161_v43, %v9139_v10  ;;  %v4963_v43 = vmul.f32 %v9173_v9, %v9165_v48 }
 0x5d3   : > { %v4542_v9 = vmul.f32 %v9199_v18, %v9337_v5 }
 0x5d5   : > { %v9303_v19 = vpop.permute.xlu0 %2018 }
 0x5d6   : > { %11625 = vst [vmem:[#allocation289_spill] sm:$0xff] %v9303_v19  ;;  %5057 = vrot.lane.b32.xlu0 %v4951_v44, %s6740_s17  ;;  %5069 = vrot.lane.b32.xlu1 %v4957_v1, %s6740_s17  ;;  %v4965_v44 = vmul.f32 %v9175_v16, %v9153_v14  ;;  %v4967_v16 = vmul.f32 %v9185_v51, %v9179_v3  ;;  %v11637_v3 = vld [vmem:[#allocation34_spill] sm:$0xff] }
 0x5d8   : > { %v9309_v56 = vpop.permute.xlu1 %4607 }
 0x5d9   : > { %11626 = vst [vmem:[#allocation290_spill] sm:$0xff] %v9309_v56  ;;  %v9313_v38 = vpop.permute.xlu0 %2026  ;;  %v9358_v56 = vld [vmem:[#allocation2 + $0x1ba] sm:$0xff] }
 0x5da   : > { %11627 = vst [vmem:[#allocation291_spill] sm:$0xff] %v9313_v38  ;;  %5065 = vrot.lane.b32.xlu0 %v4955_v13, %s6740_s17  ;;  %5077 = vrot.lane.b32.xlu1 %v4961_v17, %s6740_s17  ;;  %v4969_v13 = vmul.f32 %v9187_v6, %v9167_v4  ;;  %v11634_v6 = vld [vmem:[#allocation31_spill] sm:$0xff]  ;;  %v11636_v38 = vld [vmem:[#allocation32_spill] sm:$0xff] }
 0x5db   : > { %v6576_v4 = vld [vmem:[#allocation2 + $0xc0] sm:$0xff] }
 0x5dc   : > { %v9319_v34 = vpop.permute.xlu1 %4615 }
 0x5dd   : > { %11628 = vst [vmem:[#allocation292_spill] sm:$0xff] %v9319_v34  ;;  %v9323_v54 = vpop.permute.xlu0 %2034  ;;  %v11638_v34 = vld [vmem:[#allocation35_spill] sm:$0xff] }
 0x5de   : > { %11629 = vst [vmem:[#allocation293_spill] sm:$0xff] %v9323_v54  ;;  %5073 = vrot.lane.b32.xlu0 %v4959_v21, %s6740_s17  ;;  %5085 = vrot.lane.b32.xlu1 %v4965_v44, %s6740_s17  ;;  %v6568_v21 = vld [vmem:[#allocation2] sm:$0xff]  ;;  %v6569_v54 = vld [vmem:[#allocation2 + $0x30] sm:$0xff] }
 0x5df   : > { %v2061_v44 = vmul.f32 %v6568_v21, %v11634_v6  ;;  %v6574_v21 = vld [vmem:[#allocation2 + $0x68] sm:$0xff] }
 0x5e0   : > { %v9329_v1 = vpop.permute.xlu1 %4623  ;;  %v2070_v36 = vmul.f32 %v6574_v21, %v11636_v38 }
 0x5e1   : > { %11630 = vst [vmem:[#allocation294_spill] sm:$0xff] %v9329_v1  ;;  %v9333_v8 = vpop.permute.xlu0 %2042  ;;  %v6571_v1 = vld [vmem:[#allocation2 + $0x90] sm:$0xff] }
 0x5e2   : > { %11631 = vst [vmem:[#allocation295_spill] sm:$0xff] %v9333_v8  ;;  %5081 = vrot.lane.b32.xlu0 %v4963_v43, %s6740_s17  ;;  %5093 = vrot.lane.b32.xlu1 %v4969_v13, %s6740_s17  ;;  %v11635_v8 = vld [vmem:[#allocation33_spill] sm:$0xff]  ;;  %v6570_v13 = vld [vmem:[#allocation2 + $0x60] sm:$0xff]  ;;  %v2073_v51 = vmul.f32 %v6571_v1, %v11637_v3  ;;  %v4971_v1 = vmul.f32 %v9197_v31, %v9191_v41  ;;  %v6581_v41 = vld [vmem:[#allocation2 + $0xf8] sm:$0xff] }
 0x5e3   : > { %v2065_v43 = vmul.f32 %v6569_v54, %v11635_v8  ;;  %v2069_v19 = vmul.f32 %v6570_v13, %v11636_v38  ;;  %v6575_v54 = vld [vmem:[#allocation2 + $0x98] sm:$0xff]  ;;  %v2077_v13 = vmul.f32 %v6576_v4, %v11638_v34  ;;  %v6579_v38 = vld [vmem:[#allocation2 + $0xc8] sm:$0xff]  ;;  %v2550_v39 = vadd.f32 %v11661_v45, %v2070_v36 }
 0x5e4   : > { %v9341_v17 = vpop.permute.xlu1 %4631  ;;  %v2078_v21 = vmul.f32 %v6579_v38, %v11638_v34  ;;  %v6584_v34 = vld [vmem:[#allocation2 + $0x158] sm:$0xff] }
 0x5e5   : > { %11632 = vst [vmem:[#allocation296_spill] sm:$0xff] %v9341_v17  ;;  %v9345_v48 = vpop.permute.xlu0 %2050  ;;  %v6572_v17 = vld [vmem:[#allocation2 + $0x8] sm:$0xff]  ;;  %v9383_v38 = vmul.f32 %v6584_v34, %v11643_v27  ;;  %v11668_v45 = vld [vmem:[#allocation11_spill] sm:$0xff] }
 0x5e6   : > { %11633 = vst [vmem:[#allocation297_spill] sm:$0xff] %v9345_v48  ;;  %5089 = vrot.lane.b32.xlu0 %v4967_v16, %s6740_s17  ;;  %v2062_v15 = vmul.f32 %v6572_v17, %v11634_v6  ;;  %v2066_v48 = vmul.f32 %v6573_v60, %v11635_v8  ;;  %4671 = vrot.lane.b32.xlu1 %v4542_v9, %s6741_s18  ;;  %v6577_v6 = vld [vmem:[#allocation2 + $0xf0] sm:$0xff]  ;;  %v11640_v60 = vld [vmem:[#allocation36_spill] sm:$0xff] }
 0x5e7   : > { %v2074_v16 = vmul.f32 %v6575_v54, %v11637_v3  ;;  %v2081_v8 = vmul.f32 %v6577_v6, %v11640_v60  ;;  %v6578_v9 = vld [vmem:[#allocation2 + $0x120] sm:$0xff]  ;;  %v4546_v3 = vmul.f32 %v9209_v35, %v9358_v56  ;;  %v6580_v54 = vld [vmem:[#allocation2 + $0x150] sm:$0xff]  ;;  %v9373_v31 = vmul.f32 %v6581_v41, %v11640_v60 }
 0x5e8   : > { %v9362_v17 = vpop.permute.xlu1 %4639  ;;  %v2085_v62 = vmul.f32 %v6578_v9, %v11641_v50  ;;  %v2089_v14 = vmul.f32 %v6580_v54, %v11643_v27  ;;  %v6583_v9 = vld [vmem:[#allocation2 + $0x180] sm:$0xff]  ;;  %v6586_v60 = vld [vmem:[#allocation2 + $0x1b0] sm:$0xff]  ;;  %v6588_v27 = vld [vmem:[#allocation2 + $0x1b8] sm:$0xff] }
 0x5e9   : > { %11639 = vst [vmem:[#allocation31_spill] sm:$0xff] %v9362_v17  ;;  %v9369_v4 = vpop.permute.xlu0 %2058  ;;  %v6582_v17 = vld [vmem:[#allocation2 + $0x128] sm:$0xff]  ;;  %v9379_v10 = vmul.f32 %v6583_v9, %v11644_v59  ;;  %v11646_v41 = vld [vmem:[#allocation40_spill] sm:$0xff] }
 0x5ea   : > { %11642 = vst [vmem:[#allocation33_spill] sm:$0xff] %v9369_v4  ;;  %v9376_v6 = vmul.f32 %v6582_v17, %v11641_v50  ;;  %5097 = vrot.lane.b32.xlu0 %v4971_v1, %s6740_s17  ;;  %v6585_v4 = vld [vmem:[#allocation2 + $0x188] sm:$0xff]  ;;  %v9389_v63 = vmul.f32 %v6586_v60, %v11646_v41  ;;  %v6587_v50 = vld [vmem:[#allocation2 + $0x1e0] sm:$0xff]  ;;  %4679 = vrot.lane.b32.xlu1 %v4546_v3, %s6741_s18 }
 0x5eb   : > { %v9386_v54 = vmul.f32 %v6585_v4, %v11644_v59  ;;  %v11648_v17 = vld [vmem:[#allocation41_spill] sm:$0xff]  ;;  %v9399_v34 = vmul.f32 %v6588_v27, %v11646_v41  ;;  %v6589_v59 = vld [vmem:[#allocation2 + $0x210] sm:$0xff] }
 0x5ec   : > { %11647 = vst [vmem:[#allocation34_spill] sm:$0xff] %v9389_v63  ;;  %v9392_v11 = vmul.f32 %v6587_v50, %v11648_v17  ;;  %v9394_v9 = vld [vmem:[#allocation2 + $0x1a2] sm:$0xff]  ;;  %v11652_v4 = vld [vmem:[#allocation42_spill] sm:$0xff]  ;;  %v11655_v63 = vld [vmem:[#allocation59_spill] sm:$0xff] }
 0x5ed   : > { %11645 = vst [vmem:[#allocation32_spill] sm:$0xff] %v9386_v54  ;;  %v11650_v1 = vld [vmem:[#allocation57_spill] sm:$0xff]  ;;  %11651 = vst [vmem:[#allocation36_spill] sm:$0xff] %v9399_v34  ;;  %v9402_v54 = vmul.f32 %v6589_v59, %v11652_v4  ;;  %v4544_v50 = vmul.f32 %v9058_v49, %v9394_v9  ;;  %v2545_v22 = vadd.f32 %v11655_v63, %v2065_v43  ;;  %v9415_v27 = vpop.permute.xlu0 %4611  ;;  %v11660_v34 = vld [vmem:[#allocation75_spill] sm:$0xff] }
 0x5ee   : > { %11649 = vst [vmem:[#allocation35_spill] sm:$0xff] %v9392_v11  ;;  %v2541_v2 = vadd.f32 %v11650_v1, %v2061_v44  ;;  %v9404_v60 = vld [vmem:[#allocation2 + $0x1ea] sm:$0xff]  ;;  %v9408_v11 = vpop.permute.xlu1 %4647  ;;  %11658 = vst [vmem:[#allocation39_spill] sm:$0xff] %v9415_v27  ;;  %v2546_v46 = vadd.f32 %v11660_v34, %v2066_v48  ;;  %v11664_v43 = vld [vmem:[#allocation67_spill] sm:$0xff]  ;;  %v2565_v27 = vadd.f32 %v11666_v12, %v2085_v62 }
 0x5ef   : > { %11653 = vst [vmem:[#allocation37_spill] sm:$0xff] %v9402_v54  ;;  %11654 = vst [vmem:[#allocation38_spill] sm:$0xff] %v9408_v11  ;;  %v11656_v3 = vld [vmem:[#allocation61_spill] sm:$0xff]  ;;  %v11657_v44 = vld [vmem:[#allocation50_spill] sm:$0xff]  ;;  %v4550_v41 = vmul.f32 %v9072_v20, %v9404_v60  ;;  %v9421_v11 = vmul.f32 %v6590_v7, %v11648_v17  ;;  %4675 = vrot.lane.b32.xlu0 %v4544_v50, %s6741_s18  ;;  %v2569_v7 = vadd.f32 %v11668_v45, %v2089_v14 }
 0x5f0   : > { %v2549_v58 = vadd.f32 %v11656_v3, %v2069_v19  ;;  %v2553_v1 = vadd.f32 %v11657_v44, %v2073_v51  ;;  %v11659_v59 = vld [vmem:[#allocation73_spill] sm:$0xff]  ;;  %v11663_v63 = vld [vmem:[#allocation78_spill] sm:$0xff]  ;;  %v2557_v51 = vadd.f32 %v11664_v43, %v2077_v13  ;;  %v6591_v48 = vld [vmem:[#allocation2 + $0x218] sm:$0xff]  ;;  %v4548_v13 = vmul.f32 %v9219_v30, %v9428_v52 }
 0x5f1   : > { %v2542_v54 = vadd.f32 %v11659_v59, %v2062_v15  ;;  %11662 = vst [vmem:[#allocation40_spill] sm:$0xff] %v9421_v11  ;;  %v2554_v19 = vadd.f32 %v11663_v63, %v2074_v16  ;;  %v11665_v3 = vld [vmem:[#allocation69_spill] sm:$0xff]  ;;  %4687 = vrot.lane.b32.xlu1 %v4550_v41, %s6741_s18  ;;  %v11667_v15 = vld [vmem:[#allocation43_spill] sm:$0xff]  ;;  %v9436_v17 = vmul.f32 %v6591_v48, %v11652_v4  ;;  %v9453_v4 = vpop.permute.xlu0 %4619  ;;  %v11675_v59 = vld [vmem:[#allocation54_spill] sm:$0xff] }
 0x5f2   : > { %v2561_v44 = vadd.f32 %v11665_v3, %v2081_v8  ;;  %v9432_v36 = vadd.f32 %v11667_v15, %v2541_v2  ;;  %v9438_v16 = vld [vmem:[#allocation2 + $0x21a] sm:$0xff]  ;;  %v9442_v8 = vpop.permute.xlu1 %4655  ;;  %v11671_v62 = vld [vmem:[#allocation45_spill] sm:$0xff]  ;;  %11674 = vst [vmem:[#allocation42_spill] sm:$0xff] %v9453_v4 }
 0x5f3   : > { %11669 = vst [vmem:[#allocation41_spill] sm:$0xff] %v9436_v17  ;;  %11670 = vst [vmem:[#allocation57_spill] sm:$0xff] %v9442_v8  ;;  %v2977_v12 = vadd.f32 %v11671_v62, %v2545_v22  ;;  %v11672_v34 = vld [vmem:[#allocation47_spill] sm:$0xff]  ;;  %v4554_v14 = vmul.f32 %v9085_v32, %v9438_v16  ;;  %v2974_v63 = vadd.f32 %v11675_v59, %v2542_v54  ;;  %v11676_v43 = vld [vmem:[#allocation56_spill] sm:$0xff]  ;;  %4683 = vrot.lane.b32.xlu0 %v4548_v13, %s6741_s18 }
 0x5f4   : > { %v9446_v50 = vadd.f32 %v11672_v34, %v2549_v58  ;;  %v11673_v2 = vld [vmem:[#allocation51_spill] sm:$0xff]  ;;  %v2978_v3 = vadd.f32 %v11676_v43, %v2546_v46  ;;  %v11678_v48 = vld [vmem:[#allocation29_spill] sm:$0xff]  ;;  %v11681_v34 = vld [vmem:[#allocation82_spill] sm:$0xff] }
 0x5f5   : > { %v9449_v41 = vadd.f32 %v11673_v2, %v2553_v1  ;;  %v11677_v15 = vld [vmem:[#allocation63_spill] sm:$0xff]  ;;  %v2558_v17 = vadd.f32 %v11678_v48, %v2078_v21  ;;  %v11679_v58 = vld [vmem:[#allocation65_spill] sm:$0xff]  ;;  %v11680_v1 = vld [vmem:[#allocation80_spill] sm:$0xff]  ;;  %v9467_v2 = vadd.f32 %v11681_v34, %v2561_v44  ;;  %4695 = vrot.lane.b32.xlu1 %v4554_v14, %s6741_s18 }
 0x5f6   : > { %v2982_v45 = vadd.f32 %v11677_v15, %v2550_v39  ;;  %v9461_v22 = vadd.f32 %v11679_v58, %v2554_v19  ;;  %v9464_v62 = vadd.f32 %v11680_v1, %v2557_v51  ;;  %v11682_v11 = vld [vmem:[#allocation84_spill] sm:$0xff]  ;;  %v11685_v21 = vld [vmem:[#allocation21_spill] sm:$0xff]  ;;  %v11691_v48 = vld [vmem:[#allocation123_spill] sm:$0xff] }
 0x5f7   : > { %v9470_v8 = vadd.f32 %v11682_v11, %v2565_v27  ;;  %v9472_v54 = vld [vmem:[#allocation2 + $0x202] sm:$0xff]  ;;  %v9479_v13 = vadd.f32 %v11685_v21, %v2558_v17  ;;  %v9487_v11 = vpop.permute.xlu1 %4663 }
 0x5f8   : > { %11683 = vst [vmem:[#allocation59_spill] sm:$0xff] %v9472_v54  ;;  %v11684_v46 = vld [vmem:[#allocation28_spill] sm:$0xff]  ;;  %v4552_v44 = vmul.f32 %v9229_v26, %v9472_v54  ;;  %11688 = vst [vmem:[#allocation50_spill] sm:$0xff] %v9487_v11  ;;  %v11689_v27 = vld [vmem:[#allocation13_spill] sm:$0xff] }
 0x5f9   : > { %v9476_v39 = vadd.f32 %v11684_v46, %v2569_v7  ;;  %v11686_v19 = vld [vmem:[#allocation12_spill] sm:$0xff]  ;;  %v2566_v43 = vadd.f32 %v11689_v27, %v9376_v6  ;;  %v11690_v14 = vld [vmem:[#allocation85_spill] sm:$0xff]  ;;  %v6595_v11 = vld [vmem:[#allocation2 + $0x31] sm:$0xff] }
 0x5fa   : > { %v2562_v51 = vadd.f32 %v11686_v19, %v9373_v31  ;;  %v9483_v59 = vld [vmem:[#allocation2 + $0x182] sm:$0xff]  ;;  %v2570_v7 = vadd.f32 %v11690_v14, %v9383_v38  ;;  %v9496_v31 = vpop.permute.xlu0 %4627  ;;  %v6596_v27 = vld [vmem:[#allocation2 + $0x39] sm:$0xff]  ;;  %4691 = vrot.lane.b32.xlu0 %v4552_v44, %s6741_s18 }
 0x5fb   : > { %11687 = vst [vmem:[#allocation61_spill] sm:$0xff] %v9483_v59  ;;  %v6592_v15 = vld [vmem:[#allocation2 + $0x9] sm:$0xff]  ;;  %v4541_v58 = vmul.f32 %v9199_v18, %v9483_v59  ;;  %11692 = vst [vmem:[#allocation73_spill] sm:$0xff] %v9496_v31  ;;  %v6593_v1 = vld [vmem:[#allocation2 + $0x1] sm:$0xff] }
 0x5fc   : > { %v3166_v17 = vmul.f32 %v6592_v15, %v11691_v48  ;;  %v3165_v34 = vmul.f32 %v6593_v1, %v11691_v48  ;;  %v6594_v46 = vld [vmem:[#allocation2 + $0x69] sm:$0xff]  ;;  %v11693_v21 = vld [vmem:[#allocation124_spill] sm:$0xff]  ;;  %v11695_v14 = vld [vmem:[#allocation23_spill] sm:$0xff] }
 0x5fd   : > { %v3174_v19 = vmul.f32 %v6594_v46, %v11693_v21  ;;  %v11694_v4 = vld [vmem:[#allocation125_spill] sm:$0xff]  ;;  %v9504_v15 = vadd.f32 %v11695_v14, %v2562_v51  ;;  %v11697_v31 = vld [vmem:[#allocation86_spill] sm:$0xff]  ;;  %4669 = vrot.lane.b32.xlu1 %v4541_v58, %s6741_s18  ;;  %v6598_v44 = vld [vmem:[#allocation2 + $0x19] sm:$0xff] }
 0x5fe   : > { %v3169_v6 = vmul.f32 %v6595_v11, %v11694_v4  ;;  %v3170_v38 = vmul.f32 %v6596_v27, %v11694_v4  ;;  %v11696_v18 = vld [vmem:[#allocation25_spill] sm:$0xff]  ;;  %v9510_v54 = vadd.f32 %v11697_v31, %v2570_v7  ;;  %v9513_v46 = vld [vmem:[#allocation2 + $0x232] sm:$0xff]  ;;  %v11698_v4 = vld [vmem:[#allocation88_spill] sm:$0xff] }
 0x5ff   : > { %v9507_v59 = vadd.f32 %v11696_v18, %v2566_v43  ;;  %v6597_v48 = vld [vmem:[#allocation2 + $0x61] sm:$0xff]  ;;  %v9518_v11 = vadd.f32 %v11698_v4, %v9379_v10  ;;  %v9526_v7 = vld [vmem:[#allocation2 + $0x1b2] sm:$0xff]  ;;  %v4556_v31 = vmul.f32 %v9245_v37, %v9513_v46 }
 0x600   : > { %v3173_v1 = vmul.f32 %v6597_v48, %v11693_v21  ;;  %v11700_v51 = vld [vmem:[#allocation109_spill] sm:$0xff]  ;;  %11703 = vst [vmem:[#allocation67_spill] sm:$0xff] %v9526_v7  ;;  %v9530_v21 = vpop.permute.xlu1 %4605  ;;  %v6600_v58 = vld [vmem:[#allocation2 + $0x91] sm:$0xff]  ;;  %v6601_v10 = vld [vmem:[#allocation2 + $0x99] sm:$0xff] }
 0x601   : > { %11699 = vst [vmem:[#allocation75_spill] sm:$0xff] %v9518_v11  ;;  %v9521_v27 = vmul.f32 %v6598_v44, %v11700_v51  ;;  %v6599_v43 = vld [vmem:[#allocation2 + $0x21] sm:$0xff]  ;;  %11704 = vst [vmem:[#allocation69_spill] sm:$0xff] %v9530_v21  ;;  %v11705_v18 = vld [vmem:[#allocation126_spill] sm:$0xff]  ;;  %v9534_v11 = vadd.f32 %v3166_v17, %v2974_v63  ;;  %v4545_v44 = vmul.f32 %v9209_v35, %v9526_v7  ;;  %4699 = vrot.lane.b32.xlu0 %v4556_v31, %s6741_s18 }
 0x602   : > { %v9524_v14 = vmul.f32 %v6599_v43, %v11700_v51  ;;  %v3177_v48 = vmul.f32 %v6600_v58, %v11705_v18  ;;  %v3178_v4 = vmul.f32 %v6601_v10, %v11705_v18  ;;  %v9538_v51 = vpop.permute.xlu0 %4635  ;;  %v9541_v43 = vadd.f32 %v3165_v34, %v9432_v36  ;;  %v6602_v58 = vld [vmem:[#allocation2 + $0x49] sm:$0xff]  ;;  %v11707_v18 = vld [vmem:[#allocation127_spill] sm:$0xff]  ;;  %v6603_v17 = vld [vmem:[#allocation2 + $0xc1] sm:$0xff] }
 0x603   : > { %11701 = vst [vmem:[#allocation10_spill] sm:$0xff] %v9521_v27  ;;  %11706 = vst [vmem:[#allocation7_spill] sm:$0xff] %v9538_v51  ;;  %v9543_v27 = vadd.f32 %v3170_v38, %v2978_v3  ;;  %v9547_v21 = vadd.f32 %v3174_v19, %v2982_v45  ;;  %v9551_v63 = vmul.f32 %v6602_v58, %v11707_v18  ;;  %v11709_v10 = vld [vmem:[#allocation128_spill] sm:$0xff]  ;;  %v6604_v7 = vld [vmem:[#allocation2 + $0xc9] sm:$0xff]  ;;  %4677 = vrot.lane.b32.xlu1 %v4545_v44, %s6741_s18 }
 0x604   : > { %11702 = vst [vmem:[#allocation78_spill] sm:$0xff] %v9524_v14  ;;  %v9545_v14 = vadd.f32 %v3169_v6, %v2977_v12  ;;  %v3181_v35 = vmul.f32 %v6603_v17, %v11709_v10  ;;  %v3182_v51 = vmul.f32 %v6604_v7, %v11709_v10  ;;  %v9556_v36 = vadd.f32 %v3173_v1, %v9446_v50  ;;  %v9558_v3 = vld [vmem:[#allocation2 + $0x19a] sm:$0xff]  ;;  %v6605_v12 = vld [vmem:[#allocation2 + $0x51] sm:$0xff]  ;;  %v9566_v58 = vld [vmem:[#allocation2 + $0x1e2] sm:$0xff]  ;;  %v9570_v1 = vpop.permute.xlu1 %4613 }
 0x605   : > { %11708 = vst [vmem:[#allocation43_spill] sm:$0xff] %v9551_v63  ;;  %v9562_v45 = vmul.f32 %v6605_v12, %v11707_v18  ;;  %v6606_v34 = vld [vmem:[#allocation2 + $0xf1] sm:$0xff]  ;;  %v6607_v38 = vld [vmem:[#allocation2 + $0xf9] sm:$0xff]  ;;  %11712 = vst [vmem:[#allocation45_spill] sm:$0xff] %v9566_v58  ;;  %v4543_v50 = vmul.f32 %v9058_v49, %v9558_v3  ;;  %v9574_v10 = vadd.f32 %v3178_v4, %v9461_v22 }
 0x606   : > { %v11711_v19 = vld [vmem:[#allocation130_spill] sm:$0xff]  ;;  %11713 = vst [vmem:[#allocation47_spill] sm:$0xff] %v9570_v1  ;;  %v11714_v17 = vld [vmem:[#allocation132_spill] sm:$0xff]  ;;  %v9577_v18 = vadd.f32 %v3177_v48, %v9449_v41  ;;  %v4549_v12 = vmul.f32 %v9072_v20, %v9566_v58  ;;  %v11719_v20 = vld [vmem:[#allocation131_spill] sm:$0xff] }
 0x607   : > { %11710 = vst [vmem:[#allocation11_spill] sm:$0xff] %v9562_v45  ;;  %v3185_v6 = vmul.f32 %v6606_v34, %v11711_v19  ;;  %v3186_v31 = vmul.f32 %v6607_v38, %v11711_v19  ;;  %v6608_v7 = vld [vmem:[#allocation2 + $0x129] sm:$0xff]  ;;  %v9581_v34 = vpop.permute.xlu0 %4643  ;;  %v6609_v19 = vld [vmem:[#allocation2 + $0x79] sm:$0xff]  ;;  %v6610_v49 = vld [vmem:[#allocation2 + $0x81] sm:$0xff]  ;;  %4673 = vrot.lane.b32.xlu0 %v4543_v50, %s6741_s18 }
 0x608   : > { %v3190_v44 = vmul.f32 %v6608_v7, %v11714_v17  ;;  %11715 = vst [vmem:[#allocation51_spill] sm:$0xff] %v9581_v34  ;;  %v11716_v38 = vld [vmem:[#allocation129_spill] sm:$0xff]  ;;  %v6612_v4 = vld [vmem:[#allocation2 + $0x159] sm:$0xff]  ;;  %v11718_v45 = vld [vmem:[#allocation134_spill] sm:$0xff]  ;;  %4685 = vrot.lane.b32.xlu1 %v4549_v12, %s6741_s18 }
 0x609   : > { %v9584_v63 = vmul.f32 %v6609_v19, %v11716_v38  ;;  %v9587_v1 = vmul.f32 %v6610_v49, %v11716_v38  ;;  %v6611_v7 = vld [vmem:[#allocation2 + $0x121] sm:$0xff]  ;;  %v3194_v41 = vmul.f32 %v6612_v4, %v11718_v45  ;;  %v6613_v48 = vld [vmem:[#allocation2 + $0xa9] sm:$0xff]  ;;  %v6614_v34 = vld [vmem:[#allocation2 + $0x151] sm:$0xff]  ;;  %v3229_v38 = vadd.f32 %v3181_v35, %v9464_v62 }
 0x60a   : > { %v3189_v22 = vmul.f32 %v6611_v7, %v11714_v17  ;;  %v9593_v58 = vmul.f32 %v6613_v48, %v11719_v20  ;;  %v3193_v19 = vmul.f32 %v6614_v34, %v11718_v45  ;;  %v9598_v49 = vld [vmem:[#allocation2 + $0x1ca] sm:$0xff]  ;;  %v3234_v50 = vadd.f32 %v3186_v31, %v9504_v15  ;;  %v9606_v48 = vld [vmem:[#allocation2 + $0x212] sm:$0xff]  ;;  %v6617_v12 = vld [vmem:[#allocation2 + $0xe1] sm:$0xff] }
 0x60b   : > { %11717 = vst [vmem:[#allocation54_spill] sm:$0xff] %v9584_v63  ;;  %v3230_v63 = vadd.f32 %v3182_v51, %v9479_v13  ;;  %v6615_v17 = vld [vmem:[#allocation2 + $0xb1] sm:$0xff]  ;;  %v3233_v4 = vadd.f32 %v3185_v6, %v9467_v2  ;;  %v4547_v45 = vmul.f32 %v9219_v30, %v9598_v49  ;;  %v9610_v13 = vpop.permute.xlu1 %4621  ;;  %v6616_v62 = vld [vmem:[#allocation2 + $0xd9] sm:$0xff]  ;;  %v11721_v51 = vld [vmem:[#allocation133_spill] sm:$0xff]  ;;  %v4553_v2 = vmul.f32 %v9085_v32, %v9606_v48  ;;  %v9621_v15 = vpop.permute.xlu0 %4651 }
 0x60c   : > { %v9602_v7 = vmul.f32 %v6615_v17, %v11719_v20  ;;  %11720 = vst [vmem:[#allocation56_spill] sm:$0xff] %v9610_v13  ;;  %v9613_v35 = vmul.f32 %v6616_v62, %v11721_v51  ;;  %v9616_v34 = vmul.f32 %v6617_v12, %v11721_v51  ;;  %v3238_v20 = vadd.f32 %v3190_v44, %v9507_v59  ;;  %v6618_v6 = vld [vmem:[#allocation2 + $0x109] sm:$0xff]  ;;  %v11724_v31 = vld [vmem:[#allocation135_spill] sm:$0xff]  ;;  %v6621_v32 = vld [vmem:[#allocation2 + $0x141] sm:$0xff] }
 0x60d   : > { %11723 = vst [vmem:[#allocation29_spill] sm:$0xff] %v9621_v15  ;;  %v9624_v30 = vmul.f32 %v6618_v6, %v11724_v31  ;;  %v6619_v17 = vld [vmem:[#allocation2 + $0x111] sm:$0xff]  ;;  %v3237_v62 = vadd.f32 %v3189_v22, %v9470_v8  ;;  %v3242_v51 = vadd.f32 %v3194_v41, %v9510_v54  ;;  %4681 = vrot.lane.b32.xlu0 %v4547_v45, %s6741_s18  ;;  %v6620_v59 = vld [vmem:[#allocation2 + $0x139] sm:$0xff]  ;;  %v11727_v44 = vld [vmem:[#allocation137_spill] sm:$0xff] }
 0x60e   : > { %11722 = vst [vmem:[#allocation63_spill] sm:$0xff] %v9613_v35  ;;  %v9627_v13 = vmul.f32 %v6619_v17, %v11724_v31  ;;  %v9633_v12 = vmul.f32 %v6620_v59, %v11727_v44  ;;  %v9636_v15 = vmul.f32 %v6621_v32, %v11727_v44  ;;  %v6622_v6 = vld [vmem:[#allocation2 + $0x169] sm:$0xff]  ;;  %v3241_v31 = vadd.f32 %v3193_v19, %v9476_v39  ;;  %v9642_v17 = vld [vmem:[#allocation2 + $0x1fa] sm:$0xff]  ;;  %v6623_v8 = vld [vmem:[#allocation2 + $0x171] sm:$0xff] }
 0x60f   : > { %11725 = vst [vmem:[#allocation65_spill] sm:$0xff] %v9624_v30  ;;  %v11730_v30 = vld [vmem:[#allocation139_spill] sm:$0xff]  ;;  %4693 = vrot.lane.b32.xlu1 %v4553_v2, %s6741_s18  ;;  %v11733_v22 = vld [vmem:[#allocation160_spill] sm:$0xff]  ;;  %v11734_v45 = vld [vmem:[#allocation161_spill] sm:$0xff]  ;;  %v4551_v44 = vmul.f32 %v9229_v26, %v9642_v17  ;;  %v9654_v32 = vpop.permute.xlu1 %4629 }
 0x610   : > { %11726 = vst [vmem:[#allocation80_spill] sm:$0xff] %v9627_v13  ;;  %11728 = vst [vmem:[#allocation82_spill] sm:$0xff] %v9633_v12  ;;  %v9639_v35 = vmul.f32 %v6622_v6, %v11730_v30  ;;  %v9646_v54 = vmul.f32 %v6623_v8, %v11730_v30  ;;  %v3646_v41 = vadd.f32 %v11733_v22, %v9534_v11  ;;  %v11736_v39 = vld [vmem:[#allocation164_spill] sm:$0xff]  ;;  %v11737_v2 = vld [vmem:[#allocation165_spill] sm:$0xff]  ;;  %v9664_v22 = vpop.permute.xlu0 %4659 }
 0x611   : > { %11729 = vst [vmem:[#allocation84_spill] sm:$0xff] %v9636_v15  ;;  %v3645_v59 = vadd.f32 %v11734_v45, %v9541_v43  ;;  %11735 = vst [vmem:[#allocation12_spill] sm:$0xff] %v9654_v32  ;;  %v3650_v19 = vadd.f32 %v11736_v39, %v9543_v27  ;;  %v3649_v6 = vadd.f32 %v11737_v2, %v9545_v14  ;;  %v11738_v30 = vld [vmem:[#allocation168_spill] sm:$0xff]  ;;  %v11740_v43 = vld [vmem:[#allocation169_spill] sm:$0xff]  ;;  %4689 = vrot.lane.b32.xlu0 %v4551_v44, %s6741_s18 }
 0x612   : > { %11731 = vst [vmem:[#allocation28_spill] sm:$0xff] %v9639_v35  ;;  %11732 = vst [vmem:[#allocation21_spill] sm:$0xff] %v9646_v54  ;;  %v3654_v8 = vadd.f32 %v11738_v30, %v9547_v21  ;;  %v4974_v11 = vmul.f32 %v9207_v33, %v9337_v5  ;;  %v3653_v45 = vadd.f32 %v11740_v43, %v9556_v36  ;;  %v11741_v26 = vld [vmem:[#allocation172_spill] sm:$0xff]  ;;  %v11742_v12 = vld [vmem:[#allocation173_spill] sm:$0xff] }
 0x613   : > { %11739 = vst [vmem:[#allocation13_spill] sm:$0xff] %v9664_v22  ;;  %v3658_v35 = vadd.f32 %v11741_v26, %v9574_v10  ;;  %v3657_v27 = vadd.f32 %v11742_v12, %v9577_v18  ;;  %v11743_v39 = vld [vmem:[#allocation176_spill] sm:$0xff]  ;;  %v11744_v14 = vld [vmem:[#allocation177_spill] sm:$0xff]  ;;  %v11757_v26 = vld [vmem:[#allocation230_spill] sm:$0xff] }
 0x614   : > { %v3662_v32 = vadd.f32 %v11743_v39, %v3230_v63  ;;  %v3661_v21 = vadd.f32 %v11744_v14, %v3229_v38  ;;  %v11745_v2 = vld [vmem:[#allocation180_spill] sm:$0xff]  ;;  %v11746_v5 = vld [vmem:[#allocation181_spill] sm:$0xff]  ;;  %5103 = vrot.lane.b32.xlu1 %v4974_v11, %s6740_s17  ;;  %v9686_v38 = vpop.permute.xlu1 %4637  ;;  %v4978_v11 = vmul.f32 %v9271_v40, %v9358_v56 }
 0x615   : > { %v3666_v30 = vadd.f32 %v11745_v2, %v3234_v50  ;;  %v3665_v54 = vadd.f32 %v11746_v5, %v3233_v4  ;;  %v11747_v22 = vld [vmem:[#allocation184_spill] sm:$0xff]  ;;  %v9678_v13 = vld [vmem:[#allocation2 + $0x22a] sm:$0xff]  ;;  %11751 = vst [vmem:[#allocation85_spill] sm:$0xff] %v9686_v38  ;;  %v4077_v50 = vadd.f32 %v8746_v55, %v3645_v59  ;;  %v4078_v4 = vadd.f32 %v8748_v24, %v3646_v41  ;;  %v11754_v41 = vld [vmem:[#allocation155_spill] sm:$0xff] }
 0x616   : > { %v3670_v15 = vadd.f32 %v11747_v22, %v3238_v20  ;;  %v11748_v36 = vld [vmem:[#allocation185_spill] sm:$0xff]  ;;  %v11749_v43 = vld [vmem:[#allocation188_spill] sm:$0xff]  ;;  %v4555_v44 = vmul.f32 %v9245_v37, %v9678_v13  ;;  %v4081_v20 = vadd.f32 %v8758_v28, %v3649_v6  ;;  %v9693_v22 = vpop.permute.xlu0 %4667  ;;  %v9699_v37 = vadd.f32 %v8782_v29, %v3657_v27  ;;  %v11756_v6 = vld [vmem:[#allocation254_spill] sm:$0xff] }
 0x617   : > { %v3669_v10 = vadd.f32 %v11748_v36, %v3237_v62  ;;  %v3674_v18 = vadd.f32 %v11749_v43, %v3242_v51  ;;  %v11750_v12 = vld [vmem:[#allocation189_spill] sm:$0xff]  ;;  %11752 = vst [vmem:[#allocation123_spill] sm:$0xff] %v9693_v22  ;;  %v4082_v62 = vadd.f32 %v8760_v57, %v3650_v19  ;;  %v4085_v51 = vadd.f32 %v8770_v47, %v3653_v45  ;;  %v11753_v55 = vld [vmem:[#allocation152_spill] sm:$0xff]  ;;  %v11758_v47 = vld [vmem:[#allocation159_spill] sm:$0xff] }
 0x618   : > { %v3673_v63 = vadd.f32 %v11750_v12, %v3241_v31  ;;  %v4086_v31 = vadd.f32 %v8772_v61, %v3654_v8  ;;  %4697 = vrot.lane.b32.xlu0 %v4555_v44, %s6741_s18  ;;  %v4090_v24 = vadd.f32 %v11753_v55, %v3658_v35  ;;  %v9704_v28 = vadd.f32 %v11754_v41, %v3661_v21  ;;  %v11755_v59 = vld [vmem:[#allocation156_spill] sm:$0xff]  ;;  %v11759_v29 = vld [vmem:[#allocation18_spill] sm:$0xff]  ;;  %v9722_v45 = vpop.permute.xlu1 %4645  ;;  %v11762_v39 = vld [vmem:[#allocation233_spill] sm:$0xff] }
 0x619   : > { %v9707_v56 = vadd.f32 %v11755_v59, %v3662_v32  ;;  %v4270_v57 = vmul.f32 %v11757_v26, %v11756_v6  ;;  %5111 = vrot.lane.b32.xlu1 %v4978_v11, %s6740_s17  ;;  %v9713_v61 = vadd.f32 %v11758_v47, %v3665_v54  ;;  %v9716_v19 = vadd.f32 %v11759_v29, %v3666_v30  ;;  %v11761_v32 = vld [vmem:[#allocation27_spill] sm:$0xff]  ;;  %v11768_v12 = vld [vmem:[#allocation257_spill] sm:$0xff]  ;;  %v1674_v59 = vld [vmem:[#allocation2 + $0x20] sm:$0xff] }
 0x61a   : > { %v4269_v35 = vmul.f32 %v11757_v26, %v9068_v53  ;;  %v4976_v8 = vmul.f32 %v9257_v0, %v9394_v9  ;;  %11760 = vst [vmem:[#allocation124_spill] sm:$0xff] %v9722_v45  ;;  %v9725_v27 = vadd.f32 %v11761_v32, %v3669_v10  ;;  %v4273_v14 = vmul.f32 %v11762_v39, %v9081_v42  ;;  %v11763_v21 = vld [vmem:[#allocation255_spill] sm:$0xff]  ;;  %v9733_v30 = vpop.permute.xlu0 %4609  ;;  %v11766_v9 = vld [vmem:[#allocation210_spill] sm:$0xff]  ;;  %v11774_v26 = vld [vmem:[#allocation232_spill] sm:$0xff] }
 0x61b   : > { %v4274_v54 = vmul.f32 %v11762_v39, %v11763_v21  ;;  %v4982_v2 = vmul.f32 %v9285_v25, %v9404_v60  ;;  %11764 = vst [vmem:[#allocation125_spill] sm:$0xff] %v9733_v30  ;;  %v11765_v53 = vld [vmem:[#allocation19_spill] sm:$0xff]  ;;  %v9739_v36 = vadd.f32 %v11766_v9, %v3673_v63  ;;  %v11771_v60 = vld [vmem:[#allocation256_spill] sm:$0xff]  ;;  %v9757_v6 = vadd.f32 %v4270_v57, %v4078_v4  ;;  %v11801_v45 = vld [vmem:[#allocation61_spill] sm:$0xff] }
 0x61c   : > { %v9736_v5 = vadd.f32 %v11765_v53, %v3670_v15  ;;  %v11767_v43 = vld [vmem:[#allocation211_spill] sm:$0xff]  ;;  %5107 = vrot.lane.b32.xlu0 %v4976_v8, %s6740_s17  ;;  %v11772_v15 = vld [vmem:[#allocation270_spill] sm:$0xff]  ;;  %v9767_v39 = vadd.f32 %v4269_v35, %v4077_v50  ;;  %v9769_v21 = vpop.permute.xlu1 %4653  ;;  %v11779_v4 = vld [vmem:[#allocation288_spill] sm:$0xff] }
 0x61d   : > { %v9742_v10 = vadd.f32 %v11767_v43, %v3674_v18  ;;  %v11769_v44 = vld [vmem:[#allocation235_spill] sm:$0xff]  ;;  %5119 = vrot.lane.b32.xlu1 %v4982_v2, %s6740_s17  ;;  %v11776_v8 = vld [vmem:[#allocation282_spill] sm:$0xff]  ;;  %11777 = vst [vmem:[#allocation23_spill] sm:$0xff] %v9769_v21  ;;  %v4986_v57 = vmul.f32 %v11779_v4, %v9438_v16  ;;  %v4322_v2 = vadd.f32 %v4274_v54, %v4082_v62  ;;  %v11783_v50 = vld [vmem:[#allocation260_spill] sm:$0xff] }
 0x61e   : > { %v4278_v42 = vmul.f32 %v11769_v44, %v11768_v12  ;;  %v11770_v11 = vld [vmem:[#allocation231_spill] sm:$0xff]  ;;  %v4277_v63 = vmul.f32 %v11769_v44, %v11772_v15  ;;  %v2064_v32 = vmul.f32 %v11776_v8, %v1674_v59  ;;  %v11778_v53 = vld [vmem:[#allocation258_spill] sm:$0xff]  ;;  %v9777_v43 = vadd.f32 %v4273_v14, %v4081_v20  ;;  %v9779_v12 = vpop.permute.xlu0 %4617  ;;  %v11781_v44 = vld [vmem:[#allocation273_spill] sm:$0xff] }
 0x61f   : > { %v9749_v55 = vmul.f32 %v11770_v11, %v9095_v23  ;;  %v9753_v41 = vmul.f32 %v11770_v11, %v11771_v60  ;;  %v11773_v18 = vld [vmem:[#allocation271_spill] sm:$0xff]  ;;  %v9773_v9 = vmul.f32 %v11774_v26, %v11778_v53  ;;  %11780 = vst [vmem:[#allocation25_spill] sm:$0xff] %v9779_v12  ;;  %v11785_v15 = vld [vmem:[#allocation237_spill] sm:$0xff]  ;;  %v11786_v16 = vld [vmem:[#allocation272_spill] sm:$0xff] }
 0x620   : > { %v9762_v47 = vmul.f32 %v11774_v26, %v11773_v18  ;;  %v11775_v29 = vld [vmem:[#allocation279_spill] sm:$0xff]  ;;  %v9791_v26 = vadd.f32 %v4278_v42, %v4086_v31  ;;  %v4281_v20 = vmul.f32 %v11785_v15, %v11786_v16  ;;  %v11787_v62 = vld [vmem:[#allocation261_spill] sm:$0xff]  ;;  %v11792_v31 = vld [vmem:[#allocation274_spill] sm:$0xff]  ;;  %v9811_v30 = vpop.permute.xlu1 %4661 }
 0x621   : > { %v4980_v23 = vmul.f32 %v11775_v29, %v9428_v52  ;;  %v11782_v52 = vld [vmem:[#allocation234_spill] sm:$0xff]  ;;  %v11784_v60 = vld [vmem:[#allocation259_spill] sm:$0xff]  ;;  %5127 = vrot.lane.b32.xlu1 %v4986_v57, %s6740_s17  ;;  %v11794_v21 = vld [vmem:[#allocation280_spill] sm:$0xff]  ;;  %11796 = vst [vmem:[#allocation88_spill] sm:$0xff] %v9811_v30 }
 0x622   : > { %v9783_v11 = vmul.f32 %v11782_v52, %v11781_v44  ;;  %v9787_v35 = vmul.f32 %v11782_v52, %v11783_v50  ;;  %v4282_v59 = vmul.f32 %v11785_v15, %v11784_v60  ;;  %v1673_v18 = vld [vmem:[#allocation2 + $0x18] sm:$0xff]  ;;  %v9799_v44 = vadd.f32 %v4277_v63, %v4085_v51  ;;  %v11790_v50 = vld [vmem:[#allocation236_spill] sm:$0xff]  ;;  %v11795_v15 = vld [vmem:[#allocation74_spill] sm:$0xff]  ;;  %v9823_v38 = vpop.permute.xlu0 %4625 }
 0x623   : > { %5115 = vrot.lane.b32.xlu0 %v4980_v23, %s6740_s17  ;;  %v11788_v14 = vld [vmem:[#allocation239_spill] sm:$0xff]  ;;  %v2063_v53 = vmul.f32 %v11776_v8, %v1673_v18  ;;  %v2544_v16 = vadd.f32 %v11795_v15, %v2064_v32  ;;  %v11798_v63 = vld [vmem:[#allocation276_spill] sm:$0xff]  ;;  %v11799_v8 = vld [vmem:[#allocation241_spill] sm:$0xff]  ;;  %11802 = vst [vmem:[#allocation109_spill] sm:$0xff] %v9823_v38 }
 0x624   : > { %v4286_v54 = vmul.f32 %v11788_v14, %v11787_v62  ;;  %v11789_v52 = vld [vmem:[#allocation275_spill] sm:$0xff]  ;;  %v4285_v42 = vmul.f32 %v11788_v14, %v11792_v31  ;;  %v11797_v62 = vld [vmem:[#allocation262_spill] sm:$0xff]  ;;  %v4289_v57 = vmul.f32 %v11799_v8, %v11798_v63  ;;  %v4973_v14 = vmul.f32 %v9207_v33, %v11801_v45  ;;  %v11805_v30 = vld [vmem:[#allocation265_spill] sm:$0xff] }
 0x625   : > { %v9804_v60 = vmul.f32 %v11790_v50, %v11789_v52  ;;  %v11793_v23 = vld [vmem:[#allocation59_spill] sm:$0xff]  ;;  %v9815_v51 = vmul.f32 %v11790_v50, %v11797_v62  ;;  %v1678_v31 = vld [vmem:[#allocation2 + $0x50] sm:$0xff]  ;;  %v9830_v22 = vadd.f32 %v4282_v59, %v4090_v24  ;;  %v11807_v63 = vld [vmem:[#allocation264_spill] sm:$0xff] }
 0x626   : > { %v4984_v12 = vmul.f32 %v11794_v21, %v11793_v23  ;;  %v11800_v18 = vld [vmem:[#allocation263_spill] sm:$0xff]  ;;  %v11803_v23 = vld [vmem:[#allocation277_spill] sm:$0xff]  ;;  %v11809_v33 = vld [vmem:[#allocation58_spill] sm:$0xff]  ;;  %v9839_v38 = vadd.f32 %v4286_v54, %v9707_v56  ;;  %5101 = vrot.lane.b32.xlu1 %v4973_v14, %s6740_s17 }
 0x627   : > { %11791 = vst [vmem:[#allocation86_spill] sm:$0xff] %v9804_v60  ;;  %v4290_v52 = vmul.f32 %v11799_v8, %v11800_v18  ;;  %v11804_v32 = vld [vmem:[#allocation243_spill] sm:$0xff]  ;;  %v11808_v8 = vld [vmem:[#allocation238_spill] sm:$0xff]  ;;  %v2543_v45 = vadd.f32 %v11809_v33, %v2063_v53  ;;  %v5040_v53 = vpop.permute.xlu1 %5039  ;;  %v11815_v56 = vld [vmem:[#allocation268_spill] sm:$0xff] }
 0x628   : > { %v4293_v15 = vmul.f32 %v11804_v32, %v11803_v23  ;;  %v4294_v60 = vmul.f32 %v11804_v32, %v11805_v30  ;;  %v11806_v50 = vld [vmem:[#allocation283_spill] sm:$0xff]  ;;  %5123 = vrot.lane.b32.xlu0 %v4984_v12, %s6740_s17  ;;  %v9835_v18 = vmul.f32 %v11808_v8, %v11807_v63  ;;  %v9842_v23 = vadd.f32 %v4281_v20, %v9699_v37  ;;  %v11810_v30 = vld [vmem:[#allocation266_spill] sm:$0xff]  ;;  %v11812_v12 = vld [vmem:[#allocation281_spill] sm:$0xff] }
 0x629   : > { %v2068_v62 = vmul.f32 %v11806_v50, %v1678_v31  ;;  %v11811_v31 = vld [vmem:[#allocation240_spill] sm:$0xff]  ;;  %v4988_v59 = vmul.f32 %v11812_v12, %v9513_v46  ;;  %v11813_v32 = vld [vmem:[#allocation55_spill] sm:$0xff]  ;;  %v9853_v8 = vadd.f32 %v4285_v42, %v9704_v28  ;;  %v11816_v54 = vld [vmem:[#allocation242_spill] sm:$0xff]  ;;  %v9862_v14 = vadd.f32 %v4290_v52, %v9716_v19  ;;  %v9867_v46 = vpop.permute.xlu0 %4633 }
 0x62a   : > { %v9847_v24 = vmul.f32 %v11811_v31, %v11810_v30  ;;  %v2976_v63 = vadd.f32 %v11813_v32, %v2544_v16  ;;  %v9857_v33 = vmul.f32 %v11816_v54, %v11815_v56  ;;  %v11817_v37 = vld [vmem:[#allocation67_spill] sm:$0xff]  ;;  %v9865_v30 = vadd.f32 %v4289_v57, %v9713_v61  ;;  %11818 = vst [vmem:[#allocation127_spill] sm:$0xff] %v9867_v46  ;;  %v11819_v16 = vld [vmem:[#allocation269_spill] sm:$0xff]  ;;  %v11820_v32 = vld [vmem:[#allocation244_spill] sm:$0xff] }
 0x62b   : > { %11814 = vst [vmem:[#allocation126_spill] sm:$0xff] %v9853_v8  ;;  %v4977_v20 = vmul.f32 %v9271_v40, %v11817_v37  ;;  %v9871_v28 = vmul.f32 %v11820_v32, %v11819_v16  ;;  %v1677_v42 = vld [vmem:[#allocation2 + $0x48] sm:$0xff]  ;;  %v11821_v31 = vld [vmem:[#allocation76_spill] sm:$0xff]  ;;  %v9875_v56 = vadd.f32 %v4294_v60, %v9736_v5  ;;  %v9878_v40 = vadd.f32 %v4293_v15, %v9725_v27  ;;  %v1681_v52 = vld [vmem:[#allocation2 + $0x78] sm:$0xff] }
 0x62c   : > { %v2548_v8 = vadd.f32 %v11821_v31, %v2068_v62  ;;  %5131 = vrot.lane.b32.xlu0 %v4988_v59, %s6740_s17  ;;  %v11823_v19 = vld [vmem:[#allocation44_spill] sm:$0xff]  ;;  %v2067_v57 = vmul.f32 %v11806_v50, %v1677_v42  ;;  %v11824_v16 = vld [vmem:[#allocation290_spill] sm:$0xff]  ;;  %v4975_v27 = vmul.f32 %v9257_v0, %v9558_v3  ;;  %v5048_v31 = vpop.permute.xlu1 %5047  ;;  %v11828_v50 = vld [vmem:[#allocation267_spill] sm:$0xff]  ;;  %v4979_v3 = vmul.f32 %v11775_v29, %v9598_v49 }
 0x62d   : > { %11822 = vst [vmem:[#allocation128_spill] sm:$0xff] %v9878_v40  ;;  %v2975_v61 = vadd.f32 %v11823_v19, %v2543_v45  ;;  %v1682_v37 = vld [vmem:[#allocation2 + $0x80] sm:$0xff]  ;;  %v4750_v32 = vadd.f32 %v11824_v16, %v9757_v6  ;;  %5109 = vrot.lane.b32.xlu1 %v4977_v20, %s6740_s17  ;;  %v11826_v5 = vld [vmem:[#allocation78_spill] sm:$0xff]  ;;  %v11829_v59 = vld [vmem:[#allocation245_spill] sm:$0xff] }
 0x62e   : > { %v11825_v54 = vld [vmem:[#allocation292_spill] sm:$0xff]  ;;  %v3216_v60 = vadd.f32 %v11826_v5, %v2976_v63  ;;  %v4298_v42 = vmul.f32 %v11829_v59, %v11828_v50  ;;  %v11830_v19 = vld [vmem:[#allocation45_spill] sm:$0xff]  ;;  %v1686_v16 = vld [vmem:[#allocation2 + $0xb0] sm:$0xff]  ;;  %v9900_v63 = vpop.permute.xlu0 %4641 }
 0x62f   : > { %v4754_v46 = vadd.f32 %v11825_v54, %v4322_v2  ;;  %v11827_v15 = vld [vmem:[#allocation284_spill] sm:$0xff]  ;;  %v4981_v6 = vmul.f32 %v9285_v25, %v11830_v19  ;;  %v9896_v2 = vadd.f32 %v5040_v53, %v4750_v32  ;;  %11831 = vst [vmem:[#allocation130_spill] sm:$0xff] %v9900_v63  ;;  %v11832_v20 = vld [vmem:[#allocation278_spill] sm:$0xff]  ;;  %v11834_v5 = vld [vmem:[#allocation285_spill] sm:$0xff] }
 0x630   : > { %v2071_v62 = vmul.f32 %v11827_v15, %v1681_v52  ;;  %v2072_v45 = vmul.f32 %v11827_v15, %v1682_v37  ;;  %v4297_v0 = vmul.f32 %v11829_v59, %v11832_v20  ;;  %v11833_v52 = vld [vmem:[#allocation62_spill] sm:$0xff]  ;;  %v2076_v15 = vmul.f32 %v11834_v5, %v1686_v16  ;;  %5105 = vrot.lane.b32.xlu0 %v4975_v27, %s6740_s17  ;;  %v11836_v53 = vld [vmem:[#allocation60_spill] sm:$0xff]  ;;  %v1685_v16 = vld [vmem:[#allocation2 + $0xa8] sm:$0xff] }
 0x631   : > { %v9898_v54 = vadd.f32 %v5048_v31, %v4754_v46  ;;  %v2980_v37 = vadd.f32 %v11833_v52, %v2548_v8  ;;  %v11835_v25 = vld [vmem:[#allocation10_spill] sm:$0xff]  ;;  %v2547_v32 = vadd.f32 %v11836_v53, %v2067_v57  ;;  %v1690_v46 = vld [vmem:[#allocation2 + $0xe0] sm:$0xff]  ;;  %5117 = vrot.lane.b32.xlu1 %v4981_v6, %s6740_s17  ;;  %v11838_v8 = vld [vmem:[#allocation77_spill] sm:$0xff]  ;;  %v5056_v57 = vpop.permute.xlu1 %5055  ;;  %v2075_v53 = vmul.f32 %v11834_v5, %v1685_v16 }
 0x632   : > { %v3215_v50 = vadd.f32 %v11835_v25, %v2975_v61  ;;  %v11837_v49 = vld [vmem:[#allocation48_spill] sm:$0xff]  ;;  %v2552_v19 = vadd.f32 %v11838_v8, %v2072_v45  ;;  %v11839_v20 = vld [vmem:[#allocation286_spill] sm:$0xff]  ;;  %v4985_v31 = vmul.f32 %v11779_v4, %v9606_v48  ;;  %v11841_v63 = vld [vmem:[#allocation287_spill] sm:$0xff]  ;;  %v9925_v6 = vadd.f32 %v4298_v42, %v9742_v10 }
 0x633   : > { %v2551_v29 = vadd.f32 %v11837_v49, %v2071_v62  ;;  %v2080_v27 = vmul.f32 %v11839_v20, %v1690_v46  ;;  %v1694_v52 = vld [vmem:[#allocation2 + $0x110] sm:$0xff]  ;;  %v9927_v62 = vpop.permute.xlu0 %4649  ;;  %v4983_v45 = vmul.f32 %v11794_v21, %v9642_v17  ;;  %v11843_v46 = vld [vmem:[#allocation11_spill] sm:$0xff]  ;;  %v11848_v42 = vld [vmem:[#allocation296_spill] sm:$0xff] }
 0x634   : > { %v11840_v61 = vld [vmem:[#allocation162_spill] sm:$0xff]  ;;  %v2084_v59 = vmul.f32 %v11841_v63, %v1694_v52  ;;  %11842 = vst [vmem:[#allocation132_spill] sm:$0xff] %v9927_v62  ;;  %v3220_v49 = vadd.f32 %v11843_v46, %v2980_v37  ;;  %v11844_v8 = vld [vmem:[#allocation79_spill] sm:$0xff]  ;;  %5113 = vrot.lane.b32.xlu0 %v4979_v3, %s6740_s17  ;;  %v4762_v16 = vadd.f32 %v11848_v42, %v9830_v22  ;;  %v11850_v17 = vld [vmem:[#allocation49_spill] sm:$0xff] }
 0x635   : > { %v3648_v25 = vadd.f32 %v11840_v61, %v3216_v60  ;;  %v2556_v60 = vadd.f32 %v11844_v8, %v2076_v15  ;;  %v9934_v61 = vadd.f32 %v4297_v0, %v9739_v36  ;;  %v11846_v48 = vld [vmem:[#allocation46_spill] sm:$0xff]  ;;  %v11849_v52 = vld [vmem:[#allocation163_spill] sm:$0xff]  ;;  %5125 = vrot.lane.b32.xlu1 %v4985_v31, %s6740_s17  ;;  %v2983_v21 = vadd.f32 %v11850_v17, %v2551_v29  ;;  %v11851_v37 = vld [vmem:[#allocation64_spill] sm:$0xff]  ;;  %v5064_v8 = vpop.permute.xlu1 %5063 }
 0x636   : > { %v2979_v4 = vadd.f32 %v11846_v48, %v2547_v32  ;;  %v11847_v5 = vld [vmem:[#allocation294_spill] sm:$0xff]  ;;  %v3647_v62 = vadd.f32 %v11849_v52, %v3215_v50  ;;  %v2984_v15 = vadd.f32 %v11851_v37, %v2552_v19  ;;  %v11853_v46 = vld [vmem:[#allocation147_spill] sm:$0xff]  ;;  %v11854_v32 = vld [vmem:[#allocation52_spill] sm:$0xff]  ;;  %v9952_v50 = vadd.f32 %v5064_v8, %v4762_v16 }
 0x637   : > { %11845 = vst [vmem:[#allocation129_spill] sm:$0xff] %v9934_v61  ;;  %v4758_v10 = vadd.f32 %v11847_v5, %v9791_v26  ;;  %v11852_v36 = vld [vmem:[#allocation30_spill] sm:$0xff]  ;;  %v4080_v3 = vadd.f32 %v11853_v46, %v3648_v25  ;;  %v2555_v48 = vadd.f32 %v11854_v32, %v2075_v53  ;;  %v11855_v61 = vld [vmem:[#allocation16_spill] sm:$0xff]  ;;  %v9954_v31 = vpop.permute.xlu0 %4657  ;;  %v11857_v19 = vld [vmem:[#allocation289_spill] sm:$0xff] }
 0x638   : > { %v2560_v0 = vadd.f32 %v11852_v36, %v2080_v27  ;;  %v2564_v26 = vadd.f32 %v11855_v61, %v2084_v59  ;;  %v1698_v5 = vld [vmem:[#allocation2 + $0x140] sm:$0xff]  ;;  %v1702_v40 = vld [vmem:[#allocation2 + $0x170] sm:$0xff]  ;;  %v11858_v27 = vld [vmem:[#allocation291_spill] sm:$0xff]  ;;  %5121 = vrot.lane.b32.xlu0 %v4983_v45, %s6740_s17  ;;  %v4987_v59 = vmul.f32 %v11812_v12, %v9678_v13 }
 0x639   : > { %v9950_v22 = vadd.f32 %v5056_v57, %v4758_v10  ;;  %v11856_v29 = vld [vmem:[#allocation66_spill] sm:$0xff]  ;;  %v2088_v52 = vmul.f32 %v11857_v19, %v1698_v5  ;;  %v2092_v17 = vmul.f32 %v11858_v27, %v1702_v40  ;;  %v1689_v53 = vld [vmem:[#allocation2 + $0xd8] sm:$0xff]  ;;  %v3224_v40 = vadd.f32 %v9587_v1, %v2984_v15  ;;  %v5072_v8 = vpop.permute.xlu1 %5071  ;;  %v11864_v12 = vld [vmem:[#allocation53_spill] sm:$0xff] }
 0x63a   : > { %v2988_v42 = vadd.f32 %v11856_v29, %v2556_v60  ;;  %v11859_v25 = vld [vmem:[#allocation166_spill] sm:$0xff]  ;;  %v11861_v16 = vld [vmem:[#allocation43_spill] sm:$0xff]  ;;  %v2987_v5 = vadd.f32 %v11864_v12, %v2555_v48 }
 0x63b   : > { %v3652_v37 = vadd.f32 %v11859_v25, %v3220_v49  ;;  %v11860_v57 = vld [vmem:[#allocation146_spill] sm:$0xff]  ;;  %v5669_v10 = vcombine.low %v9950_v22, %v9952_v50  ;;  %v3219_v36 = vadd.f32 %v11861_v16, %v2979_v4  ;;  %v2079_v49 = vmul.f32 %v11839_v20, %v1689_v53  ;;  %v1693_v4 = vld [vmem:[#allocation2 + $0x108] sm:$0xff]  ;;  %v11867_v15 = vld [vmem:[#allocation87_spill] sm:$0xff] }
 0x63c   : > { %v4079_v61 = vadd.f32 %v11860_v57, %v3647_v62  ;;  %v11862_v46 = vld [vmem:[#allocation22_spill] sm:$0xff]  ;;  %v11865_v62 = vld [vmem:[#allocation24_spill] sm:$0xff]  ;;  %v4320_v25 = vadd.f32 %v9753_v41, %v4080_v3  ;;  %v9976_v57 = vpop.permute.xlu0 %4665  ;;  %v3228_v60 = vadd.f32 %v9602_v7, %v2988_v42  ;;  %v11866_v16 = vld [vmem:[#allocation17_spill] sm:$0xff]  ;;  %v2572_v20 = vadd.f32 %v11867_v15, %v2092_v17  ;;  %5129 = vrot.lane.b32.xlu0 %v4987_v59, %s6740_s17 }
 0x63d   : > { %v2992_v45 = vadd.f32 %v11862_v46, %v2560_v0  ;;  %v11863_v32 = vld [vmem:[#allocation54_spill] sm:$0xff]  ;;  %v2996_v29 = vadd.f32 %v11865_v62, %v2564_v26  ;;  %v2568_v1 = vadd.f32 %v11866_v16, %v2088_v52  ;;  %v11868_v53 = vld [vmem:[#allocation149_spill] sm:$0xff]  ;;  %v11869_v48 = vld [vmem:[#allocation31_spill] sm:$0xff]  ;;  %v5080_v59 = vpop.permute.xlu1 %5079 }
 0x63e   : > { %v3223_v13 = vadd.f32 %v11863_v32, %v2983_v21  ;;  %v4084_v0 = vadd.f32 %v11868_v53, %v3652_v37  ;;  %v2083_v21 = vmul.f32 %v11841_v63, %v1693_v4  ;;  %v4766_v26 = vadd.f32 %v11869_v48, %v9839_v38  ;;  %v11870_v41 = vld [vmem:[#allocation38_spill] sm:$0xff]  ;;  %v11871_v7 = vld [vmem:[#allocation68_spill] sm:$0xff]  ;;  %v11873_v37 = vld [vmem:[#allocation167_spill] sm:$0xff] }
 0x63f   : > { %v4770_v3 = vadd.f32 %v11870_v41, %v9862_v14  ;;  %v9989_v46 = vadd.f32 %v9749_v55, %v4079_v61  ;;  %v2559_v42 = vadd.f32 %v11871_v7, %v2079_v49  ;;  %v3232_v52 = vadd.f32 %v9616_v34, %v2992_v45  ;;  %v11872_v17 = vld [vmem:[#allocation170_spill] sm:$0xff]  ;;  %v11874_v62 = vld [vmem:[#allocation80_spill] sm:$0xff]  ;;  %v11876_v15 = vld [vmem:[#allocation107_spill] sm:$0xff] }
 0x640   : > { %v3656_v32 = vadd.f32 %v11872_v17, %v3224_v40  ;;  %v3651_v12 = vadd.f32 %v11873_v37, %v3219_v36  ;;  %v3227_v63 = vadd.f32 %v9593_v58, %v2987_v5  ;;  %v3236_v4 = vadd.f32 %v11874_v62, %v2996_v29  ;;  %v5044_v14 = vpop.permute.xlu0 %5043  ;;  %v11875_v55 = vld [vmem:[#allocation14_spill] sm:$0xff]  ;;  %v11879_v48 = vld [vmem:[#allocation171_spill] sm:$0xff]  ;;  %v11880_v5 = vld [vmem:[#allocation81_spill] sm:$0xff] }
 0x641   : > { %v9997_v38 = vadd.f32 %v5072_v8, %v4766_v26  ;;  %v9999_v16 = vadd.f32 %v5080_v59, %v4770_v3  ;;  %v3000_v61 = vadd.f32 %v11875_v55, %v2568_v1  ;;  %v3004_v49 = vadd.f32 %v11876_v15, %v2572_v20  ;;  %v11877_v45 = vld [vmem:[#allocation174_spill] sm:$0xff]  ;;  %v11882_v3 = vld [vmem:[#allocation151_spill] sm:$0xff] }
 0x642   : > { %v4324_v34 = vadd.f32 %v9773_v9, %v4084_v0  ;;  %v3660_v40 = vadd.f32 %v11877_v45, %v3228_v60  ;;  %v11878_v53 = vld [vmem:[#allocation70_spill] sm:$0xff]  ;;  %v3655_v41 = vadd.f32 %v11879_v48, %v3223_v13  ;;  %v2991_v29 = vadd.f32 %v11880_v5, %v2559_v42  ;;  %v5088_v0 = vpop.permute.xlu1 %5087  ;;  %v11884_v60 = vld [vmem:[#allocation39_spill] sm:$0xff]  ;;  %v11886_v13 = vld [vmem:[#allocation148_spill] sm:$0xff] }
 0x643   : > { %v2563_v36 = vadd.f32 %v11878_v53, %v2083_v21  ;;  %v5773_v58 = vcombine.low %v9997_v38, %v9999_v16  ;;  %v5774_v8 = vcombine.high %v9997_v38, %v9999_v16  ;;  %v11881_v26 = vld [vmem:[#allocation42_spill] sm:$0xff]  ;;  %v4088_v20 = vadd.f32 %v11882_v3, %v3656_v32  ;;  %v11887_v62 = vld [vmem:[#allocation175_spill] sm:$0xff]  ;;  %v11888_v53 = vld [vmem:[#allocation84_spill] sm:$0xff] }
 0x644   : > { %v4756_v1 = vadd.f32 %v11881_v26, %v4324_v34  ;;  %v11883_v7 = vld [vmem:[#allocation178_spill] sm:$0xff]  ;;  %v4752_v17 = vadd.f32 %v11884_v60, %v4320_v25  ;;  %v10018_v59 = vadd.f32 %v11886_v13, %v3651_v12  ;;  %v3659_v55 = vadd.f32 %v11887_v62, %v3227_v63  ;;  %v5052_v15 = vpop.permute.xlu0 %5051  ;;  %v1697_v45 = vld [vmem:[#allocation2 + $0x138] sm:$0xff]  ;;  %v11889_v48 = vld [vmem:[#allocation21_spill] sm:$0xff] }
 0x645   : > { %v3664_v9 = vadd.f32 %v11883_v7, %v3232_v52  ;;  %v11885_v21 = vld [vmem:[#allocation182_spill] sm:$0xff]  ;;  %v3240_v42 = vadd.f32 %v11888_v53, %v3000_v61  ;;  %v3244_v34 = vadd.f32 %v11889_v48, %v3004_v49  ;;  %v11891_v52 = vld [vmem:[#allocation83_spill] sm:$0xff]  ;;  %v2087_v25 = vmul.f32 %v11857_v19, %v1697_v45  ;;  %v11898_v19 = vld [vmem:[#allocation153_spill] sm:$0xff] }
 0x646   : > { %v3668_v37 = vadd.f32 %v11885_v21, %v3236_v4  ;;  %v11890_v5 = vld [vmem:[#allocation154_spill] sm:$0xff]  ;;  %v5188_v26 = vadd.f32 %v5052_v15, %v4756_v1  ;;  %v2995_v3 = vadd.f32 %v11891_v52, %v2563_v36  ;;  %v5184_v12 = vadd.f32 %v5044_v14, %v4752_v17  ;;  %v11893_v60 = vld [vmem:[#allocation63_spill] sm:$0xff]  ;;  %v5096_v14 = vpop.permute.xlu1 %5095 }
 0x647   : > { %v4092_v32 = vadd.f32 %v11890_v5, %v3660_v40  ;;  %v11892_v7 = vld [vmem:[#allocation150_spill] sm:$0xff]  ;;  %v10030_v21 = vadd.f32 %v11893_v60, %v2991_v29  ;;  %v4328_v61 = vadd.f32 %v9787_v35, %v4088_v20  ;;  %v11896_v40 = vld [vmem:[#allocation57_spill] sm:$0xff]  ;;  %v11897_v36 = vld [vmem:[#allocation15_spill] sm:$0xff]  ;;  %v10040_v45 = vadd.f32 %v11898_v19, %v3659_v55 }
 0x648   : > { %v10027_v4 = vadd.f32 %v11892_v7, %v3655_v41  ;;  %v11894_v63 = vld [vmem:[#allocation50_spill] sm:$0xff]  ;;  %v4774_v1 = vadd.f32 %v11896_v40, %v9875_v56  ;;  %v4100_v15 = vadd.f32 %v11897_v36, %v3668_v37  ;;  %v5653_v41 = vcombine.low %v5184_v12, %v5188_v26  ;;  %v5060_v17 = vpop.permute.xlu0 %5059  ;;  %v11901_v20 = vld [vmem:[#allocation65_spill] sm:$0xff]  ;;  %v11902_v56 = vld [vmem:[#allocation8_spill] sm:$0xff] }
 0x649   : > { %v4778_v13 = vadd.f32 %v11894_v63, %v9925_v6  ;;  %v11895_v49 = vld [vmem:[#allocation158_spill] sm:$0xff]  ;;  %v4332_v29 = vadd.f32 %v9815_v51, %v4092_v32  ;;  %v10051_v52 = vadd.f32 %v11902_v56, %v2087_v25  ;;  %v1701_v37 = vld [vmem:[#allocation2 + $0x168] sm:$0xff]  ;;  %v5654_v7 = vcombine.high %v5184_v12, %v5188_v26 }
 0x64a   : > { %v4096_v62 = vadd.f32 %v11895_v49, %v3664_v9  ;;  %v11899_v53 = vld [vmem:[#allocation186_spill] sm:$0xff]  ;;  %v10048_v9 = vadd.f32 %v11901_v20, %v2995_v3  ;;  %v10053_v55 = vadd.f32 %v5088_v0, %v4774_v1  ;;  %v10056_v60 = vmul.f32 %v11858_v27, %v1701_v37  ;;  %v11903_v51 = vld [vmem:[#allocation73_spill] sm:$0xff]  ;;  %v11905_v3 = vld [vmem:[#allocation71_spill] sm:$0xff]  ;;  %v5038_v26 = vpop.permute.xlu1 %5037 }
 0x64b   : > { %v3672_v48 = vadd.f32 %v11899_v53, %v3240_v42  ;;  %v11900_v6 = vld [vmem:[#allocation190_spill] sm:$0xff]  ;;  %v10045_v35 = vadd.f32 %v5096_v14, %v4778_v13  ;;  %v4760_v32 = vadd.f32 %v11903_v51, %v4328_v61  ;;  %v11904_v42 = vld [vmem:[#allocation7_spill] sm:$0xff]  ;;  %v4340_v13 = vadd.f32 %v9847_v24, %v4100_v15  ;;  %v11906_v27 = vld [vmem:[#allocation209_spill] sm:$0xff] }
 0x64c   : > { %v3676_v5 = vadd.f32 %v11900_v6, %v3244_v34  ;;  %v4764_v63 = vadd.f32 %v11904_v42, %v4332_v29  ;;  %v4336_v34 = vadd.f32 %v9835_v18, %v4096_v62  ;;  %v5661_v49 = vrot.slane %v5653_v41, %v11905_v3  ;;  %v5068_v12 = vpop.permute.xlu0 %5067  ;;  %v11907_v1 = vld [vmem:[#allocation213_spill] sm:$0xff]  ;;  %v11909_v24 = vld [vmem:[#allocation47_spill] sm:$0xff] }
 0x64d   : > { %v5805_v25 = vcombine.low %v10053_v55, %v10045_v35  ;;  %v5806_v0 = vcombine.high %v10053_v55, %v10045_v35  ;;  %v4104_v40 = vadd.f32 %v11906_v27, %v3672_v48  ;;  %v5192_v36 = vadd.f32 %v5060_v17, %v4760_v32  ;;  %v11908_v18 = vld [vmem:[#allocation69_spill] sm:$0xff]  ;;  %v11911_v53 = vld [vmem:[#allocation51_spill] sm:$0xff]  ;;  %v11912_v48 = vld [vmem:[#allocation56_spill] sm:$0xff] }
 0x64e   : > { %v4108_v61 = vadd.f32 %v11907_v1, %v3676_v5  ;;  %v5196_v19 = vadd.f32 %v5068_v12, %v4764_v63  ;;  %v4749_v62 = vadd.f32 %v11908_v18, %v9767_v39  ;;  %v4753_v15 = vadd.f32 %v11909_v24, %v9777_v43 }
 0x64f   : > { %v11910_v41 = vcombine.low %v9896_v2, %v9898_v54  ;;  %v5668_v29 = vrot.slane %v5654_v7, %v11905_v3  ;;  %v4768_v6 = vadd.f32 %v11911_v53, %v4336_v34  ;;  %v4757_v5 = vadd.f32 %v11912_v48, %v9799_v44  ;;  %v5046_v7 = vpop.permute.xlu1 %5045 }
 0x650   : > { %v5685_v17 = vcombine.low %v5192_v36, %v5196_v19  ;;  %v5686_v20 = vcombine.high %v5192_v36, %v5196_v19  ;;  %v11913_v39 = vcombine.high %v9896_v2, %v9898_v54  ;;  %v5677_v43 = vrot.slane %v5669_v10, %v11905_v3  ;;  %v5076_v32 = vpop.permute.xlu0 %5075  ;;  %v11915_v54 = vld [vmem:[#allocation29_spill] sm:$0xff] }
 0x651   : > { %v5645_v14 = vrot.slane %v11910_v41, %v11905_v3  ;;  %v11914_v44 = vcombine.high %v9950_v22, %v9952_v50  ;;  %v10095_v2 = vadd.f32 %v5046_v7, %v4753_v15  ;;  %v4772_v12 = vadd.f32 %v11915_v54, %v4340_v13  ;;  %v11916_v15 = vld [vmem:[#allocation72_spill] sm:$0xff] }
 0x652   : > { %v5652_v56 = vrot.slane %v11913_v39, %v11905_v3  ;;  %v5693_v63 = vrot.slane %v5685_v17, %v11905_v3  ;;  %v5700_v34 = vrot.slane %v5686_v20, %v11905_v3  ;;  %v10098_v10 = vadd.f32 %v5038_v26, %v4749_v62 }
 0x653   : > { %v5701_v37 = vcombine.low %v5645_v14, %v5661_v49  ;;  %v5702_v51 = vcombine.high %v5645_v14, %v5661_v49  ;;  %v5684_v42 = vrot.slane %v11914_v44, %v11905_v3  ;;  %v5054_v24 = vpop.permute.xlu1 %5053  ;;  %v5200_v26 = vadd.f32 %v5076_v32, %v4768_v6  ;;  %v11919_v6 = vld [vmem:[#allocation12_spill] sm:$0xff] }
 0x654   : > { %v5717_v27 = vcombine.low %v5652_v56, %v5668_v29  ;;  %v5718_v1 = vcombine.high %v5652_v56, %v5668_v29  ;;  %v5733_v49 = vcombine.low %v5677_v43, %v5693_v63  ;;  %v5734_v36 = vcombine.high %v5677_v43, %v5693_v63  ;;  %v5084_v41 = vpop.permute.xlu0 %5083  ;;  %v11953_v63 = vld [vmem:[#allocation240_spill] sm:$0xff] }
 0x655   : > { %v5749_v19 = vcombine.low %v5684_v42, %v5700_v34  ;;  %v5750_v18 = vcombine.high %v5684_v42, %v5700_v34  ;;  %v5229_v22 = vcombine.low %v10098_v10, %v10095_v2  ;;  %v5230_v50 = vcombine.high %v10098_v10, %v10095_v2  ;;  %v11920_v34 = vld [vmem:[#allocation9_spill] sm:$0xff] }
 0x656   : > { %v10105_v14 = vrot.slane %v5701_v37, %v11916_v15  ;;  %v10108_v13 = vrot.slane %v5702_v51, %v11916_v15  ;;  %v5204_v62 = vadd.f32 %v5084_v41, %v4772_v12  ;;  %v10111_v29 = vrot.slane %v5733_v49, %v11916_v15  ;;  %v11922_v41 = vld [vmem:[#allocation13_spill] sm:$0xff] }
 0x657   : > { %v10114_v53 = vrot.slane %v5734_v36, %v11916_v15  ;;  %v10117_v48 = vrot.slane %v5717_v27, %v11916_v15  ;;  %v10120_v17 = vrot.slane %v5749_v19, %v11916_v15  ;;  %v10123_v20 = vrot.slane %v5718_v1, %v11916_v15  ;;  %v5062_v7 = vpop.permute.xlu1 %5061  ;;  %v6262_v19 = vld [vmem:[%s10972_s4] sm:$0xff] }
 0x658   : > { %11917 = vst [vmem:[#allocation134_spill] sm:$0xff] %v10105_v14  ;;  %11918 = vst [vmem:[#allocation131_spill] sm:$0xff] %v10111_v29  ;;  %v10126_v39 = vrot.slane %v5750_v18, %v11916_v15  ;;  %v4761_v56 = vadd.f32 %v11919_v6, %v9842_v23  ;;  %v5789_v43 = vcombine.low %v5200_v26, %v5204_v62  ;;  %v5092_v32 = vpop.permute.xlu0 %5091 }
 0x659   : > { %v5766_v37 = vcombine.high %v10105_v14, %v10111_v29  ;;  %v5767_v51 = vcombine.low %v10108_v13, %v10114_v53  ;;  %v2999_v54 = vadd.f32 %v11920_v34, %v10051_v52  ;;  %v4344_v12 = vadd.f32 %v9857_v33, %v4104_v40  ;;  %v11921_v33 = vld [vmem:[#allocation20_spill] sm:$0xff]  ;;  %v12004_v29 = vld [vmem:[#allocation117_spill] sm:$0xff] }
 0x65a   : > { %v5790_v27 = vcombine.high %v5200_v26, %v5204_v62  ;;  %v10145_v1 = vadd.f32 %v5062_v7, %v4761_v56  ;;  %v4348_v49 = vadd.f32 %v9871_v28, %v4108_v61  ;;  %v10149_v36 = vadd.f32 %v5054_v24, %v4757_v5  ;;  %v11923_v5 = vld [vmem:[#allocation123_spill] sm:$0xff]  ;;  %v11924_v7 = vld [vmem:[#allocation86_spill] sm:$0xff] }
 0x65b   : > { %6132 = vrot.lane.b32.xlu1 %v5766_v37, %s6736_s15  ;;  %v2571_v40 = vadd.f32 %v11921_v33, %v10056_v60  ;;  %v4776_v26 = vadd.f32 %v11922_v41, %v4344_v12  ;;  %v4323_v28 = vadd.f32 %v9762_v47, %v10018_v59  ;;  %v10165_v61 = vadd.f32 %v9783_v11, %v10027_v4  ;;  %v5070_v60 = vpop.permute.xlu1 %5069  ;;  %v11925_v47 = vld [vmem:[#allocation179_spill] sm:$0xff]  ;;  %v11927_v12 = vld [vmem:[#allocation82_spill] sm:$0xff] }
 0x65c   : > { %v4780_v24 = vadd.f32 %v11923_v5, %v4348_v49  ;;  %v5797_v62 = vrot.slane %v5789_v43, %v11905_v3  ;;  %v5261_v6 = vcombine.low %v10149_v36, %v10145_v1  ;;  %v5262_v56 = vcombine.high %v10149_v36, %v10145_v1  ;;  %v5100_v37 = vpop.permute.xlu0 %5099  ;;  %v11926_v59 = vld [vmem:[#allocation183_spill] sm:$0xff]  ;;  %v11928_v5 = vld [vmem:[#allocation102_spill] sm:$0xff] }
 0x65d   : > { %v10175_v34 = vadd.f32 %v11924_v7, %v10040_v45  ;;  %v10179_v11 = vadd.f32 %v11925_v47, %v10030_v21  ;;  %v10183_v4 = vadd.f32 %v11926_v59, %v10048_v9  ;;  %v5804_v43 = vrot.slane %v5790_v27, %v11905_v3  ;;  %v11929_v7 = vld [vmem:[#allocation126_spill] sm:$0xff]  ;;  %v11930_v47 = vld [vmem:[#allocation85_spill] sm:$0xff]  ;;  %v11931_v9 = vld [vmem:[#allocation124_spill] sm:$0xff] }
 0x65e   : > { %v10187_v49 = vadd.f32 %v11927_v12, %v2999_v54  ;;  %v5781_v45 = vrot.slane %v5773_v58, %v11905_v3  ;;  %v5208_v33 = vadd.f32 %v5092_v32, %v4776_v26  ;;  %v5212_v41 = vadd.f32 %v5100_v37, %v4780_v24  ;;  %v11932_v27 = vld [vmem:[#allocation125_spill] sm:$0xff] }
 0x65f   : > { %6267 = vperm.xlu1 %6563, %v6262_v19   ;;  %v3003_v21 = vadd.f32 %v11928_v5, %v2571_v40  ;;  %v4765_v52 = vadd.f32 %v11930_v47, %v11929_v7  ;;  %v4769_v59 = vadd.f32 %v11931_v9, %v9865_v30  ;;  %v5788_v54 = vrot.slane %v5774_v8, %v11905_v3  ;;  %v5078_v26 = vpop.permute.xlu1 %5077  ;;  %v11933_v8 = vld [vmem:[#allocation25_spill] sm:$0xff] }
 0x660   : > { %v4751_v19 = vadd.f32 %v11932_v27, %v9989_v46  ;;  %v5837_v12 = vcombine.low %v5781_v45, %v5797_v62  ;;  %v5821_v58 = vcombine.low %v5208_v33, %v5212_v41  ;;  %v5822_v32 = vcombine.high %v5208_v33, %v5212_v41  ;;  %v5042_v24 = vpop.permute.xlu0 %5041 }
 0x661   : > { %v5838_v40 = vcombine.high %v5781_v45, %v5797_v62  ;;  %v5853_v37 = vcombine.low %v5788_v54, %v5804_v43  ;;  %v10204_v5 = vadd.f32 %v5070_v60, %v4765_v52  ;;  %v10206_v7 = vadd.f32 %v5078_v26, %v4769_v59  ;;  %v11954_v45 = vld [vmem:[#allocation36_spill] sm:$0xff] }
 0x662   : > { %v5813_v30 = vrot.slane %v5805_v25, %v11905_v3  ;;  %v5820_v46 = vrot.slane %v5806_v0, %v11905_v3  ;;  %v5829_v38 = vrot.slane %v5821_v58, %v11905_v3  ;;  %v5836_v16 = vrot.slane %v5822_v32, %v11905_v3  ;;  %v11938_v32 = vld [vmem:[#allocation23_spill] sm:$0xff]  ;;  %v11955_v60 = vld [vmem:[#allocation92_spill] sm:$0xff] }
 0x663   : > { %v4755_v62 = vadd.f32 %v11933_v8, %v4323_v28  ;;  %v5854_v52 = vcombine.high %v5788_v54, %v5804_v43  ;;  %v5086_v9 = vpop.permute.xlu1 %5085  ;;  %v10224_v55 = vrot.slane %v5837_v12, %v11916_v15  ;;  %v10227_v0 = vrot.slane %v5838_v40, %v11916_v15  ;;  %v11937_v12 = vld [vmem:[#allocation128_spill] sm:$0xff]  ;;  %v11939_v40 = vld [vmem:[#allocation129_spill] sm:$0xff] }
 0x664   : > { %v5869_v33 = vcombine.low %v5813_v30, %v5829_v38  ;;  %v5870_v25 = vcombine.high %v5813_v30, %v5829_v38  ;;  %v5885_v41 = vcombine.low %v5820_v46, %v5836_v16  ;;  %v5886_v47 = vcombine.high %v5820_v46, %v5836_v16  ;;  %v5050_v35 = vpop.permute.xlu0 %5049  ;;  %v11940_v30 = vld [vmem:[#allocation88_spill] sm:$0xff] }
 0x665   : > { %11934 = vst [vmem:[#allocation133_spill] sm:$0xff] %v10224_v55  ;;  %v10230_v28 = vrot.slane %v5853_v37, %v11916_v15  ;;  %v5187_v43 = vadd.f32 %v5050_v35, %v4755_v62  ;;  %v4773_v26 = vadd.f32 %v11938_v32, %v11937_v12  ;;  %v4777_v37 = vadd.f32 %v11940_v30, %v11939_v40  ;;  %v11947_v32 = vld [vmem:[#allocation109_spill] sm:$0xff]  ;;  %v11948_v40 = vld [vmem:[#allocation127_spill] sm:$0xff] }
 0x666   : > { %v10233_v59 = vrot.slane %v5869_v33, %v11916_v15  ;;  %v10236_v54 = vrot.slane %v5870_v25, %v11916_v15  ;;  %v10239_v27 = vrot.slane %v5885_v41, %v11916_v15  ;;  %v10242_v58 = vrot.slane %v5886_v47, %v11916_v15  ;;  %v6625_v33 = vld [vmem:[#allocation2 + $0x10a] sm:$0xff] }
 0x667   : > { %v10249_v46 = vrot.slane %v5854_v52, %v11916_v15  ;;  %v5183_v38 = vadd.f32 %v5042_v24, %v4751_v19  ;;  %v5094_v16 = vpop.permute.xlu1 %5093  ;;  %v10259_v47 = vadd.f32 %v5086_v9, %v4773_v26  ;;  %v11942_v9 = vld [vmem:[#allocation32_spill] sm:$0xff]  ;;  %v11943_v26 = vld [vmem:[#allocation89_spill] sm:$0xff]  ;;  %v4759_v19 = vadd.f32 %v11947_v32, %v10165_v61 }
 0x668   : > { %11935 = vst [vmem:[#allocation135_spill] sm:$0xff] %v10233_v59  ;;  %11936 = vst [vmem:[#allocation137_spill] sm:$0xff] %v10242_v58  ;;  %v5058_v8 = vpop.permute.xlu0 %5057  ;;  %v5902_v62 = vcombine.high %v10224_v55, %v10233_v59  ;;  %v10261_v12 = vadd.f32 %v5094_v16, %v4777_v37  ;;  %v10274_v30 = vadd.f32 %v11943_v26, %v11942_v9  ;;  %v6263_v24 = vld [vmem:[%s10972_s4 + $0x8] sm:$0xff]  ;;  %v6624_v32 = vld [vmem:[#allocation2 + $0xda] sm:$0xff] }
 0x669   : > { %11941 = vst [vmem:[#allocation139_spill] sm:$0xff] %v10249_v46  ;;  %v5245_v35 = vcombine.low %v5183_v38, %v5187_v43  ;;  %v5246_v52 = vcombine.high %v5183_v38, %v5187_v43  ;;  %v11944_v43 = vld [vmem:[#allocation28_spill] sm:$0xff]  ;;  %v11945_v38 = vld [vmem:[#allocation157_spill] sm:$0xff]  ;;  %v4763_v41 = vadd.f32 %v11948_v40, %v10175_v34  ;;  %v11952_v40 = vld [vmem:[#allocation238_spill] sm:$0xff]  ;;  %v4291_v42 = vmul.f32 %v6625_v33, %v11953_v63 }
 0x66a   : > { %6134 = vrot.lane.b32.xlu0 %v5902_v62, %s6736_s15  ;;  %v3243_v37 = vadd.f32 %v11944_v43, %v3003_v21  ;;  %v4095_v16 = vadd.f32 %v11945_v38, %v10179_v11  ;;  %v11946_v62 = vld [vmem:[#allocation26_spill] sm:$0xff]  ;;  %v11950_v43 = vld [vmem:[#allocation93_spill] sm:$0xff]  ;;  %v4287_v23 = vmul.f32 %v6624_v32, %v11952_v40  ;;  %v5191_v21 = vadd.f32 %v5058_v8, %v4759_v19  ;;  %v12001_v59 = vld [vmem:[#allocation295_spill] sm:$0xff] }
 0x66b   : > { %v4099_v18 = vadd.f32 %v11946_v62, %v10183_v4  ;;  %v10292_v11 = vpop.permute.xlu1 %4671  ;;  %v11949_v4 = vld [vmem:[#allocation34_spill] sm:$0xff]  ;;  %v11951_v62 = vld [vmem:[#allocation187_spill] sm:$0xff]  ;;  %v5253_v61 = vrot.slane %v5245_v35, %v11905_v3  ;;  %v5260_v34 = vrot.slane %v5246_v52, %v11905_v3  ;;  %v5244_v35 = vrot.slane %v5230_v50, %v11905_v3  ;;  %v6636_v46 = vld [vmem:[#allocation2 + $0x1e1] sm:$0xff] }
 0x66c   : > { %v5066_v26 = vpop.permute.xlu0 %5065  ;;  %v10296_v38 = vadd.f32 %v11950_v43, %v11949_v4  ;;  %v3671_v25 = vadd.f32 %v11951_v62, %v10187_v49  ;;  %v10306_v4 = vadd.f32 %v11955_v60, %v11954_v45  ;;  %v11956_v43 = vld [vmem:[#allocation191_spill] sm:$0xff]  ;;  %v5237_v49 = vrot.slane %v5229_v22, %v11905_v3  ;;  %v11957_v45 = vld [vmem:[#allocation208_spill] sm:$0xff] }
 0x66d   : > { %v5195_v9 = vadd.f32 %v5066_v26, %v4763_v41  ;;  %v3675_v44 = vadd.f32 %v11956_v43, %v3243_v37  ;;  %v4335_v63 = vadd.f32 %v4287_v23, %v4095_v16  ;;  %v4339_v8 = vadd.f32 %v4291_v42, %v4099_v18  ;;  %v11958_v42 = vld [vmem:[#allocation130_spill] sm:$0xff]  ;;  %v11959_v18 = vld [vmem:[#allocation132_spill] sm:$0xff] }
 0x66e   : > { %6272 = vperm.xlu0 %6562, %v6263_v24   ;;  %v4103_v19 = vadd.f32 %v11957_v45, %v3671_v25  ;;  %v5293_v24 = vcombine.low %v5237_v49, %v5253_v61  ;;  %v5294_v37 = vcombine.high %v5237_v49, %v5253_v61  ;;  %v5309_v26 = vcombine.low %v5244_v35, %v5260_v34  ;;  %v11960_v16 = vld [vmem:[#allocation212_spill] sm:$0xff] }
 0x66f   : > { %v5277_v33 = vcombine.low %v5191_v21, %v5195_v9  ;;  %v5278_v41 = vcombine.high %v5191_v21, %v5195_v9  ;;  %v10317_v52 = vpop.permute.xlu1 %4679  ;;  %v5269_v22 = vrot.slane %v5261_v6, %v11905_v3  ;;  %v5276_v2 = vrot.slane %v5262_v56, %v11905_v3  ;;  %v11964_v45 = vld [vmem:[#allocation244_spill] sm:$0xff] }
 0x670   : > { %v5074_v60 = vpop.permute.xlu0 %5073  ;;  %v4767_v23 = vadd.f32 %v11958_v42, %v4335_v63  ;;  %v4771_v25 = vadd.f32 %v11959_v18, %v4339_v8  ;;  %v4107_v6 = vadd.f32 %v11960_v16, %v3675_v44  ;;  %v5310_v9 = vcombine.high %v5244_v35, %v5260_v34  ;;  %v6626_v63 = vld [vmem:[#allocation2 + $0x13a] sm:$0xff]  ;;  %v11963_v8 = vld [vmem:[#allocation242_spill] sm:$0xff] }
 0x671   : > { %v5285_v10 = vrot.slane %v5277_v33, %v11905_v3  ;;  %v5292_v50 = vrot.slane %v5278_v41, %v11905_v3  ;;  %v10340_v32 = vrot.slane %v5293_v24, %v11916_v15  ;;  %v10343_v40 = vrot.slane %v5294_v37, %v11916_v15  ;;  %v6627_v41 = vld [vmem:[#allocation2 + $0x16a] sm:$0xff] }
 0x672   : > { %6144 = vrot.lane.b32.xlu0 %v5767_v51, %s6734_s13  ;;  %v10346_v51 = vrot.slane %v5309_v26, %v11916_v15  ;;  %v4295_v33 = vmul.f32 %v6626_v63, %v11963_v8  ;;  %v4299_v24 = vmul.f32 %v6627_v41, %v11964_v45  ;;  %v10363_v37 = vrot.slane %v5310_v9, %v11916_v15  ;;  %v11971_v8 = vld [vmem:[#allocation41_spill] sm:$0xff]  ;;  %v11973_v45 = vld [vmem:[#allocation75_spill] sm:$0xff] }
 0x673   : > { %v5325_v21 = vcombine.low %v5269_v22, %v5285_v10  ;;  %v5326_v62 = vcombine.high %v5269_v22, %v5285_v10  ;;  %v5341_v1 = vcombine.low %v5276_v2, %v5292_v50  ;;  %v5342_v36 = vcombine.high %v5276_v2, %v5292_v50  ;;  %v10337_v56 = vpop.permute.xlu1 %4687  ;;  %11961 = vst [vmem:[#allocation160_spill] sm:$0xff] %v10340_v32 }
 0x674   : > { %v5082_v61 = vpop.permute.xlu0 %5081  ;;  %v5199_v26 = vadd.f32 %v5074_v60, %v4767_v23  ;;  %v4347_v16 = vadd.f32 %v4299_v24, %v4107_v6  ;;  %v11968_v6 = vld [vmem:[#allocation96_spill] sm:$0xff] }
 0x675   : > { %v5203_v43 = vadd.f32 %v5082_v61, %v4771_v25  ;;  %v10349_v44 = vrot.slane %v5325_v21, %v11916_v15  ;;  %v10352_v34 = vrot.slane %v5326_v62, %v11916_v15  ;;  %v10355_v49 = vrot.slane %v5341_v1, %v11916_v15  ;;  %v11965_v1 = vld [vmem:[#allocation35_spill] sm:$0xff]  ;;  %v11974_v24 = vld [vmem:[#allocation104_spill] sm:$0xff] }
 0x676   : > { %v10358_v35 = vrot.slane %v5342_v36, %v11916_v15  ;;  %v4343_v25 = vadd.f32 %v4295_v33, %v4103_v19  ;;  %v11966_v36 = vld [vmem:[#allocation98_spill] sm:$0xff]  ;;  %v11967_v19 = vld [vmem:[#allocation40_spill] sm:$0xff]  ;;  %v11972_v33 = vld [vmem:[#allocation99_spill] sm:$0xff] }
 0x677   : > { %11962 = vst [vmem:[#allocation161_spill] sm:$0xff] %v10349_v44  ;;  %v10365_v22 = vpop.permute.xlu1 %4695  ;;  %v5359_v10 = vcombine.low %v10343_v40, %v10352_v34  ;;  %v5358_v50 = vcombine.high %v10340_v32, %v10349_v44  ;;  %v5360_v42 = vcombine.high %v10343_v40, %v10352_v34  ;;  %v5381_v9 = vcombine.low %v5199_v26, %v5203_v43  ;;  %v11970_v34 = vld [vmem:[#allocation103_spill] sm:$0xff] }
 0x678   : > { %v5090_v2 = vpop.permute.xlu0 %5089  ;;  %v5382_v21 = vcombine.high %v5199_v26, %v5203_v43  ;;  %v2581_v61 = vadd.f32 %v11966_v36, %v11965_v1  ;;  %v10387_v40 = vadd.f32 %v11968_v6, %v11967_v19  ;;  %v11969_v43 = vld [vmem:[#allocation37_spill] sm:$0xff]  ;;  %v10393_v41 = vadd.f32 %v11972_v33, %v11971_v8  ;;  %v11975_v6 = vld [vmem:[#allocation108_spill] sm:$0xff] }
 0x679   : > { %6060 = vrot.lane.b32.xlu0 %v5359_v10, %s6734_s13  ;;  %6048 = vrot.lane.b32.xlu1 %v5358_v50, %s6736_s15  ;;  %v2585_v63 = vadd.f32 %v11970_v34, %v11969_v43  ;;  %v10397_v26 = vadd.f32 %v11974_v24, %v11973_v45  ;;  %v4775_v10 = vadd.f32 %v9954_v31, %v4343_v25  ;;  %v6628_v34 = vld [vmem:[#allocation2 + $0x189] sm:$0xff]  ;;  %v11976_v8 = vld [vmem:[#allocation136_spill] sm:$0xff] }
 0x67a   : > { %v4779_v50 = vadd.f32 %v9976_v57, %v4347_v16  ;;  %v10407_v43 = vadd.f32 %v11975_v6, %v10296_v38  ;;  %v3198_v33 = vmul.f32 %v6628_v34, %v11976_v8  ;;  %v5389_v45 = vrot.slane %v5381_v9, %v11905_v3  ;;  %v11977_v31 = vld [vmem:[#allocation113_spill] sm:$0xff]  ;;  %v11978_v57 = vld [vmem:[#allocation111_spill] sm:$0xff]  ;;  %v11980_v6 = vld [vmem:[#allocation118_spill] sm:$0xff] }
 0x67b   : > { %v10401_v1 = vpop.permute.xlu1 %4669  ;;  %v5396_v24 = vrot.slane %v5382_v21, %v11905_v3  ;;  %v10413_v25 = vadd.f32 %v11977_v31, %v2581_v61  ;;  %v3006_v16 = vadd.f32 %v11978_v57, %v10274_v30  ;;  %v5207_v62 = vadd.f32 %v5090_v2, %v4775_v10  ;;  %v6629_v34 = vld [vmem:[#allocation2 + $0x1b9] sm:$0xff]  ;;  %v11981_v9 = vld [vmem:[#allocation138_spill] sm:$0xff] }
 0x67c   : > { %v5098_v36 = vpop.permute.xlu0 %5097  ;;  %v11979_v38 = vcombine.high %v10108_v13, %v10114_v53  ;;  %v10422_v19 = vadd.f32 %v11980_v6, %v2585_v63  ;;  %v3202_v60 = vmul.f32 %v6629_v34, %v11981_v9  ;;  %v11982_v21 = vcombine.low %v10204_v5, %v10206_v7  ;;  %v11984_v10 = vld [vmem:[#allocation114_spill] sm:$0xff]  ;;  %v6630_v53 = vld [vmem:[#allocation2 + $0x181] sm:$0xff] }
 0x67d   : > { %v5211_v23 = vadd.f32 %v5098_v36, %v4779_v50  ;;  %v11983_v30 = vcombine.high %v10204_v5, %v10206_v7  ;;  %v3010_v13 = vadd.f32 %v11984_v10, %v10306_v4  ;;  %v10436_v63 = vmul.f32 %v6630_v53, %v11976_v8 }
 0x67e   : > { %6156 = vrot.lane.b32.xlu0 %v11979_v38, %s6735_s14  ;;  %v5373_v61 = vrot.slane %v11982_v21, %v11905_v3  ;;  %v3246_v38 = vadd.f32 %v3198_v33, %v3006_v16  ;;  %v11986_v5 = vcombine.low %v10259_v47, %v10261_v12  ;;  %v11987_v4 = vcombine.high %v10259_v47, %v10261_v12  ;;  %v6631_v33 = vld [vmem:[#allocation2 + $0x1b1] sm:$0xff]  ;;  %v6632_v16 = vld [vmem:[#allocation2 + $0x1e9] sm:$0xff] }
 0x67f   : > { %v5380_v2 = vrot.slane %v11983_v30, %v11905_v3  ;;  %v5413_v50 = vcombine.low %v5207_v62, %v5211_v23  ;;  %v5414_v36 = vcombine.high %v5207_v62, %v5211_v23  ;;  %v10438_v31 = vpop.permute.xlu1 %4677  ;;  %v3250_v10 = vadd.f32 %v3202_v60, %v3010_v13 }
 0x680   : > { %v10440_v57 = vpop.permute.xlu0 %4675  ;;  %v5429_v6 = vcombine.low %v5373_v61, %v5389_v45  ;;  %v5430_v34 = vcombine.high %v5373_v61, %v5389_v45  ;;  %v5405_v7 = vrot.slane %v11986_v5, %v11905_v3  ;;  %v5412_v8 = vrot.slane %v11987_v4, %v11905_v3  ;;  %v11988_v61 = vld [vmem:[#allocation140_spill] sm:$0xff] }
 0x681   : > { %11985 = vst [vmem:[#allocation164_spill] sm:$0xff] %v10440_v57  ;;  %v5445_v21 = vcombine.low %v5380_v2, %v5396_v24  ;;  %v5421_v23 = vrot.slane %v5413_v50, %v11905_v3  ;;  %v5428_v62 = vrot.slane %v5414_v36, %v11905_v3  ;;  %v3201_v45 = vmul.f32 %v6631_v33, %v11981_v9  ;;  %v6633_v50 = vld [vmem:[#allocation2 + $0x219] sm:$0xff]  ;;  %v11991_v36 = vld [vmem:[#allocation142_spill] sm:$0xff]  ;;  %v12008_v57 = vld [vmem:[#allocation141_spill] sm:$0xff] }
 0x682   : > { %6072 = vrot.lane.b32.xlu0 %v5360_v42, %s6735_s14  ;;  %v3206_v30 = vmul.f32 %v6632_v16, %v11988_v61  ;;  %v5446_v53 = vcombine.high %v5380_v2, %v5396_v24  ;;  %v3210_v4 = vmul.f32 %v6633_v50, %v11991_v36  ;;  %v10461_v42 = vrot.slane %v5429_v6, %v11916_v15  ;;  %v11997_v33 = vld [vmem:[#allocation247_spill] sm:$0xff] }
 0x683   : > { %v5461_v5 = vcombine.low %v5405_v7, %v5421_v23  ;;  %v5462_v18 = vcombine.high %v5405_v7, %v5421_v23  ;;  %v5477_v44 = vcombine.low %v5412_v8, %v5428_v62  ;;  %v5478_v32 = vcombine.high %v5412_v8, %v5428_v62  ;;  %v10455_v47 = vpop.permute.xlu1 %4685  ;;  %v11996_v8 = vld [vmem:[#allocation197_spill] sm:$0xff] }
 0x684   : > { %11989 = vst [vmem:[#allocation165_spill] sm:$0xff] %v10455_v47  ;;  %v10457_v12 = vpop.permute.xlu0 %4683  ;;  %11992 = vst [vmem:[#allocation169_spill] sm:$0xff] %v10461_v42  ;;  %v10464_v9 = vrot.slane %v5430_v34, %v11916_v15  ;;  %v10467_v60 = vrot.slane %v5445_v21, %v11916_v15  ;;  %v11994_v6 = vcombine.low %v10117_v48, %v10120_v17  ;;  %v11995_v34 = vld [vmem:[#allocation193_spill] sm:$0xff] }
 0x685   : > { %11990 = vst [vmem:[#allocation168_spill] sm:$0xff] %v10457_v12  ;;  %v10470_v24 = vrot.slane %v5461_v5, %v11916_v15  ;;  %v10473_v2 = vrot.slane %v5462_v18, %v11916_v15  ;;  %v10476_v13 = vrot.slane %v5477_v44, %v11916_v15  ;;  %v10479_v7 = vrot.slane %v5478_v32, %v11916_v15  ;;  %v6634_v62 = vld [vmem:[#allocation2 + $0x18a] sm:$0xff] }
 0x686   : > { %6168 = vrot.lane.b32.xlu0 %v11994_v6, %s6732_s8  ;;  %v3678_v21 = vadd.f32 %v11995_v34, %v3246_v38  ;;  %v3682_v23 = vadd.f32 %v11996_v8, %v3250_v10  ;;  %v4302_v16 = vmul.f32 %v6634_v62, %v11997_v33  ;;  %v10489_v18 = vrot.slane %v5446_v53, %v11916_v15  ;;  %v1710_v44 = vld [vmem:[#allocation2 + $0x1d0] sm:$0xff]  ;;  %v6635_v34 = vld [vmem:[#allocation2 + $0x1ba] sm:$0xff]  ;;  %v12000_v53 = vld [vmem:[#allocation249_spill] sm:$0xff] }
 0x687   : > { %11993 = vst [vmem:[#allocation172_spill] sm:$0xff] %v10470_v24  ;;  %v10491_v5 = vpop.permute.xlu1 %4693  ;;  %v5494_v50 = vcombine.high %v10461_v42, %v10470_v24  ;;  %v5495_v6 = vcombine.low %v10464_v9, %v10473_v2  ;;  %v4306_v8 = vmul.f32 %v6635_v34, %v12000_v53  ;;  %v1706_v62 = vld [vmem:[#allocation2 + $0x1a0] sm:$0xff]  ;;  %v2100_v55 = vmul.f32 %v12001_v59, %v1710_v44  ;;  %v12002_v15 = vld [vmem:[#allocation293_spill] sm:$0xff]  ;;  %v12010_v24 = vld [vmem:[#allocation91_spill] sm:$0xff] }
 0x688   : > { %11998 = vst [vmem:[#allocation173_spill] sm:$0xff] %v10491_v5  ;;  %v10493_v32 = vpop.permute.xlu0 %4691  ;;  %v2096_v58 = vmul.f32 %v12002_v15, %v1706_v62  ;;  %v12003_v38 = vcombine.low %v10346_v51, %v10355_v49  ;;  %v3014_v10 = vadd.f32 %v12004_v29, %v10387_v40  ;;  %v3205_v14 = vmul.f32 %v6636_v46, %v11988_v61  ;;  %v12005_v62 = vld [vmem:[#allocation215_spill] sm:$0xff]  ;;  %v6638_v46 = vld [vmem:[#allocation2 + $0x1a1] sm:$0xff] }
 0x689   : > { %11999 = vst [vmem:[#allocation176_spill] sm:$0xff] %v10493_v32  ;;  %6050 = vrot.lane.b32.xlu1 %v5494_v50, %s6736_s15  ;;  %v4110_v3 = vadd.f32 %v12005_v62, %v3678_v21  ;;  %v12006_v32 = vld [vmem:[#allocation219_spill] sm:$0xff]  ;;  %v3245_v44 = vadd.f32 %v10436_v63, %v10397_v26  ;;  %v3249_v34 = vadd.f32 %v3201_v45, %v10407_v43  ;;  %v12009_v21 = vld [vmem:[#allocation94_spill] sm:$0xff] }
 0x68a   : > { %6084 = vrot.lane.b32.xlu0 %v12003_v38, %s6732_s8  ;;  %v4114_v47 = vadd.f32 %v12006_v32, %v3682_v23  ;;  %v12007_v38 = vld [vmem:[#allocation121_spill] sm:$0xff]  ;;  %v6637_v50 = vld [vmem:[#allocation2 + $0x199] sm:$0xff]  ;;  %v3200_v61 = vmul.f32 %v6638_v46, %v12008_v57  ;;  %v2580_v23 = vadd.f32 %v12009_v21, %v2100_v55  ;;  %v12011_v26 = vcombine.high %v10117_v48, %v10120_v17  ;;  %v6639_v63 = vld [vmem:[#allocation2 + $0x211] sm:$0xff] }
 0x68b   : > { %v3018_v5 = vadd.f32 %v12007_v38, %v10393_v41  ;;  %v10527_v12 = vmul.f32 %v6637_v50, %v12008_v57  ;;  %v5104_v29 = vpop.permute.xlu1 %5103  ;;  %v4350_v32 = vadd.f32 %v4302_v16, %v4110_v3  ;;  %v3254_v41 = vadd.f32 %v3206_v30, %v3014_v10  ;;  %v6640_v45 = vld [vmem:[#allocation2 + $0x1d1] sm:$0xff]  ;;  %v12014_v48 = vld [vmem:[#allocation201_spill] sm:$0xff]  ;;  %v12019_v21 = vld [vmem:[#allocation116_spill] sm:$0xff] }
 0x68c   : > { %v10532_v40 = vpop.permute.xlu0 %4699  ;;  %v4354_v62 = vadd.f32 %v4306_v8, %v4114_v47  ;;  %v2576_v50 = vadd.f32 %v12010_v24, %v2096_v58  ;;  %v12012_v43 = vcombine.low %v10227_v0, %v10236_v54  ;;  %v3209_v57 = vmul.f32 %v6639_v63, %v11991_v36  ;;  %v12013_v30 = vld [vmem:[#allocation143_spill] sm:$0xff]  ;;  %v6641_v16 = vld [vmem:[#allocation2 + $0x1ea] sm:$0xff] }
 0x68d   : > { %v3258_v38 = vadd.f32 %v3210_v4, %v3018_v5  ;;  %v10547_v3 = vadd.f32 %v3205_v14, %v10413_v25  ;;  %v4782_v55 = vadd.f32 %v10292_v11, %v4350_v32  ;;  %v3204_v47 = vmul.f32 %v6640_v45, %v12013_v30  ;;  %v12015_v4 = vld [vmem:[#allocation205_spill] sm:$0xff]  ;;  %v12016_v5 = vld [vmem:[#allocation251_spill] sm:$0xff]  ;;  %v1714_v32 = vld [vmem:[#allocation2 + $0x200] sm:$0xff] }
 0x68e   : > { %6180 = vrot.lane.b32.xlu0 %v12011_v26, %s6733_s9  ;;  %6146 = vrot.lane.b32.xlu1 %v12012_v43, %s6734_s13  ;;  %v4786_v58 = vadd.f32 %v10317_v52, %v4354_v62  ;;  %v3686_v17 = vadd.f32 %v12014_v48, %v3254_v41  ;;  %v4310_v10 = vmul.f32 %v6641_v16, %v12016_v5  ;;  %v6642_v36 = vld [vmem:[#allocation2 + $0x21a] sm:$0xff]  ;;  %v12018_v14 = vld [vmem:[#allocation253_spill] sm:$0xff]  ;;  %v1718_v52 = vld [vmem:[#allocation2 + $0x230] sm:$0xff] }
 0x68f   : > { %v3690_v24 = vadd.f32 %v12015_v4, %v3258_v38  ;;  %v5112_v8 = vpop.permute.xlu1 %5111  ;;  %v4314_v25 = vmul.f32 %v6642_v36, %v12018_v14  ;;  %v3012_v11 = vadd.f32 %v12019_v21, %v2580_v23  ;;  %v10559_v62 = vadd.f32 %v5104_v29, %v4782_v55  ;;  %v12020_v41 = vld [vmem:[#allocation112_spill] sm:$0xff]  ;;  %v12021_v38 = vld [vmem:[#allocation297_spill] sm:$0xff]  ;;  %v12024_v23 = vld [vmem:[#allocation223_spill] sm:$0xff] }
 0x690   : > { %v10555_v46 = vpop.permute.xlu0 %4673  ;;  %v10561_v26 = vadd.f32 %v5112_v8, %v4786_v58  ;;  %v3008_v43 = vadd.f32 %v12020_v41, %v2576_v50  ;;  %v2104_v63 = vmul.f32 %v12021_v38, %v1714_v32  ;;  %v12022_v45 = vld [vmem:[#allocation33_spill] sm:$0xff]  ;;  %v12023_v4 = vcombine.high %v10346_v51, %v10355_v49  ;;  %v12025_v36 = vld [vmem:[#allocation227_spill] sm:$0xff]  ;;  %v12026_v51 = vld [vmem:[#allocation144_spill] sm:$0xff] }
 0x691   : > { %12017 = vst [vmem:[#allocation177_spill] sm:$0xff] %v10555_v46  ;;  %v2108_v48 = vmul.f32 %v12022_v45, %v1718_v52  ;;  %v4118_v16 = vadd.f32 %v12024_v23, %v3686_v17  ;;  %v4122_v29 = vadd.f32 %v12025_v36, %v3690_v24  ;;  %v1705_v55 = vld [vmem:[#allocation2 + $0x198] sm:$0xff]  ;;  %v6643_v8 = vld [vmem:[#allocation2 + $0x1c9] sm:$0xff]  ;;  %v6644_v32 = vld [vmem:[#allocation2 + $0x201] sm:$0xff]  ;;  %v3252_v50 = vadd.f32 %v3204_v47, %v3012_v11 }
 0x692   : > { %6096 = vrot.lane.b32.xlu0 %v12023_v4, %s6733_s9  ;;  %6062 = vrot.lane.b32.xlu1 %v5495_v6, %s6734_s13  ;;  %v10578_v21 = vmul.f32 %v6643_v8, %v12013_v30  ;;  %v3208_v49 = vmul.f32 %v6644_v32, %v12026_v51  ;;  %v3257_v6 = vadd.f32 %v3209_v57, %v10422_v19  ;;  %v1709_v52 = vld [vmem:[#allocation2 + $0x1c8] sm:$0xff]  ;;  %v12031_v57 = vld [vmem:[#allocation192_spill] sm:$0xff] }
 0x693   : > { %v2095_v17 = vmul.f32 %v12002_v15, %v1705_v55  ;;  %v5120_v24 = vpop.permute.xlu1 %5119  ;;  %v2099_v4 = vmul.f32 %v12001_v59, %v1709_v52  ;;  %v4358_v23 = vadd.f32 %v4310_v10, %v4118_v16  ;;  %v4362_v36 = vadd.f32 %v4314_v25, %v4122_v29  ;;  %v12027_v58 = vld [vmem:[#allocation97_spill] sm:$0xff]  ;;  %v12032_v10 = vld [vmem:[#allocation196_spill] sm:$0xff]  ;;  %v6646_v16 = vld [vmem:[#allocation2 + $0x1b2] sm:$0xff] }
 0x694   : > { %v10583_v41 = vpop.permute.xlu0 %4681  ;;  %v2584_v42 = vadd.f32 %v12027_v58, %v2104_v63  ;;  %v12028_v30 = vld [vmem:[#allocation101_spill] sm:$0xff]  ;;  %v3248_v46 = vadd.f32 %v3200_v61, %v3008_v43  ;;  %v12029_v19 = vcombine.low %v10123_v20, %v10126_v39  ;;  %v12030_v15 = vcombine.high %v10227_v0, %v10236_v54  ;;  %v12033_v63 = vld [vmem:[#allocation204_spill] sm:$0xff]  ;;  %v12034_v55 = vld [vmem:[#allocation90_spill] sm:$0xff] }
 0x695   : > { %v2588_v8 = vadd.f32 %v12028_v30, %v2108_v48  ;;  %v3677_v59 = vadd.f32 %v12031_v57, %v3245_v44  ;;  %v3681_v25 = vadd.f32 %v12032_v10, %v3249_v34  ;;  %v4790_v47 = vadd.f32 %v10337_v56, %v4358_v23  ;;  %v6645_v43 = vld [vmem:[#allocation2 + $0x182] sm:$0xff]  ;;  %v12035_v44 = vld [vmem:[#allocation95_spill] sm:$0xff] }
 0x696   : > { %6192 = vrot.lane.b32.xlu0 %v12029_v19, %s6730_s22  ;;  %6158 = vrot.lane.b32.xlu1 %v12030_v15, %s6735_s14  ;;  %v4794_v11 = vadd.f32 %v10365_v22, %v4362_v36  ;;  %v3689_v61 = vadd.f32 %v12033_v63, %v3257_v6  ;;  %v4301_v48 = vmul.f32 %v6645_v43, %v11997_v33  ;;  %v12036_v34 = vld [vmem:[#allocation199_spill] sm:$0xff]  ;;  %v12038_v36 = vld [vmem:[#allocation122_spill] sm:$0xff]  ;;  %v12044_v57 = vld [vmem:[#allocation145_spill] sm:$0xff] }
 0x697   : > { %v4305_v29 = vmul.f32 %v6646_v16, %v12000_v53  ;;  %v2575_v58 = vadd.f32 %v12034_v55, %v2095_v17  ;;  %v5128_v0 = vpop.permute.xlu1 %5127  ;;  %v2579_v32 = vadd.f32 %v12035_v44, %v2099_v4  ;;  %v3684_v52 = vadd.f32 %v12036_v34, %v3252_v50  ;;  %v12037_v6 = vld [vmem:[#allocation119_spill] sm:$0xff]  ;;  %v12042_v50 = vld [vmem:[#allocation214_spill] sm:$0xff]  ;;  %v12048_v34 = vld [vmem:[#allocation221_spill] sm:$0xff] }
 0x698   : > { %v10604_v54 = vpop.permute.xlu0 %4689  ;;  %v10608_v56 = vadd.f32 %v5120_v24, %v4790_v47  ;;  %v10610_v22 = vadd.f32 %v5128_v0, %v4794_v11  ;;  %v3016_v23 = vadd.f32 %v12037_v6, %v2584_v42  ;;  %v3020_v33 = vadd.f32 %v12038_v36, %v2588_v8  ;;  %v12039_v30 = vld [vmem:[#allocation195_spill] sm:$0xff]  ;;  %v12043_v4 = vld [vmem:[#allocation218_spill] sm:$0xff]  ;;  %v12045_v47 = vld [vmem:[#allocation200_spill] sm:$0xff] }
 0x699   : > { %v3680_v19 = vadd.f32 %v12039_v30, %v3248_v46  ;;  %v12040_v53 = vcombine.low %v10363_v37, %v10358_v35  ;;  %v12041_v17 = vcombine.high %v10464_v9, %v10473_v2  ;;  %v4109_v24 = vadd.f32 %v12042_v50, %v3677_v59  ;;  %v6647_v8 = vld [vmem:[#allocation2 + $0x231] sm:$0xff] }
 0x69a   : > { %v4113_v15 = vadd.f32 %v12043_v4, %v3681_v25  ;;  %v5941_v42 = vcombine.low %v10608_v56, %v10610_v22  ;;  %v5942_v46 = vcombine.high %v10608_v56, %v10610_v22  ;;  %v3212_v10 = vmul.f32 %v6647_v8, %v12044_v57  ;;  %v12046_v63 = vld [vmem:[#allocation226_spill] sm:$0xff]  ;;  %v1713_v16 = vld [vmem:[#allocation2 + $0x1f8] sm:$0xff]  ;;  %v12052_v8 = vld [vmem:[#allocation248_spill] sm:$0xff] }
 0x69b   : > { %6108 = vrot.lane.b32.xlu0 %v12040_v53, %s6730_s22  ;;  %6074 = vrot.lane.b32.xlu1 %v12041_v17, %s6735_s14  ;;  %v3685_v11 = vadd.f32 %v12045_v47, %v10547_v3  ;;  %v4121_v43 = vadd.f32 %v12046_v63, %v3689_v61  ;;  %v12047_v9 = vld [vmem:[#allocation106_spill] sm:$0xff]  ;;  %v5102_v59 = vpop.permute.xlu1 %5101  ;;  %v2103_v25 = vmul.f32 %v12021_v38, %v1713_v16  ;;  %v1717_v53 = vld [vmem:[#allocation2 + $0x228] sm:$0xff] }
 0x69c   : > { %v3007_v2 = vadd.f32 %v12047_v9, %v2575_v58  ;;  %v10634_v55 = vpop.permute.xlu0 %4697  ;;  %v4349_v0 = vadd.f32 %v4301_v48, %v4109_v24  ;;  %v4353_v44 = vadd.f32 %v4305_v29, %v4113_v15  ;;  %v4116_v6 = vadd.f32 %v12048_v34, %v3684_v52  ;;  %v12049_v36 = vld [vmem:[#allocation110_spill] sm:$0xff]  ;;  %v12050_v17 = vld [vmem:[#allocation217_spill] sm:$0xff]  ;;  %v12054_v9 = vld [vmem:[#allocation100_spill] sm:$0xff] }
 0x69d   : > { %v3011_v30 = vadd.f32 %v12049_v36, %v2579_v32  ;;  %v4112_v50 = vadd.f32 %v12050_v17, %v3680_v19  ;;  %v3256_v3 = vadd.f32 %v3208_v49, %v3016_v23  ;;  %v3260_v4 = vadd.f32 %v3212_v10, %v3020_v33  ;;  %v6648_v58 = vld [vmem:[#allocation2 + $0x1d2] sm:$0xff]  ;;  %v6649_v32 = vld [vmem:[#allocation2 + $0x1a2] sm:$0xff] }
 0x69e   : > { %v12051_v61 = vcombine.low %v10230_v28, %v10239_v27  ;;  %v4308_v47 = vmul.f32 %v6648_v58, %v12052_v8  ;;  %v2107_v38 = vmul.f32 %v12022_v45, %v1717_v53  ;;  %v4781_v48 = vadd.f32 %v10401_v1, %v4349_v0  ;;  %v12053_v52 = vld [vmem:[#allocation246_spill] sm:$0xff]  ;;  %v6650_v19 = vld [vmem:[#allocation2 + $0x1e2] sm:$0xff]  ;;  %v12055_v0 = vld [vmem:[#allocation203_spill] sm:$0xff] }
 0x69f   : > { %v4785_v29 = vadd.f32 %v10438_v31, %v4353_v44  ;;  %v4304_v24 = vmul.f32 %v6649_v32, %v12053_v52  ;;  %v4309_v49 = vmul.f32 %v6650_v19, %v12016_v5  ;;  %v6651_v23 = vld [vmem:[#allocation2 + $0x212] sm:$0xff]  ;;  %v3247_v15 = vadd.f32 %v10527_v12, %v3007_v2  ;;  %v5110_v10 = vpop.permute.xlu1 %5109  ;;  %v12063_v19 = vld [vmem:[#allocation225_spill] sm:$0xff] }
 0x6a0   : > { %6170 = vrot.lane.b32.xlu1 %v12051_v61, %s6732_s8  ;;  %v4313_v33 = vmul.f32 %v6651_v23, %v12018_v14  ;;  %v5108_v63 = vpop.permute.xlu0 %5107  ;;  %v2583_v16 = vadd.f32 %v12054_v9, %v2103_v25  ;;  %v4356_v45 = vadd.f32 %v4308_v47, %v4116_v6  ;;  %v10653_v34 = vadd.f32 %v5102_v59, %v4781_v48  ;;  %v12056_v36 = vld [vmem:[#allocation207_spill] sm:$0xff]  ;;  %v12058_v14 = vld [vmem:[#allocation105_spill] sm:$0xff]  ;;  %v12059_v25 = vld [vmem:[#allocation168_spill] sm:$0xff] }
 0x6a1   : > { %v10655_v1 = vadd.f32 %v5110_v10, %v4785_v29  ;;  %v4352_v31 = vadd.f32 %v4304_v24, %v4112_v50  ;;  %v3688_v44 = vadd.f32 %v12055_v0, %v3256_v3  ;;  %v3692_v53 = vadd.f32 %v12056_v36, %v3260_v4  ;;  %v6652_v50 = vld [vmem:[#allocation2 + $0x1f9] sm:$0xff]  ;;  %v12060_v4 = vld [vmem:[#allocation222_spill] sm:$0xff]  ;;  %v12064_v10 = vld [vmem:[#allocation229_spill] sm:$0xff] }
 0x6a2   : > { %v3251_v5 = vadd.f32 %v10578_v21, %v3011_v30  ;;  %v12057_v12 = vcombine.low %v10467_v60, %v10476_v13  ;;  %v2587_v2 = vadd.f32 %v12058_v14, %v2107_v38  ;;  %v4788_v6 = vadd.f32 %v12059_v25, %v4356_v45  ;;  %v12061_v58 = vld [vmem:[#allocation115_spill] sm:$0xff]  ;;  %v12062_v48 = vld [vmem:[#allocation164_spill] sm:$0xff]  ;;  %v12065_v45 = vld [vmem:[#allocation194_spill] sm:$0xff] }
 0x6a3   : > { %v5501_v59 = vcombine.low %v10653_v34, %v10655_v1  ;;  %v5502_v17 = vcombine.high %v10653_v34, %v10655_v1  ;;  %v3207_v3 = vmul.f32 %v6652_v50, %v12026_v51  ;;  %v4117_v21 = vadd.f32 %v12060_v4, %v3685_v11  ;;  %v5118_v30 = vpop.permute.xlu1 %5117  ;;  %v12067_v11 = vld [vmem:[#allocation120_spill] sm:$0xff]  ;;  %v12069_v14 = vld [vmem:[#allocation198_spill] sm:$0xff]  ;;  %v12072_v4 = vld [vmem:[#allocation165_spill] sm:$0xff] }
 0x6a4   : > { %6086 = vrot.lane.b32.xlu1 %v12057_v12, %s6732_s8  ;;  %v5116_v61 = vpop.permute.xlu0 %5115  ;;  %v3015_v47 = vadd.f32 %v12061_v58, %v2583_v16  ;;  %v4784_v29 = vadd.f32 %v12062_v48, %v4352_v31  ;;  %v4361_v38 = vadd.f32 %v4313_v33, %v4121_v43  ;;  %v4120_v23 = vadd.f32 %v12063_v19, %v3688_v44  ;;  %v12068_v12 = vld [vmem:[#allocation173_spill] sm:$0xff]  ;;  %v12070_v25 = vld [vmem:[#allocation250_spill] sm:$0xff] }
 0x6a5   : > { %v5220_v32 = vadd.f32 %v5116_v61, %v4788_v6  ;;  %v4357_v24 = vadd.f32 %v4309_v49, %v4117_v21  ;;  %v4124_v9 = vadd.f32 %v12064_v10, %v3692_v53  ;;  %v3679_v0 = vadd.f32 %v12065_v45, %v3247_v15  ;;  %v6653_v33 = vld [vmem:[#allocation2 + $0x229] sm:$0xff]  ;;  %v6655_v6 = vld [vmem:[#allocation2 + $0x232] sm:$0xff]  ;;  %v12071_v15 = vld [vmem:[#allocation252_spill] sm:$0xff] }
 0x6a6   : > { %v12066_v51 = vcombine.high %v10230_v28, %v10239_v27  ;;  %v3019_v36 = vadd.f32 %v12067_v11, %v2587_v2  ;;  %v4793_v16 = vadd.f32 %v12068_v12, %v4361_v38  ;;  %v3683_v31 = vadd.f32 %v12069_v14, %v3251_v5  ;;  %v6654_v44 = vld [vmem:[#allocation2 + $0x202] sm:$0xff]  ;;  %v6656_v12 = vld [vmem:[#allocation2 + $0x19a] sm:$0xff] }
 0x6a7   : > { %v5216_v43 = vadd.f32 %v5108_v63, %v4784_v29  ;;  %v3211_v49 = vmul.f32 %v6653_v33, %v12044_v57  ;;  %v4312_v53 = vmul.f32 %v6654_v44, %v12070_v25  ;;  %v4316_v50 = vmul.f32 %v6655_v6, %v12071_v15  ;;  %v5126_v28 = vpop.permute.xlu1 %5125  ;;  %v12074_v38 = vld [vmem:[#allocation216_spill] sm:$0xff]  ;;  %v12080_v33 = vld [vmem:[#allocation137_spill] sm:$0xff] }
 0x6a8   : > { %6182 = vrot.lane.b32.xlu1 %v12066_v51, %s6733_s9  ;;  %v4789_v21 = vadd.f32 %v12072_v4, %v4357_v24  ;;  %v5124_v27 = vpop.permute.xlu0 %5123  ;;  %v3255_v61 = vadd.f32 %v3207_v3, %v3015_v47  ;;  %v10688_v48 = vadd.f32 %v5126_v28, %v4793_v16  ;;  %v12073_v57 = vcombine.high %v10467_v60, %v10476_v13  ;;  %v12075_v10 = vld [vmem:[#allocation220_spill] sm:$0xff]  ;;  %v12078_v60 = vld [vmem:[#allocation71_spill] sm:$0xff]  ;;  %v6657_v16 = vld [vmem:[#allocation2 + $0x1ca] sm:$0xff] }
 0x6a9   : > { %v5925_v2 = vcombine.low %v5216_v43, %v5220_v32  ;;  %v5926_v58 = vcombine.high %v5216_v43, %v5220_v32  ;;  %v4360_v5 = vadd.f32 %v4312_v53, %v4120_v23  ;;  %v4364_v63 = vadd.f32 %v4316_v50, %v4124_v9  ;;  %v12076_v51 = vld [vmem:[#allocation176_spill] sm:$0xff]  ;;  %v12077_v9 = vld [vmem:[#allocation202_spill] sm:$0xff]  ;;  %v12079_v43 = vld [vmem:[#allocation139_spill] sm:$0xff] }
 0x6aa   : > { %v10690_v29 = vadd.f32 %v5118_v30, %v4789_v21  ;;  %v4111_v19 = vadd.f32 %v12074_v38, %v3679_v0  ;;  %v4115_v24 = vadd.f32 %v12075_v10, %v3683_v31  ;;  %v3259_v45 = vadd.f32 %v3211_v49, %v3019_v36  ;;  %v6658_v44 = vld [vmem:[#allocation2 + $0x1fa] sm:$0xff]  ;;  %v12084_v4 = vld [vmem:[#allocation206_spill] sm:$0xff] }
 0x6ab   : > { %v4792_v3 = vadd.f32 %v12076_v51, %v4360_v5  ;;  %v4796_v47 = vadd.f32 %v10532_v40, %v4364_v63  ;;  %v3687_v11 = vadd.f32 %v12077_v9, %v3255_v61  ;;  %v5933_v13 = vrot.slane %v5925_v2, %v12078_v60  ;;  %v12085_v5 = vld [vmem:[#allocation224_spill] sm:$0xff] }
 0x6ac   : > { %6098 = vrot.lane.b32.xlu1 %v12073_v57, %s6733_s9  ;;  %v5533_v32 = vcombine.low %v10690_v29, %v10688_v48  ;;  %v5534_v30 = vcombine.high %v10690_v29, %v10688_v48  ;;  %v5132_v23 = vpop.permute.xlu0 %5131  ;;  %v5940_v0 = vrot.slane %v5926_v58, %v12078_v60  ;;  %v4303_v36 = vmul.f32 %v6656_v12, %v12053_v52 }
 0x6ad   : > { %v4307_v14 = vmul.f32 %v6657_v16, %v12052_v8  ;;  %v5224_v40 = vadd.f32 %v5124_v27, %v4792_v3  ;;  %v5228_v31 = vadd.f32 %v5132_v23, %v4796_v47  ;;  %v12081_v49 = vcombine.low %v12079_v43, %v12080_v33  ;;  %v12088_v47 = vld [vmem:[#allocation228_spill] sm:$0xff] }
 0x6ae   : > { %v4311_v53 = vmul.f32 %v6658_v44, %v12070_v25  ;;  %v12082_v6 = vcombine.low %v10559_v62, %v10561_v26  ;;  %v12083_v52 = vcombine.high %v10559_v62, %v10561_v26  ;;  %v3691_v21 = vadd.f32 %v12084_v4, %v3259_v45  ;;  %v12087_v45 = vld [vmem:[#allocation177_spill] sm:$0xff]  ;;  %v6264_v4 = vld [vmem:[%s10972_s4 + $0x10] sm:$0xff] }
 0x6af   : > { %v4351_v28 = vadd.f32 %v4303_v36, %v4111_v19  ;;  %v4355_v27 = vadd.f32 %v4307_v14, %v4115_v24  ;;  %v5957_v61 = vcombine.low %v5224_v40, %v5228_v31  ;;  %v5958_v2 = vcombine.high %v5224_v40, %v5228_v31  ;;  %v6659_v44 = vld [vmem:[#allocation2 + $0x22a] sm:$0xff] }
 0x6b0   : > { %6194 = vrot.lane.b32.xlu1 %v12081_v49, %s6730_s22  ;;  %v5917_v50 = vrot.slane %v12082_v6, %v12078_v60  ;;  %v5924_v8 = vrot.slane %v12083_v52, %v12078_v60  ;;  %v5106_v58 = vpop.permute.xlu0 %5105  ;;  %v4119_v63 = vadd.f32 %v12085_v5, %v3687_v11  ;;  %v5949_v10 = vrot.slane %v5941_v42, %v12078_v60 }
 0x6b1   : > { %v5956_v62 = vrot.slane %v5942_v46, %v12078_v60  ;;  %v5965_v26 = vrot.slane %v5957_v61, %v12078_v60  ;;  %v5972_v19 = vrot.slane %v5958_v2, %v12078_v60  ;;  %v12086_v24 = vcombine.low %v10489_v18, %v10479_v7 }
 0x6b2   : > { %v5973_v25 = vcombine.low %v5917_v50, %v5933_v13  ;;  %v5974_v57 = vcombine.high %v5917_v50, %v5933_v13  ;;  %v5989_v38 = vcombine.low %v5924_v8, %v5940_v0  ;;  %v4783_v51 = vadd.f32 %v12087_v45, %v4351_v28  ;;  %v12089_v13 = vld [vmem:[#allocation72_spill] sm:$0xff] }
 0x6b3   : > { %v4787_v3 = vadd.f32 %v10583_v41, %v4355_v27  ;;  %v4123_v42 = vadd.f32 %v12088_v47, %v3691_v21  ;;  %v5990_v23 = vcombine.high %v5924_v8, %v5940_v0  ;;  %v6005_v9 = vcombine.low %v5949_v10, %v5965_v26 }
 0x6b4   : > { %6110 = vrot.lane.b32.xlu1 %v12086_v24, %s6730_s22  ;;  %v6006_v11 = vcombine.high %v5949_v10, %v5965_v26  ;;  %v6021_v56 = vcombine.low %v5956_v62, %v5972_v19  ;;  %v6022_v22 = vcombine.high %v5956_v62, %v5972_v19  ;;  %v5114_v46 = vpop.permute.xlu0 %5113  ;;  %v10742_v12 = vrot.slane %v5973_v25, %v12089_v13 }
 0x6b5   : > { %v5988_v36 = vrot.slane %v5974_v57, %v12089_v13  ;;  %v10746_v16 = vrot.slane %v5989_v38, %v12089_v13  ;;  %v5219_v14 = vadd.f32 %v5114_v46, %v4787_v3  ;;  %v10749_v40 = vrot.slane %v6005_v9, %v12089_v13 }
 0x6b6   : > { %v6020_v41 = vrot.slane %v6006_v11, %v12089_v13  ;;  %v10753_v0 = vrot.slane %v6021_v56, %v12089_v13  ;;  %v10756_v31 = vrot.slane %v6022_v22, %v12089_v13  ;;  %v12090_v49 = vcombine.high %v10123_v20, %v10126_v39 }
 0x6b7   : > { %v4315_v6 = vmul.f32 %v6659_v44, %v12071_v15  ;;  %v4359_v50 = vadd.f32 %v4311_v53, %v4119_v63  ;;  %v10764_v52 = vrot.slane %v5990_v23, %v12089_v13  ;;  %v5215_v8 = vadd.f32 %v5106_v58, %v4783_v51  ;;  %v6293_v44 = vld [vmem:[%s10974_s6] sm:$0xf] }
 0x6b8   : > { %6204 = vrot.lane.b32.xlu1 %v12090_v49, %s6731_s29  ;;  %v5122_v21 = vpop.permute.xlu0 %5121  ;;  %v6038_v28 = vcombine.high %v10742_v12, %v10749_v40  ;;  %v6039_v27 = vcombine.low %v5988_v36, %v6020_v41  ;;  %v6040_v61 = vcombine.high %v5988_v36, %v6020_v41  ;;  %v6041_v20 = vcombine.low %v10746_v16, %v10753_v0 }
 0x6b9   : > { %v4363_v39 = vadd.f32 %v4315_v6, %v4123_v42  ;;  %v5517_v15 = vcombine.low %v5215_v8, %v5219_v14  ;;  %v5518_v53 = vcombine.high %v5215_v8, %v5219_v14  ;;  %v6042_v2 = vcombine.high %v10746_v16, %v10753_v0 }
 0x6ba   : > { %6136 = vrot.lane.b32.xlu0 %v6038_v28, %s6736_s15  ;;  %v6043_v58 = vcombine.low %v10764_v52, %v10756_v31  ;;  %v6044_v5 = vcombine.high %v10764_v52, %v10756_v31  ;;  %v6037_v63 = vcombine.low %v10742_v12, %v10749_v40  ;;  %v4791_v25 = vadd.f32 %v10604_v54, %v4359_v50 }
 0x6bb   : > { %v4795_v57 = vadd.f32 %v10634_v55, %v4363_v39  ;;  %v5525_v10 = vrot.slane %v5517_v15, %v12078_v60  ;;  %v5532_v62 = vrot.slane %v5518_v53, %v12078_v60  ;;  %v12091_v24 = vcombine.high %v10363_v37, %v10358_v35 }
 0x6bc   : > { %6277 = vperm.xlu1 %6563, %v6264_v4   ;;  %v5130_v38 = vpop.permute.xlu0 %5129  ;;  %v5223_v26 = vadd.f32 %v5122_v21, %v4791_v25  ;;  %v12092_v45 = vcombine.high %v12079_v43, %v12080_v33  ;;  %v5509_v54 = vrot.slane %v5501_v59, %v12078_v60  ;;  %v5516_v55 = vrot.slane %v5502_v17, %v12078_v60 }
 0x6bd   : > { %v5227_v19 = vadd.f32 %v5130_v38, %v4795_v57  ;;  %v5541_v43 = vrot.slane %v5533_v32, %v12078_v60  ;;  %v5548_v59 = vrot.slane %v5534_v30, %v12078_v60 }
 0x6be   : > { %6206 = vrot.lane.b32.xlu0 %v12092_v45, %s6731_s29  ;;  %v5565_v47 = vcombine.low %v5509_v54, %v5525_v10  ;;  %v5566_v35 = vcombine.high %v5509_v54, %v5525_v10  ;;  %v5581_v37 = vcombine.low %v5516_v55, %v5532_v62  ;;  %v5582_v1 = vcombine.high %v5516_v55, %v5532_v62  ;;  %v12095_v45 = vld [vmem:[#allocation131_spill] sm:$0xff] }
 0x6bf   : > { %v5549_v51 = vcombine.low %v5223_v26, %v5227_v19  ;;  %v5550_v3 = vcombine.high %v5223_v26, %v5227_v19 }
 0x6c0   : > { %6120 = vrot.lane.b32.xlu1 %v12091_v24, %s6731_s29  ;;  %v10814_v11 = vrot.slane %v5565_v47, %v12089_v13  ;;  %v5580_v32 = vrot.slane %v5566_v35, %v12089_v13  ;;  %v5589_v56 = vrot.slane %v5581_v37, %v12089_v13  ;;  %v5596_v22 = vrot.slane %v5582_v1, %v12089_v13  ;;  %v12094_v24 = vld [vmem:[#allocation134_spill] sm:$0xff] }
 0x6c1   : > { %v5557_v33 = vrot.slane %v5549_v51, %v12078_v60  ;;  %v5564_v34 = vrot.slane %v5550_v3, %v12078_v60  ;;  %v12096_v54 = vcombine.low %v12094_v24, %v12095_v45 }
 0x6c3   : > { %v5597_v17 = vcombine.low %v5541_v43, %v5557_v33  ;;  %v5598_v42 = vcombine.high %v5541_v43, %v5557_v33  ;;  %v5613_v23 = vcombine.low %v5548_v59, %v5564_v34  ;;  %v5614_v9 = vcombine.high %v5548_v59, %v5564_v34  ;;  %v12097_v43 = vld [vmem:[#allocation133_spill] sm:$0xff]  ;;  %v12098_v59 = vld [vmem:[#allocation135_spill] sm:$0xff] }
 0x6c4   : > { %6148 = vrot.lane.b32.xlu1 %v6039_v27, %s6734_s13  ;;  %v12099_v33 = vcombine.low %v12097_v43, %v12098_v59 }
 0x6c5   : > { %v10819_v48 = vrot.slane %v5597_v17, %v12089_v13  ;;  %v5612_v29 = vrot.slane %v5598_v42, %v12089_v13  ;;  %v5621_v30 = vrot.slane %v5613_v23, %v12089_v13  ;;  %v5628_v60 = vrot.slane %v5614_v9, %v12089_v13 }
 0x6c6   : > { %v12093_v13 = vcombine.high %v10489_v18, %v10479_v7 }
 0x6c7   : > { %v5630_v46 = vcombine.high %v10814_v11, %v10819_v48  ;;  %v5631_v36 = vcombine.low %v5580_v32, %v5612_v29  ;;  %v5632_v16 = vcombine.high %v5580_v32, %v5612_v29  ;;  %v5633_v14 = vcombine.low %v5589_v56, %v5621_v30 }
 0x6c8   : > { %6160 = vrot.lane.b32.xlu1 %v6040_v61, %s6735_s14  ;;  %v5634_v41 = vcombine.high %v5589_v56, %v5621_v30  ;;  %v5635_v0 = vcombine.low %v5596_v22, %v5628_v60  ;;  %v5636_v31 = vcombine.high %v5596_v22, %v5628_v60  ;;  %v5629_v49 = vcombine.low %v10814_v11, %v10819_v48 }
 0x6c9   : > { %6052 = vrot.lane.b32.xlu0 %v5630_v46, %s6736_s15 }
 0x6cc   : > { %6172 = vrot.lane.b32.xlu1 %v6041_v20, %s6732_s8 }
 0x6cd   : > { %6122 = vrot.lane.b32.xlu0 %v12093_v13, %s6731_s29  ;;  %v6133_v6 = vpop.permute.xlu1 %6132 }
 0x6ce   : > { %v6241_v55 = vsel %vm6213_vm5, %v12096_v54, %v6133_v6 }
 0x6d0   : > { %6184 = vrot.lane.b32.xlu1 %v6042_v2, %s6733_s9 }
 0x6d1   : > { %6064 = vrot.lane.b32.xlu0 %v5631_v36, %s6734_s13  ;;  %s6475_s13 = sshll.u32 %s6810_s28, 7  ;;  %s6748_s28 = smov [#allocation3]  }
 0x6d2   : > { %s10926_s17 = scalar_lea.hbm %s10975_s7, %s6475_s13  ;;  %s6665_s19 = sshll.u32 %s6748_s28, 4  ;;  %s6666_s19 = int_to_ptr.vmem [resolvable:$false] %s6665_s19 }
 0x6d3   : > { %s6667_s20 = scalar_lea.vmem %s6666_s19, 256 }
 0x6d4   : > { %6196 = vrot.lane.b32.xlu1 %v6043_v58, %s6730_s22 }
 0x6d5   : > { %6076 = vrot.lane.b32.xlu0 %v5632_v16, %s6735_s14 }
 0x6d8   : > { %6208 = vrot.lane.b32.xlu1 %v6044_v5, %s6731_s29 }
 0x6d9   : > { %6088 = vrot.lane.b32.xlu0 %v5633_v14, %s6732_s8  ;;  %s269_s8 = sand.u32 1, %s6715_s25  }
 0x6da   : > { %s6383_s18 = scalar_lea.sflag [#allocation4], %s269_s8 }
 0x6dc   : > { %6296 = vperm.xlu1 %6563, %v6293_v44   ;;  %v6135_v7 = vpop.permute.xlu0 %6134 }
 0x6dd   : > { %6100 = vrot.lane.b32.xlu0 %v5634_v41, %s6733_s9  ;;  %v6242_v34 = vsel %vm6213_vm5, %v12099_v33, %v6135_v7  ;;  %s6460_s9 = sshll.u32 %s269_s8, 3 }
 0x6de   : > { %v10850_v50 = vpop.permute.xlu1 %6267  ;;  %s271_s14 = scalar_lea.vmem [#allocation3], %s6460_s9 }
 0x6df   : > { %s6397_s15 = sshll.u32 %s271_s14, 4  ;;  %s10928_s15 = int_to_ptr.vmem [resolvable:$true] %s6397_s15 }
 0x6e0   : > { %p6668_p0 = scmp.lt.s32.totalorder %s10928_s15, %s6666_s19 }
 0x6e1   : > { %6112 = vrot.lane.b32.xlu0 %v5635_v0, %s6730_s22  ;;  %v12100_v0 = vld [vmem:[#allocation160_spill] sm:$0xff] }
 0x6e5   : > { %6124 = vrot.lane.b32.xlu0 %v5636_v31, %s6731_s29  ;;  %v12101_v31 = vld [vmem:[#allocation161_spill] sm:$0xff] }
 0x6e6   : > { %v12102_v13 = vcombine.low %v12100_v0, %v12101_v31  ;;  %v6660_v31 = vld [vmem:[%s6857_s23] sm:$0xff]  ;;  %s6661_s23 = scalar_lea.vmem %s10928_s15, 128 }
 0x6e7   : > { %p6662_p11 = scmp.ne.s32.totalorder %s10928_s15, %s6661_s23  ;;  %p6669_p1 = scmp.lt.s32.totalorder %s6667_s20, %s6661_s23 }
 0x6e9   : > { %p6663_p12 = pnand %p6662_p11, %p6827_p5  ;;  %p6670_p2 = por %p6669_p1, %p6668_p0 }
 0x6eb   : > { %v6049_v8 = vpop.permute.xlu1 %6048  ;;  %p6664_p13 = pneg %p6663_p12 }
 0x6ec   : > { %v6214_v44 = vsel %vm6213_vm5, %v12102_v13, %v6049_v8 }
 0x6ed   : > { %v10848_v18 = vpop.permute.xlu0 %6272  ;;  %p6671_p3 = pnand %p6670_p2, %p6664_p13 }
 0x6f1   : > { %v6145_v52 = vpop.permute.xlu0 %6144 }
 0x6f2   : > { %v6244_v51 = vsel %vm6217_vm6, %v6241_v55, %v6145_v52 }
 0x6f5   : > { %v6061_v4 = vpop.permute.xlu0 %6060 }
 0x6f6   : > { %v6218_v7 = vsel %vm6217_vm6, %v6214_v44, %v6061_v4  ;;  %v12106_v44 = vld [vmem:[#allocation6_spill] sm:$0xff] }
 0x6f9   : > { %v6157_v28 = vpop.permute.xlu0 %6156 }
 0x6fa   : > { %v6247_v47 = vsel %vm6221_vm7, %v6244_v51, %v6157_v28  ;;  %v12103_v28 = vld [vmem:[#allocation169_spill] sm:$0xff] }
 0x6fb   : > { %v6051_v21 = vpop.permute.xlu1 %6050 }
 0x6fd   : > { %v6073_v61 = vpop.permute.xlu0 %6072 }
 0x6fe   : > { %v6222_v52 = vsel %vm6221_vm7, %v6218_v7, %v6073_v61 }
 0x700   : > { %v6147_v27 = vpop.permute.xlu1 %6146 }
 0x701   : > { %v6169_v15 = vpop.permute.xlu0 %6168  ;;  %v6245_v17 = vsel %vm6217_vm6, %v6242_v34, %v6147_v27  ;;  %v12104_v27 = vld [vmem:[#allocation172_spill] sm:$0xff] }
 0x702   : > { %v6250_v35 = vsel %vm6225_vm8, %v6247_v47, %v6169_v15 }
 0x704   : > { %v6063_v20 = vpop.permute.xlu1 %6062 }
 0x705   : > { %v6085_v2 = vpop.permute.xlu0 %6084 }
 0x708   : > { %v6159_v39 = vpop.permute.xlu1 %6158 }
 0x709   : > { %v6181_v25 = vpop.permute.xlu0 %6180  ;;  %v6248_v9 = vsel %vm6221_vm7, %v6245_v17, %v6159_v39  ;;  %v12105_v39 = vcombine.low %v12103_v28, %v12104_v27 }
 0x70a   : > { %v6253_v1 = vsel %vm6229_vm9, %v6250_v35, %v6181_v25 }
 0x70b   : > { %v6215_v15 = vsel %vm6213_vm5, %v12105_v39, %v6051_v21 }
 0x70c   : > { %v6219_v25 = vsel %vm6217_vm6, %v6215_v15, %v6063_v20 }
 0x70d   : > { %v6075_v53 = vpop.permute.xlu1 %6074  ;;  %v6097_v38 = vpop.permute.xlu0 %6096 }
 0x70e   : > { %v6223_v8 = vsel %vm6221_vm7, %v6219_v25, %v6075_v53 }
 0x711   : > { %v6193_v26 = vpop.permute.xlu0 %6192 }
 0x712   : > { %v6171_v58 = vpop.permute.xlu1 %6170  ;;  %v6256_v42 = vsel %vm6233_vm10, %v6253_v1, %v6193_v26 }
 0x713   : > { %v6251_v56 = vsel %vm6225_vm8, %v6248_v9, %v6171_v58  ;;  %v6226_v58 = vsel %vm6225_vm8, %v6222_v52, %v6085_v2 }
 0x715   : > { %v6109_v3 = vpop.permute.xlu0 %6108 }
 0x716   : > { %v6087_v5 = vpop.permute.xlu1 %6086 }
 0x717   : > { %v6227_v24 = vsel %vm6225_vm8, %v6223_v8, %v6087_v5 }
 0x71a   : > { %v6183_v57 = vpop.permute.xlu1 %6182 }
 0x71b   : > { %v6254_v29 = vsel %vm6229_vm9, %v6251_v56, %v6183_v57  ;;  %v6230_v57 = vsel %vm6229_vm9, %v6226_v58, %v6097_v38 }
 0x71c   : > { %v6234_v26 = vsel %vm6233_vm10, %v6230_v57, %v6109_v3 }
 0x71e   : > { %v6099_v10 = vpop.permute.xlu1 %6098 }
 0x71f   : > { %v6231_v45 = vsel %vm6229_vm9, %v6227_v24, %v6099_v10 }
 0x722   : > { %v6195_v62 = vpop.permute.xlu1 %6194 }
 0x723   : > { %v6257_v30 = vsel %vm6233_vm10, %v6254_v29, %v6195_v62 }
 0x726   : > { %v6111_v19 = vpop.permute.xlu1 %6110 }
 0x727   : > { %v6235_v21 = vsel %vm6233_vm10, %v6231_v45, %v6111_v19 }
 0x72a   : > { %v6205_v37 = vpop.permute.xlu1 %6204 }
 0x72b   : > { %v6259_v32 = vsel %vm6237_vm11, %v6256_v42, %v6205_v37 }
 0x72c   : > { %v6137_v23 = vpop.permute.xlu0 %6136  ;;  %v6281_v22 = vadd.f32 %v10850_v50, %v6259_v32 }
 0x72e   : > { %v6287_v16 = vmax.f32 %v6281_v22, 0.0 }
 0x730   : > { %v6207_v60 = vpop.permute.xlu0 %6206 }
 0x731   : > { %v6260_v46 = vsel %vm6237_vm11, %v6257_v30, %v6207_v60 }
 0x732   : > { %v6283_v36 = vadd.f32 %v10848_v18, %v6260_v46  ;;  %v6292_v46 = vld [vmem:[%s10973_s5] sm:$0xf] }
 0x734   : > { %v6289_v14 = vmax.f32 %v6283_v36, 0.0 }
 0x736   : > { %v6476_v41 = vpack.c.bf16 %v6289_v14, %v6287_v16 }
 0x738   : > { %6477 = vmatprep.subr.bf16.mxu1 %v6476_v41 }
 0x73b   : > { %v6278_v6 = vpop.permute.xlu1 %6277  ;;  %v6053_v62 = vpop.permute.xlu0 %6052 }
 0x73c   : > { %v6216_v34 = vsel %vm6213_vm5, %v5629_v49, %v6053_v62 }
 0x73f   : > { %v6121_v4 = vpop.permute.xlu1 %6120  ;;  %v6123_v54 = vpop.permute.xlu0 %6122 }
 0x740   : > { %v6238_v61 = vsel %vm6237_vm11, %v6234_v26, %v6121_v4  ;;  %v6239_v20 = vsel %vm6237_vm11, %v6235_v21, %v6123_v54 }
 0x741   : > { %v6280_v2 = vadd.f32 %v10850_v50, %v6238_v61  ;;  %v6282_v55 = vadd.f32 %v10848_v18, %v6239_v20  ;;  %v6243_v50 = vsel %vm6213_vm5, %v6037_v63, %v6137_v23 }
 0x743   : > { %v6149_v38 = vpop.permute.xlu1 %6148  ;;  %v6286_v53 = vmax.f32 %v6280_v2, 0.0  ;;  %v6288_v51 = vmax.f32 %v6282_v55, 0.0  ;;  %v6065_v3 = vpop.permute.xlu0 %6064 }
 0x744   : > { %v6246_v59 = vsel %vm6217_vm6, %v6243_v50, %v6149_v38  ;;  %v6220_v17 = vsel %vm6217_vm6, %v6216_v34, %v6065_v3 }
 0x745   : > { %v6478_v35 = vpack.c.bf16 %v6288_v51, %v6286_v53 }
 0x747   : > { %v6161_v47 = vpop.permute.xlu1 %6160  ;;  %v6077_v5 = vpop.permute.xlu0 %6076  ;;  %6479 = vmatpush1.bf16.msra.mxu1 %v6478_v35 }
 0x748   : > { %v6249_v18 = vsel %vm6221_vm7, %v6246_v59, %v6161_v47  ;;  %v6224_v40 = vsel %vm6221_vm7, %v6220_v17, %v6077_v5 }
 0x74b   : > { %v6173_v37 = vpop.permute.xlu1 %6172  ;;  %v6089_v43 = vpop.permute.xlu0 %6088 }
 0x74c   : > { %v6252_v1 = vsel %vm6225_vm8, %v6249_v18, %v6173_v37  ;;  %v6228_v9 = vsel %vm6225_vm8, %v6224_v40, %v6089_v43 }
 0x74f   : > { %v6185_v10 = vpop.permute.xlu1 %6184  ;;  %v6101_v19 = vpop.permute.xlu0 %6100 }
 0x750   : > { %v6255_v42 = vsel %vm6229_vm9, %v6252_v1, %v6185_v10  ;;  %v6232_v11 = vsel %vm6229_vm9, %v6228_v9, %v6101_v19 }
 0x753   : > { %v6197_v33 = vpop.permute.xlu1 %6196  ;;  %v6113_v12 = vpop.permute.xlu0 %6112 }
 0x754   : > { %v6258_v63 = vsel %vm6233_vm10, %v6255_v42, %v6197_v33  ;;  %v6236_v49 = vsel %vm6233_vm10, %v6232_v11, %v6113_v12 }
 0x757   : > { %v6209_v23 = vpop.permute.xlu1 %6208  ;;  %v6125_v56 = vpop.permute.xlu0 %6124 }
 0x758   : > { %v6261_v32 = vsel %vm6237_vm11, %v6258_v63, %v6209_v23  ;;  %v6240_v30 = vsel %vm6237_vm11, %v6236_v49, %v6125_v56 }
 0x759   : > { %v6285_v48 = vadd.f32 %v6278_v6, %v6261_v32  ;;  %v6284_v60 = vadd.f32 %v6278_v6, %v6240_v30 }
 0x75b   : > { %v6291_v29 = vmax.f32 %v6285_v48, 0.0  ;;  %v6290_v22 = vmax.f32 %v6284_v60, 0.0  ;;  %v6297_v36 = vpop.permute.xlu1 %6296 }
 0x75d   : > { %6307 = vmatprep.subr.mxu1 %v6291_v29 }
 0x75e   : > { %6308 = vmatpush1.msra.mxu1 %v6290_v22 }
 0x75f   : > { %6468 = vmatmul.mubr.msk.f32.vlgmr.msra.gmra.mrb[0].mxu1 %vm6299_vm12, %v6292_v46 }
 0x832   : > { %v6369_v16 = vpop.f32.mrb[0].mxu1 }
 0x833   : > { %v6370_v14 = vadd.f32 %v6369_v16, %v6297_v36  ;;  %v6371_v41 = vpop.f32.mrb[1].mxu1 }
 0x834   : > { %v6372_v0 = vadd.f32 %v6371_v41, %v6297_v36 }
 0x835   : > { %v6375_v13 = vadd.f32 %v6660_v31, %v6370_v14 }
 0x836   : > { %v6376_v7 = vadd.f32 %v6372_v0, %v12106_v44 }
 0x838   : > { %v6379_v6 = vcombine.low %v6375_v13, %v6376_v7 }
 0x83a   : > { %6381 = vst [vmem:[%s271_s14] sm:$0xff] %v6379_v6 }
 0x83b   : > { %6674 = shalt.err (!%p6671_p3)
}
 0x83c   : > { %s6675_s22 = scalar_lea.hbm %s10926_s17, 128  ;;  %s6679_s9 = scalar_lea.hbm %s10975_s7, 256 }
 0x83d   : > { %p6676_p4 = scmp.ne.s32.totalorder %s10926_s17, %s6675_s22  ;;  %p6680_p9 = scmp.lt.u32.totalorder %s10926_s17, %s10975_s7 }
 0x83e   : > { %p6681_p10 = scmp.lt.u32.totalorder %s6679_s9, %s6675_s22  ;;  %p6683_p12 = scmp.lt.u32.totalorder %s6675_s22, %s10926_s17 }
 0x83f   : > { %p6677_p7 = pnand %p6676_p4, %p6827_p5 }
 0x840   : > { %p6682_p11 = por %p6681_p10, %p6680_p9 }
 0x841   : > { %p6678_p8 = pneg %p6677_p7 }
 0x842   : > { %p6684_p13 = por %p6683_p12, %p6682_p11 }
 0x844   : > { %p6685_p0 = pnand %p6684_p13, %p6678_p8 }
 0x846   : > { %6688 = shalt.err (!%p6685_p0)
}
 0x847   : > { %6480 = dma.vmem_to_hbm [thread:$0]  (%p6827_p5), %s10928_s15, 128, %s10926_s17, %s6383_s18  }
 0x848 PF: > { %p6486_p1 = scmp.ge.s32.totalorder %s6723_s27, 2  ;;  %s6409_s21 = sand.u32 1, %s6711_s24  }
 0x849   : > { %s6410_s16 = scalar_lea.sflag [#allocation4], %s6409_s21 }
 0x84a   : > { %p6483_p2 = pnand %p6486_p1, %p6831_p6 }
 0x84c   : > { %6706 = dma.done.wait (!%p6483_p2), %s6410_s16, 128  }
 0x84d   : > { %6708 = vsyncadd (!%p6483_p2), %s6410_s16, 4294967168  ;;  %p17_p3 = scmp.ge.s32.totalorder %s6814_s30, 4   ;;  %s12107_s24 = smov %s6715_s25 }
 0x84e   : > { %s12108_s25 = smov %s6719_s26  ;;  %s12109_s26 = smov %s6825_s10 }
 0x84f   : > { %s12110_s27 = smov %s6814_s30  ;;  %19 = sbr.rel (!%p17_p3) target bundleno = 3 (0x3), region = 83 }
 0x856   :  { %6415 = vsyncpa [#allocation4], 1 }
 0x857   :  { %6417 = vsyncpa [#allocation4 + $0x1], 1 }

</bundles_post_ra>
